<compile_context>
chip_gen: v5e
topology: v5e:2x2
jax: 0.10.0
libtpu: 0.0.40
codegen_flags: <defaults>
</compile_context>

<pallas_src>
import jax
import jax.numpy as jnp
from jax import lax
from jax.experimental import pallas as pl
from jax.experimental.pallas import tpu as pltpu

GLOBAL_MAX = 32767.0
GLOBAL_MIN = -32768.0

# ---- model hyper-parameters --------------------------------------------------
LENGTH = 64                      # conv1 kernel size
STRIDE = 2048                    # conv1 stride -> full1 in_features = 65536//2048 = 32
L1 = 16                          # sequence length after conv1
POOL = 4
L2 = L1 // POOL                  # after first MaxPool1d(4)  -> 4
L3 = L2 // POOL                  # after second MaxPool1d(4) -> 1
C = 32                           # conv channel width
FEAT = C * L3                    # flattened features == 65536 // STRIDE == 32
SEQ_LEN = (L1 - 1) * STRIDE + LENGTH   # raw waveform length per (b, group) slice
GROUP = 10                       # forward reshapes to (batch, 10, 50)
K2 = 8                           # conv2 / conv3 kernel ('same': 3 left, 4 right)
PAD_L, PAD_R = 3, 4
HID1, HID2 = 100, 50
HID2_PAD = 128                   # lane-dense output slab (sliced to HID2 on host)


# ------------------------------- Pallas kernel -------------------------------
def model_kernel(patches_ref, w1_ref, b1_ref, w2_ref, b2_ref, w3_ref, b3_ref,
                 wf1_ref, bf1_ref, wf2_ref, bf2_ref, out_ref):
    BB = patches_ref.shape[0]            # batch elements handled this grid step
    BG = BB * GROUP                      # sequences handled this grid step
    R1 = BG * L1                         # conv-time rows handled this grid step

    # input normalisation: [-32768, 32767] -> [0, 1] -> [-1, 1]
    x = patches_ref[...].reshape(R1, LENGTH)
    x = (x - GLOBAL_MIN) / (GLOBAL_MAX - GLOBAL_MIN) * 2.0 - 1.0

    # conv1 (strided) as one big im2col matmul + bias + ReLU        -> (R1, 32)
    h1 = jnp.maximum(
        jnp.dot(x, w1_ref[...], preferred_element_type=jnp.float32)
        + b1_ref[...], 0.0)

    # conv2: 'same' padding (3 left / 4 right) per sequence, K2 taps fused into
    # a single 256-contraction matmul via an in-register im2col.
    h1s = h1.reshape(BG, L1, C)
    h1p = jnp.concatenate(
        [jnp.zeros((BG, PAD_L, C), jnp.float32), h1s,
         jnp.zeros((BG, PAD_R, C), jnp.float32)], axis=1)            # (BG, L1+7, C)
    cols2 = jnp.concatenate([h1p[:, k:k + L1, :] for k in range(K2)],
                            axis=-1).reshape(R1, K2 * C)             # (R1, 256)
    h2 = jnp.maximum(
        jnp.dot(cols2, w2_ref[...], preferred_element_type=jnp.float32)
        + b2_ref[...], 0.0)                                          # (R1, 32)

    # MaxPool1d(4) over time, in registers                           -> (BG, L2, 32)
    p1 = jnp.max(h2.reshape(BG * L2, POOL, C), axis=1).reshape(BG, L2, C)

    # conv3, same fused-tap scheme                                   -> (BG*L2, 32)
    p1p = jnp.concatenate(
        [jnp.zeros((BG, PAD_L, C), jnp.float32), p1,
         jnp.zeros((BG, PAD_R, C), jnp.float32)], axis=1)            # (BG, L2+7, C)
    cols3 = jnp.concatenate([p1p[:, k:k + L2, :] for k in range(K2)],
                            axis=-1).reshape(BG * L2, K2 * C)        # (BG*L2, 256)
    h3 = jnp.maximum(
        jnp.dot(cols3, w3_ref[...], preferred_element_type=jnp.float32)
        + b3_ref[...], 0.0)

    # second MaxPool1d(4): L2 == POOL so time collapses to 1; torch's
    # channel-major flatten of (32, 1) is just the 32 channels.
    feat = jnp.max(h3.reshape(BG, L2, C), axis=1)                    # (BG, FEAT)

    # full1 + ReLU, full2 (lane-padded to 128) + sigmoid
    f1 = jnp.maximum(
        jnp.dot(feat, wf1_ref[...], preferred_element_type=jnp.float32)
        + bf1_ref[...], 0.0)                                         # (BG, 100)
    z = jnp.dot(f1, wf2_ref[...], preferred_element_type=jnp.float32) \
        + bf2_ref[...]                                               # (BG, 128)
    f2 = 1.0 / (1.0 + jnp.exp(-z))

    # mean over the GROUP sequences of each batch element
    out_ref[...] = jnp.sum(f2.reshape(BB, GROUP, HID2_PAD), axis=1) * (1.0 / GROUP)


# ------------------------------- host wrapper ---------------------------------
def model_forward(x, torch_params):
    """x: (B, GROUP, 1, SEQ_LEN) float32 — same layout as the PyTorch input."""
    (w1_t, b1, w2_t, b2, w3_t, b3, wf1_t, bf1, wf2_t, bf2) = torch_params
    B = x.shape[0]
    assert x.shape == (B, GROUP, 1, SEQ_LEN)
    assert L2 == POOL and L3 == 1          # second pool collapses time to 1
    assert STRIDE >= LENGTH                # conv1 windows are disjoint

    # glue: strided-conv1 im2col as pad + reshape + static slice (no gather)
    x_flat = x.reshape(B * GROUP, SEQ_LEN)
    x_pad = jnp.pad(x_flat, ((0, 0), (0, L1 * STRIDE - SEQ_LEN)))
    patches = x_pad.reshape(B * GROUP, L1, STRIDE)[:, :, :LENGTH]
    patches = patches.reshape(B, GROUP * L1, LENGTH)

    # glue: convert torch parameter layouts to matmul layouts
    w1 = jnp.transpose(w1_t[:, 0, :], (1, 0))                       # (LENGTH, 32)
    w2 = jnp.transpose(w2_t, (2, 1, 0)).reshape(K2 * C, C)          # (256, 32)
    w3 = jnp.transpose(w3_t, (2, 1, 0)).reshape(K2 * C, C)          # (256, 32)
    wf1 = wf1_t.T                                                   # (FEAT, 100)
    wf2 = jnp.pad(wf2_t.T, ((0, 0), (0, HID2_PAD - HID2)))          # (100, 128)
    b1r, b2r, b3r = b1.reshape(1, C), b2.reshape(1, C), b3.reshape(1, C)
    bf1r = bf1.reshape(1, HID1)
    bf2r = jnp.pad(bf2.reshape(1, HID2), ((0, 0), (0, HID2_PAD - HID2)))

    # batch-block size: amortize per-grid-step overhead; keep (8,128) rules.
    BB = 8 if (B % 8 == 0) else B
    grid = (B // BB,)

    out = pl.pallas_call(
        model_kernel,
        out_shape=jax.ShapeDtypeStruct((B, HID2_PAD), jnp.float32),
        grid_spec=pltpu.PrefetchScalarGridSpec(
            num_scalar_prefetch=0,
            grid=grid,
            in_specs=[
                pl.BlockSpec((BB, GROUP * L1, LENGTH), lambda i: (i, 0, 0)),
                pl.BlockSpec((LENGTH, C), lambda i: (0, 0)),
                pl.BlockSpec((1, C), lambda i: (0, 0)),
                pl.BlockSpec((K2 * C, C), lambda i: (0, 0)),
                pl.BlockSpec((1, C), lambda i: (0, 0)),
                pl.BlockSpec((K2 * C, C), lambda i: (0, 0)),
                pl.BlockSpec((1, C), lambda i: (0, 0)),
                pl.BlockSpec((FEAT, HID1), lambda i: (0, 0)),
                pl.BlockSpec((1, HID1), lambda i: (0, 0)),
                pl.BlockSpec((HID1, HID2_PAD), lambda i: (0, 0)),
                pl.BlockSpec((1, HID2_PAD), lambda i: (0, 0)),
            ],
            out_specs=pl.BlockSpec((BB, HID2_PAD), lambda i: (i, 0)),
        ),
        compiler_params=pltpu.CompilerParams(dimension_semantics=("parallel",)),
    )(patches, w1, b1r, w2, b2r, w3, b3r, wf1, bf1r, wf2, bf2r)
    return out[:, :HID2]                                  # (B, 50)


# --------------------------- pure-JAX reference -------------------------------
def reference_forward(x, torch_params):
    (w1_t, b1, w2_t, b2, w3_t, b3, wf1_t, bf1, wf2_t, bf2) = torch_params
    B = x.shape[0]
    dn = ('NCH', 'OIH', 'NCH')
    h = x.reshape(B * GROUP, 1, SEQ_LEN)
    h = (h - GLOBAL_MIN) / (GLOBAL_MAX - GLOBAL_MIN) * 2.0 - 1.0
    h = jax.nn.relu(lax.conv_general_dilated(h, w1_t, (STRIDE,), 'VALID',
                                             dimension_numbers=dn) + b1[None, :, None])
    h = jax.nn.relu(lax.conv_general_dilated(h, w2_t, (1,), [(PAD_L, PAD_R)],
                                             dimension_numbers=dn) + b2[None, :, None])
    h = lax.reduce_window(h, -jnp.inf, lax.max, (1, 1, POOL), (1, 1, POOL), 'VALID')
    h = jax.nn.relu(lax.conv_general_dilated(h, w3_t, (1,), [(PAD_L, PAD_R)],
                                             dimension_numbers=dn) + b3[None, :, None])
    h = lax.reduce_window(h, -jnp.inf, lax.max, (1, 1, POOL), (1, 1, POOL), 'VALID')
    h = h.reshape(B * GROUP, -1)
    h = jax.nn.relu(h @ wf1_t.T + bf1)
    h = jax.nn.sigmoid(h @ wf2_t.T + bf2)
    return h.reshape(B, GROUP, HID2).mean(axis=1)


if __name__ == "__main__":
    key = jax.random.PRNGKey(0)
    kx, k1, k2, k3, k4, k5, k6, k7 = jax.random.split(key, 8)

    B = 2
    x = jax.random.uniform(kx, (B, GROUP, 1, SEQ_LEN), jnp.float32,
                           minval=GLOBAL_MIN, maxval=GLOBAL_MAX)

    # deterministic parameters in torch layouts (kaiming-style std for convs,
    # zero conv biases as in Model.initialise_layer).
    w1_t = jax.random.normal(k1, (C, 1, LENGTH), jnp.float32) * (2.0 / LENGTH) ** 0.5
    b1 = jnp.zeros((C,), jnp.float32)
    w2_t = jax.random.normal(k2, (C, C, K2), jnp.float32) * (2.0 / (C * K2)) ** 0.5
    b2 = jnp.zeros((C,), jnp.float32)
    w3_t = jax.random.normal(k3, (C, C, K2), jnp.float32) * (2.0 / (C * K2)) ** 0.5
    b3 = jnp.zeros((C,), jnp.float32)
    wf1_t = jax.random.normal(k4, (HID1, FEAT), jnp.float32) * (1.0 / FEAT) ** 0.5
    bf1 = jax.random.normal(k5, (HID1,), jnp.float32) * 0.01
    wf2_t = jax.random.normal(k6, (HID2, HID1), jnp.float32) * (1.0 / HID1) ** 0.5
    bf2 = jax.random.normal(k7, (HID2,), jnp.float32) * 0.01

    params = (w1_t, b1, w2_t, b2, w3_t, b3, wf1_t, bf1, wf2_t, bf2)

    out = jax.block_until_ready(model_forward(x, params))
    assert out.shape == (B, HID2) and out.dtype == jnp.float32

    ref = reference_forward(x, params)
    err = float(jnp.max(jnp.abs(out - ref)))
    assert err < 1e-2, f"max abs error vs reference: {err}"

    print("KERNEL_OK")
</pallas_src>

<mosaic_0001>
module attributes {stable_mosaic.version = 11 : i64} {
  func.func @model_kernel(%arg0: i32, %arg1: memref<2x160x64xf32, #tpu.memory_space<vmem>>, %arg2: memref<64x32xf32, #tpu.memory_space<vmem>>, %arg3: memref<1x32xf32, #tpu.memory_space<vmem>>, %arg4: memref<256x32xf32, #tpu.memory_space<vmem>>, %arg5: memref<1x32xf32, #tpu.memory_space<vmem>>, %arg6: memref<256x32xf32, #tpu.memory_space<vmem>>, %arg7: memref<1x32xf32, #tpu.memory_space<vmem>>, %arg8: memref<32x100xf32, #tpu.memory_space<vmem>>, %arg9: memref<1x100xf32, #tpu.memory_space<vmem>>, %arg10: memref<100x128xf32, #tpu.memory_space<vmem>>, %arg11: memref<1x128xf32, #tpu.memory_space<vmem>>, %arg12: memref<2x128xf32, #tpu.memory_space<vmem>>) attributes {dimension_semantics = [#tpu.dimension_semantics<parallel>], iteration_bounds = array<i64: 1>, scalar_prefetch = 0 : i64, scratch_operands = 0 : i64, tpu.core_type = #tpu.core_type<tc>, window_params = [{transform_indices = @transform_0, window_bounds = array<i64: 2, 160, 64>}, {pipeline_mode = #tpu.pipeline_mode<synchronous>, transform_indices = @transform_1, window_bounds = array<i64: 64, 32>}, {pipeline_mode = #tpu.pipeline_mode<synchronous>, transform_indices = @transform_2, window_bounds = array<i64: 1, 32>}, {pipeline_mode = #tpu.pipeline_mode<synchronous>, transform_indices = @transform_3, window_bounds = array<i64: 256, 32>}, {pipeline_mode = #tpu.pipeline_mode<synchronous>, transform_indices = @transform_4, window_bounds = array<i64: 1, 32>}, {pipeline_mode = #tpu.pipeline_mode<synchronous>, transform_indices = @transform_5, window_bounds = array<i64: 256, 32>}, {pipeline_mode = #tpu.pipeline_mode<synchronous>, transform_indices = @transform_6, window_bounds = array<i64: 1, 32>}, {pipeline_mode = #tpu.pipeline_mode<synchronous>, transform_indices = @transform_7, window_bounds = array<i64: 32, 100>}, {pipeline_mode = #tpu.pipeline_mode<synchronous>, transform_indices = @transform_8, window_bounds = array<i64: 1, 100>}, {pipeline_mode = #tpu.pipeline_mode<synchronous>, transform_indices = @transform_9, window_bounds = array<i64: 100, 128>}, {pipeline_mode = #tpu.pipeline_mode<synchronous>, transform_indices = @transform_10, window_bounds = array<i64: 1, 128>}, {transform_indices = @transform_11, window_bounds = array<i64: 2, 128>}]} {
    %c0 = arith.constant 0 : index
    %c0_0 = arith.constant 0 : index
    %c0_1 = arith.constant 0 : index
    %0 = vector.load %arg1[%c0, %c0_0, %c0_1] : memref<2x160x64xf32, #tpu.memory_space<vmem>>, vector<2x160x64xf32>
    %1 = vector.shape_cast %0 : vector<2x160x64xf32> to vector<320x64xf32>
    %cst = arith.constant -3.276800e+04 : f32
    %2 = vector.broadcast %cst : f32 to vector<320x64xf32>
    %3 = arith.subf %1, %2 : vector<320x64xf32>
    %cst_2 = arith.constant 6.553500e+04 : f32
    %4 = vector.broadcast %cst_2 : f32 to vector<320x64xf32>
    %5 = arith.divf %3, %4 : vector<320x64xf32>
    %cst_3 = arith.constant 2.000000e+00 : f32
    %6 = vector.broadcast %cst_3 : f32 to vector<320x64xf32>
    %7 = arith.mulf %5, %6 : vector<320x64xf32>
    %cst_4 = arith.constant 1.000000e+00 : f32
    %8 = vector.broadcast %cst_4 : f32 to vector<320x64xf32>
    %9 = arith.subf %7, %8 : vector<320x64xf32>
    %c0_5 = arith.constant 0 : index
    %c0_6 = arith.constant 0 : index
    %10 = vector.load %arg2[%c0_5, %c0_6] : memref<64x32xf32, #tpu.memory_space<vmem>>, vector<64x32xf32>
    %cst_7 = arith.constant dense<0.000000e+00> : vector<320x32xf32>
    %11 = tpu.matmul %9, %10, %cst_7 {dimension_numbers = #tpu.dot_dimension_numbers<[1], [0], [0], [1], [0, 0, 1, 1], [], []>} : vector<320x64xf32>, vector<64x32xf32>, vector<320x32xf32> -> vector<320x32xf32>
    %c0_8 = arith.constant 0 : index
    %c0_9 = arith.constant 0 : index
    %12 = vector.load %arg3[%c0_8, %c0_9] : memref<1x32xf32, #tpu.memory_space<vmem>>, vector<1x32xf32>
    %13 = vector.broadcast %12 : vector<1x32xf32> to vector<320x32xf32>
    %14 = arith.addf %11, %13 : vector<320x32xf32>
    %cst_10 = arith.constant 0.000000e+00 : f32
    %15 = vector.broadcast %cst_10 : f32 to vector<320x32xf32>
    %16 = arith.maximumf %14, %15 : vector<320x32xf32>
    %17 = vector.shape_cast %16 : vector<320x32xf32> to vector<20x16x32xf32>
    %cst_11 = arith.constant 0.000000e+00 : f32
    %18 = vector.broadcast %cst_11 : f32 to vector<20x3x32xf32>
    %cst_12 = arith.constant 0.000000e+00 : f32
    %19 = vector.broadcast %cst_12 : f32 to vector<20x4x32xf32>
    %20 = tpu.concatenate %18, %17, %19 in 1 : vector<20x3x32xf32>, vector<20x16x32xf32>, vector<20x4x32xf32> -> vector<20x23x32xf32>
    %21 = vector.extract_strided_slice %20 {offsets = [0, 0, 0], sizes = [20, 16, 32], strides = [1, 1, 1]} : vector<20x23x32xf32> to vector<20x16x32xf32>
    %22 = vector.extract_strided_slice %20 {offsets = [0, 1, 0], sizes = [20, 16, 32], strides = [1, 1, 1]} : vector<20x23x32xf32> to vector<20x16x32xf32>
    %23 = vector.extract_strided_slice %20 {offsets = [0, 2, 0], sizes = [20, 16, 32], strides = [1, 1, 1]} : vector<20x23x32xf32> to vector<20x16x32xf32>
    %24 = vector.extract_strided_slice %20 {offsets = [0, 3, 0], sizes = [20, 16, 32], strides = [1, 1, 1]} : vector<20x23x32xf32> to vector<20x16x32xf32>
    %25 = vector.extract_strided_slice %20 {offsets = [0, 4, 0], sizes = [20, 16, 32], strides = [1, 1, 1]} : vector<20x23x32xf32> to vector<20x16x32xf32>
    %26 = vector.extract_strided_slice %20 {offsets = [0, 5, 0], sizes = [20, 16, 32], strides = [1, 1, 1]} : vector<20x23x32xf32> to vector<20x16x32xf32>
    %27 = vector.extract_strided_slice %20 {offsets = [0, 6, 0], sizes = [20, 16, 32], strides = [1, 1, 1]} : vector<20x23x32xf32> to vector<20x16x32xf32>
    %28 = vector.extract_strided_slice %20 {offsets = [0, 7, 0], sizes = [20, 16, 32], strides = [1, 1, 1]} : vector<20x23x32xf32> to vector<20x16x32xf32>
    %29 = tpu.concatenate %21, %22, %23, %24, %25, %26, %27, %28 in 2 : vector<20x16x32xf32>, vector<20x16x32xf32>, vector<20x16x32xf32>, vector<20x16x32xf32>, vector<20x16x32xf32>, vector<20x16x32xf32>, vector<20x16x32xf32>, vector<20x16x32xf32> -> vector<20x16x256xf32>
    %30 = vector.shape_cast %29 : vector<20x16x256xf32> to vector<320x256xf32>
    %c0_13 = arith.constant 0 : index
    %c0_14 = arith.constant 0 : index
    %31 = vector.load %arg4[%c0_13, %c0_14] : memref<256x32xf32, #tpu.memory_space<vmem>>, vector<256x32xf32>
    %cst_15 = arith.constant dense<0.000000e+00> : vector<320x32xf32>
    %32 = tpu.matmul %30, %31, %cst_15 {dimension_numbers = #tpu.dot_dimension_numbers<[1], [0], [0], [1], [0, 0, 1, 1], [], []>} : vector<320x256xf32>, vector<256x32xf32>, vector<320x32xf32> -> vector<320x32xf32>
    %c0_16 = arith.constant 0 : index
    %c0_17 = arith.constant 0 : index
    %33 = vector.load %arg5[%c0_16, %c0_17] : memref<1x32xf32, #tpu.memory_space<vmem>>, vector<1x32xf32>
    %34 = vector.broadcast %33 : vector<1x32xf32> to vector<320x32xf32>
    %35 = arith.addf %32, %34 : vector<320x32xf32>
    %cst_18 = arith.constant 0.000000e+00 : f32
    %36 = vector.broadcast %cst_18 : f32 to vector<320x32xf32>
    %37 = arith.maximumf %35, %36 : vector<320x32xf32>
    %38 = vector.shape_cast %37 : vector<320x32xf32> to vector<80x4x32xf32>
    %cst_19 = arith.constant dense<0xFF800000> : vector<80x32xf32>
    %39 = vector.multi_reduction <maximumf>, %38, %cst_19 [1] : vector<80x4x32xf32> to vector<80x32xf32>
    %40 = vector.shape_cast %39 : vector<80x32xf32> to vector<20x4x32xf32>
    %cst_20 = arith.constant 0.000000e+00 : f32
    %41 = vector.broadcast %cst_20 : f32 to vector<20x3x32xf32>
    %cst_21 = arith.constant 0.000000e+00 : f32
    %42 = vector.broadcast %cst_21 : f32 to vector<20x4x32xf32>
    %43 = tpu.concatenate %41, %40, %42 in 1 : vector<20x3x32xf32>, vector<20x4x32xf32>, vector<20x4x32xf32> -> vector<20x11x32xf32>
    %44 = vector.extract_strided_slice %43 {offsets = [0, 0, 0], sizes = [20, 4, 32], strides = [1, 1, 1]} : vector<20x11x32xf32> to vector<20x4x32xf32>
    %45 = vector.extract_strided_slice %43 {offsets = [0, 1, 0], sizes = [20, 4, 32], strides = [1, 1, 1]} : vector<20x11x32xf32> to vector<20x4x32xf32>
    %46 = vector.extract_strided_slice %43 {offsets = [0, 2, 0], sizes = [20, 4, 32], strides = [1, 1, 1]} : vector<20x11x32xf32> to vector<20x4x32xf32>
    %47 = vector.extract_strided_slice %43 {offsets = [0, 3, 0], sizes = [20, 4, 32], strides = [1, 1, 1]} : vector<20x11x32xf32> to vector<20x4x32xf32>
    %48 = vector.extract_strided_slice %43 {offsets = [0, 4, 0], sizes = [20, 4, 32], strides = [1, 1, 1]} : vector<20x11x32xf32> to vector<20x4x32xf32>
    %49 = vector.extract_strided_slice %43 {offsets = [0, 5, 0], sizes = [20, 4, 32], strides = [1, 1, 1]} : vector<20x11x32xf32> to vector<20x4x32xf32>
    %50 = vector.extract_strided_slice %43 {offsets = [0, 6, 0], sizes = [20, 4, 32], strides = [1, 1, 1]} : vector<20x11x32xf32> to vector<20x4x32xf32>
    %51 = vector.extract_strided_slice %43 {offsets = [0, 7, 0], sizes = [20, 4, 32], strides = [1, 1, 1]} : vector<20x11x32xf32> to vector<20x4x32xf32>
    %52 = tpu.concatenate %44, %45, %46, %47, %48, %49, %50, %51 in 2 : vector<20x4x32xf32>, vector<20x4x32xf32>, vector<20x4x32xf32>, vector<20x4x32xf32>, vector<20x4x32xf32>, vector<20x4x32xf32>, vector<20x4x32xf32>, vector<20x4x32xf32> -> vector<20x4x256xf32>
    %53 = vector.shape_cast %52 : vector<20x4x256xf32> to vector<80x256xf32>
    %c0_22 = arith.constant 0 : index
    %c0_23 = arith.constant 0 : index
    %54 = vector.load %arg6[%c0_22, %c0_23] : memref<256x32xf32, #tpu.memory_space<vmem>>, vector<256x32xf32>
    %cst_24 = arith.constant dense<0.000000e+00> : vector<80x32xf32>
    %55 = tpu.matmul %53, %54, %cst_24 {dimension_numbers = #tpu.dot_dimension_numbers<[1], [0], [0], [1], [0, 0, 1, 1], [], []>} : vector<80x256xf32>, vector<256x32xf32>, vector<80x32xf32> -> vector<80x32xf32>
    %c0_25 = arith.constant 0 : index
    %c0_26 = arith.constant 0 : index
    %56 = vector.load %arg7[%c0_25, %c0_26] : memref<1x32xf32, #tpu.memory_space<vmem>>, vector<1x32xf32>
    %57 = vector.broadcast %56 : vector<1x32xf32> to vector<80x32xf32>
    %58 = arith.addf %55, %57 : vector<80x32xf32>
    %cst_27 = arith.constant 0.000000e+00 : f32
    %59 = vector.broadcast %cst_27 : f32 to vector<80x32xf32>
    %60 = arith.maximumf %58, %59 : vector<80x32xf32>
    %61 = vector.shape_cast %60 : vector<80x32xf32> to vector<20x4x32xf32>
    %cst_28 = arith.constant dense<0xFF800000> : vector<20x32xf32>
    %62 = vector.multi_reduction <maximumf>, %61, %cst_28 [1] : vector<20x4x32xf32> to vector<20x32xf32>
    %c0_29 = arith.constant 0 : index
    %c0_30 = arith.constant 0 : index
    %63 = vector.load %arg8[%c0_29, %c0_30] : memref<32x100xf32, #tpu.memory_space<vmem>>, vector<32x100xf32>
    %cst_31 = arith.constant dense<0.000000e+00> : vector<20x100xf32>
    %64 = tpu.matmul %62, %63, %cst_31 {dimension_numbers = #tpu.dot_dimension_numbers<[1], [0], [0], [1], [0, 0, 1, 1], [], []>} : vector<20x32xf32>, vector<32x100xf32>, vector<20x100xf32> -> vector<20x100xf32>
    %c0_32 = arith.constant 0 : index
    %c0_33 = arith.constant 0 : index
    %65 = vector.load %arg9[%c0_32, %c0_33] : memref<1x100xf32, #tpu.memory_space<vmem>>, vector<1x100xf32>
    %66 = vector.broadcast %65 : vector<1x100xf32> to vector<20x100xf32>
    %67 = arith.addf %64, %66 : vector<20x100xf32>
    %cst_34 = arith.constant 0.000000e+00 : f32
    %68 = vector.broadcast %cst_34 : f32 to vector<20x100xf32>
    %69 = arith.maximumf %67, %68 : vector<20x100xf32>
    %c0_35 = arith.constant 0 : index
    %c0_36 = arith.constant 0 : index
    %70 = vector.load %arg10[%c0_35, %c0_36] : memref<100x128xf32, #tpu.memory_space<vmem>>, vector<100x128xf32>
    %cst_37 = arith.constant dense<0.000000e+00> : vector<20x128xf32>
    %71 = tpu.matmul %69, %70, %cst_37 {dimension_numbers = #tpu.dot_dimension_numbers<[1], [0], [0], [1], [0, 0, 1, 1], [], []>} : vector<20x100xf32>, vector<100x128xf32>, vector<20x128xf32> -> vector<20x128xf32>
    %c0_38 = arith.constant 0 : index
    %c0_39 = arith.constant 0 : index
    %72 = vector.load %arg11[%c0_38, %c0_39] : memref<1x128xf32, #tpu.memory_space<vmem>>, vector<1x128xf32>
    %73 = vector.broadcast %72 : vector<1x128xf32> to vector<20x128xf32>
    %74 = arith.addf %71, %73 : vector<20x128xf32>
    %cst_40 = arith.constant 0.000000e+00 : f32
    %75 = vector.broadcast %cst_40 : f32 to vector<20x128xf32>
    %76 = arith.subf %75, %74 : vector<20x128xf32>
    %77 = math.exp %76 : vector<20x128xf32>
    %cst_41 = arith.constant 1.000000e+00 : f32
    %78 = vector.broadcast %cst_41 : f32 to vector<20x128xf32>
    %79 = arith.addf %78, %77 : vector<20x128xf32>
    %cst_42 = arith.constant 1.000000e+00 : f32
    %80 = vector.broadcast %cst_42 : f32 to vector<20x128xf32>
    %81 = arith.divf %80, %79 : vector<20x128xf32>
    %82 = vector.shape_cast %81 : vector<20x128xf32> to vector<2x10x128xf32>
    %cst_43 = arith.constant dense<0.000000e+00> : vector<2x128xf32>
    %83 = vector.multi_reduction <add>, %82, %cst_43 [1] : vector<2x10x128xf32> to vector<2x128xf32>
    %cst_44 = arith.constant 1.000000e-01 : f32
    %84 = vector.broadcast %cst_44 : f32 to vector<2x128xf32>
    %85 = arith.mulf %83, %84 : vector<2x128xf32>
    %c0_45 = arith.constant 0 : index
    %c0_46 = arith.constant 0 : index
    %86 = vector.load %arg12[%c0_45, %c0_46] : memref<2x128xf32, #tpu.memory_space<vmem>>, vector<2x128xf32>
    tpu.vector_store %arg12[%c0_45, %c0_46], %85 {strides = array<i32>} : memref<2x128xf32, #tpu.memory_space<vmem>>, vector<2x128xf32>,
    return
  }
  func.func @transform_0(%arg0: i32) -> (i32, i32, i32) {
    %c0_i32 = arith.constant 0 : i32
    %c0_i32_0 = arith.constant 0 : i32
    %c0_i32_1 = arith.constant 0 : i32
    return %arg0, %c0_i32, %c0_i32_0 : i32, i32, i32
  }
  func.func @transform_1(%arg0: i32) -> (i32, i32) {
    %c0_i32 = arith.constant 0 : i32
    %c0_i32_0 = arith.constant 0 : i32
    %c0_i32_1 = arith.constant 0 : i32
    return %c0_i32, %c0_i32_0 : i32, i32
  }
  func.func @transform_2(%arg0: i32) -> (i32, i32) {
    %c0_i32 = arith.constant 0 : i32
    %c0_i32_0 = arith.constant 0 : i32
    %c0_i32_1 = arith.constant 0 : i32
    return %c0_i32, %c0_i32_0 : i32, i32
  }
  func.func @transform_3(%arg0: i32) -> (i32, i32) {
    %c0_i32 = arith.constant 0 : i32
    %c0_i32_0 = arith.constant 0 : i32
    %c0_i32_1 = arith.constant 0 : i32
    return %c0_i32, %c0_i32_0 : i32, i32
  }
  func.func @transform_4(%arg0: i32) -> (i32, i32) {
    %c0_i32 = arith.constant 0 : i32
    %c0_i32_0 = arith.constant 0 : i32
    %c0_i32_1 = arith.constant 0 : i32
    return %c0_i32, %c0_i32_0 : i32, i32
  }
  func.func @transform_5(%arg0: i32) -> (i32, i32) {
    %c0_i32 = arith.constant 0 : i32
    %c0_i32_0 = arith.constant 0 : i32
    %c0_i32_1 = arith.constant 0 : i32
    return %c0_i32, %c0_i32_0 : i32, i32
  }
  func.func @transform_6(%arg0: i32) -> (i32, i32) {
    %c0_i32 = arith.constant 0 : i32
    %c0_i32_0 = arith.constant 0 : i32
    %c0_i32_1 = arith.constant 0 : i32
    return %c0_i32, %c0_i32_0 : i32, i32
  }
  func.func @transform_7(%arg0: i32) -> (i32, i32) {
    %c0_i32 = arith.constant 0 : i32
    %c0_i32_0 = arith.constant 0 : i32
    %c0_i32_1 = arith.constant 0 : i32
    return %c0_i32, %c0_i32_0 : i32, i32
  }
  func.func @transform_8(%arg0: i32) -> (i32, i32) {
    %c0_i32 = arith.constant 0 : i32
    %c0_i32_0 = arith.constant 0 : i32
    %c0_i32_1 = arith.constant 0 : i32
    return %c0_i32, %c0_i32_0 : i32, i32
  }
  func.func @transform_9(%arg0: i32) -> (i32, i32) {
    %c0_i32 = arith.constant 0 : i32
    %c0_i32_0 = arith.constant 0 : i32
    %c0_i32_1 = arith.constant 0 : i32
    return %c0_i32, %c0_i32_0 : i32, i32
  }
  func.func @transform_10(%arg0: i32) -> (i32, i32) {
    %c0_i32 = arith.constant 0 : i32
    %c0_i32_0 = arith.constant 0 : i32
    %c0_i32_1 = arith.constant 0 : i32
    return %c0_i32, %c0_i32_0 : i32, i32
  }
  func.func @transform_11(%arg0: i32) -> (i32, i32) {
    %c0_i32 = arith.constant 0 : i32
    %c0_i32_0 = arith.constant 0 : i32
    return %arg0, %c0_i32 : i32, i32
  }
}

</mosaic_0001>

<bundles_post_ra>
// kernel: tpu_custom_call.1
= control target key start
LH: loop header
LB: loop body
LE: loop exit
PB: predicated region body
PF: predicated region fallthrough
CT: control target
= control target key end

     0   :  { %v6004_v2 = vmov 65535.0   ;;  %s9949_s0 = inlined_call_operand.vmem [shape: f32[2,160,64], index: 0, kind: input, shape index: {}]   ;;  %s9950_s1 = inlined_call_operand.vmem [shape: f32[64,32], index: 1, kind: input, shape index: {}]   ;;  %s9951_s2 = inlined_call_operand.vmem [shape: f32[1,32], index: 2, kind: input, shape index: {}]   ;;  %s9952_s3 = inlined_call_operand.vmem [shape: f32[256,32], index: 3, kind: input, shape index: {}]   ;;  %s9953_s4 = inlined_call_operand.vmem [shape: f32[1,32], index: 4, kind: input, shape index: {}]   ;;  %s9954_s5 = inlined_call_operand.vmem [shape: f32[256,32], index: 5, kind: input, shape index: {}]   ;;  %s9955_s6 = inlined_call_operand.vmem [shape: f32[1,32], index: 6, kind: input, shape index: {}]   ;;  %s9956_s7 = inlined_call_operand.vmem [shape: f32[32,100], index: 7, kind: input, shape index: {}]   ;;  %s9957_s8 = inlined_call_operand.vmem [shape: f32[1,100], index: 8, kind: input, shape index: {}]   ;;  %s9958_s9 = inlined_call_operand.vmem [shape: f32[100,128], index: 9, kind: input, shape index: {}]   ;;  %s9959_s10 = inlined_call_operand.vmem [shape: f32[1,128], index: 10, kind: input, shape index: {}]   ;;  %s9960_s11 = inlined_call_operand.hbm [shape: f32[2,128], index: 11, kind: output, shape index: {}]  }
   0x1   :  { %v253_v0 = vld [vmem:[%s9950_s1 + $0x38] sm:$0xff]  ;;  %v252_v1 = vld [vmem:[%s9950_s1 + $0x30] sm:$0xff]  ;;  %5958 = vrcp.f32 %v6004_v2  ;;  %v251_v3 = vld [vmem:[%s9950_s1 + $0x28] sm:$0xff] }
   0x2   :  { %387 = vmatpush.msra.mxu0 %v253_v0  ;;  %v250_v4 = vld [vmem:[%s9950_s1 + $0x20] sm:$0xff] }
   0x4   :  { %388 = vmatpush.msra.mxu0 %v252_v1 }
   0x6   :  { %389 = vmatpush.msra.mxu0 %v251_v3 }
   0x7   :  { %16 = vsyncpa [#allocation3], 0  ;;  %v249_v5 = vld [vmem:[%s9950_s1 + $0x18] sm:$0xff]  ;;  %v5959_v6 = vpop.eup %5958  ;;  %v248_v7 = vld [vmem:[%s9950_s1 + $0x10] sm:$0xff]  ;;  %vm258_vm1 = vcmask 523264   ;;  %vm596_vm2 = vcmask 1042432  }
   0x8   :  { %390 = vmatpush.msra.mxu0 %v250_v4  ;;  %v120_v8 = vmul.f32 65535.0, %v5959_v6  ;;  %v247_v9 = vld [vmem:[%s9950_s1 + $0x8] sm:$0xff]  ;;  %v39_v10 = vld [vmem:[%s9949_s0] sm:$0xff]  ;;  %vm124_vm0 = vweird.f32 %v5959_v6  ;;  %v41_v22 = vld [vmem:[%s9949_s0 + $0x10] sm:$0xff]  ;;  %vm1239_vm3 = vcmask 1044480  }
   0x9   :  { %v246_v12 = vld [vmem:[%s9950_s1] sm:$0xff]  ;;  %v40_v14 = vld [vmem:[%s9949_s0 + $0x8] sm:$0xff]  ;;  %v5188_v15 = vadd.f32 32768.0, %v39_v10  ;;  %v5190_v25 = vadd.f32 32768.0, %v41_v22  ;;  %v42_v28 = vld [vmem:[%s9949_s0 + $0x18] sm:$0xff]  ;;  %vm2042_vm4 = vcmask 1040384  }
   0xa   :  { %391 = vmatpush.msra.mxu0 %v249_v5  ;;  %v121_v11 = vsub.f32 1.0, %v120_v8  ;;  %v5189_v17 = vadd.f32 32768.0, %v40_v14  ;;  %v5191_v30 = vadd.f32 32768.0, %v42_v28  ;;  %v43_v33 = vld [vmem:[%s9949_s0 + $0x20] sm:$0xff]  ;;  %v44_v38 = vld [vmem:[%s9949_s0 + $0x28] sm:$0xff]  ;;  %v45_v43 = vld [vmem:[%s9949_s0 + $0x30] sm:$0xff] }
   0xb   :  { %v5192_v35 = vadd.f32 32768.0, %v43_v33  ;;  %v5193_v40 = vadd.f32 32768.0, %v44_v38  ;;  %v5194_v45 = vadd.f32 32768.0, %v45_v43  ;;  %v46_v48 = vld [vmem:[%s9949_s0 + $0x38] sm:$0xff]  ;;  %v47_v53 = vld [vmem:[%s9949_s0 + $0x40] sm:$0xff]  ;;  %v48_v58 = vld [vmem:[%s9949_s0 + $0x48] sm:$0xff] }
   0xc   :  { %392 = vmatpush.msra.mxu0 %v248_v7  ;;  %v122_v13 = vmul.f32 %v5959_v6, %v121_v11  ;;  %v5195_v50 = vadd.f32 32768.0, %v46_v48  ;;  %v5196_v55 = vadd.f32 32768.0, %v47_v53  ;;  %v5197_v60 = vadd.f32 32768.0, %v48_v58  ;;  %v49_v63 = vld [vmem:[%s9949_s0 + $0x50] sm:$0xff]  ;;  %v50_v4 = vld [vmem:[%s9949_s0 + $0x58] sm:$0xff]  ;;  %v52_v14 = vld [vmem:[%s9949_s0 + $0x68] sm:$0xff] }
   0xd   :  { %v5198_v1 = vadd.f32 32768.0, %v49_v63  ;;  %v6186_v38 = vld [vmem:[%s9951_s2] ss:$0 sm:$0xff]  ;;  %vm1018_vm5 = vcmask 1045504   ;;  %vm1821_vm6 = vcmask 1041408   ;;  %vm797_vm7 = vcmask 1046528  }
   0xe   :  { %393 = vmatpush.msra.mxu0 %v247_v9  ;;  %v123_v16 = vadd.f32 %v5959_v6, %v122_v13  ;;  %v51_v9 = vld [vmem:[%s9949_s0 + $0x60] sm:$0xff]  ;;  %s6005_s19 = smov 96   ;;  %s6006_s20 = smov 64   ;;  %vm1460_vm8 = vcmask 1043456   ;;  %vm2263_vm9 = vcmask 261120   ;;  %vm2344_vm10 = vcmask 785408  }
   0xf   :  { %v5200_v11 = vadd.f32 32768.0, %v51_v9  ;;  %s6007_s21 = smov 32   ;;  %vm2975_vm11 = vcmask 257024   ;;  %vm3616_vm12 = vcmask 1044484   ;;  %vm3618_vm13 = vcmask 1045509   ;;  %s5179_s1 = sshll.u32 %s9960_s11, 4  ;;  %s5180_s1 = int_to_ptr.hbm [resolvable:$true] %s5179_s1 }
  0x10   :  { %394 = vmatpush.msra.mxu0 %v246_v12  ;;  %v6100_v18 = vsel %vm124_vm0, %v5959_v6, %v123_v16  ;;  %v5199_v6 = vadd.f32 32768.0, %v50_v4  ;;  %v5201_v16 = vadd.f32 32768.0, %v52_v14  ;;  %vm3620_vm14 = vcmask 1046534  }
  0x11   :  { %v126_v19 = vmul.f32 %v5188_v15, %v6100_v18  ;;  %v127_v21 = vmul.f32 %v5189_v17, %v6100_v18  ;;  %v128_v27 = vmul.f32 %v5190_v25, %v6100_v18  ;;  %v129_v32 = vmul.f32 %v5191_v30, %v6100_v18  ;;  %v54_v25 = vld [vmem:[%s9949_s0 + $0x78] sm:$0xff]  ;;  %v55_v30 = vld [vmem:[%s9949_s0 + $0x80] sm:$0xff] }
  0x12   :  { %v130_v37 = vmul.f32 %v5192_v35, %v6100_v18  ;;  %v131_v42 = vmul.f32 %v5193_v40, %v6100_v18  ;;  %v132_v47 = vmul.f32 %v5194_v45, %v6100_v18  ;;  %v133_v52 = vmul.f32 %v5195_v50, %v6100_v18  ;;  %v56_v35 = vld [vmem:[%s9949_s0 + $0x88] sm:$0xff] }
  0x13   :  { %v166_v20 = vmul.f32 2.0, %v126_v19  ;;  %v167_v24 = vmul.f32 2.0, %v127_v21  ;;  %v168_v29 = vmul.f32 2.0, %v128_v27  ;;  %v169_v34 = vmul.f32 2.0, %v129_v32 }
  0x14   :  { %v170_v39 = vmul.f32 2.0, %v130_v37  ;;  %v171_v44 = vmul.f32 2.0, %v131_v42  ;;  %v172_v49 = vmul.f32 2.0, %v132_v47  ;;  %v173_v54 = vmul.f32 2.0, %v133_v52  ;;  %v58_v47 = vld [vmem:[%s9949_s0 + $0x98] sm:$0xff]  ;;  %v59_v52 = vld [vmem:[%s9949_s0 + $0xa0] sm:$0xff] }
  0x15   :  { %v5228_v23 = vadd.f32 -1.0, %v166_v20  ;;  %v5229_v26 = vadd.f32 -1.0, %v167_v24  ;;  %v5230_v31 = vadd.f32 -1.0, %v168_v29  ;;  %v5231_v36 = vadd.f32 -1.0, %v169_v34  ;;  %v53_v20 = vld [vmem:[%s9949_s0 + $0x70] sm:$0xff] }
  0x16   :  { %v5232_v41 = vadd.f32 -1.0, %v170_v39  ;;  %v5233_v46 = vadd.f32 -1.0, %v171_v44  ;;  %v5234_v51 = vadd.f32 -1.0, %v172_v49  ;;  %v5235_v56 = vadd.f32 -1.0, %v173_v54  ;;  %v57_v39 = vld [vmem:[%s9949_s0 + $0x90] sm:$0xff] }
  0x17   :  { %5268 = vmatmul.msk.f32.vlgmr.msra.gmra.mxu0 %vm258_vm1, %v5228_v23  ;;  %v134_v57 = vmul.f32 %v5196_v55, %v6100_v18  ;;  %v135_v62 = vmul.f32 %v5197_v60, %v6100_v18  ;;  %v136_v3 = vmul.f32 %v5198_v1, %v6100_v18  ;;  %v137_v8 = vmul.f32 %v5199_v6, %v6100_v18 }
  0x18   :  { %v138_v13 = vmul.f32 %v5200_v11, %v6100_v18  ;;  %v139_v19 = vmul.f32 %v5201_v16, %v6100_v18  ;;  %v5202_v22 = vadd.f32 32768.0, %v53_v20  ;;  %v5203_v27 = vadd.f32 32768.0, %v54_v25 }
  0x19   :  { %v174_v59 = vmul.f32 2.0, %v134_v57  ;;  %v175_v0 = vmul.f32 2.0, %v135_v62  ;;  %v176_v5 = vmul.f32 2.0, %v136_v3  ;;  %v177_v10 = vmul.f32 2.0, %v137_v8 }
  0x1a   :  { %v178_v15 = vmul.f32 2.0, %v138_v13  ;;  %v179_v21 = vmul.f32 2.0, %v139_v19  ;;  %v140_v24 = vmul.f32 %v5202_v22, %v6100_v18  ;;  %v141_v29 = vmul.f32 %v5203_v27, %v6100_v18 }
  0x1b   :  { %v5236_v61 = vadd.f32 -1.0, %v174_v59  ;;  %v5237_v2 = vadd.f32 -1.0, %v175_v0  ;;  %v5238_v7 = vadd.f32 -1.0, %v176_v5  ;;  %v5239_v12 = vadd.f32 -1.0, %v177_v10 }
  0x1c   :  { %v5240_v17 = vadd.f32 -1.0, %v178_v15  ;;  %v5241_v23 = vadd.f32 -1.0, %v179_v21  ;;  %v5204_v32 = vadd.f32 32768.0, %v55_v30  ;;  %v5205_v37 = vadd.f32 32768.0, %v56_v35  ;;  %v60_v15 = vld [vmem:[%s9949_s0 + $0xa8] sm:$0xff] }
  0x1d   :  { %v5206_v43 = vadd.f32 32768.0, %v57_v39  ;;  %v5207_v49 = vadd.f32 32768.0, %v58_v47  ;;  %v5208_v57 = vadd.f32 32768.0, %v59_v52  ;;  %v61_v52 = vld [vmem:[%s9949_s0 + $0xb0] sm:$0xff]  ;;  %vm4948_vm15 = vcmask 1041409  }
  0x1e   :  { %v142_v34 = vmul.f32 %v5204_v32, %v6100_v18  ;;  %vm4950_vm0 = vcmask 1042434  }
  0x1f   :  { %5269 = vmatmul.msk.f32.gmra.mxu0 %vm258_vm1, %v5229_v26  ;;  %v180_v26 = vmul.f32 2.0, %v140_v24  ;;  %v144_v48 = vmul.f32 %v5206_v43, %v6100_v18  ;;  %v146_v1 = vmul.f32 %v5208_v57, %v6100_v18 }
  0x21   :  { %v5242_v28 = vadd.f32 -1.0, %v180_v26  ;;  %v184_v54 = vmul.f32 2.0, %v144_v48  ;;  %v186_v35 = vmul.f32 2.0, %v146_v1  ;;  %v5210_v1 = vadd.f32 32768.0, %v61_v52 }
  0x23   :  { %v5246_v60 = vadd.f32 -1.0, %v184_v54 }
  0x27   :  { %5270 = vmatmul.msk.f32.gmra.mxu0 %vm258_vm1, %v5230_v31  ;;  %v181_v31 = vmul.f32 2.0, %v141_v29 }
  0x29   :  { %v5243_v33 = vadd.f32 -1.0, %v181_v31 }
  0x2f   :  { %5271 = vmatmul.msk.f32.gmra.mxu0 %vm258_vm1, %v5231_v36  ;;  %v182_v36 = vmul.f32 2.0, %v142_v34 }
  0x31   :  { %v5244_v40 = vadd.f32 -1.0, %v182_v36 }
  0x37   :  { %5272 = vmatmul.msk.f32.gmra.mxu0 %vm258_vm1, %v5232_v41  ;;  %v143_v41 = vmul.f32 %v5205_v37, %v6100_v18 }
  0x3f   :  { %5273 = vmatmul.msk.f32.gmra.mxu0 %vm258_vm1, %v5233_v46  ;;  %v183_v46 = vmul.f32 2.0, %v143_v41 }
  0x47   :  { %5274 = vmatmul.msk.f32.gmra.mxu0 %vm258_vm1, %v5234_v51  ;;  %v5245_v51 = vadd.f32 -1.0, %v183_v46 }
  0x4f   :  { %5275 = vmatmul.msk.f32.gmra.mxu0 %vm258_vm1, %v5235_v56  ;;  %v145_v56 = vmul.f32 %v5207_v49, %v6100_v18 }
  0x51   :  { %v185_v0 = vmul.f32 2.0, %v145_v56 }
  0x53   :  { %v5247_v34 = vadd.f32 -1.0, %v185_v0 }
  0x57   :  { %5276 = vmatmul.msk.f32.gmra.mxu0 %vm258_vm1, %v5236_v61 }
  0x5f   :  { %5277 = vmatmul.msk.f32.gmra.mxu0 %vm258_vm1, %v5237_v2 }
  0x67   :  { %5278 = vmatmul.msk.f32.gmra.mxu0 %vm258_vm1, %v5238_v7 }
  0x6f   :  { %5279 = vmatmul.msk.f32.gmra.mxu0 %vm258_vm1, %v5239_v12 }
  0x77   :  { %5280 = vmatmul.msk.f32.gmra.mxu0 %vm258_vm1, %v5240_v17 }
  0x7f   :  { %5281 = vmatmul.msk.f32.gmra.mxu0 %vm258_vm1, %v5241_v23 }
  0x87   :  { %5282 = vmatmul.msk.f32.gmra.mxu0 %vm258_vm1, %v5242_v28  ;;  %v5209_v28 = vadd.f32 32768.0, %v60_v15 }
  0x8f   :  { %5283 = vmatmul.msk.f32.gmra.mxu0 %vm258_vm1, %v5243_v33 }
  0x94   :  { %v396_v42 = vpop.f32.mrf.mxu0 }
  0x95   :  { %v397_v44 = vadd.f32 %v6186_v38, %v396_v42 }
  0x97   :  { %v516_v45 = vmax.f32 %v397_v44, 0.0  ;;  %5284 = vmatmul.msk.f32.gmra.mxu0 %vm258_vm1, %v5244_v40 }
  0x99   :  { %v597_v50 = vrot.slane %v516_v45, 5  ;;  %v147_v45 = vmul.f32 %v5209_v28, %v6100_v18 }
  0x9b   :  { %v6204_v58 = vsel %vm596_vm2, 0.0, %v597_v50  ;;  %v187_v56 = vmul.f32 2.0, %v147_v45 }
  0x9c   :  { %v399_v53 = vpop.f32.mrf.mxu0  ;;  %v1240_v62 = vrot.slane %v6204_v58, 3  ;;  %v2043_v63 = vrot.slane %v6204_v58, 7  ;;  %v798_v4 = vrot.slane %v6204_v58, 1  ;;  %v1601_v5 = vrot.slane %v6204_v58, 5 }
  0x9d   :  { %v400_v55 = vadd.f32 %v6186_v38, %v399_v53  ;;  %v1019_v40 = vrot.slane %v6204_v58, 2  ;;  %v1822_v41 = vrot.slane %v6204_v58, 6 }
  0x9f   :  { %v517_v59 = vmax.f32 %v400_v55, 0.0  ;;  %5285 = vmatmul.msk.f32.gmra.mxu0 %vm258_vm1, %v5245_v51  ;;  %v5248_v55 = vadd.f32 -1.0, %v186_v35 }
  0xa1   :  { %v598_v61 = vrot.slane %v517_v59, 5 }
  0xa3   :  { %v6211_v2 = vsel %vm596_vm2, %v597_v50, %v598_v61  ;;  %v6214_v3 = vsel %vm596_vm2, %v598_v61, 0.0 }
  0xa4   :  { %v402_v6 = vpop.f32.mrf.mxu0  ;;  %v1241_v7 = vrot.slane %v6211_v2, 3  ;;  %v2044_v8 = vrot.slane %v6211_v2, 7  ;;  %v1020_v9 = vrot.slane %v6211_v2, 2  ;;  %v1022_v10 = vrot.slane %v6214_v3, 2 }
  0xa5   :  { %v403_v11 = vadd.f32 %v6186_v38, %v402_v6  ;;  %v1823_v12 = vrot.slane %v6211_v2, 6  ;;  %v1825_v13 = vrot.slane %v6214_v3, 6  ;;  %v799_v14 = vrot.slane %v6211_v2, 1 }
  0xa6   :  { %v1242_v16 = vsel %vm1239_vm3, %v1240_v62, %v1241_v7  ;;  %v2045_v17 = vsel %vm2042_vm4, %v2043_v63, %v2044_v8  ;;  %v1023_v19 = vsel %vm1018_vm5, %v1020_v9, %v1022_v10  ;;  %v1602_v20 = vrot.slane %v6211_v2, 5 }
  0xa7   :  { %v518_v21 = vmax.f32 %v403_v11, 0.0  ;;  %5286 = vmatmul.msk.f32.gmra.mxu0 %vm258_vm1, %v5246_v60  ;;  %v5363_v22 = vpack.i.bf16 %v1242_v16, %v2045_v17  ;;  %v1826_v23 = vsel %vm1821_vm6, %v1823_v12, %v1825_v13  ;;  %v800_v24 = vsel %vm797_vm7, %v798_v4, %v799_v14  ;;  %v62_v13 = vld [vmem:[%s9949_s0 + $0xb8] sm:$0xff] }
  0xa8   :  { %v5373_v25 = vpack.i.bf16 %v1023_v19, %v1826_v23  ;;  %v1603_v26 = vsel %vm596_vm2, %v1601_v5, %v1602_v20  ;;  %v1243_v27 = vrot.slane %v6214_v3, 3  ;;  %v2046_v30 = vrot.slane %v6214_v3, 7 }
  0xa9   :  { %5364 = vrot.lane.b32.xlu1 %v5363_v22, %s6005_s19  ;;  %v5353_v29 = vpack.i.bf16 %v800_v24, %v1603_v26  ;;  %v801_v31 = vrot.slane %v6214_v3, 1  ;;  %v1604_v32 = vrot.slane %v6214_v3, 5  ;;  %v600_v33 = vrot.slane %v518_v21, 5 }
  0xaa   :  { %5374 = vrot.lane.b32.xlu2 %v5373_v25, %s6006_s20  ;;  %v1244_v43 = vsel %vm1239_vm3, %v1241_v7, %v1243_v27  ;;  %v2047_v44 = vsel %vm2042_vm4, %v2044_v8, %v2046_v30  ;;  %v1021_v46 = vsel %vm1018_vm5, %v1019_v40, %v1020_v9  ;;  %v1824_v47 = vsel %vm1821_vm6, %v1822_v41, %v1823_v12 }
  0xab   :  { %5354 = vrot.lane.b32.xlu0 %v5353_v29, %s6007_s21  ;;  %v802_v37 = vsel %vm797_vm7, %v799_v14, %v801_v31  ;;  %v1605_v39 = vsel %vm596_vm2, %v1602_v20, %v1604_v32  ;;  %v6255_v48 = vsel %vm596_vm2, 0.0, %v600_v33  ;;  %v5378_v51 = vpack.i.bf16 %v1244_v43, %v2047_v44 }
  0xac   :  { %v405_v36 = vpop.f32.mrf.mxu0  ;;  %v5368_v50 = vpack.i.bf16 %v802_v37, %v1605_v39  ;;  %v5358_v54 = vpack.i.bf16 %v1021_v46, %v1824_v47  ;;  %v1245_v57 = vrot.slane %v6255_v48, 3  ;;  %v2048_v59 = vrot.slane %v6255_v48, 7 }
  0xad   :  { %v406_v42 = vadd.f32 %v6186_v38, %v405_v36  ;;  %v1024_v60 = vrot.slane %v6255_v48, 2  ;;  %v1827_v61 = vrot.slane %v6255_v48, 6  ;;  %v803_v63 = vrot.slane %v6255_v48, 1 }
  0xae   :  { %v1606_v0 = vrot.slane %v6255_v48, 5  ;;  %v148_v25 = vmul.f32 %v5210_v1, %v6100_v18  ;;  %v5211_v26 = vadd.f32 32768.0, %v62_v13 }
  0xaf   :  { %v519_v49 = vmax.f32 %v406_v42, 0.0  ;;  %5287 = vmatmul.msk.f32.gmra.mxu0 %vm258_vm1, %v5247_v34  ;;  %v5249_v34 = vadd.f32 -1.0, %v187_v56 }
  0xb0   :  { %v149_v39 = vmul.f32 %v5211_v26, %v6100_v18  ;;  %v188_v43 = vmul.f32 2.0, %v148_v25 }
  0xb1   :  { %v601_v53 = vrot.slane %v519_v49, 5  ;;  %5369 = vrot.lane.b32.xlu1 %v5368_v50, %s6007_s21 }
  0xb2   :  { %5379 = vrot.lane.b32.xlu2 %v5378_v51, %s6005_s19  ;;  %v63_v51 = vld [vmem:[%s9949_s0 + $0xc0] sm:$0xff] }
  0xb3   :  { %v6268_v62 = vsel %vm596_vm2, %v600_v33, %v601_v53  ;;  %5359 = vrot.lane.b32.xlu0 %v5358_v54, %s6006_s20  ;;  %v6278_v9 = vsel %vm596_vm2, %v601_v53, 0.0  ;;  %v5250_v54 = vadd.f32 -1.0, %v188_v43  ;;  %v5212_v1 = vadd.f32 32768.0, %v63_v51 }
  0xb4   :  { %10024 = vst [vmem:[#allocation5_spill] sm:$0xff] %v6268_v62  ;;  %v408_v4 = vpop.f32.mrf.mxu0  ;;  %v1246_v5 = vrot.slane %v6268_v62, 3  ;;  %v2049_v6 = vrot.slane %v6268_v62, 7  ;;  %v1025_v7 = vrot.slane %v6268_v62, 2  ;;  %v1828_v8 = vrot.slane %v6268_v62, 6 }
  0xb5   :  { %v409_v10 = vadd.f32 %v6186_v38, %v408_v4  ;;  %v804_v11 = vrot.slane %v6268_v62, 1  ;;  %v1607_v12 = vrot.slane %v6268_v62, 5  ;;  %v1027_v24 = vrot.slane %v6278_v9, 2 }
  0xb6   :  { %v1247_v14 = vsel %vm1239_vm3, %v1245_v57, %v1246_v5  ;;  %v2050_v15 = vsel %vm2042_vm4, %v2048_v59, %v2049_v6  ;;  %v1026_v16 = vsel %vm1018_vm5, %v1024_v60, %v1025_v7  ;;  %v1829_v17 = vsel %vm1821_vm6, %v1827_v61, %v1828_v8 }
  0xb7   :  { %v520_v19 = vmax.f32 %v409_v10, 0.0  ;;  %5288 = vmatmul.msk.f32.gmra.mxu0 %vm258_vm1, %v5248_v55  ;;  %v5393_v20 = vpack.i.bf16 %v1247_v14, %v2050_v15  ;;  %v5388_v21 = vpack.i.bf16 %v1026_v16, %v1829_v17  ;;  %v805_v22 = vsel %vm797_vm7, %v803_v63, %v804_v11  ;;  %v64_v14 = vld [vmem:[%s9949_s0 + $0xc8] sm:$0xff] }
  0xb8   :  { %v1608_v23 = vsel %vm596_vm2, %v1606_v0, %v1607_v12  ;;  %v1248_v28 = vrot.slane %v6278_v9, 3  ;;  %v2051_v29 = vrot.slane %v6278_v9, 7  ;;  %v1830_v30 = vrot.slane %v6278_v9, 6 }
  0xb9   :  { %5389 = vrot.lane.b32.xlu1 %v5388_v21, %s6006_s20  ;;  %v5383_v27 = vpack.i.bf16 %v805_v22, %v1608_v23  ;;  %v806_v31 = vrot.slane %v6278_v9, 1  ;;  %v1609_v32 = vrot.slane %v6278_v9, 5  ;;  %v603_v33 = vrot.slane %v520_v19, 5 }
  0xba   :  { %5394 = vrot.lane.b32.xlu2 %v5393_v20, %s6005_s19  ;;  %v1028_v36 = vsel %vm1018_vm5, %v1025_v7, %v1027_v24  ;;  %v1831_v37 = vsel %vm1821_vm6, %v1828_v8, %v1830_v30  ;;  %v1249_v41 = vsel %vm1239_vm3, %v1246_v5, %v1248_v28  ;;  %v2052_v42 = vsel %vm2042_vm4, %v2049_v6, %v2051_v29 }
  0xbb   :  { %5384 = vrot.lane.b32.xlu0 %v5383_v27, %s6007_s21  ;;  %v807_v44 = vsel %vm797_vm7, %v804_v11, %v806_v31  ;;  %v1610_v45 = vsel %vm596_vm2, %v1607_v12, %v1609_v32  ;;  %v6312_v46 = vsel %vm596_vm2, 0.0, %v603_v33  ;;  %v5403_v49 = vpack.i.bf16 %v1028_v36, %v1831_v37 }
  0xbc   :  { %v411_v35 = vpop.f32.mrf.mxu0  ;;  %10025 = vst [vmem:[#allocation6_spill] sm:$0xff] %v6312_v46  ;;  %v5408_v50 = vpack.i.bf16 %v1249_v41, %v2052_v42  ;;  %v5398_v53 = vpack.i.bf16 %v807_v44, %v1610_v45  ;;  %v189_v55 = vmul.f32 2.0, %v149_v39  ;;  %v1250_v56 = vrot.slane %v6312_v46, 3 }
  0xbd   :  { %v412_v40 = vadd.f32 %v6186_v38, %v411_v35  ;;  %v2053_v57 = vrot.slane %v6312_v46, 7  ;;  %v1029_v59 = vrot.slane %v6312_v46, 2  ;;  %v1832_v60 = vrot.slane %v6312_v46, 6 }
  0xbe   :  { %v808_v63 = vrot.slane %v6312_v46, 1  ;;  %v1611_v0 = vrot.slane %v6312_v46, 5  ;;  %v150_v26 = vmul.f32 %v5212_v1, %v6100_v18  ;;  %v5213_v27 = vadd.f32 32768.0, %v64_v14 }
  0xbf   :  { %v521_v47 = vmax.f32 %v412_v40, 0.0  ;;  %5289 = vmatmul.msk.f32.gmra.mxu0 %vm258_vm1, %v5249_v34  ;;  %v5251_v35 = vadd.f32 -1.0, %v189_v55 }
  0xc0   :  { %v151_v40 = vmul.f32 %v5213_v27, %v6100_v18  ;;  %v190_v44 = vmul.f32 2.0, %v150_v26 }
  0xc1   :  { %v604_v52 = vrot.slane %v521_v47, 5  ;;  %5404 = vrot.lane.b32.xlu1 %v5403_v49, %s6006_s20 }
  0xc2   :  { %5409 = vrot.lane.b32.xlu2 %v5408_v50, %s6005_s19 }
  0xc3   :  { %v6325_v61 = vsel %vm596_vm2, %v603_v33, %v604_v52  ;;  %5399 = vrot.lane.b32.xlu0 %v5398_v53, %s6007_s21  ;;  %v6335_v10 = vsel %vm596_vm2, %v604_v52, 0.0  ;;  %v65_v53 = vld [vmem:[%s9949_s0 + $0xd0] sm:$0xff] }
  0xc4   :  { %10026 = vst [vmem:[#allocation7_spill] sm:$0xff] %v6325_v61  ;;  %v414_v4 = vpop.f32.mrf.mxu0  ;;  %v1251_v5 = vrot.slane %v6325_v61, 3  ;;  %v2054_v6 = vrot.slane %v6325_v61, 7  ;;  %v1030_v7 = vrot.slane %v6325_v61, 2  ;;  %v1833_v8 = vrot.slane %v6325_v61, 6 }
  0xc5   :  { %v415_v11 = vadd.f32 %v6186_v38, %v414_v4  ;;  %v809_v12 = vrot.slane %v6325_v61, 1  ;;  %v1612_v13 = vrot.slane %v6325_v61, 5  ;;  %v1032_v25 = vrot.slane %v6335_v10, 2 }
  0xc6   :  { %v1252_v15 = vsel %vm1239_vm3, %v1250_v56, %v1251_v5  ;;  %v2055_v16 = vsel %vm2042_vm4, %v2053_v57, %v2054_v6  ;;  %v1031_v17 = vsel %vm1018_vm5, %v1029_v59, %v1030_v7  ;;  %v1834_v19 = vsel %vm1821_vm6, %v1832_v60, %v1833_v8 }
  0xc7   :  { %v522_v20 = vmax.f32 %v415_v11, 0.0  ;;  %5290 = vmatmul.msk.f32.gmra.mxu0 %vm258_vm1, %v5250_v54  ;;  %v5423_v21 = vpack.i.bf16 %v1252_v15, %v2055_v16  ;;  %v5418_v22 = vpack.i.bf16 %v1031_v17, %v1834_v19  ;;  %v810_v23 = vsel %vm797_vm7, %v808_v63, %v809_v12  ;;  %v66_v19 = vld [vmem:[%s9949_s0 + $0xd8] sm:$0xff] }
  0xc8   :  { %v1613_v24 = vsel %vm596_vm2, %v1611_v0, %v1612_v13  ;;  %v1253_v29 = vrot.slane %v6335_v10, 3  ;;  %v2056_v30 = vrot.slane %v6335_v10, 7  ;;  %v1835_v31 = vrot.slane %v6335_v10, 6 }
  0xc9   :  { %5419 = vrot.lane.b32.xlu1 %v5418_v22, %s6006_s20  ;;  %v5413_v28 = vpack.i.bf16 %v810_v23, %v1613_v24  ;;  %v811_v32 = vrot.slane %v6335_v10, 1  ;;  %v1614_v33 = vrot.slane %v6335_v10, 5  ;;  %v606_v34 = vrot.slane %v522_v20, 5 }
  0xca   :  { %5424 = vrot.lane.b32.xlu2 %v5423_v21, %s6005_s19  ;;  %v1033_v37 = vsel %vm1018_vm5, %v1030_v7, %v1032_v25  ;;  %v1836_v39 = vsel %vm1821_vm6, %v1833_v8, %v1835_v31  ;;  %v1254_v42 = vsel %vm1239_vm3, %v1251_v5, %v1253_v29  ;;  %v2057_v43 = vsel %vm2042_vm4, %v2054_v6, %v2056_v30 }
  0xcb   :  { %5414 = vrot.lane.b32.xlu0 %v5413_v28, %s6007_s21  ;;  %v812_v45 = vsel %vm797_vm7, %v809_v12, %v811_v32  ;;  %v1615_v47 = vsel %vm596_vm2, %v1612_v13, %v1614_v33  ;;  %v6369_v49 = vsel %vm596_vm2, 0.0, %v606_v34  ;;  %v5433_v51 = vpack.i.bf16 %v1033_v37, %v1836_v39 }
  0xcc   :  { %v417_v36 = vpop.f32.mrf.mxu0  ;;  %10027 = vst [vmem:[#allocation8_spill] sm:$0xff] %v6369_v49  ;;  %v5438_v52 = vpack.i.bf16 %v1254_v42, %v2057_v43  ;;  %v5428_v55 = vpack.i.bf16 %v812_v45, %v1615_v47  ;;  %v5252_v56 = vadd.f32 -1.0, %v190_v44  ;;  %v191_v57 = vmul.f32 2.0, %v151_v40 }
  0xcd   :  { %v418_v41 = vadd.f32 %v6186_v38, %v417_v36  ;;  %v1255_v59 = vrot.slane %v6369_v49, 3  ;;  %v2058_v60 = vrot.slane %v6369_v49, 7  ;;  %v1034_v63 = vrot.slane %v6369_v49, 2 }
  0xce   :  { %v1837_v0 = vrot.slane %v6369_v49, 6  ;;  %v813_v4 = vrot.slane %v6369_v49, 1  ;;  %v1616_v5 = vrot.slane %v6369_v49, 5  ;;  %v5214_v6 = vadd.f32 32768.0, %v65_v53 }
  0xcf   :  { %v523_v50 = vmax.f32 %v418_v41, 0.0  ;;  %5291 = vmatmul.msk.f32.gmra.mxu0 %vm258_vm1, %v5251_v35  ;;  %v5215_v31 = vadd.f32 32768.0, %v66_v19  ;;  %v5253_v40 = vadd.f32 -1.0, %v191_v57 }
  0xd0   :  { %v152_v30 = vmul.f32 %v5214_v6, %v6100_v18 }
  0xd1   :  { %v607_v54 = vrot.slane %v523_v50, 5  ;;  %5434 = vrot.lane.b32.xlu1 %v5433_v51, %s6006_s20  ;;  %v153_v44 = vmul.f32 %v5215_v31, %v6100_v18 }
  0xd2   :  { %5439 = vrot.lane.b32.xlu2 %v5438_v52, %s6005_s19  ;;  %v192_v51 = vmul.f32 2.0, %v152_v30 }
  0xd3   :  { %v6382_v1 = vsel %vm596_vm2, %v606_v34, %v607_v54  ;;  %5429 = vrot.lane.b32.xlu0 %v5428_v55, %s6007_s21  ;;  %v6392_v14 = vsel %vm596_vm2, %v607_v54, 0.0 }
  0xd4   :  { %v420_v7 = vpop.f32.mrf.mxu0  ;;  %v1256_v8 = vrot.slane %v6382_v1, 3  ;;  %v2059_v11 = vrot.slane %v6382_v1, 7  ;;  %v1035_v12 = vrot.slane %v6382_v1, 2  ;;  %v1838_v13 = vrot.slane %v6382_v1, 6 }
  0xd5   :  { %v421_v15 = vadd.f32 %v6186_v38, %v420_v7  ;;  %v814_v16 = vrot.slane %v6382_v1, 1  ;;  %v1617_v17 = vrot.slane %v6382_v1, 5  ;;  %v1037_v29 = vrot.slane %v6392_v14, 2 }
  0xd6   :  { %v1257_v20 = vsel %vm1239_vm3, %v1255_v59, %v1256_v8  ;;  %v2060_v21 = vsel %vm2042_vm4, %v2058_v60, %v2059_v11  ;;  %v1036_v22 = vsel %vm1018_vm5, %v1034_v63, %v1035_v12  ;;  %v1839_v23 = vsel %vm1821_vm6, %v1837_v0, %v1838_v13  ;;  %v67_v59 = vld [vmem:[%s9949_s0 + $0xe0] sm:$0xff] }
  0xd7   :  { %v524_v24 = vmax.f32 %v421_v15, 0.0  ;;  %5292 = vmatmul.msk.f32.gmra.mxu0 %vm258_vm1, %v5252_v56  ;;  %v5453_v25 = vpack.i.bf16 %v1257_v20, %v2060_v21  ;;  %v5448_v26 = vpack.i.bf16 %v1036_v22, %v1839_v23  ;;  %v815_v27 = vsel %vm797_vm7, %v813_v4, %v814_v16 }
  0xd8   :  { %v1618_v28 = vsel %vm596_vm2, %v1616_v5, %v1617_v17  ;;  %v1258_v33 = vrot.slane %v6392_v14, 3  ;;  %v2061_v34 = vrot.slane %v6392_v14, 7  ;;  %v1840_v35 = vrot.slane %v6392_v14, 6 }
  0xd9   :  { %5449 = vrot.lane.b32.xlu1 %v5448_v26, %s6006_s20  ;;  %v5443_v32 = vpack.i.bf16 %v815_v27, %v1618_v28  ;;  %v816_v36 = vrot.slane %v6392_v14, 1  ;;  %v1619_v37 = vrot.slane %v6392_v14, 5  ;;  %v609_v39 = vrot.slane %v524_v24, 5  ;;  %v68_v26 = vld [vmem:[%s9949_s0 + $0xe8] sm:$0xff] }
  0xda   :  { %5454 = vrot.lane.b32.xlu2 %v5453_v25, %s6005_s19  ;;  %v1038_v42 = vsel %vm1018_vm5, %v1035_v12, %v1037_v29  ;;  %v1841_v43 = vsel %vm1821_vm6, %v1838_v13, %v1840_v35  ;;  %v1259_v47 = vsel %vm1239_vm3, %v1256_v8, %v1258_v33  ;;  %v2062_v50 = vsel %vm2042_vm4, %v2059_v11, %v2061_v34 }
  0xdb   :  { %5444 = vrot.lane.b32.xlu0 %v5443_v32, %s6007_s21  ;;  %v817_v52 = vsel %vm797_vm7, %v814_v16, %v816_v36  ;;  %v1620_v53 = vsel %vm596_vm2, %v1617_v17, %v1619_v37  ;;  %v6426_v54 = vsel %vm596_vm2, 0.0, %v609_v39  ;;  %v5463_v56 = vpack.i.bf16 %v1038_v42, %v1841_v43 }
  0xdc   :  { %v423_v41 = vpop.f32.mrf.mxu0  ;;  %v5468_v57 = vpack.i.bf16 %v1259_v47, %v2062_v50  ;;  %v5458_v63 = vpack.i.bf16 %v817_v52, %v1620_v53  ;;  %v5254_v0 = vadd.f32 -1.0, %v192_v51  ;;  %v193_v4 = vmul.f32 2.0, %v153_v44  ;;  %v2520_v53 = vld [vmem:[%s9952_s3 + $0x78] sm:$0xff] }
  0xdd   :  { %v424_v45 = vadd.f32 %v6186_v38, %v423_v41  ;;  %v1260_v5 = vrot.slane %v6426_v54, 3  ;;  %v2063_v6 = vrot.slane %v6426_v54, 7  ;;  %v1039_v7 = vrot.slane %v6426_v54, 2  ;;  %2541 = vmatpush.msra.mxu1 %v2520_v53  ;;  %5315 = vmatpush.msra.mxu3 %v2520_v53 }
  0xde   :  { %v1842_v8 = vrot.slane %v6426_v54, 6  ;;  %v818_v12 = vrot.slane %v6426_v54, 1  ;;  %v1621_v13 = vrot.slane %v6426_v54, 5  ;;  %v5216_v15 = vadd.f32 32768.0, %v67_v59 }
  0xdf   :  { %v525_v55 = vmax.f32 %v424_v45, 0.0  ;;  %5293 = vmatmul.msk.f32.gmra.mxu0 %vm258_vm1, %v5253_v40  ;;  %v1461_v47 = vrot.slane %v6204_v58, 4  ;;  %v1462_v50 = vrot.slane %v6211_v2, 4  ;;  %v5255_v52 = vadd.f32 -1.0, %v193_v4 }
  0xe0   :  { %v154_v37 = vmul.f32 %v5216_v15, %v6100_v18  ;;  %v1467_v4 = vrot.slane %v6268_v62, 4 }
  0xe1   :  { %v610_v60 = vrot.slane %v525_v55, 5  ;;  %5464 = vrot.lane.b32.xlu1 %v5463_v56, %s6006_s20  ;;  %v6482_v55 = vld [vmem:[%s9952_s3 + $0xf8] sm:$0xff]  ;;  %v1464_v56 = vrot.slane %v6214_v3, 4 }
  0xe2   :  { %5469 = vrot.lane.b32.xlu2 %v5468_v57, %s6005_s19  ;;  %v1466_v57 = vrot.slane %v6255_v48, 4  ;;  %2678 = vmatpush.msra.mxu2 %v6482_v55 }
  0xe3   :  { %v6439_v11 = vsel %vm596_vm2, %v609_v39, %v610_v60  ;;  %5459 = vrot.lane.b32.xlu0 %v5458_v63, %s6007_s21  ;;  %v6449_v22 = vsel %vm596_vm2, %v610_v60, 0.0  ;;  %v5217_v39 = vadd.f32 32768.0, %v68_v26  ;;  %v1469_v26 = vrot.slane %v6278_v9, 4  ;;  %v6634_v9 = vld [vmem:[%s9952_s3 + $0x40] sm:$0xff] }
  0xe4   :  { %10028 = vst [vmem:[#allocation9_spill] sm:$0xff] %v6439_v11  ;;  %v426_v16 = vpop.f32.mrf.mxu0  ;;  %v1261_v17 = vrot.slane %v6439_v11, 3  ;;  %v2064_v19 = vrot.slane %v6439_v11, 7  ;;  %v1040_v20 = vrot.slane %v6439_v11, 2  ;;  %v1843_v21 = vrot.slane %v6439_v11, 6 }
  0xe5   :  { %v427_v23 = vadd.f32 %v6186_v38, %v426_v16  ;;  %v819_v24 = vrot.slane %v6439_v11, 1  ;;  %v1622_v25 = vrot.slane %v6439_v11, 5  ;;  %v1042_v36 = vrot.slane %v6449_v22, 2 }
  0xe6   :  { %v1262_v27 = vsel %vm1239_vm3, %v1260_v5, %v1261_v17  ;;  %v2065_v28 = vsel %vm2042_vm4, %v2063_v6, %v2064_v19  ;;  %v1041_v29 = vsel %vm1018_vm5, %v1039_v7, %v1040_v20  ;;  %v1844_v30 = vsel %vm1821_vm6, %v1842_v8, %v1843_v21  ;;  %v2519_v8 = vld [vmem:[%s9952_s3 + $0x70] sm:$0xff] }
  0xe7   :  { %v526_v31 = vmax.f32 %v427_v23, 0.0  ;;  %5294 = vmatmul.msk.f32.gmra.mxu0 %vm258_vm1, %v5254_v0  ;;  %v5483_v32 = vpack.i.bf16 %v1262_v27, %v2065_v28  ;;  %v5478_v33 = vpack.i.bf16 %v1041_v29, %v1844_v30  ;;  %v820_v34 = vsel %vm797_vm7, %v818_v12, %v819_v24  ;;  %v6500_v12 = vld [vmem:[%s9952_s3 + $0xf0] sm:$0xff]  ;;  %2542 = vmatpush.msra.mxu1 %v2519_v8 }
  0xe8   :  { %v1623_v35 = vsel %vm596_vm2, %v1621_v13, %v1622_v25  ;;  %v1263_v41 = vrot.slane %v6449_v22, 3  ;;  %v2066_v42 = vrot.slane %v6449_v22, 7  ;;  %v1845_v43 = vrot.slane %v6449_v22, 6  ;;  %2679 = vmatpush.msra.mxu2 %v6500_v12  ;;  %5316 = vmatpush.msra.mxu3 %v2519_v8 }
  0xe9   :  { %5479 = vrot.lane.b32.xlu1 %v5478_v33, %s6006_s20  ;;  %v5473_v40 = vpack.i.bf16 %v820_v34, %v1623_v35  ;;  %v821_v44 = vrot.slane %v6449_v22, 1  ;;  %v1624_v45 = vrot.slane %v6449_v22, 5  ;;  %v612_v51 = vrot.slane %v526_v31, 5  ;;  %v6534_v33 = vld [vmem:[%s9952_s3 + $0xe8] sm:$0xff] }
  0xea   :  { %5484 = vrot.lane.b32.xlu2 %v5483_v32, %s6005_s19  ;;  %v1043_v60 = vsel %vm1018_vm5, %v1040_v20, %v1042_v36  ;;  %v1846_v63 = vsel %vm1821_vm6, %v1843_v21, %v1845_v43  ;;  %v155_v0 = vmul.f32 %v5217_v39, %v6100_v18  ;;  %v1264_v6 = vsel %vm1239_vm3, %v1261_v17, %v1263_v41  ;;  %v2518_v32 = vld [vmem:[%s9952_s3 + $0x68] sm:$0xff]  ;;  %v2517_v43 = vld [vmem:[%s9952_s3 + $0x60] sm:$0xff] }
  0xeb   :  { %5474 = vrot.lane.b32.xlu0 %v5473_v40, %s6007_s21  ;;  %v2067_v3 = vsel %vm2042_vm4, %v2064_v19, %v2066_v42  ;;  %v194_v7 = vmul.f32 2.0, %v154_v37  ;;  %v822_v13 = vsel %vm797_vm7, %v819_v24, %v821_v44  ;;  %v1625_v15 = vsel %vm596_vm2, %v1622_v25, %v1624_v45  ;;  %v69_v24 = vld [vmem:[%s9949_s0 + $0xf0] sm:$0xff]  ;;  %2543 = vmatpush.msra.mxu1 %v2518_v32  ;;  %v6554_v44 = vld [vmem:[%s9952_s3 + $0xe0] sm:$0xff]  ;;  %v6559_v45 = vld [vmem:[%s9952_s3 + $0x58] sm:$0xff] }
  0xec   :  { %v429_v59 = vpop.f32.mrf.mxu0  ;;  %v6506_v16 = vsel %vm1460_vm8, %v1461_v47, %v1462_v50  ;;  %v6509_v17 = vsel %vm596_vm2, 0.0, %v612_v51  ;;  %v5493_v20 = vpack.i.bf16 %v1043_v60, %v1846_v63  ;;  %v6513_v21 = vsel %vm1460_vm8, %v1462_v50, %v1464_v56  ;;  %2680 = vmatpush.msra.mxu2 %v6534_v33  ;;  %v6568_v56 = vld [vmem:[%s9952_s3 + $0xd8] sm:$0xff]  ;;  %5317 = vmatpush.msra.mxu3 %v2518_v32 }
  0xed   :  { %v430_v5 = vadd.f32 %v6186_v38, %v429_v59  ;;  %10029 = vst [vmem:[#allocation10_spill] sm:$0xff] %v6509_v17  ;;  %v5498_v23 = vpack.i.bf16 %v1264_v6, %v2067_v3  ;;  %v6521_v25 = vsel %vm1460_vm8, %v1466_v57, %v1467_v4  ;;  %v1471_v27 = vrot.slane %v6312_v46, 4  ;;  %2544 = vmatpush.msra.mxu1 %v2517_v43 }
  0xee   :  { %v5488_v29 = vpack.i.bf16 %v822_v13, %v1625_v15  ;;  %v5256_v30 = vadd.f32 -1.0, %v194_v7  ;;  %v6526_v31 = vmul.f32 2.0, %v155_v0  ;;  %v1265_v34 = vrot.slane %v6509_v17, 3  ;;  %v70_v0 = vld [vmem:[%s9949_s0 + $0xf8] sm:$0xff]  ;;  %2681 = vmatpush.msra.mxu2 %v6554_v44  ;;  %v6595_v13 = vld [vmem:[%s9952_s3 + $0xd0] sm:$0xff]  ;;  %5318 = vmatpush.msra.mxu3 %v2517_v43 }
  0xef   :  { %v527_v19 = vmax.f32 %v430_v5, 0.0  ;;  %5295 = vmatmul.msk.f32.gmra.mxu0 %vm258_vm1, %v5255_v52  ;;  %v2068_v35 = vrot.slane %v6509_v17, 7  ;;  %v1044_v36 = vrot.slane %v6509_v17, 2  ;;  %v1847_v37 = vrot.slane %v6509_v17, 6  ;;  %v2515_v5 = vld [vmem:[%s9952_s3 + $0x50] sm:$0xff]  ;;  %2545 = vmatpush.msra.mxu1 %v6559_v45 }
  0xf0   :  { %v823_v40 = vrot.slane %v6509_v17, 1  ;;  %v1626_v41 = vrot.slane %v6509_v17, 5  ;;  %v5218_v42 = vadd.f32 32768.0, %v69_v24  ;;  %2682 = vmatpush.msra.mxu2 %v6568_v56  ;;  %v1472_v32 = vrot.slane %v6325_v61, 4  ;;  %5319 = vmatpush.msra.mxu3 %v6559_v45 }
  0xf1   :  { %v613_v28 = vrot.slane %v527_v19, 5  ;;  %5494 = vrot.lane.b32.xlu1 %v5493_v20, %s6006_s20  ;;  %2546 = vmatpush.msra.mxu1 %v2515_v5 }
  0xf2   :  { %5499 = vrot.lane.b32.xlu2 %v5498_v23, %s6005_s19  ;;  %2683 = vmatpush.msra.mxu2 %v6595_v13 }
  0xf3   :  { %v6542_v39 = vsel %vm596_vm2, %v612_v51, %v613_v28  ;;  %5489 = vrot.lane.b32.xlu0 %v5488_v29, %s6007_s21  ;;  %v6571_v57 = vsel %vm596_vm2, %v613_v28, 0.0  ;;  %v5219_v29 = vadd.f32 32768.0, %v70_v0  ;;  %5320 = vmatpush.msra.mxu3 %v2515_v5 }
  0xf4   :  { %10030 = vst [vmem:[#allocation11_spill] sm:$0xff] %v6542_v39  ;;  %v432_v47 = vpop.f32.mrf.mxu0  ;;  %v1266_v50 = vrot.slane %v6542_v39, 3  ;;  %v2069_v51 = vrot.slane %v6542_v39, 7  ;;  %v1045_v52 = vrot.slane %v6542_v39, 2  ;;  %v1848_v53 = vrot.slane %v6542_v39, 6 }
  0xf5   :  { %v433_v59 = vadd.f32 %v6186_v38, %v432_v47  ;;  %v824_v60 = vrot.slane %v6542_v39, 1  ;;  %v1627_v63 = vrot.slane %v6542_v39, 5  ;;  %v1047_v28 = vrot.slane %v6571_v57, 2 }
  0xf6   :  { %v1267_v6 = vsel %vm1239_vm3, %v1265_v34, %v1266_v50  ;;  %v2070_v3 = vsel %vm2042_vm4, %v2068_v35, %v2069_v51  ;;  %v1046_v7 = vsel %vm1018_vm5, %v1044_v36, %v1045_v52  ;;  %v1849_v8 = vsel %vm1821_vm6, %v1847_v37, %v1848_v53  ;;  %v2514_v37 = vld [vmem:[%s9952_s3 + $0x48] sm:$0xff] }
  0xf7   :  { %v528_v15 = vmax.f32 %v433_v59, 0.0  ;;  %5296 = vmatmul.msk.f32.gmra.mxu0 %vm258_vm1, %v5256_v30  ;;  %v5513_v19 = vpack.i.bf16 %v1267_v6, %v2070_v3  ;;  %v5508_v20 = vpack.i.bf16 %v1046_v7, %v1849_v8  ;;  %v825_v23 = vsel %vm797_vm7, %v823_v40, %v824_v60  ;;  %v6614_v40 = vld [vmem:[%s9952_s3 + $0xc8] sm:$0xff]  ;;  %2547 = vmatpush.msra.mxu1 %v2514_v37  ;;  %v6653_v8 = vld [vmem:[%s9952_s3 + $0xb8] sm:$0xff] }
  0xf8   :  { %v1628_v24 = vsel %vm596_vm2, %v1626_v41, %v1627_v63  ;;  %v1268_v30 = vrot.slane %v6571_v57, 3  ;;  %v2071_v35 = vrot.slane %v6571_v57, 7  ;;  %v1850_v36 = vrot.slane %v6571_v57, 6  ;;  %2684 = vmatpush.msra.mxu2 %v6614_v40  ;;  %5321 = vmatpush.msra.mxu3 %v2514_v37  ;;  %v6766_v37 = vld [vmem:[%s9951_s2] ss:$0 sm:$0xff] }
  0xf9   :  { %5509 = vrot.lane.b32.xlu1 %v5508_v20, %s6006_s20  ;;  %v5503_v34 = vpack.i.bf16 %v825_v23, %v1628_v24  ;;  %v826_v41 = vrot.slane %v6571_v57, 1  ;;  %v1629_v43 = vrot.slane %v6571_v57, 5  ;;  %v6624_v47 = vsel %vm1460_vm8, %v1467_v4, %v1469_v26  ;;  %v6639_v4 = vld [vmem:[%s9952_s3 + $0xc0] sm:$0xff]  ;;  %2548 = vmatpush.msra.mxu1 %v6634_v9 }
  0xfa   :  { %5514 = vrot.lane.b32.xlu2 %v5513_v19, %s6005_s19  ;;  %10031 = vst [vmem:[#allocation12_spill] sm:$0xff] %v6624_v47  ;;  %v1474_v59 = vrot.slane %v6335_v10, 4  ;;  %v615_v0 = vrot.slane %v528_v15, 5  ;;  %v5257_v6 = vadd.f32 -1.0, %v6526_v31  ;;  %v156_v3 = vmul.f32 %v5218_v42, %v6100_v18  ;;  %v6644_v10 = vld [vmem:[%s9952_s3 + $0x38] sm:$0xff]  ;;  %2685 = vmatpush.msra.mxu2 %v6639_v4 }
  0xfb   :  { %5504 = vrot.lane.b32.xlu0 %v5503_v34, %s6007_s21  ;;  %v1476_v26 = vrot.slane %v6369_v49, 4  ;;  %v1048_v42 = vsel %vm1018_vm5, %v1045_v52, %v1047_v28  ;;  %v1851_v7 = vsel %vm1821_vm6, %v1848_v53, %v1850_v36  ;;  %v6658_v15 = vsel %vm1460_vm8, %v1471_v27, %v1472_v32  ;;  %v6674_v27 = vld [vmem:[%s9952_s3 + $0x30] sm:$0xff]  ;;  %2549 = vmatpush.msra.mxu1 %v6644_v10 }
  0xfc   :  { %v435_v31 = vpop.f32.mrf.mxu0  ;;  %10032 = vst [vmem:[#allocation13_spill] sm:$0xff] %v6658_v15  ;;  %v9961_v19 = vrot.slane %v6382_v1, 4  ;;  %v1269_v53 = vsel %vm1239_vm3, %v1266_v50, %v1268_v30  ;;  %v2072_v20 = vsel %vm2042_vm4, %v2069_v51, %v2071_v35  ;;  %v157_v23 = vmul.f32 %v5219_v29, %v6100_v18  ;;  %v6682_v50 = vld [vmem:[%s9952_s3 + $0xb0] sm:$0xff]  ;;  %2686 = vmatpush.msra.mxu2 %v6653_v8 }
  0xfd   :  { %v436_v52 = vadd.f32 %v6186_v38, %v435_v31  ;;  %v827_v45 = vsel %vm797_vm7, %v824_v60, %v826_v41  ;;  %v1630_v38 = vsel %vm596_vm2, %v1627_v63, %v1629_v43  ;;  %v6685_v51 = vsel %vm1460_vm8, %v1472_v32, %v1474_v59  ;;  %2550 = vmatpush.msra.mxu1 %v6674_v27  ;;  %v6707_v41 = vld [vmem:[%s9952_s3 + $0x28] sm:$0xff]  ;;  %v71_v31 = vld [vmem:[%s9949_s0 + $0x100] sm:$0xff] }
  0xfe   :  { %10033 = vst [vmem:[#allocation14_spill] sm:$0xff] %v6685_v51  ;;  %v6688_v24 = vsel %vm596_vm2, 0.0, %v615_v0  ;;  %v5523_v60 = vpack.i.bf16 %v1048_v42, %v1851_v7  ;;  %v196_v29 = vmul.f32 2.0, %v156_v3  ;;  %v5528_v63 = vpack.i.bf16 %v1269_v53, %v2072_v20  ;;  %2687 = vmatpush.msra.mxu2 %v6682_v50  ;;  %v6712_v43 = vld [vmem:[%s9952_s3 + $0xa8] sm:$0xff]  ;;  %v6734_v20 = vld [vmem:[%s9952_s3 + $0x20] sm:$0xff]  ;;  %5322 = vmatpush.msra.mxu3 %v6634_v9 }
  0xff   :  { %v529_v28 = vmax.f32 %v436_v52, 0.0  ;;  %5297 = vmatmul.msk.f32.gmra.mxu0 %vm258_vm1, %v5257_v6  ;;  %v6696_v34 = vsel %vm1460_vm8, %v1476_v26, %v9961_v19  ;;  %v5518_v35 = vpack.i.bf16 %v827_v45, %v1630_v38  ;;  %v6701_v36 = vmul.f32 2.0, %v157_v23  ;;  %2551 = vmatpush.msra.mxu1 %v6707_v41  ;;  %v6739_v23 = vld [vmem:[%s9952_s3 + $0xa0] sm:$0xff]  ;;  %v6774_v38 = vld [vmem:[%s9952_s3 + $0x10] sm:$0xff] }
 0x100   :  { %10034 = vst [vmem:[#allocation15_spill] sm:$0xff] %v6696_v34  ;;  %v1270_v59 = vrot.slane %v6688_v24, 3  ;;  %v2073_v6 = vrot.slane %v6688_v24, 7  ;;  %v1049_v3 = vrot.slane %v6688_v24, 2  ;;  %v1852_v26 = vrot.slane %v6688_v24, 6  ;;  %2688 = vmatpush.msra.mxu2 %v6712_v43  ;;  %5323 = vmatpush.msra.mxu3 %v6644_v10 }
 0x101   :  { %v616_v30 = vrot.slane %v529_v28, 5  ;;  %5524 = vrot.lane.b32.xlu1 %v5523_v60, %s6006_s20  ;;  %v5258_v7 = vadd.f32 -1.0, %v196_v29  ;;  %v828_v52 = vrot.slane %v6688_v24, 1  ;;  %v1631_v53 = vrot.slane %v6688_v24, 5  ;;  %2552 = vmatpush.msra.mxu1 %v6734_v20 }
 0x102   :  { %5529 = vrot.lane.b32.xlu2 %v5528_v63, %s6005_s19  ;;  %v72_v63 = vld [vmem:[%s9949_s0 + $0x108] sm:$0xff]  ;;  %v5220_v28 = vadd.f32 32768.0, %v71_v31  ;;  %2689 = vmatpush.msra.mxu2 %v6739_v23  ;;  %v6788_v31 = vld [vmem:[%s9952_s3 + $0x90] sm:$0xff] }
 0x103   :  { %v6725_v42 = vsel %vm596_vm2, %v615_v0, %v616_v30  ;;  %5519 = vrot.lane.b32.xlu0 %v5518_v35, %s6007_s21  ;;  %v6744_v0 = vld [vmem:[%s9952_s3 + $0x18] sm:$0xff]  ;;  %v6761_v32 = vsel %vm596_vm2, %v616_v30, 0.0  ;;  %5324 = vmatpush.msra.mxu3 %v6674_v27  ;;  %v10041_v27 = vrot.slane %v6382_v1, 4 }
 0x104   :  { %v438_v45 = vpop.f32.mrf.mxu0  ;;  %v1050_v60 = vrot.slane %v6725_v42, 2  ;;  %v1853_v29 = vrot.slane %v6725_v42, 6  ;;  %v6757_v35 = vld [vmem:[%s9952_s3 + $0x98] sm:$0xff]  ;;  %v10035_v9 = vrot.slane %v6725_v42, 3  ;;  %v10036_v34 = vrot.slane %v6725_v42, 7  ;;  %2553 = vmatpush.msra.mxu1 %v6744_v0 }
 0x105   :  { %v439_v19 = vadd.f32 %v6766_v37, %v438_v45  ;;  %2690 = vmatpush.msra.mxu2 %v6757_v35  ;;  %v1052_v15 = vrot.slane %v6761_v32, 2  ;;  %v10038_v47 = vrot.slane %v6725_v42, 3  ;;  %5325 = vmatpush.msra.mxu3 %v6707_v41 }
 0x106   :  { %v1272_v30 = vsel %vm1239_vm3, %v1270_v59, %v10035_v9  ;;  %v2075_v49 = vsel %vm2042_vm4, %v2073_v6, %v10036_v34  ;;  %v1051_v45 = vsel %vm1018_vm5, %v1049_v3, %v1050_v60  ;;  %v1854_v5 = vsel %vm1821_vm6, %v1852_v26, %v1853_v29  ;;  %v6792_v34 = vpop.permute.xlu2 %5374  ;;  %2554 = vmatpush.msra.mxu1 %v6774_v38 }
 0x107   :  { %v530_v51 = vmax.f32 %v439_v19, 0.0  ;;  %5298 = vmatmul.msk.f32.gmra.mxu0 %vm258_vm1, %v5258_v7  ;;  %v5543_v61 = vpack.i.bf16 %v1272_v30, %v2075_v49  ;;  %v5538_v59 = vpack.i.bf16 %v1051_v45, %v1854_v5  ;;  %v5221_v9 = vadd.f32 32768.0, %v72_v63  ;;  %2691 = vmatpush.msra.mxu2 %v6788_v31  ;;  %v6811_v63 = vld [vmem:[%s9952_s3 + $0x8] sm:$0xff] }
 0x108   :  { %v10037_v6 = vrot.slane %v6725_v42, 1  ;;  %v1632_v26 = vrot.slane %v6725_v42, 5  ;;  %v1484_v19 = vrot.slane %v6449_v22, 4  ;;  %v1273_v49 = vrot.slane %v6761_v32, 3  ;;  %v6816_v22 = vld [vmem:[%s9952_s3 + $0x88] sm:$0xff]  ;;  %2555 = vmatpush.msra.mxu1 %v6811_v63  ;;  %5326 = vmatpush.msra.mxu3 %v6734_v20 }
 0x109   :  { %5539 = vrot.lane.b32.xlu1 %v5538_v59, %s6006_s20  ;;  %v2076_v5 = vrot.slane %v6761_v32, 7  ;;  %v1855_v7 = vrot.slane %v6761_v32, 6  ;;  %v5259_v30 = vadd.f32 -1.0, %v6701_v36  ;;  %v1487_v45 = vrot.slane %v6542_v39, 4  ;;  %2692 = vmatpush.msra.mxu2 %v6816_v22  ;;  %v6834_v36 = vld [vmem:[%s9952_s3 + $0x80] sm:$0xff] }
 0x10a   :  { %v830_v3 = vsel %vm797_vm7, %v828_v52, %v10037_v6  ;;  %v158_v52 = vmul.f32 %v5220_v28, %v6100_v18  ;;  %5544 = vrot.lane.b32.xlu2 %v5543_v61, %s6005_s19  ;;  %v1633_v10 = vsel %vm596_vm2, %v1631_v53, %v1632_v26  ;;  %v1486_v28 = vrot.slane %v6509_v17, 4  ;;  %v6829_v61 = vld [vmem:[%s9952_s3] sm:$0xff]  ;;  %5327 = vmatpush.msra.mxu3 %v6744_v0 }
 0x10b   :  { %v618_v59 = vrot.slane %v530_v51, 5  ;;  %v5533_v6 = vpack.i.bf16 %v830_v3, %v1633_v10  ;;  %v159_v46 = vmul.f32 %v5221_v9, %v6100_v18  ;;  %v1489_v53 = vrot.slane %v6571_v57, 4  ;;  %2556 = vmatpush.msra.mxu1 %v6829_v61  ;;  %2693 = vmatpush.msra.mxu2 %v6834_v36 }
 0x10c   :  { %v441_v51 = vpop.f32.mrf.mxu0  ;;  %v1053_v3 = vsel %vm1018_vm5, %v1050_v60, %v1052_v15  ;;  %v1856_v9 = vsel %vm1821_vm6, %v1853_v29, %v1855_v7  ;;  %v831_v10 = vrot.slane %v6761_v32, 1  ;;  %v1634_v39 = vrot.slane %v6761_v32, 5  ;;  %5328 = vmatpush.msra.mxu3 %v6774_v38 }
 0x10d   :  { %5534 = vrot.lane.b32.xlu0 %v5533_v6, %s6007_s21  ;;  %v442_v17 = vadd.f32 %v6766_v37, %v441_v51  ;;  %v1274_v62 = vsel %vm1239_vm3, %v10038_v47, %v1273_v49  ;;  %v10039_v57 = vrot.slane %v6725_v42, 7  ;;  %v198_v60 = vmul.f32 2.0, %v158_v52 }
 0x10e   :  { %v10040_v29 = vrot.slane %v6392_v14, 4  ;;  %v10042_v6 = vrot.slane %v6439_v11, 4  ;;  %v10043_v47 = vrot.slane %v6426_v54, 4  ;;  %v6873_v14 = vsel %vm596_vm2, 0.0, %v618_v59  ;;  %5329 = vmatpush.msra.mxu3 %v6811_v63 }
 0x10f   :  { %v2077_v15 = vsel %vm2042_vm4, %v10039_v57, %v2076_v5  ;;  %v531_v51 = vmax.f32 %v442_v17, 0.0  ;;  %5299 = vmatmul.msk.f32.gmra.mxu0 %vm258_vm1, %v5259_v30  ;;  %v5553_v57 = vpack.i.bf16 %v1053_v3, %v1856_v9  ;;  %v1635_v11 = vsel %vm596_vm2, %v1632_v26, %v1634_v39 }
 0x110   :  { %v6857_v7 = vsel %vm1460_vm8, %v10041_v27, %v10040_v29  ;;  %v6864_v49 = vsel %vm1460_vm8, %v10043_v47, %v10042_v6  ;;  %v10044_v5 = vmov %v10042_v6  ;;  %v5558_v27 = vpack.i.bf16 %v1274_v62, %v2077_v15  ;;  %v6889_v62 = vpop.permute.xlu2 %5379  ;;  %5330 = vmatpush.msra.mxu3 %v6829_v61 }
 0x111   :  { %v6869_v52 = vsel %vm1460_vm8, %v10044_v5, %v1484_v19  ;;  %v10045_v6 = vrot.slane %v6725_v42, 1  ;;  %v6882_v19 = vsel %vm1460_vm8, %v1486_v28, %v1487_v45  ;;  %v619_v41 = vrot.slane %v531_v51, 5  ;;  %5554 = vrot.lane.b32.xlu1 %v5553_v57, %s6006_s20  ;;  %v73_v28 = vld [vmem:[%s9949_s0 + $0x110] sm:$0xff] }
 0x112   :  { %v5260_v17 = vadd.f32 -1.0, %v198_v60  ;;  %v199_v30 = vmul.f32 2.0, %v159_v46  ;;  %v6887_v3 = vsel %vm1460_vm8, %v1487_v45, %v1489_v53  ;;  %5559 = vrot.lane.b32.xlu2 %v5558_v27, %s6005_s19  ;;  %v1275_v9 = vrot.slane %v6873_v14, 3  ;;  %5331 = vmatpush.msrb.mxu3 %v6482_v55 }
 0x113   :  { %v832_v47 = vsel %vm797_vm7, %v10045_v6, %v831_v10  ;;  %10046 = vst [vmem:[#allocation16_spill] sm:$0xff] %v6887_v3  ;;  %v2078_v39 = vrot.slane %v6873_v14, 7  ;;  %v1054_v26 = vrot.slane %v6873_v14, 2  ;;  %v1857_v20 = vrot.slane %v6873_v14, 6 }
 0x114   :  { %v6901_v46 = vsel %vm596_vm2, %v618_v59, %v619_v41  ;;  %v5548_v45 = vpack.i.bf16 %v832_v47, %v1635_v11  ;;  %v833_v53 = vrot.slane %v6873_v14, 1  ;;  %v1636_v10 = vrot.slane %v6873_v14, 5  ;;  %v444_v15 = vpop.f32.mrf.mxu0  ;;  %5332 = vmatpush.msrb.mxu3 %v6500_v12 }
 0x115   :  { %10047 = vst [vmem:[#allocation17_spill] sm:$0xff] %v6901_v46  ;;  %v1276_v60 = vrot.slane %v6901_v46, 3  ;;  %v2079_v5 = vrot.slane %v6901_v46, 7  ;;  %v1055_v51 = vrot.slane %v6901_v46, 2  ;;  %v1858_v57 = vrot.slane %v6901_v46, 6 }
 0x116   :  { %v6911_v0 = vsel %vm596_vm2, %v619_v41, 0.0  ;;  %5549 = vrot.lane.b32.xlu0 %v5548_v45, %s6007_s21  ;;  %v445_v11 = vadd.f32 %v6766_v37, %v444_v15  ;;  %v834_v59 = vrot.slane %v6901_v46, 1  ;;  %v5222_v27 = vadd.f32 32768.0, %v73_v28  ;;  %5333 = vmatpush.msrb.mxu3 %v6534_v33 }
 0x117   :  { %10048 = vst [vmem:[#allocation18_spill] sm:$0xff] %v6911_v0  ;;  %v1277_v6 = vsel %vm1239_vm3, %v1275_v9, %v1276_v60  ;;  %v2080_v47 = vsel %vm2042_vm4, %v2078_v39, %v2079_v5  ;;  %v1056_v29 = vsel %vm1018_vm5, %v1054_v26, %v1055_v51  ;;  %v1859_v3 = vsel %vm1821_vm6, %v1857_v20, %v1858_v57 }
 0x118   :  { %v532_v41 = vmax.f32 %v445_v11, 0.0  ;;  %5300 = vmatmul.msk.f32.gmra.mxu0 %vm258_vm1, %v5260_v17  ;;  %v5573_v45 = vpack.i.bf16 %v1277_v6, %v2080_v47  ;;  %v5568_v15 = vpack.i.bf16 %v1056_v29, %v1859_v3  ;;  %v835_v9 = vsel %vm797_vm7, %v833_v53, %v834_v59  ;;  %v74_v3 = vld [vmem:[%s9949_s0 + $0x118] sm:$0xff]  ;;  %v6946_v55 = vpop.permute.xlu2 %5394  ;;  %5334 = vmatpush.msrb.mxu3 %v6554_v44 }
 0x119   :  { %v1637_v39 = vrot.slane %v6901_v46, 5  ;;  %v1057_v26 = vrot.slane %v6911_v0, 2  ;;  %v1278_v63 = vrot.slane %v6911_v0, 3  ;;  %v2081_v17 = vrot.slane %v6911_v0, 7 }
 0x11a   :  { %v621_v20 = vrot.slane %v532_v41, 5  ;;  %5569 = vrot.lane.b32.xlu1 %v5568_v15, %s6006_s20  ;;  %v1860_v29 = vrot.slane %v6911_v0, 6  ;;  %5574 = vrot.lane.b32.xlu2 %v5573_v45, %s6005_s19  ;;  %v836_v61 = vrot.slane %v6911_v0, 1  ;;  %v1639_v11 = vrot.slane %v6911_v0, 5 }
 0x11b   :  { %v1638_v53 = vsel %vm596_vm2, %v1636_v10, %v1637_v39  ;;  %v160_v6 = vmul.f32 %v5222_v27, %v6100_v18  ;;  %v5381_v41 = vunpack.i.l.bf16 %v6889_v62  ;;  %v6943_v28 = vpop.permute.xlu1 %5364  ;;  %v5261_v38 = vadd.f32 -1.0, %v199_v30  ;;  %5335 = vmatpush.msrb.mxu3 %v6568_v56 }
 0x11c   :  { %v5563_v15 = vpack.i.bf16 %v835_v9, %v1638_v53  ;;  %v447_v45 = vpop.f32.mrf.mxu0  ;;  %v1058_v10 = vsel %vm1018_vm5, %v1055_v51, %v1057_v26  ;;  %v1861_v46 = vsel %vm1821_vm6, %v1858_v57, %v1860_v29  ;;  %v5223_v0 = vadd.f32 32768.0, %v74_v3 }
 0x11d   :  { %v6952_v47 = vsel %vm596_vm2, 0.0, %v621_v20  ;;  %v5355_v9 = vpop.permute.xlu0 %5354  ;;  %v448_v30 = vadd.f32 %v6766_v37, %v447_v45  ;;  %v1279_v12 = vsel %vm1239_vm3, %v1276_v60, %v1278_v63  ;;  %v2082_v53 = vsel %vm2042_vm4, %v2079_v5, %v2081_v17  ;;  %5336 = vmatpush.msrb.mxu3 %v6595_v13 }
 0x11e   :  { %5564 = vrot.lane.b32.xlu0 %v5563_v15, %s6007_s21  ;;  %v5357_v51 = vunpack.i.h.bf16 %v5355_v9  ;;  %v837_v57 = vsel %vm797_vm7, %v834_v59, %v836_v61  ;;  %v1640_v26 = vsel %vm596_vm2, %v1637_v39, %v1639_v11  ;;  %v200_v29 = vmul.f32 2.0, %v160_v6 }
 0x11f   :  { %v5356_v3 = vunpack.i.l.bf16 %v5355_v9  ;;  %v533_v27 = vmax.f32 %v448_v30, 0.0  ;;  %v5583_v15 = vpack.i.bf16 %v1058_v10, %v1861_v46  ;;  %v1494_v45 = vrot.slane %v6761_v32, 4  ;;  %5337 = vmatpush.msrb.mxu3 %v6614_v40 }
 0x120   :  { %5301 = vmatmul.msk.f32.gmra.mxu0 %vm258_vm1, %v5261_v38  ;;  %v5367_v60 = vunpack.i.h.bf16 %v6943_v28  ;;  %v5588_v5 = vpack.i.bf16 %v1279_v12, %v2082_v53  ;;  %v161_v33 = vmul.f32 %v5223_v0, %v6100_v18  ;;  %v1496_v59 = vrot.slane %v6873_v14, 4  ;;  %v6994_v13 = vpop.permute.xlu2 %5409 }
 0x121   :  { %v5366_v39 = vunpack.i.l.bf16 %v6943_v28  ;;  %v622_v63 = vrot.slane %v533_v27, 5  ;;  %v5578_v17 = vpack.i.bf16 %v837_v57, %v1640_v26  ;;  %v1280_v38 = vrot.slane %v6952_v47, 3  ;;  %5338 = vmatpush.msrb.mxu3 %v6639_v4 }
 0x122   :  { %5584 = vrot.lane.b32.xlu1 %v5583_v15, %s6006_s20  ;;  %5589 = vrot.lane.b32.xlu2 %v5588_v5, %s6005_s19  ;;  %v5262_v44 = vadd.f32 -1.0, %v200_v29  ;;  %v2264_v46 = vsel %vm2263_vm9, %v6204_v58, %v5357_v51  ;;  %v2083_v0 = vrot.slane %v6952_v47, 7  ;;  %v1059_v61 = vrot.slane %v6952_v47, 2 }
 0x123   :  { %v6977_v28 = vsel %vm596_vm2, %v621_v20, %v622_v63  ;;  %v5370_v11 = vpop.permute.xlu1 %5369  ;;  %v2385_v6 = vsel %vm2263_vm9, %v6506_v16, %v5356_v3  ;;  %v1862_v10 = vrot.slane %v6952_v47, 6  ;;  %v838_v56 = vrot.slane %v6952_v47, 1  ;;  %5339 = vmatpush.msrb.mxu3 %v6653_v8 }
 0x124   :  { %v450_v27 = vpop.f32.mrf.mxu0  ;;  %v1281_v58 = vrot.slane %v6977_v28, 3  ;;  %v2084_v9 = vrot.slane %v6977_v28, 7  ;;  %v1641_v30 = vrot.slane %v6952_v47, 5  ;;  %v201_v12 = vmul.f32 2.0, %v161_v33 }
 0x125   :  { %v6988_v20 = vsel %vm596_vm2, %v622_v63, 0.0  ;;  %v5372_v16 = vunpack.i.h.bf16 %v5370_v11  ;;  %v5360_v53 = vpop.permute.xlu0 %5359  ;;  %v451_v51 = vadd.f32 %v6766_v37, %v450_v27  ;;  %v1060_v57 = vrot.slane %v6977_v28, 2  ;;  %5340 = vmatpush.msrb.mxu3 %v6682_v50 }
 0x126   :  { %5579 = vrot.lane.b32.xlu0 %v5578_v17, %s6007_s21  ;;  %v5362_v26 = vunpack.i.h.bf16 %v5360_v53  ;;  %v5361_v29 = vunpack.i.l.bf16 %v5360_v53  ;;  %v1282_v3 = vsel %vm1239_vm3, %v1280_v38, %v1281_v58  ;;  %v2085_v15 = vsel %vm2042_vm4, %v2083_v0, %v2084_v9 }
 0x127   :  { %v5371_v5 = vunpack.i.l.bf16 %v5370_v11  ;;  %v5603_v33 = vpack.i.bf16 %v1282_v3, %v2085_v15  ;;  %v1061_v63 = vsel %vm1018_vm5, %v1059_v61, %v1060_v57  ;;  %v1863_v40 = vrot.slane %v6977_v28, 6  ;;  %v75_v61 = vld [vmem:[%s9949_s0 + $0x120] sm:$0xff]  ;;  %5341 = vmatpush.msrb.mxu3 %v6712_v43 }
 0x128   :  { %5302 = vmatmul.msk.f32.gmra.mxu0 %vm258_vm1, %v5262_v44  ;;  %v2304_v17 = vsel %vm258_vm1, %v2264_v46, %v5362_v26  ;;  %v2425_v38 = vsel %vm258_vm1, %v2385_v6, %v5361_v29  ;;  %v839_v27 = vrot.slane %v6977_v28, 1  ;;  %v1642_v0 = vrot.slane %v6977_v28, 5  ;;  %v7054_v43 = vpop.permute.xlu2 %5424 }
 0x129   :  { %v534_v11 = vmax.f32 %v451_v51, 0.0  ;;  %v2345_v44 = vsel %vm2344_vm10, %v2304_v17, %v5367_v60  ;;  %v2465_v53 = vsel %vm2344_vm10, %v2425_v38, %v5366_v39  ;;  %v1864_v3 = vsel %vm1821_vm6, %v1862_v10, %v1863_v40  ;;  %5342 = vmatpush.msrb.mxu3 %v6739_v23 }
 0x12a   :  { %2557 = vmatmul.f32.vlgmr.msra.gmra.mxu1 %v2345_v44  ;;  %2694 = vmatmul.f32.vlgmr.msra.gmra.mxu2 %v2465_v53  ;;  %v5598_v4 = vpack.i.bf16 %v1061_v63, %v1864_v3  ;;  %v840_v46 = vsel %vm797_vm7, %v838_v56, %v839_v27  ;;  %v1643_v6 = vsel %vm596_vm2, %v1641_v30, %v1642_v0  ;;  %v1283_v60 = vrot.slane %v6988_v20, 3 }
 0x12b   :  { %5604 = vrot.lane.b32.xlu2 %v5603_v33, %s6005_s19  ;;  %v5593_v39 = vpack.i.bf16 %v840_v46, %v1643_v6  ;;  %v7023_v10 = vpop.permute.xlu1 %5389  ;;  %v5263_v51 = vadd.f32 -1.0, %v201_v12  ;;  %v2265_v8 = vsel %vm2263_vm9, %v6211_v2, %v5372_v16  ;;  %v2386_v26 = vsel %vm2263_vm9, %v6513_v21, %v5371_v5  ;;  %5343 = vmatpush.msrb.mxu3 %v6757_v35 }
 0x12c   :  { %v5397_v56 = vunpack.i.h.bf16 %v6946_v55  ;;  %5599 = vrot.lane.b32.xlu1 %v5598_v4, %s6006_s20  ;;  %v453_v30 = vpop.f32.mrf.mxu0  ;;  %v10049_v29 = vunpack.i.h.bf16 %v6792_v34  ;;  %v10050_v33 = vunpack.i.l.bf16 %v6792_v34  ;;  %v5224_v63 = vadd.f32 32768.0, %v75_v61 }
 0x12d   :  { %v624_v2 = vrot.slane %v534_v11, 5  ;;  %v5392_v21 = vunpack.i.h.bf16 %v7023_v10  ;;  %v5385_v50 = vpop.permute.xlu0 %5384  ;;  %v454_v16 = vadd.f32 %v6766_v37, %v453_v30  ;;  %v10051_v5 = vunpack.i.h.bf16 %v6889_v62  ;;  %v76_v30 = vld [vmem:[%s9949_s0 + $0x128] sm:$0xff]  ;;  %5344 = vmatpush.msrb.mxu3 %v6788_v31 }
 0x12e   :  { %v2305_v15 = vsel %vm258_vm1, %v2265_v8, %v10049_v29  ;;  %v2426_v12 = vsel %vm258_vm1, %v2386_v26, %v10050_v33  ;;  %5594 = vrot.lane.b32.xlu0 %v5593_v39, %s6007_s21  ;;  %v5387_v38 = vunpack.i.h.bf16 %v5385_v50  ;;  %v5386_v44 = vunpack.i.l.bf16 %v5385_v50 }
 0x12f   :  { %v2346_v17 = vsel %vm2344_vm10, %v2305_v15, %v10051_v5  ;;  %v2466_v34 = vsel %vm2344_vm10, %v2426_v12, %v5381_v41  ;;  %v1284_v11 = vsel %vm1239_vm3, %v1281_v58, %v1283_v60  ;;  %v535_v53 = vmax.f32 %v454_v16, 0.0  ;;  %5345 = vmatpush.msrb.mxu3 %v6816_v22 }
 0x130   :  { %5303 = vmatmul.msk.f32.gmra.mxu0 %vm258_vm1, %v5263_v51  ;;  %v2086_v3 = vrot.slane %v6988_v20, 7  ;;  %v1062_v61 = vrot.slane %v6988_v20, 2  ;;  %v1865_v4 = vrot.slane %v6988_v20, 6  ;;  %v841_v46 = vrot.slane %v6988_v20, 1 }
 0x131   :  { %v1644_v62 = vrot.slane %v6988_v20, 5  ;;  %v162_v41 = vmul.f32 %v5224_v63, %v6100_v18  ;;  %v2266_v58 = vsel %vm2263_vm9, %v6255_v48, %v5387_v38  ;;  %v7061_v6 = vrot.slane %v535_v53, 5  ;;  %5346 = vmatpush.msrb.mxu3 %v6834_v36 }
 0x132   :  { %v2087_v60 = vsel %vm2042_vm4, %v2084_v9, %v2086_v3  ;;  %v1063_v23 = vsel %vm1018_vm5, %v1060_v57, %v1062_v61  ;;  %v1866_v39 = vsel %vm1821_vm6, %v1863_v40, %v1865_v4  ;;  %2560 = vmatmul.f32.gmra.mxu1 %v2346_v17  ;;  %2697 = vmatmul.f32.gmra.mxu2 %v2466_v34  ;;  %v7076_v9 = vsel %vm596_vm2, 0.0, %v624_v2 }
 0x133   :  { %v5618_v51 = vpack.i.bf16 %v1284_v11, %v2087_v60  ;;  %v5613_v8 = vpack.i.bf16 %v1063_v23, %v1866_v39  ;;  %v842_v48 = vsel %vm797_vm7, %v839_v27, %v841_v46  ;;  %v202_v26 = vmul.f32 2.0, %v162_v41  ;;  %v7082_v40 = vpop.permute.xlu1 %5404  ;;  %v7116_v46 = vpop.permute.xlu2 %5439 }
 0x134   :  { %v5391_v57 = vunpack.i.l.bf16 %v7023_v10  ;;  %v1645_v35 = vsel %vm596_vm2, %v1642_v0, %v1644_v62  ;;  %v2306_v29 = vsel %vm258_vm1, %v2266_v58, %v5392_v21  ;;  %v5396_v27 = vunpack.i.l.bf16 %v6946_v55  ;;  %v456_v33 = vpop.f32.mrf.mxu0 }
 0x135   :  { %v7089_v15 = vsel %vm596_vm2, %v624_v2, %v7061_v6  ;;  %5619 = vrot.lane.b32.xlu2 %v5618_v51, %s6005_s19  ;;  %5614 = vrot.lane.b32.xlu1 %v5613_v8, %s6006_s20  ;;  %v5608_v10 = vpack.i.bf16 %v842_v48, %v1645_v35  ;;  %v5264_v12 = vadd.f32 -1.0, %v202_v26  ;;  %v5412_v0 = vunpack.i.h.bf16 %v6994_v13  ;;  %v5400_v21 = vpop.permute.xlu0 %5399 }
 0x136   :  { %v5407_v63 = vunpack.i.h.bf16 %v7082_v40  ;;  %v457_v31 = vadd.f32 %v6766_v37, %v456_v33  ;;  %v5225_v50 = vadd.f32 32768.0, %v76_v30  ;;  %v5402_v55 = vunpack.i.h.bf16 %v5400_v21 }
 0x137   :  { %5609 = vrot.lane.b32.xlu0 %v5608_v10, %s6007_s21  ;;  %v2347_v2 = vsel %vm2344_vm10, %v2306_v29, %v5397_v56  ;;  %v2387_v16 = vsel %vm2263_vm9, %v6521_v25, %v5386_v44  ;;  %v1285_v5 = vrot.slane %v7076_v9, 3  ;;  %v1286_v34 = vrot.slane %v7089_v15, 3 }
 0x138   :  { %v536_v17 = vmax.f32 %v457_v31, 0.0  ;;  %5304 = vmatmul.msk.f32.gmra.mxu0 %vm258_vm1, %v5264_v12  ;;  %v2427_v38 = vsel %vm258_vm1, %v2387_v16, %v5391_v57  ;;  %v2088_v11 = vrot.slane %v7076_v9, 7  ;;  %v2089_v56 = vrot.slane %v7089_v15, 7 }
 0x139   :  { %v2467_v22 = vsel %vm2344_vm10, %v2427_v38, %v5396_v27  ;;  %v1064_v53 = vrot.slane %v7076_v9, 2  ;;  %v1065_v25 = vrot.slane %v7089_v15, 2  ;;  %v1287_v3 = vsel %vm1239_vm3, %v1285_v5, %v1286_v34  ;;  %v10052_v5 = vld [vmem:[#allocation5_spill] sm:$0xff]  ;;  %v10053_v38 = vld [vmem:[#allocation12_spill] sm:$0xff] }
 0x13a   :  { %v7111_v44 = vrot.slane %v536_v17, 5  ;;  %v1867_v61 = vrot.slane %v7076_v9, 6  ;;  %v1868_v4 = vrot.slane %v7089_v15, 6  ;;  %2563 = vmatmul.f32.gmra.mxu1 %v2347_v2  ;;  %2700 = vmatmul.f32.gmra.mxu2 %v2467_v22  ;;  %v2090_v36 = vsel %vm2042_vm4, %v2088_v11, %v2089_v56 }
 0x13b   :  { %v1066_v62 = vsel %vm1018_vm5, %v1064_v53, %v1065_v25  ;;  %v843_v41 = vrot.slane %v7076_v9, 1  ;;  %v844_v58 = vrot.slane %v7089_v15, 1  ;;  %v5401_v60 = vunpack.i.l.bf16 %v5400_v21  ;;  %v7124_v8 = vpop.permute.xlu1 %5419 }
 0x13c   :  { %v5633_v23 = vpack.i.bf16 %v1287_v3, %v2090_v36  ;;  %v1869_v39 = vsel %vm1821_vm6, %v1867_v61, %v1868_v4  ;;  %v1646_v51 = vrot.slane %v7076_v9, 5  ;;  %v5406_v48 = vunpack.i.l.bf16 %v7082_v40  ;;  %v459_v35 = vpop.f32.mrf.mxu0 }
 0x13d   :  { %v5628_v26 = vpack.i.bf16 %v1066_v62, %v1869_v39  ;;  %v845_v30 = vsel %vm797_vm7, %v843_v41, %v844_v58  ;;  %v1647_v57 = vrot.slane %v7089_v15, 5  ;;  %v5411_v29 = vunpack.i.l.bf16 %v6994_v13  ;;  %v5415_v33 = vpop.permute.xlu0 %5414 }
 0x13e   :  { %v5427_v27 = vunpack.i.h.bf16 %v7054_v43  ;;  %v7133_v10 = vsel %vm596_vm2, %v7061_v6, 0.0  ;;  %5634 = vrot.lane.b32.xlu2 %v5633_v23, %s6005_s19  ;;  %v460_v12 = vadd.f32 %v6766_v37, %v459_v35  ;;  %v7139_v40 = vsel %vm596_vm2, 0.0, %v7111_v44 }
 0x13f   :  { %5629 = vrot.lane.b32.xlu1 %v5628_v26, %s6006_s20  ;;  %v1648_v21 = vsel %vm596_vm2, %v1646_v51, %v1647_v57  ;;  %v5422_v31 = vunpack.i.h.bf16 %v7124_v8  ;;  %v163_v2 = vmul.f32 %v5225_v50, %v6100_v18  ;;  %v2267_v17 = vsel %vm2263_vm9, %v10052_v5, %v5402_v55  ;;  %v7165_v26 = vpop.permute.xlu2 %5454 }
 0x140   :  { %v5623_v16 = vpack.i.bf16 %v845_v30, %v1648_v21  ;;  %v537_v6 = vmax.f32 %v460_v12, 0.0  ;;  %v2388_v11 = vsel %vm2263_vm9, %v10053_v38, %v5401_v60  ;;  %v2307_v53 = vsel %vm258_vm1, %v2267_v17, %v5407_v63 }
 0x141   :  { %v203_v22 = vmul.f32 2.0, %v163_v2  ;;  %v2428_v3 = vsel %vm258_vm1, %v2388_v11, %v5406_v48  ;;  %v1288_v61 = vrot.slane %v7133_v10, 3  ;;  %v2348_v50 = vsel %vm2344_vm10, %v2307_v53, %v5412_v0  ;;  %v10054_v11 = vld [vmem:[#allocation6_spill] sm:$0xff]  ;;  %v10055_v53 = vld [vmem:[#allocation13_spill] sm:$0xff] }
 0x142   :  { %5624 = vrot.lane.b32.xlu0 %v5623_v16, %s6007_s21  ;;  %v628_v36 = vrot.slane %v537_v6, 5  ;;  %v2468_v62 = vsel %vm2344_vm10, %v2428_v3, %v5411_v29  ;;  %v2091_v55 = vrot.slane %v7133_v10, 7  ;;  %2566 = vmatmul.f32.gmra.mxu1 %v2348_v50  ;;  %v1067_v60 = vrot.slane %v7133_v10, 2 }
 0x143   :  { %v5265_v41 = vadd.f32 -1.0, %v203_v22  ;;  %2703 = vmatmul.f32.gmra.mxu2 %v2468_v62  ;;  %v1289_v63 = vsel %vm1239_vm3, %v1286_v34, %v1288_v61  ;;  %v1870_v23 = vrot.slane %v7133_v10, 6  ;;  %v5417_v39 = vunpack.i.h.bf16 %v5415_v33  ;;  %v7163_v0 = vpop.permute.xlu1 %5434 }
 0x144   :  { %v5416_v51 = vunpack.i.l.bf16 %v5415_v33  ;;  %v2092_v48 = vsel %vm2042_vm4, %v2089_v56, %v2091_v55  ;;  %v846_v13 = vrot.slane %v7133_v10, 1  ;;  %v1068_v35 = vsel %vm1018_vm5, %v1065_v25, %v1067_v60  ;;  %v462_v12 = vpop.f32.mrf.mxu0  ;;  %v77_v56 = vld [vmem:[%s9949_s0 + $0x130] sm:$0xff] }
 0x145   :  { %5305 = vmatmul.msk.f32.gmra.mxu0 %vm258_vm1, %v5265_v41  ;;  %v5648_v30 = vpack.i.bf16 %v1289_v63, %v2092_v48  ;;  %v1871_v34 = vsel %vm1821_vm6, %v1868_v4, %v1870_v23  ;;  %v1649_v29 = vrot.slane %v7133_v10, 5  ;;  %v5421_v33 = vunpack.i.l.bf16 %v7124_v8  ;;  %v7180_v6 = vpop.permute.xlu0 %5429 }
 0x146   :  { %v7177_v21 = vsel %vm596_vm2, %v7111_v44, %v628_v36  ;;  %v5643_v2 = vpack.i.bf16 %v1068_v35, %v1871_v34  ;;  %v847_v16 = vsel %vm797_vm7, %v844_v58, %v846_v13  ;;  %v5426_v25 = vunpack.i.l.bf16 %v7054_v43 }
 0x147   :  { %v7184_v4 = vsel %vm596_vm2, %v628_v36, 0.0  ;;  %5649 = vrot.lane.b32.xlu2 %v5648_v30, %s6005_s19  ;;  %v1650_v5 = vsel %vm596_vm2, %v1647_v57, %v1649_v29  ;;  %v5437_v8 = vunpack.i.h.bf16 %v7163_v0  ;;  %v5432_v17 = vunpack.i.h.bf16 %v7180_v6 }
 0x148   :  { %5644 = vrot.lane.b32.xlu1 %v5643_v2, %s6006_s20  ;;  %v5638_v44 = vpack.i.bf16 %v847_v16, %v1650_v5  ;;  %v463_v58 = vadd.f32 %v6766_v37, %v462_v12  ;;  %v5226_v38 = vadd.f32 32768.0, %v77_v56  ;;  %v2268_v22 = vsel %vm2263_vm9, %v10054_v11, %v5417_v39  ;;  %v7223_v16 = vpop.permute.xlu2 %5469 }
 0x149   :  { %v2389_v3 = vsel %vm2263_vm9, %v10055_v53, %v5416_v51  ;;  %v1290_v61 = vrot.slane %v7139_v40, 3  ;;  %v1291_v57 = vrot.slane %v7177_v21, 3  ;;  %v2308_v62 = vsel %vm258_vm1, %v2268_v22, %v5422_v31 }
 0x14a   :  { %5639 = vrot.lane.b32.xlu0 %v5638_v44, %s6007_s21  ;;  %v538_v36 = vmax.f32 %v463_v58, 0.0  ;;  %v164_v50 = vmul.f32 %v5226_v38, %v6100_v18  ;;  %v2429_v55 = vsel %vm258_vm1, %v2389_v3, %v5421_v33  ;;  %v2349_v41 = vsel %vm2344_vm10, %v2308_v62, %v5427_v27 }
 0x14b   :  { %v2469_v63 = vsel %vm2344_vm10, %v2429_v55, %v5426_v25  ;;  %v1292_v60 = vsel %vm1239_vm3, %v1290_v61, %v1291_v57  ;;  %v2093_v23 = vrot.slane %v7139_v40, 7  ;;  %2569 = vmatmul.f32.gmra.mxu1 %v2349_v41  ;;  %v2094_v48 = vrot.slane %v7177_v21, 7  ;;  %v7212_v13 = vpop.permute.xlu1 %5449 }
 0x14c   :  { %v7208_v39 = vrot.slane %v538_v36, 5  ;;  %v204_v51 = vmul.f32 2.0, %v164_v50  ;;  %2706 = vmatmul.f32.gmra.mxu2 %v2469_v63  ;;  %v1069_v31 = vrot.slane %v7139_v40, 2  ;;  %v1070_v43 = vrot.slane %v7177_v21, 2  ;;  %v465_v34 = vpop.f32.mrf.mxu0 }
 0x14d   :  { %v1872_v27 = vrot.slane %v7139_v40, 6  ;;  %v1873_v30 = vrot.slane %v7177_v21, 6  ;;  %v848_v35 = vrot.slane %v7139_v40, 1  ;;  %v5431_v29 = vunpack.i.l.bf16 %v7180_v6  ;;  %v7221_v2 = vpop.permute.xlu0 %5444  ;;  %v78_v6 = vld [vmem:[%s9949_s0 + $0x138] sm:$0xff] }
 0x14e   :  { %v5266_v12 = vadd.f32 -1.0, %v204_v51  ;;  %v2095_v56 = vsel %vm2042_vm4, %v2093_v23, %v2094_v48  ;;  %v849_v33 = vrot.slane %v7177_v21, 1  ;;  %v1071_v5 = vsel %vm1018_vm5, %v1069_v31, %v1070_v43  ;;  %v10056_v23 = vld [vmem:[#allocation7_spill] sm:$0xff]  ;;  %v10057_v51 = vld [vmem:[#allocation14_spill] sm:$0xff] }
 0x14f   :  { %v5663_v25 = vpack.i.bf16 %v1292_v60, %v2095_v56  ;;  %v1874_v44 = vsel %vm1821_vm6, %v1872_v27, %v1873_v30  ;;  %v1651_v58 = vrot.slane %v7139_v40, 5  ;;  %v5436_v38 = vunpack.i.l.bf16 %v7163_v0 }
 0x150   :  { %5306 = vmatmul.msk.f32.gmra.mxu0 %vm258_vm1, %v5266_v12  ;;  %v5658_v11 = vpack.i.bf16 %v1071_v5, %v1874_v44  ;;  %v850_v22 = vsel %vm797_vm7, %v848_v35, %v849_v33  ;;  %v1652_v53 = vrot.slane %v7177_v21, 5  ;;  %v5442_v3 = vunpack.i.h.bf16 %v7116_v46 }
 0x151   :  { %v5441_v61 = vunpack.i.l.bf16 %v7116_v46  ;;  %v7241_v36 = vsel %vm596_vm2, 0.0, %v7208_v39  ;;  %5664 = vrot.lane.b32.xlu2 %v5663_v25, %s6005_s19  ;;  %v5452_v50 = vunpack.i.h.bf16 %v7212_v13  ;;  %v5451_v55 = vunpack.i.l.bf16 %v7212_v13 }
 0x152   :  { %5659 = vrot.lane.b32.xlu1 %v5658_v11, %s6006_s20  ;;  %v1653_v62 = vsel %vm596_vm2, %v1651_v58, %v1652_v53  ;;  %v466_v41 = vadd.f32 %v6766_v37, %v465_v34  ;;  %v5227_v63 = vadd.f32 32768.0, %v78_v6  ;;  %v2269_v46 = vsel %vm2263_vm9, %v10056_v23, %v5432_v17 }
 0x153   :  { %v5653_v60 = vpack.i.bf16 %v850_v22, %v1653_v62  ;;  %v2390_v31 = vsel %vm2263_vm9, %v10057_v51, %v5431_v29  ;;  %v1293_v27 = vrot.slane %v7184_v4, 3  ;;  %v2309_v56 = vsel %vm258_vm1, %v2269_v46, %v5437_v8  ;;  %v7259_v34 = vpop.permute.xlu1 %5464 }
 0x154   :  { %v539_v35 = vmax.f32 %v466_v41, 0.0  ;;  %v165_v12 = vmul.f32 %v5227_v63, %v6100_v18  ;;  %v2430_v13 = vsel %vm258_vm1, %v2390_v31, %v5436_v38  ;;  %v2350_v17 = vsel %vm2344_vm10, %v2309_v56, %v5442_v3  ;;  %v468_v44 = vpop.f32.mrf.mxu0  ;;  %v7279_v63 = vpop.permute.xlu2 %5484 }
 0x155   :  { %5654 = vrot.lane.b32.xlu0 %v5653_v60, %s6007_s21  ;;  %v2470_v25 = vsel %vm2344_vm10, %v2430_v13, %v5441_v61  ;;  %v1294_v29 = vsel %vm1239_vm3, %v1291_v57, %v1293_v27  ;;  %v2096_v5 = vrot.slane %v7184_v4, 7  ;;  %2572 = vmatmul.f32.gmra.mxu1 %v2350_v17  ;;  %v1072_v0 = vrot.slane %v7184_v4, 2  ;;  %v7268_v6 = vpop.permute.xlu0 %5459 }
 0x156   :  { %v631_v18 = vrot.slane %v539_v35, 5  ;;  %v205_v58 = vmul.f32 2.0, %v165_v12  ;;  %2709 = vmatmul.f32.gmra.mxu2 %v2470_v25  ;;  %v1875_v8 = vrot.slane %v7184_v4, 6  ;;  %v5447_v38 = vunpack.i.h.bf16 %v7221_v2  ;;  %v10059_v35 = vld [vmem:[#allocation15_spill] sm:$0xff] }
 0x157   :  { %v2097_v11 = vsel %vm2042_vm4, %v2094_v48, %v2096_v5  ;;  %v851_v22 = vrot.slane %v7184_v4, 1  ;;  %v1654_v57 = vrot.slane %v7184_v4, 5  ;;  %v5446_v3 = vunpack.i.l.bf16 %v7221_v2 }
 0x158   :  { %v7277_v61 = vsel %vm596_vm2, %v7208_v39, %v631_v18  ;;  %v5267_v62 = vadd.f32 -1.0, %v205_v58  ;;  %v5678_v41 = vpack.i.bf16 %v1294_v29, %v2097_v11  ;;  %v1073_v60 = vsel %vm1018_vm5, %v1070_v43, %v1072_v0 }
 0x159   :  { %v1876_v48 = vsel %vm1821_vm6, %v1873_v30, %v1875_v8  ;;  %v852_v23 = vsel %vm797_vm7, %v849_v33, %v851_v22  ;;  %v1655_v46 = vsel %vm596_vm2, %v1652_v53, %v1654_v57  ;;  %v5457_v2 = vunpack.i.h.bf16 %v7165_v26  ;;  %v10058_v53 = vld [vmem:[#allocation8_spill] sm:$0xff] }
 0x15a   :  { %v5456_v51 = vunpack.i.l.bf16 %v7165_v26  ;;  %v7290_v39 = vsel %vm596_vm2, %v631_v18, 0.0  ;;  %5307 = vmatmul.msk.f32.gmra.mxu0 %vm258_vm1, %v5267_v62  ;;  %5679 = vrot.lane.b32.xlu2 %v5678_v41, %s6005_s19  ;;  %v5673_v31 = vpack.i.bf16 %v1073_v60, %v1876_v48  ;;  %v5668_v27 = vpack.i.bf16 %v852_v23, %v1655_v46 }
 0x15b   :  { %v5467_v43 = vunpack.i.h.bf16 %v7259_v34  ;;  %v5462_v30 = vunpack.i.h.bf16 %v7268_v6  ;;  %v469_v33 = vadd.f32 %v6766_v37, %v468_v44  ;;  %v2270_v26 = vsel %vm2263_vm9, %v10058_v53, %v5447_v38  ;;  %v7304_v17 = vpop.permute.xlu1 %5479 }
 0x15c   :  { %5674 = vrot.lane.b32.xlu1 %v5673_v31, %s6006_s20  ;;  %v2391_v12 = vsel %vm2263_vm9, %v10059_v35, %v5446_v3  ;;  %v1295_v56 = vrot.slane %v7241_v36, 3  ;;  %v1296_v13 = vrot.slane %v7277_v61, 3  ;;  %v2310_v29 = vsel %vm258_vm1, %v2270_v26, %v5452_v50  ;;  %v471_v44 = vpop.f32.mrf.mxu0  ;;  %v7332_v26 = vpop.permute.xlu2 %5499 }
 0x15d   :  { %5669 = vrot.lane.b32.xlu0 %v5668_v27, %s6007_s21  ;;  %v540_v25 = vmax.f32 %v469_v33, 0.0  ;;  %v2431_v37 = vsel %vm258_vm1, %v2391_v12, %v5451_v55  ;;  %v2098_v5 = vrot.slane %v7241_v36, 7  ;;  %v2351_v18 = vsel %vm2344_vm10, %v2310_v29, %v5457_v2  ;;  %v7314_v38 = vpop.permute.xlu0 %5474 }
 0x15e   :  { %v2471_v58 = vsel %vm2344_vm10, %v2431_v37, %v5456_v51  ;;  %v1297_v0 = vsel %vm1239_vm3, %v1295_v56, %v1296_v13  ;;  %v2099_v8 = vrot.slane %v7277_v61, 7  ;;  %2575 = vmatmul.f32.gmra.mxu1 %v2351_v18  ;;  %v1074_v50 = vrot.slane %v7241_v36, 2 }
 0x15f   :  { %v633_v11 = vrot.slane %v540_v25, 5  ;;  %2712 = vmatmul.f32.gmra.mxu2 %v2471_v58  ;;  %v1075_v55 = vrot.slane %v7277_v61, 2  ;;  %v1877_v22 = vrot.slane %v7241_v36, 6  ;;  %v1878_v3 = vrot.slane %v7277_v61, 6 }
 0x160   :  { %v2100_v57 = vsel %vm2042_vm4, %v2098_v5, %v2099_v8  ;;  %v853_v62 = vrot.slane %v7241_v36, 1  ;;  %v854_v41 = vrot.slane %v7277_v61, 1  ;;  %v5461_v60 = vunpack.i.l.bf16 %v7268_v6 }
 0x161   :  { %v5693_v48 = vpack.i.bf16 %v1297_v0, %v2100_v57  ;;  %v1076_v23 = vsel %vm1018_vm5, %v1074_v50, %v1075_v55  ;;  %v1656_v46 = vrot.slane %v7241_v36, 5  ;;  %v5466_v2 = vunpack.i.l.bf16 %v7259_v34 }
 0x162   :  { %v1879_v51 = vsel %vm1821_vm6, %v1877_v22, %v1878_v3  ;;  %v855_v31 = vsel %vm797_vm7, %v853_v62, %v854_v41  ;;  %v1657_v27 = vrot.slane %v7277_v61, 5  ;;  %v5472_v33 = vunpack.i.h.bf16 %v7223_v16 }
 0x163   :  { %v5471_v53 = vunpack.i.l.bf16 %v7223_v16  ;;  %5694 = vrot.lane.b32.xlu2 %v5693_v48, %s6005_s19  ;;  %v5688_v6 = vpack.i.bf16 %v1076_v23, %v1879_v51  ;;  %v10060_v35 = vrot.slane %v6725_v42, 4  ;;  %v10061_v12 = vrot.slane %v6688_v24, 4  ;;  %v7350_v16 = vld [vmem:[%s9951_s2] ss:$0 sm:$0xff]  ;;  %v7353_v5 = vpop.permute.xlu1 %5494 }
 0x164   :  { %v7343_v56 = vsel %vm596_vm2, 0.0, %v633_v11  ;;  %v1658_v25 = vsel %vm596_vm2, %v1656_v46, %v1657_v27  ;;  %v5477_v29 = vunpack.i.h.bf16 %v7314_v38  ;;  %v472_v37 = vadd.f32 %v7350_v16, %v471_v44  ;;  %v474_v22 = vpop.f32.mrf.mxu0 }
 0x165   :  { %v7340_v34 = vsel %vm1460_vm8, %v10061_v12, %v10060_v35  ;;  %5689 = vrot.lane.b32.xlu1 %v5688_v6, %s6006_s20  ;;  %v5683_v18 = vpack.i.bf16 %v855_v31, %v1658_v25  ;;  %v2271_v58 = vsel %vm2263_vm9, %v6382_v1, %v5462_v30  ;;  %v2392_v0 = vsel %vm2263_vm9, %v6857_v7, %v5461_v60  ;;  %v7364_v23 = vpop.permute.xlu0 %5489 }
 0x166   :  { %v1298_v50 = vrot.slane %v7290_v39, 3  ;;  %v541_v57 = vmax.f32 %v472_v37, 0.0  ;;  %v2311_v62 = vsel %vm258_vm1, %v2271_v58, %v5467_v43  ;;  %v2432_v48 = vsel %vm258_vm1, %v2392_v0, %v5466_v2 }
 0x167   :  { %v2101_v44 = vrot.slane %v7290_v39, 7  ;;  %5684 = vrot.lane.b32.xlu0 %v5683_v18, %s6007_s21  ;;  %v2352_v46 = vsel %vm2344_vm10, %v2311_v62, %v5472_v33  ;;  %v2472_v1 = vsel %vm2344_vm10, %v2432_v48, %v5471_v53  ;;  %v1077_v30 = vrot.slane %v7290_v39, 2 }
 0x168   :  { %v1299_v7 = vsel %vm1239_vm3, %v1296_v13, %v1298_v50  ;;  %v634_v60 = vrot.slane %v541_v57, 5  ;;  %2578 = vmatmul.f32.gmra.mxu1 %v2352_v46  ;;  %2715 = vmatmul.f32.gmra.mxu2 %v2472_v1  ;;  %v1880_v2 = vrot.slane %v7290_v39, 6  ;;  %v856_v51 = vrot.slane %v7290_v39, 1 }
 0x169   :  { %v2102_v43 = vsel %vm2042_vm4, %v2099_v8, %v2101_v44  ;;  %v5476_v31 = vunpack.i.l.bf16 %v7314_v38  ;;  %v1078_v33 = vsel %vm1018_vm5, %v1075_v55, %v1077_v30  ;;  %v1659_v53 = vrot.slane %v7290_v39, 5 }
 0x16a   :  { %v5708_v6 = vpack.i.bf16 %v1299_v7, %v2102_v43  ;;  %v5482_v13 = vunpack.i.h.bf16 %v7304_v17  ;;  %v5481_v35 = vunpack.i.l.bf16 %v7304_v17  ;;  %v1881_v12 = vsel %vm1821_vm6, %v1878_v3, %v1880_v2 }
 0x16b   :  { %v857_v25 = vsel %vm797_vm7, %v854_v41, %v856_v51  ;;  %v5487_v8 = vunpack.i.h.bf16 %v7279_v63  ;;  %v7383_v37 = vsel %vm596_vm2, %v633_v11, %v634_v60  ;;  %v5703_v38 = vpack.i.bf16 %v1078_v33, %v1881_v12  ;;  %v7390_v3 = vpop.permute.xlu1 %5509  ;;  %v7392_v41 = vpop.permute.xlu2 %5514 }
 0x16c   :  { %5709 = vrot.lane.b32.xlu2 %v5708_v6, %s6005_s19  ;;  %v1660_v55 = vsel %vm596_vm2, %v1657_v27, %v1659_v53  ;;  %v5486_v18 = vunpack.i.l.bf16 %v7279_v63  ;;  %v5502_v58 = vunpack.i.h.bf16 %v7332_v26  ;;  %v5492_v17 = vunpack.i.h.bf16 %v7364_v23  ;;  %v477_v57 = vpop.f32.mrf.mxu0 }
 0x16d   :  { %v5698_v0 = vpack.i.bf16 %v857_v25, %v1660_v55  ;;  %5704 = vrot.lane.b32.xlu1 %v5703_v38, %s6006_s20  ;;  %v475_v11 = vadd.f32 %v7350_v16, %v474_v22  ;;  %v2272_v50 = vsel %vm2263_vm9, %v6426_v54, %v5477_v29  ;;  %v2393_v27 = vsel %vm2263_vm9, %v6864_v49, %v5476_v31  ;;  %v7405_v1 = vpop.permute.xlu0 %5504 }
 0x16e   :  { %v1300_v63 = vrot.slane %v7343_v56, 3  ;;  %v2312_v62 = vsel %vm258_vm1, %v2272_v50, %v5482_v13  ;;  %v2433_v48 = vsel %vm258_vm1, %v2393_v27, %v5481_v35  ;;  %v1301_v44 = vrot.slane %v7383_v37, 3 }
 0x16f   :  { %v2103_v46 = vrot.slane %v7343_v56, 7  ;;  %5699 = vrot.lane.b32.xlu0 %v5698_v0, %s6007_s21  ;;  %v5491_v54 = vunpack.i.l.bf16 %v7364_v23  ;;  %v2353_v29 = vsel %vm2344_vm10, %v2312_v62, %v5487_v8  ;;  %v2473_v49 = vsel %vm2344_vm10, %v2433_v48, %v5486_v18 }
 0x170   :  { %v2104_v22 = vrot.slane %v7383_v37, 7  ;;  %2581 = vmatmul.f32.gmra.mxu1 %v2353_v29  ;;  %2718 = vmatmul.f32.gmra.mxu2 %v2473_v49  ;;  %v1302_v7 = vsel %vm1239_vm3, %v1300_v63, %v1301_v44  ;;  %v1079_v30 = vrot.slane %v7343_v56, 2  ;;  %v1080_v43 = vrot.slane %v7383_v37, 2  ;;  %v10062_v29 = vld [vmem:[#allocation9_spill] sm:$0xff] }
 0x171   :  { %v1882_v2 = vrot.slane %v7343_v56, 6  ;;  %v542_v51 = vmax.f32 %v475_v11, 0.0  ;;  %v1883_v23 = vrot.slane %v7383_v37, 6  ;;  %v858_v6 = vrot.slane %v7343_v56, 1 }
 0x172   :  { %v2105_v31 = vsel %vm2042_vm4, %v2103_v46, %v2104_v22  ;;  %v1081_v53 = vsel %vm1018_vm5, %v1079_v30, %v1080_v43  ;;  %v859_v13 = vrot.slane %v7383_v37, 1  ;;  %v1661_v35 = vrot.slane %v7343_v56, 5 }
 0x173   :  { %v5723_v33 = vpack.i.bf16 %v1302_v7, %v2105_v31  ;;  %v5497_v12 = vunpack.i.h.bf16 %v7353_v5  ;;  %v5496_v25 = vunpack.i.l.bf16 %v7353_v5  ;;  %v1884_v8 = vsel %vm1821_vm6, %v1882_v2, %v1883_v23  ;;  %v7432_v50 = vpop.permute.xlu1 %5524  ;;  %v7445_v2 = vpop.permute.xlu2 %5529 }
 0x174   :  { %v1662_v38 = vrot.slane %v7383_v37, 5  ;;  %v5501_v55 = vunpack.i.l.bf16 %v7332_v26  ;;  %v7428_v18 = vsel %vm596_vm2, %v634_v60, 0.0  ;;  %v5718_v0 = vpack.i.bf16 %v1081_v53, %v1884_v8  ;;  %v480_v48 = vpop.f32.mrf.mxu0 }
 0x175   :  { %5724 = vrot.lane.b32.xlu2 %v5723_v33, %s6005_s19  ;;  %v860_v11 = vsel %vm797_vm7, %v858_v6, %v859_v13  ;;  %v636_v27 = vrot.slane %v542_v51, 5  ;;  %v5507_v5 = vunpack.i.h.bf16 %v7405_v1  ;;  %v5506_v62 = vunpack.i.l.bf16 %v7405_v1  ;;  %v7443_v30 = vpop.permute.xlu0 %5519 }
 0x176   :  { %v1663_v63 = vsel %vm596_vm2, %v1661_v35, %v1662_v38  ;;  %5719 = vrot.lane.b32.xlu1 %v5718_v0, %s6006_s20  ;;  %v478_v60 = vadd.f32 %v7350_v16, %v477_v57  ;;  %v2273_v49 = vsel %vm2263_vm9, %v10062_v29, %v5492_v17  ;;  %v2394_v7 = vsel %vm2263_vm9, %v6869_v52, %v5491_v54 }
 0x177   :  { %v5713_v46 = vpack.i.bf16 %v860_v11, %v1663_v63  ;;  %v2313_v51 = vsel %vm258_vm1, %v2273_v49, %v5497_v12  ;;  %v2434_v1 = vsel %vm258_vm1, %v2394_v7, %v5496_v25  ;;  %v1303_v31 = vrot.slane %v7428_v18, 3  ;;  %v10063_v7 = vld [vmem:[#allocation10_spill] sm:$0xff] }
 0x178   :  { %v2106_v6 = vrot.slane %v7428_v18, 7  ;;  %v543_v57 = vmax.f32 %v478_v60, 0.0  ;;  %v2354_v17 = vsel %vm2344_vm10, %v2313_v51, %v5502_v58  ;;  %v2474_v52 = vsel %vm2344_vm10, %v2434_v1, %v5501_v55 }
 0x179   :  { %5714 = vrot.lane.b32.xlu0 %v5713_v46, %s6007_s21  ;;  %v1082_v54 = vrot.slane %v7428_v18, 2  ;;  %2584 = vmatmul.f32.gmra.mxu1 %v2354_v17  ;;  %v1304_v33 = vsel %vm1239_vm3, %v1301_v44, %v1303_v31  ;;  %v1885_v35 = vrot.slane %v7428_v18, 6  ;;  %v861_v12 = vrot.slane %v7428_v18, 1 }
 0x17a   :  { %2721 = vmatmul.f32.gmra.mxu2 %v2474_v52  ;;  %v2107_v53 = vsel %vm2042_vm4, %v2104_v22, %v2106_v6  ;;  %v637_v25 = vrot.slane %v543_v57, 5  ;;  %v1664_v58 = vrot.slane %v7428_v18, 5  ;;  %v5512_v55 = vunpack.i.h.bf16 %v7390_v3 }
 0x17b   :  { %v5738_v8 = vpack.i.bf16 %v1304_v33, %v2107_v53  ;;  %v1083_v26 = vsel %vm1018_vm5, %v1080_v43, %v1082_v54  ;;  %v5511_v0 = vunpack.i.l.bf16 %v7390_v3  ;;  %v1886_v11 = vsel %vm1821_vm6, %v1883_v23, %v1885_v35  ;;  %v7485_v1 = vpop.permute.xlu1 %5539 }
 0x17c   :  { %v862_v44 = vsel %vm797_vm7, %v859_v13, %v861_v12  ;;  %v7468_v22 = vsel %vm596_vm2, 0.0, %v636_v27  ;;  %v7471_v63 = vsel %vm596_vm2, %v636_v27, %v637_v25  ;;  %v5733_v46 = vpack.i.bf16 %v1083_v26, %v1886_v11  ;;  %v483_v49 = vpop.f32.mrf.mxu0 }
 0x17d   :  { %5739 = vrot.lane.b32.xlu2 %v5738_v8, %s6005_s19  ;;  %v1665_v43 = vsel %vm596_vm2, %v1662_v38, %v1664_v58  ;;  %v5517_v60 = vunpack.i.h.bf16 %v7392_v41  ;;  %v5516_v29 = vunpack.i.l.bf16 %v7392_v41  ;;  %v5527_v23 = vunpack.i.h.bf16 %v7432_v50 }
 0x17e   :  { %v5728_v3 = vpack.i.bf16 %v862_v44, %v1665_v43  ;;  %5734 = vrot.lane.b32.xlu1 %v5733_v46, %s6006_s20  ;;  %v5522_v13 = vunpack.i.h.bf16 %v7443_v30  ;;  %v481_v27 = vadd.f32 %v7350_v16, %v480_v48  ;;  %v2274_v51 = vsel %vm2263_vm9, %v10063_v7, %v5507_v5 }
 0x17f   :  { %v2395_v38 = vsel %vm2263_vm9, %v6882_v19, %v5506_v62  ;;  %v2314_v41 = vsel %vm258_vm1, %v2274_v51, %v5512_v55  ;;  %v1305_v6 = vrot.slane %v7468_v22, 3  ;;  %v1306_v57 = vrot.slane %v7471_v63, 3  ;;  %v7495_v19 = vpop.permute.xlu0 %5534  ;;  %v7497_v62 = vpop.permute.xlu2 %5544 }
 0x180   :  { %v2435_v31 = vsel %vm258_vm1, %v2395_v38, %v5511_v0  ;;  %v544_v17 = vmax.f32 %v481_v27, 0.0  ;;  %v2355_v48 = vsel %vm2344_vm10, %v2314_v41, %v5517_v60  ;;  %v2108_v52 = vrot.slane %v7468_v22, 7 }
 0x181   :  { %5729 = vrot.lane.b32.xlu0 %v5728_v3, %s6007_s21  ;;  %v2475_v5 = vsel %vm2344_vm10, %v2435_v31, %v5516_v29  ;;  %2587 = vmatmul.f32.gmra.mxu1 %v2355_v48  ;;  %v1307_v54 = vsel %vm1239_vm3, %v1305_v6, %v1306_v57  ;;  %v2109_v33 = vrot.slane %v7471_v63, 7  ;;  %v1084_v53 = vrot.slane %v7468_v22, 2  ;;  %v10064_v48 = vld [vmem:[#allocation11_spill] sm:$0xff] }
 0x182   :  { %2724 = vmatmul.f32.gmra.mxu2 %v2475_v5  ;;  %v1085_v35 = vrot.slane %v7471_v63, 2  ;;  %v639_v12 = vrot.slane %v544_v17, 5  ;;  %v1887_v8 = vrot.slane %v7468_v22, 6  ;;  %v1888_v26 = vrot.slane %v7471_v63, 6 }
 0x183   :  { %v863_v58 = vrot.slane %v7468_v22, 1  ;;  %v2110_v55 = vsel %vm2042_vm4, %v2108_v52, %v2109_v33  ;;  %v864_v11 = vrot.slane %v7471_v63, 1  ;;  %v1666_v44 = vrot.slane %v7468_v22, 5 }
 0x184   :  { %v1086_v0 = vsel %vm1018_vm5, %v1084_v53, %v1085_v35  ;;  %v5521_v46 = vunpack.i.l.bf16 %v7443_v30  ;;  %v5753_v43 = vpack.i.bf16 %v1307_v54, %v2110_v55  ;;  %v1889_v60 = vsel %vm1821_vm6, %v1887_v8, %v1888_v26  ;;  %v486_v38 = vpop.f32.mrf.mxu0 }
 0x185   :  { %v1667_v29 = vrot.slane %v7471_v63, 5  ;;  %v7514_v3 = vsel %vm596_vm2, %v637_v25, 0.0  ;;  %v5526_v27 = vunpack.i.l.bf16 %v7432_v50  ;;  %v5748_v7 = vpack.i.bf16 %v1086_v0, %v1889_v60 }
 0x186   :  { %v865_v51 = vsel %vm797_vm7, %v863_v58, %v864_v11  ;;  %v5532_v41 = vunpack.i.h.bf16 %v7445_v2  ;;  %v5531_v31 = vunpack.i.l.bf16 %v7445_v2  ;;  %v7521_v30 = vsel %vm596_vm2, 0.0, %v639_v12  ;;  %5754 = vrot.lane.b32.xlu2 %v5753_v43, %s6005_s19  ;;  %v10065_v2 = vld [vmem:[#allocation16_spill] sm:$0xff]  ;;  %v7535_v58 = vpop.permute.xlu1 %5554 }
 0x187   :  { %v1668_v6 = vsel %vm596_vm2, %v1666_v44, %v1667_v29  ;;  %5749 = vrot.lane.b32.xlu1 %v5748_v7, %s6006_s20  ;;  %v5542_v50 = vunpack.i.h.bf16 %v7485_v1  ;;  %v484_v17 = vadd.f32 %v7350_v16, %v483_v49  ;;  %v2275_v5 = vsel %vm2263_vm9, %v10064_v48, %v5522_v13  ;;  %v7547_v7 = vpop.permute.xlu2 %5559 }
 0x188   :  { %v5743_v25 = vpack.i.bf16 %v865_v51, %v1668_v6  ;;  %v2315_v52 = vsel %vm258_vm1, %v2275_v5, %v5527_v23  ;;  %v2396_v54 = vsel %vm2263_vm9, %v10065_v2, %v5521_v46  ;;  %v1308_v53 = vrot.slane %v7514_v3, 3  ;;  %v7537_v55 = vpop.permute.xlu0 %5549 }
 0x189   :  { %v2111_v8 = vrot.slane %v7514_v3, 7  ;;  %v545_v0 = vmax.f32 %v484_v17, 0.0  ;;  %v2356_v49 = vsel %vm2344_vm10, %v2315_v52, %v5532_v41  ;;  %v2436_v13 = vsel %vm258_vm1, %v2396_v54, %v5526_v27  ;;  %v10067_v54 = vld [vmem:[#allocation17_spill] sm:$0xff] }
 0x18a   :  { %5744 = vrot.lane.b32.xlu0 %v5743_v25, %s6007_s21  ;;  %v1087_v23 = vrot.slane %v7514_v3, 2  ;;  %2590 = vmatmul.f32.gmra.mxu1 %v2356_v49  ;;  %v2476_v44 = vsel %vm2344_vm10, %v2436_v13, %v5531_v31  ;;  %v1309_v46 = vsel %vm1239_vm3, %v1306_v57, %v1308_v53  ;;  %v1890_v60 = vrot.slane %v7514_v3, 6 }
 0x18b   :  { %v2112_v43 = vsel %vm2042_vm4, %v2109_v33, %v2111_v8  ;;  %v5537_v51 = vunpack.i.h.bf16 %v7495_v19  ;;  %v7550_v6 = vrot.slane %v545_v0, 5  ;;  %2727 = vmatmul.f32.gmra.mxu2 %v2476_v44  ;;  %v866_v41 = vrot.slane %v7514_v3, 1 }
 0x18c   :  { %v1088_v27 = vsel %vm1018_vm5, %v1085_v35, %v1087_v23  ;;  %v5536_v25 = vunpack.i.l.bf16 %v7495_v19  ;;  %v5768_v31 = vpack.i.bf16 %v1309_v46, %v2112_v43  ;;  %v1891_v57 = vsel %vm1821_vm6, %v1888_v26, %v1890_v60  ;;  %v489_v2 = vpop.f32.mrf.mxu0 }
 0x18d   :  { %v1669_v33 = vrot.slane %v7514_v3, 5  ;;  %v5541_v17 = vunpack.i.l.bf16 %v7485_v1  ;;  %v7560_v48 = vsel %vm596_vm2, %v639_v12, %v7550_v6  ;;  %v5763_v5 = vpack.i.bf16 %v1088_v27, %v1891_v57 }
 0x18e   :  { %v867_v52 = vsel %vm797_vm7, %v864_v11, %v866_v41  ;;  %v5547_v35 = vunpack.i.h.bf16 %v7497_v62  ;;  %5769 = vrot.lane.b32.xlu2 %v5768_v31, %s6005_s19  ;;  %v10066_v26 = vrot.slane %v6725_v42, 4  ;;  %v1497_v53 = vrot.slane %v10067_v54, 4  ;;  %v5570_v43 = vpop.permute.xlu1 %5569 }
 0x18f   :  { %v1670_v19 = vsel %vm596_vm2, %v1667_v29, %v1669_v33  ;;  %v5546_v12 = vunpack.i.l.bf16 %v7497_v62  ;;  %5764 = vrot.lane.b32.xlu1 %v5763_v5, %s6006_s20  ;;  %v487_v8 = vadd.f32 %v7350_v16, %v486_v38  ;;  %v2276_v0 = vsel %vm2263_vm9, %v6688_v24, %v5537_v51 }
 0x190   :  { %v1495_v1 = vsel %vm1460_vm8, %v10066_v26, %v1494_v45  ;;  %v5758_v11 = vpack.i.bf16 %v867_v52, %v1670_v19  ;;  %v2316_v29 = vsel %vm258_vm1, %v2276_v0, %v5542_v50  ;;  %v2397_v32 = vsel %vm2263_vm9, %v7340_v34, %v5536_v25  ;;  %v7582_v13 = vpop.permute.xlu0 %5564 }
 0x191   :  { %v868_v49 = vrot.slane %v7521_v30, 1  ;;  %v9984_v45 = vrot.slane %v7560_v48, 1  ;;  %v546_v62 = vmax.f32 %v487_v8, 0.0  ;;  %v2357_v23 = vsel %vm2344_vm10, %v2316_v29, %v5547_v35 }
 0x192   :  { %5759 = vrot.lane.b32.xlu0 %v5758_v11, %s6007_s21  ;;  %v2437_v38 = vsel %vm258_vm1, %v2397_v32, %v5541_v17  ;;  %v1671_v24 = vrot.slane %v7521_v30, 5  ;;  %2593 = vmatmul.f32.gmra.mxu1 %v2357_v23  ;;  %v1672_v44 = vrot.slane %v7560_v48, 5  ;;  %v1089_v46 = vrot.slane %v7521_v30, 2  ;;  %v7604_v17 = vpop.permute.xlu2 %5574 }
 0x193   :  { %v2477_v50 = vsel %vm2344_vm10, %v2437_v38, %v5546_v12  ;;  %v870_v34 = vsel %vm797_vm7, %v868_v49, %v9984_v45  ;;  %v5562_v60 = vunpack.i.h.bf16 %v7547_v7  ;;  %v9985_v51 = vrot.slane %v7560_v48, 2 }
 0x194   :  { %2730 = vmatmul.f32.gmra.mxu2 %v2477_v50  ;;  %v1892_v27 = vrot.slane %v7521_v30, 6  ;;  %v1893_v41 = vrot.slane %v7560_v48, 6  ;;  %v5557_v25 = vunpack.i.h.bf16 %v7535_v58  ;;  %v5552_v31 = vunpack.i.h.bf16 %v7537_v55 }
 0x195   :  { %v5551_v57 = vunpack.i.l.bf16 %v7537_v55  ;;  %v1673_v33 = vsel %vm596_vm2, %v1671_v24, %v1672_v44  ;;  %v5556_v5 = vunpack.i.l.bf16 %v7535_v58  ;;  %v1091_v35 = vsel %vm1018_vm5, %v1089_v46, %v9985_v51  ;;  %v492_v26 = vpop.f32.mrf.mxu0 }
 0x196   :  { %v5773_v52 = vpack.i.bf16 %v870_v34, %v1673_v33  ;;  %v1894_v19 = vsel %vm1821_vm6, %v1892_v27, %v1893_v41  ;;  %v5561_v55 = vunpack.i.l.bf16 %v7547_v7  ;;  %v642_v12 = vrot.slane %v546_v62, 5 }
 0x197   :  { %v5778_v11 = vpack.i.bf16 %v1091_v35, %v1894_v19  ;;  %v5572_v8 = vunpack.i.h.bf16 %v5570_v43  ;;  %v490_v0 = vadd.f32 %v7350_v16, %v489_v2  ;;  %v1310_v29 = vrot.slane %v7521_v30, 3 }
 0x198   :  { %v9986_v58 = vrot.slane %v7560_v48, 3  ;;  %v2113_v32 = vrot.slane %v7521_v30, 7  ;;  %v5567_v49 = vunpack.i.h.bf16 %v7582_v13  ;;  %v2114_v23 = vrot.slane %v7560_v48, 7  ;;  %v7630_v34 = vpop.permute.xlu0 %5579 }
 0x199   :  { %5779 = vrot.lane.b32.xlu1 %v5778_v11, %s6006_s20  ;;  %v2277_v7 = vsel %vm2263_vm9, %v6725_v42, %v5552_v31  ;;  %v2398_v62 = vsel %vm2263_vm9, %v1495_v1, %v5551_v57  ;;  %v547_v2 = vmax.f32 %v490_v0, 0.0  ;;  %v5566_v46 = vunpack.i.l.bf16 %v7582_v13 }
 0x19a   :  { %5774 = vrot.lane.b32.xlu0 %v5773_v52, %s6007_s21  ;;  %v1312_v38 = vsel %vm1239_vm3, %v1310_v29, %v9986_v58  ;;  %v2317_v24 = vsel %vm258_vm1, %v2277_v7, %v5557_v25  ;;  %v2438_v50 = vsel %vm258_vm1, %v2398_v62, %v5556_v5  ;;  %v2115_v42 = vsel %vm2042_vm4, %v2113_v32, %v2114_v23  ;;  %v7643_v5 = vpop.permute.xlu1 %5584  ;;  %v5590_v29 = vpop.permute.xlu2 %5589 }
 0x19b   :  { %v2358_v1 = vsel %vm2344_vm10, %v2317_v24, %v5562_v60  ;;  %v2478_v27 = vsel %vm2344_vm10, %v2438_v50, %v5561_v55  ;;  %v7639_v31 = vsel %vm596_vm2, 0.0, %v642_v12  ;;  %v5571_v57 = vunpack.i.l.bf16 %v5570_v43 }
 0x19c   :  { %10068 = vst [vmem:[#allocation5_spill] sm:$0xff] %v7639_v31  ;;  %v7641_v33 = vrot.slane %v547_v2, 5  ;;  %v5783_v25 = vpack.i.bf16 %v1312_v38, %v2115_v42  ;;  %2596 = vmatmul.f32.gmra.mxu1 %v2358_v1  ;;  %2733 = vmatmul.f32.gmra.mxu2 %v2478_v27  ;;  %v493_v13 = vadd.f32 %v7350_v16, %v492_v26  ;;  %v5577_v60 = vunpack.i.h.bf16 %v7604_v17 }
 0x19d   :  { %v2278_v52 = vsel %vm2263_vm9, %v6873_v14, %v5567_v49  ;;  %v1498_v43 = vsel %vm1460_vm8, %v1496_v59, %v1497_v53  ;;  %v5576_v19 = vunpack.i.l.bf16 %v7604_v17  ;;  %v873_v11 = vrot.slane %v7639_v31, 1  ;;  %v495_v0 = vpop.f32.mrf.mxu0 }
 0x19e   :  { %v7651_v35 = vsel %vm596_vm2, %v642_v12, %v7641_v33  ;;  %5784 = vrot.lane.b32.xlu2 %v5783_v25, %s6005_s19  ;;  %v2318_v26 = vsel %vm258_vm1, %v2278_v52, %v5572_v8  ;;  %v2399_v55 = vsel %vm2263_vm9, %v1498_v43, %v5566_v46  ;;  %v1676_v49 = vrot.slane %v7639_v31, 5 }
 0x19f   :  { %10069 = vst [vmem:[#allocation12_spill] sm:$0xff] %v7651_v35  ;;  %v2439_v12 = vsel %vm258_vm1, %v2399_v55, %v5571_v57  ;;  %v9972_v32 = vrot.slane %v7651_v35, 1  ;;  %v9975_v14 = vrot.slane %v7651_v35, 5  ;;  %v5582_v59 = vunpack.i.h.bf16 %v7630_v34 }
 0x1a0   :  { %v548_v7 = vmax.f32 %v493_v13, 0.0  ;;  %v1094_v17 = vrot.slane %v7639_v31, 2  ;;  %v9973_v8 = vrot.slane %v7651_v35, 2  ;;  %v1897_v38 = vrot.slane %v7639_v31, 6  ;;  %v5595_v13 = vpop.permute.xlu0 %5594 }
 0x1a1   :  { %v875_v62 = vsel %vm797_vm7, %v873_v11, %v9972_v32  ;;  %v1678_v2 = vsel %vm596_vm2, %v1676_v49, %v9975_v14  ;;  %v9976_v24 = vrot.slane %v7651_v35, 6  ;;  %v2359_v50 = vsel %vm2344_vm10, %v2318_v26, %v5577_v60 }
 0x1a2   :  { %v2479_v46 = vsel %vm2344_vm10, %v2439_v12, %v5576_v19  ;;  %v5788_v42 = vpack.i.bf16 %v875_v62, %v1678_v2  ;;  %v1096_v1 = vsel %vm1018_vm5, %v1094_v17, %v9973_v8  ;;  %v5587_v27 = vunpack.i.h.bf16 %v7643_v5  ;;  %v5600_v12 = vpop.permute.xlu1 %5599 }
 0x1a3   :  { %v5586_v57 = vunpack.i.l.bf16 %v7643_v5  ;;  %v1899_v25 = vsel %vm1821_vm6, %v1897_v38, %v9976_v24  ;;  %v5581_v52 = vunpack.i.l.bf16 %v7630_v34  ;;  %v645_v60 = vrot.slane %v548_v7, 5  ;;  %v10070_v7 = vld [vmem:[#allocation18_spill] sm:$0xff] }
 0x1a4   :  { %2599 = vmatmul.f32.gmra.mxu1 %v2359_v50  ;;  %2736 = vmatmul.f32.gmra.mxu2 %v2479_v46  ;;  %v5793_v43 = vpack.i.bf16 %v1096_v1, %v1899_v25  ;;  %v496_v19 = vadd.f32 %v7350_v16, %v495_v0  ;;  %v1315_v26 = vrot.slane %v7639_v31, 3  ;;  %v9974_v55 = vrot.slane %v7651_v35, 3 }
 0x1a5   :  { %5789 = vrot.lane.b32.xlu0 %v5788_v42, %s6007_s21  ;;  %v2118_v5 = vrot.slane %v7639_v31, 7  ;;  %v9977_v11 = vrot.slane %v7651_v35, 7  ;;  %v5597_v49 = vunpack.i.h.bf16 %v5595_v13  ;;  %v2279_v34 = vsel %vm2263_vm9, %v10067_v54, %v5582_v59  ;;  %v498_v1 = vpop.f32.mrf.mxu0 }
 0x1a6   :  { %5794 = vrot.lane.b32.xlu1 %v5793_v43, %s6006_s20  ;;  %v549_v17 = vmax.f32 %v496_v19, 0.0  ;;  %v1499_v62 = vrot.slane %v10070_v7, 4  ;;  %v1317_v0 = vsel %vm1239_vm3, %v1315_v26, %v9974_v55  ;;  %v2319_v38 = vsel %vm258_vm1, %v2279_v34, %v5587_v27  ;;  %v5605_v43 = vpop.permute.xlu2 %5604 }
 0x1a7   :  { %v2120_v2 = vsel %vm2042_vm4, %v2118_v5, %v9977_v11  ;;  %v5592_v50 = vunpack.i.h.bf16 %v5590_v29  ;;  %v5591_v25 = vunpack.i.l.bf16 %v5590_v29  ;;  %v5602_v19 = vunpack.i.h.bf16 %v5600_v12  ;;  %v7715_v5 = vld [vmem:[%s9953_s4] ss:$0 sm:$0xff] }
 0x1a8   :  { %v7706_v46 = vrot.slane %v549_v17, 5  ;;  %v5798_v42 = vpack.i.bf16 %v1317_v0, %v2120_v2  ;;  %v1500_v59 = vsel %vm1460_vm8, %v1497_v53, %v1499_v62  ;;  %v7718_v27 = vsel %vm596_vm2, 0.0, %v645_v60  ;;  %v2558_v17 = vpop.f32.mrf.mxu1 }
 0x1a9   :  { %v2400_v26 = vsel %vm2263_vm9, %v1500_v59, %v5581_v52  ;;  %10071 = vst [vmem:[#allocation6_spill] sm:$0xff] %v7718_v27  ;;  %v2360_v54 = vsel %vm2344_vm10, %v2319_v38, %v5592_v50  ;;  %v2280_v29 = vsel %vm2263_vm9, %v6952_v47, %v5597_v49  ;;  %v5607_v34 = vunpack.i.h.bf16 %v5605_v43 }
 0x1aa   :  { %5799 = vrot.lane.b32.xlu2 %v5798_v42, %s6005_s19  ;;  %v2440_v53 = vsel %vm258_vm1, %v2400_v26, %v5586_v57  ;;  %v7727_v52 = vsel %vm596_vm2, %v645_v60, %v7706_v46  ;;  %v5606_v62 = vunpack.i.l.bf16 %v5605_v43  ;;  %v5601_v0 = vunpack.i.l.bf16 %v5600_v12  ;;  %v7739_v43 = vpop.permute.xlu0 %5609 }
 0x1ab   :  { %10072 = vst [vmem:[#allocation13_spill] sm:$0xff] %v7727_v52  ;;  %v2480_v7 = vsel %vm2344_vm10, %v2440_v53, %v5591_v25  ;;  %v5596_v2 = vunpack.i.l.bf16 %v5595_v13  ;;  %v1501_v38 = vrot.slane %v6952_v47, 4  ;;  %v2559_v57 = vadd.f32 %v7715_v5, %v2558_v17  ;;  %v7747_v53 = vpop.permute.xlu1 %5614 }
 0x1ac   :  { %2602 = vmatmul.f32.gmra.mxu1 %v2360_v54  ;;  %2739 = vmatmul.f32.gmra.mxu2 %v2480_v7  ;;  %v2320_v50 = vsel %vm258_vm1, %v2280_v29, %v5602_v19  ;;  %v1502_v49 = vrot.slane %v6977_v28, 4  ;;  %v878_v42 = vrot.slane %v7718_v27, 1  ;;  %v879_v60 = vrot.slane %v7727_v52, 1 }
 0x1ad   :  { %v1681_v59 = vrot.slane %v7718_v27, 5  ;;  %v9978_v25 = vrot.slane %v7727_v52, 5  ;;  %v1099_v12 = vrot.slane %v7718_v27, 2  ;;  %v2695_v13 = vpop.f32.mrf.mxu2  ;;  %v1100_v19 = vrot.slane %v7727_v52, 2  ;;  %v501_v24 = vpop.f32.mrf.mxu0 }
 0x1ae   :  { %v1503_v47 = vsel %vm1460_vm8, %v1501_v38, %v1502_v49  ;;  %v1902_v26 = vrot.slane %v7718_v27, 6  ;;  %v9979_v54 = vrot.slane %v7727_v52, 6  ;;  %v880_v29 = vsel %vm797_vm7, %v878_v42, %v879_v60  ;;  %v5620_v11 = vpop.permute.xlu2 %5619 }
 0x1af   :  { %v2401_v17 = vsel %vm2263_vm9, %v1503_v47, %v5596_v2  ;;  %v1683_v7 = vsel %vm596_vm2, %v1681_v59, %v9978_v25  ;;  %v2696_v32 = vadd.f32 %v2695_v13, %v2559_v57  ;;  %v1101_v55 = vsel %vm1018_vm5, %v1099_v12, %v1100_v19 }
 0x1b0   :  { %v2441_v38 = vsel %vm258_vm1, %v2401_v17, %v5601_v0  ;;  %v5803_v8 = vpack.i.bf16 %v880_v29, %v1683_v7  ;;  %v1904_v2 = vsel %vm1821_vm6, %v1902_v26, %v9979_v54  ;;  %v499_v47 = vadd.f32 %v7350_v16, %v498_v1  ;;  %v2561_v26 = vpop.f32.mrf.mxu1 }
 0x1b1   :  { %v2361_v42 = vsel %vm2344_vm10, %v2320_v50, %v5607_v34  ;;  %v5808_v14 = vpack.i.bf16 %v1101_v55, %v1904_v2  ;;  %v5617_v57 = vunpack.i.h.bf16 %v7747_v53  ;;  %v5612_v0 = vunpack.i.h.bf16 %v7739_v43 }
 0x1b2   :  { %v2481_v59 = vsel %vm2344_vm10, %v2441_v38, %v5606_v62  ;;  %5804 = vrot.lane.b32.xlu0 %v5803_v8, %s6007_s21  ;;  %v2815_v12 = vmax.f32 %v2696_v32, 0.0  ;;  %v1320_v1 = vrot.slane %v7718_v27, 3  ;;  %v1321_v34 = vrot.slane %v7727_v52, 3 }
 0x1b3   :  { %5809 = vrot.lane.b32.xlu1 %v5808_v14, %s6006_s20  ;;  %v2123_v55 = vrot.slane %v7718_v27, 7  ;;  %v9980_v50 = vrot.slane %v7727_v52, 7  ;;  %v502_v13 = vadd.f32 %v7350_v16, %v501_v24  ;;  %v5622_v17 = vunpack.i.h.bf16 %v5620_v11  ;;  %v5630_v25 = vpop.permute.xlu1 %5629 }
 0x1b4   :  { %2605 = vmatmul.f32.gmra.mxu1 %v2361_v42  ;;  %2742 = vmatmul.f32.gmra.mxu2 %v2481_v59  ;;  %v550_v29 = vmax.f32 %v499_v47, 0.0  ;;  %v2895_v62 = vrot.slane %v2815_v12, 4  ;;  %v1322_v32 = vsel %vm1239_vm3, %v1320_v1, %v1321_v34  ;;  %v5611_v14 = vunpack.i.l.bf16 %v7739_v43  ;;  %v5625_v59 = vpop.permute.xlu0 %5624 }
 0x1b5   :  { %v2125_v8 = vsel %vm2042_vm4, %v2123_v55, %v9980_v50  ;;  %v2281_v7 = vsel %vm2263_vm9, %v6977_v28, %v5612_v0  ;;  %v2698_v38 = vpop.f32.mrf.mxu2  ;;  %v2562_v2 = vadd.f32 %v7715_v5, %v2561_v26  ;;  %v5616_v42 = vunpack.i.l.bf16 %v7747_v53 }
 0x1b6   :  { %v2983_v16 = vsel %vm2975_vm11, %v2895_v62, -inf  ;;  %v5813_v24 = vpack.i.bf16 %v1322_v32, %v2125_v8  ;;  %v2321_v47 = vsel %vm258_vm1, %v2281_v7, %v5617_v57  ;;  %v551_v43 = vmax.f32 %v502_v13, 0.0  ;;  %v5635_v50 = vpop.permute.xlu2 %5634 }
 0x1b7   :  { %v1504_v1 = vrot.slane %v6988_v20, 4  ;;  %v2976_v55 = vsel %vm2975_vm11, %v2815_v12, -inf  ;;  %v2984_v54 = vrot.slane %v2983_v16, 4  ;;  %v2362_v0 = vsel %vm2344_vm10, %v2321_v47, %v5622_v17 }
 0x1b8   :  { %5814 = vrot.lane.b32.xlu2 %v5813_v24, %s6005_s19  ;;  %v2699_v62 = vadd.f32 %v2698_v38, %v2562_v2  ;;  %v5621_v32 = vunpack.i.l.bf16 %v5620_v11  ;;  %v648_v53 = vrot.slane %v550_v29, 5  ;;  %v5627_v26 = vunpack.i.h.bf16 %v5625_v59 }
 0x1b9   :  { %v1505_v57 = vsel %vm1460_vm8, %v1502_v49, %v1504_v1  ;;  %v5632_v8 = vunpack.i.h.bf16 %v5630_v25  ;;  %v2977_v7 = vrot.slane %v2976_v55, 4  ;;  %v7796_v12 = vrot.slane %v551_v43, 5 }
 0x1ba   :  { %v2402_v13 = vsel %vm2263_vm9, %v1505_v57, %v5611_v14  ;;  %v2816_v20 = vmax.f32 %v2699_v62, 0.0  ;;  %v2985_v17 = vmax.f32 %v2983_v16, %v2984_v54  ;;  %v5637_v38 = vunpack.i.h.bf16 %v5635_v50 }
 0x1bb   :  { %v2442_v24 = vsel %vm258_vm1, %v2402_v13, %v5616_v42  ;;  %v7802_v28 = vsel %vm596_vm2, %v7706_v46, 0.0  ;;  %v7806_v14 = vsel %vm596_vm2, 0.0, %v648_v53  ;;  %v5626_v2 = vunpack.i.l.bf16 %v5625_v59 }
 0x1bc   :  { %2608 = vmatmul.f32.gmra.mxu1 %v2362_v0  ;;  %v2482_v11 = vsel %vm2344_vm10, %v2442_v24, %v5621_v32  ;;  %10073 = vst [vmem:[#allocation7_spill] sm:$0xff] %v7802_v28  ;;  %v2896_v49 = vrot.slane %v2816_v20, 4  ;;  %v2990_v29 = vsel %vm2975_vm11, %v2816_v20, -inf  ;;  %v2282_v42 = vsel %vm2263_vm9, %v7076_v9, %v5627_v26 }
 0x1bd   :  { %2745 = vmatmul.f32.gmra.mxu2 %v2482_v11  ;;  %10074 = vst [vmem:[#allocation14_spill] sm:$0xff] %v7806_v14  ;;  %v2991_v47 = vrot.slane %v2990_v29, 4  ;;  %v2978_v54 = vmax.f32 %v2976_v55, %v2977_v7  ;;  %v7812_v16 = vsel %vm596_vm2, %v648_v53, %v7796_v12  ;;  %v2322_v43 = vsel %vm258_vm1, %v2282_v42, %v5632_v8  ;;  %v5640_v8 = vpop.permute.xlu0 %5639 }
 0x1be   :  { %10075 = vst [vmem:[#allocation8_spill] sm:$0xff] %v7812_v16  ;;  %v2997_v46 = vsel %vm2975_vm11, %v2896_v49, -inf  ;;  %v2986_v1 = vrot.slane %v2985_v17, 2  ;;  %v2363_v32 = vsel %vm2344_vm10, %v2322_v43, %v5637_v38  ;;  %v5631_v57 = vunpack.i.l.bf16 %v5630_v25  ;;  %v5645_v25 = vpop.permute.xlu1 %5644 }
 0x1bf   :  { %v2992_v0 = vmax.f32 %v2990_v29, %v2991_v47  ;;  %v2998_v62 = vrot.slane %v2997_v46, 4  ;;  %v1506_v59 = vrot.slane %v7076_v9, 4  ;;  %v1507_v26 = vrot.slane %v7089_v15, 4 }
 0x1c0   :  { %v1323_v55 = vrot.slane %v7802_v28, 3  ;;  %v2128_v20 = vrot.slane %v7806_v14, 7  ;;  %v5636_v7 = vunpack.i.l.bf16 %v5635_v50  ;;  %v2979_v24 = vrot.slane %v2978_v54, 2 }
 0x1c1   :  { %v2993_v13 = vrot.slane %v2992_v0, 2  ;;  %v2999_v53 = vmax.f32 %v2997_v46, %v2998_v62  ;;  %v1508_v11 = vsel %vm1460_vm8, %v1506_v59, %v1507_v26  ;;  %v9983_v49 = vrot.slane %v7812_v16, 7 }
 0x1c2   :  { %v2987_v38 = vmax.f32 %v2985_v17, %v2986_v1  ;;  %v2403_v9 = vsel %vm2263_vm9, %v1508_v11, %v5626_v2  ;;  %v1324_v47 = vsel %vm1239_vm3, %v1321_v34, %v1323_v55  ;;  %v1102_v46 = vrot.slane %v7802_v28, 2  ;;  %v5650_v11 = vpop.permute.xlu2 %5649 }
 0x1c3   :  { %v3000_v29 = vrot.slane %v2999_v53, 2  ;;  %v2443_v42 = vsel %vm258_vm1, %v2403_v9, %v5631_v57  ;;  %v2130_v50 = vsel %vm2042_vm4, %v2128_v20, %v9983_v49  ;;  %v1907_v43 = vrot.slane %v7806_v14, 6 }
 0x1c4   :  { %2611 = vmatmul.f32.gmra.mxu1 %v2363_v32  ;;  %v2994_v62 = vmax.f32 %v2992_v0, %v2993_v13  ;;  %v2483_v17 = vsel %vm2344_vm10, %v2443_v42, %v5636_v7  ;;  %v5828_v1 = vpack.i.bf16 %v2130_v50, %v1324_v47  ;;  %v2980_v32 = vmax.f32 %v2978_v54, %v2979_v24 }
 0x1c5   :  { %2748 = vmatmul.f32.gmra.mxu2 %v2483_v17  ;;  %v9982_v2 = vrot.slane %v7812_v16, 6  ;;  %v881_v34 = vrot.slane %v7802_v28, 1  ;;  %v1686_v57 = vrot.slane %v7806_v14, 5  ;;  %v5647_v59 = vunpack.i.h.bf16 %v5645_v25 }
 0x1c6   :  { %v5642_v55 = vunpack.i.h.bf16 %v5640_v8  ;;  %5829 = vrot.lane.b32.xlu2 %v5828_v1, %s6005_s19  ;;  %v9981_v20 = vrot.slane %v7812_v16, 5  ;;  %v2988_v9 = vrot.slane %v2987_v38, 1  ;;  %v3001_v0 = vmax.f32 %v2999_v53, %v3000_v29 }
 0x1c7   :  { %v1103_v54 = vsel %vm1018_vm5, %v1100_v19, %v1102_v46  ;;  %v1909_v13 = vsel %vm1821_vm6, %v1907_v43, %v9982_v2  ;;  %v2995_v7 = vrot.slane %v2994_v62, 1  ;;  %v882_v47 = vsel %vm797_vm7, %v879_v60, %v881_v34  ;;  %v5655_v43 = vpop.permute.xlu0 %5654 }
 0x1c8   :  { %v5823_v24 = vpack.i.bf16 %v1909_v13, %v1103_v54  ;;  %v1688_v42 = vsel %vm596_vm2, %v1686_v57, %v9981_v20  ;;  %v2981_v50 = vrot.slane %v2980_v32, 1  ;;  %v5652_v29 = vunpack.i.h.bf16 %v5650_v11  ;;  %v2564_v57 = vpop.f32.mrf.mxu1  ;;  %v5660_v13 = vpop.permute.xlu1 %5659 }
 0x1c9   :  { %v5818_v53 = vpack.i.bf16 %v1688_v42, %v882_v47  ;;  %v5646_v17 = vunpack.i.l.bf16 %v5645_v25  ;;  %v5641_v1 = vunpack.i.l.bf16 %v5640_v8  ;;  %v2989_v19 = vmax.f32 %v2987_v38, %v2988_v9  ;;  %v2701_v8 = vpop.f32.mrf.mxu2 }
 0x1ca   :  { %5824 = vrot.lane.b32.xlu1 %v5823_v24, %s6006_s20  ;;  %v3002_v46 = vrot.slane %v3001_v0, 1  ;;  %v2283_v54 = vsel %vm2263_vm9, %v7089_v15, %v5642_v55  ;;  %v1509_v60 = vrot.slane %v7133_v10, 4  ;;  %v2996_v34 = vmax.f32 %v2994_v62, %v2995_v7 }
 0x1cb   :  { %5819 = vrot.lane.b32.xlu0 %v5818_v53, %s6007_s21  ;;  %v2323_v47 = vsel %vm258_vm1, %v2283_v54, %v5647_v59  ;;  %v2982_v25 = vmax.f32 %v2980_v32, %v2981_v50  ;;  %v5651_v24 = vunpack.i.l.bf16 %v5650_v11  ;;  %v5657_v42 = vunpack.i.h.bf16 %v5655_v43  ;;  %v5665_v50 = vpop.permute.xlu2 %5664 }
 0x1cc   :  { %v2364_v38 = vsel %vm2344_vm10, %v2323_v47, %v5652_v29  ;;  %v1510_v9 = vsel %vm1460_vm8, %v1507_v26, %v1509_v60  ;;  %v3003_v55 = vmax.f32 %v3001_v0, %v3002_v46  ;;  %v5662_v62 = vunpack.i.h.bf16 %v5660_v13  ;;  %v504_v60 = vpop.f32.mrf.mxu0 }
 0x1cd   :  { %2614 = vmatmul.f32.gmra.mxu1 %v2364_v38  ;;  %v2404_v15 = vsel %vm2263_vm9, %v1510_v9, %v5641_v1  ;;  %v3617_v10 = vsel %vm3616_vm12, %v2989_v19, %v2982_v25  ;;  %v2284_v26 = vsel %vm2263_vm9, %v7139_v40, %v5657_v42  ;;  %v1511_v11 = vrot.slane %v7139_v40, 4 }
 0x1ce   :  { %v2444_v7 = vsel %vm258_vm1, %v2404_v15, %v5646_v17  ;;  %v3619_v59 = vsel %vm3618_vm13, %v2996_v34, %v3617_v10  ;;  %v5667_v53 = vunpack.i.h.bf16 %v5665_v50  ;;  %v5656_v1 = vunpack.i.l.bf16 %v5655_v43 }
 0x1cf   :  { %v2484_v32 = vsel %vm2344_vm10, %v2444_v7, %v5651_v24  ;;  %v3621_v29 = vsel %vm3620_vm14, %v3003_v55, %v3619_v59  ;;  %v2324_v0 = vsel %vm258_vm1, %v2284_v26, %v5662_v62  ;;  %v5661_v19 = vunpack.i.l.bf16 %v5660_v13  ;;  %v5670_v13 = vpop.permute.xlu0 %5669 }
 0x1d0   :  { %2751 = vmatmul.f32.gmra.mxu2 %v2484_v32  ;;  %v1512_v17 = vrot.slane %v7177_v21, 4  ;;  %v2365_v46 = vsel %vm2344_vm10, %v2324_v0, %v5667_v53  ;;  %v3699_v54 = vsel %vm596_vm2, 0.0, %v3621_v29  ;;  %v2567_v34 = vpop.f32.mrf.mxu1  ;;  %v5666_v25 = vunpack.i.l.bf16 %v5665_v50  ;;  %v5675_v42 = vpop.permute.xlu1 %5674 }
 0x1d1   :  { %v2704_v40 = vpop.f32.mrf.mxu2  ;;  %v7876_v9 = vsel %vm797_vm7, %v3699_v54, 0.0  ;;  %v5672_v15 = vunpack.i.h.bf16 %v5670_v13  ;;  %v5677_v59 = vunpack.i.h.bf16 %v5675_v42  ;;  %v6008_v32 = vmov 0.0  }
 0x1d2   :  { %v1513_v47 = vsel %vm1460_vm8, %v1511_v11, %v1512_v17  ;;  %v3839_v10 = vrot.slane %v7876_v9, 2  ;;  %v3759_v55 = vrot.slane %v7876_v9, 1  ;;  %v4040_v62 = vrot.slane %v7876_v9, 5 }
 0x1d3   :  { %v2405_v38 = vsel %vm2263_vm9, %v1513_v47, %v5656_v1  ;;  %v5680_v7 = vpop.permute.xlu2 %5679  ;;  %v7884_v50 = vrot.slane %v6008_v32, 5  ;;  %v2565_v26 = vadd.f32 %v7715_v5, %v2564_v57  ;;  %v2285_v29 = vsel %vm2263_vm9, %v7177_v21, %v5672_v15 }
 0x1d4   :  { %v2445_v43 = vsel %vm258_vm1, %v2405_v38, %v5661_v19  ;;  %3859 = vrot.lane.b32.xlu2 %v3839_v10, %s6006_s20  ;;  %3779 = vrot.lane.b32.xlu1 %v3759_v55, %s6007_s21  ;;  %v507_v11 = vpop.f32.mrf.mxu0  ;;  %v5682_v19 = vunpack.i.h.bf16 %v5680_v7  ;;  %v5671_v47 = vunpack.i.l.bf16 %v5670_v13  ;;  %v5676_v21 = vunpack.i.l.bf16 %v5675_v42 }
 0x1d5   :  { %2617 = vmatmul.f32.gmra.mxu1 %v2365_v46  ;;  %v2485_v24 = vsel %vm2344_vm10, %v2445_v43, %v5666_v25  ;;  %v4042_v0 = vsel %vm596_vm2, %v4040_v62, %v7884_v50  ;;  %v7898_v46 = vld [vmem:[%s9951_s2] ss:$0 sm:$0xff]  ;;  %v2702_v57 = vadd.f32 %v2701_v8, %v2565_v26  ;;  %v2325_v38 = vsel %vm258_vm1, %v2285_v29, %v5677_v59 }
 0x1d6   :  { %v505_v54 = vadd.f32 %v7898_v46, %v504_v60  ;;  %4081 = vrot.lane.b32.xlu0 %v4042_v0, %s6007_s21  ;;  %v508_v25 = vadd.f32 %v7898_v46, %v507_v11  ;;  %v1514_v43 = vrot.slane %v7184_v4, 4  ;;  %v2366_v15 = vsel %vm2344_vm10, %v2325_v38, %v5682_v19 }
 0x1d7   :  { %v5681_v62 = vunpack.i.l.bf16 %v5680_v7  ;;  %v2568_v8 = vadd.f32 %v7715_v5, %v2567_v34  ;;  %v2817_v26 = vmax.f32 %v2702_v57, 0.0  ;;  %v4141_v19 = vrot.slane %v7876_v9, 6 }
 0x1d8   :  { %2754 = vmatmul.f32.gmra.mxu2 %v2485_v24  ;;  %v7887_v53 = vpop.f32.mrf.mxu1  ;;  %v5690_v10 = vpop.permute.xlu1 %5689  ;;  %v1515_v55 = vsel %vm1460_vm8, %v1512_v17, %v1514_v43  ;;  %v552_v60 = vmax.f32 %v505_v54, 0.0  ;;  %v553_v11 = vmax.f32 %v508_v25, 0.0  ;;  %v7912_v17 = vrot.slane %v6008_v32, 6 }
 0x1d9   :  { %v7891_v1 = vpop.f32.mrf.mxu2  ;;  %v5685_v24 = vpop.permute.xlu0 %5684  ;;  %v2406_v13 = vsel %vm2263_vm9, %v1515_v55, %v5671_v47  ;;  %v2705_v29 = vadd.f32 %v2704_v40, %v2568_v8  ;;  %v5692_v4 = vunpack.i.h.bf16 %v5690_v10  ;;  %v3919_v7 = vrot.slane %v7876_v9, 3 }
 0x1da   :  { %v5687_v42 = vunpack.i.h.bf16 %v5685_v24  ;;  %v2446_v59 = vsel %vm258_vm1, %v2406_v13, %v5676_v21  ;;  %v651_v54 = vrot.slane %v552_v60, 5  ;;  %v4242_v57 = vrot.slane %v7876_v9, 7 }
 0x1db   :  { %v2486_v0 = vsel %vm2344_vm10, %v2446_v59, %v5681_v62  ;;  %v5695_v38 = vpop.permute.xlu2 %5694  ;;  %v7918_v25 = vrot.slane %v6008_v32, 7  ;;  %v2897_v40 = vrot.slane %v2817_v26, 4  ;;  %v7920_v21 = vrot.slane %v553_v11, 5 }
 0x1dc   :  { %v5697_v34 = vunpack.i.h.bf16 %v5695_v38  ;;  %3939 = vrot.lane.b32.xlu1 %v3919_v7, %s6005_s19  ;;  %v2286_v55 = vsel %vm2263_vm9, %v7241_v36, %v5687_v42  ;;  %v2818_v62 = vmax.f32 %v2705_v29, 0.0  ;;  %v5686_v60 = vunpack.i.l.bf16 %v5685_v24 }
 0x1dd   :  { %2620 = vmatmul.f32.gmra.mxu1 %v2366_v15  ;;  %v4143_v15 = vsel %vm1821_vm6, %v4141_v19, %v7912_v17  ;;  %v4244_v32 = vsel %vm2042_vm4, %v4242_v57, %v7918_v25  ;;  %v2326_v8 = vsel %vm258_vm1, %v2286_v55, %v5692_v4  ;;  %v5691_v13 = vunpack.i.l.bf16 %v5690_v10 }
 0x1de   :  { %4182 = vrot.lane.b32.xlu2 %v4143_v15, %s6006_s20  ;;  %4283 = vrot.lane.b32.xlu0 %v4244_v32, %s6005_s19  ;;  %v2367_v11 = vsel %vm2344_vm10, %v2326_v8, %v5697_v34  ;;  %v1516_v59 = vrot.slane %v7241_v36, 4  ;;  %v7938_v42 = vsel %vm596_vm2, 0.0, %v651_v54  ;;  %v3011_v24 = vsel %vm2975_vm11, %v2897_v40, -inf }
 0x1df   :  { %v7943_v29 = vsel %vm596_vm2, %v651_v54, %v7920_v21  ;;  %v7950_v4 = vsel %vm596_vm2, %v7550_v6, 0.0  ;;  %v5696_v36 = vunpack.i.l.bf16 %v5695_v38  ;;  %v3004_v7 = vsel %vm2975_vm11, %v2817_v26, -inf }
 0x1e0   :  { %2757 = vmatmul.f32.gmra.mxu2 %v2486_v0  ;;  %v7915_v47 = vpop.f32.mrf.mxu1  ;;  %v1517_v0 = vrot.slane %v7277_v61, 4  ;;  %10076 = vst [vmem:[#allocation15_spill] sm:$0xff] %v7943_v29  ;;  %v2898_v34 = vrot.slane %v2818_v62, 4  ;;  %v1330_v40 = vrot.slane %v7938_v42, 3  ;;  %v3012_v54 = vrot.slane %v3011_v24, 4  ;;  %v7963_v38 = vpop.permute.xlu1 %5704 }
 0x1e1   :  { %v7922_v43 = vpop.f32.mrf.mxu2  ;;  %v7956_v15 = vpop.permute.xlu0 %5699  ;;  %v9987_v32 = vrot.slane %v7943_v29, 3  ;;  %v3018_v6 = vsel %vm2975_vm11, %v2818_v62, -inf  ;;  %v2116_v26 = vrot.slane %v7950_v4, 7  ;;  %v5707_v2 = vunpack.i.h.bf16 %v7963_v38 }
 0x1e2   :  { %v1518_v10 = vsel %vm1460_vm8, %v1516_v59, %v1517_v0  ;;  %v3025_v62 = vsel %vm2975_vm11, %v2898_v34, -inf  ;;  %v3019_v20 = vrot.slane %v3018_v6, 4  ;;  %v3013_v45 = vmax.f32 %v3011_v24, %v3012_v54 }
 0x1e3   :  { %v2407_v19 = vsel %vm2263_vm9, %v1518_v10, %v5686_v60  ;;  %v7960_v8 = vpop.permute.xlu2 %5709  ;;  %v1109_v60 = vrot.slane %v7938_v42, 2  ;;  %v1332_v10 = vsel %vm1239_vm3, %v1330_v40, %v9987_v32  ;;  %v888_v51 = vrot.slane %v7938_v42, 1 }
 0x1e4   :  { %v2447_v57 = vsel %vm258_vm1, %v2407_v19, %v5691_v13  ;;  %v9988_v13 = vrot.slane %v7943_v29, 2  ;;  %v5702_v19 = vunpack.i.h.bf16 %v7956_v15  ;;  %v5712_v34 = vunpack.i.h.bf16 %v7960_v8 }
 0x1e5   :  { %2623 = vmatmul.f32.gmra.mxu1 %v2367_v11  ;;  %v2487_v55 = vsel %vm2344_vm10, %v2447_v57, %v5696_v36  ;;  %v3005_v11 = vrot.slane %v3004_v7, 4  ;;  %v1895_v36 = vrot.slane %v7950_v4, 6  ;;  %v3026_v32 = vrot.slane %v3025_v62, 4 }
 0x1e6   :  { %v1111_v40 = vsel %vm1018_vm5, %v1109_v60, %v9988_v13  ;;  %v2287_v24 = vsel %vm2263_vm9, %v7277_v61, %v5702_v19  ;;  %v3020_v54 = vmax.f32 %v3018_v6, %v3019_v20  ;;  %v3014_v13 = vrot.slane %v3013_v45, 2 }
 0x1e7   :  { %v3006_v58 = vmax.f32 %v3004_v7, %v3005_v11  ;;  %v2327_v60 = vsel %vm258_vm1, %v2287_v24, %v5707_v2  ;;  %v5701_v2 = vunpack.i.l.bf16 %v7956_v15  ;;  %v8011_v6 = vsel %vm596_vm2, %v7641_v33, 0.0 }
 0x1e8   :  { %2760 = vmatmul.f32.gmra.mxu2 %v2487_v55  ;;  %v7968_v59 = vpop.f32.mrf.mxu1  ;;  %v2117_v55 = vsel %vm2042_vm4, %v2114_v23, %v2116_v26  ;;  %v1896_v23 = vsel %vm1821_vm6, %v1893_v41, %v1895_v36  ;;  %v2368_v7 = vsel %vm2344_vm10, %v2327_v60, %v5712_v34  ;;  %v8006_v36 = vsel %vm596_vm2, %v7920_v21, 0.0  ;;  %10078 = vst [vmem:[#allocation10_spill] sm:$0xff] %v8011_v6 }
 0x1e9   :  { %v7976_v57 = vpop.f32.mrf.mxu2  ;;  %v5843_v49 = vpack.i.bf16 %v2117_v55, %v1332_v10  ;;  %v5838_v26 = vpack.i.bf16 %v1896_v23, %v1111_v40  ;;  %v9989_v10 = vrot.slane %v7943_v29, 1  ;;  %v1674_v55 = vrot.slane %v7950_v4, 5  ;;  %10077 = vst [vmem:[#allocation9_spill] sm:$0xff] %v8006_v36 }
 0x1ea   :  { %v3007_v11 = vrot.slane %v3006_v58, 2  ;;  %v3027_v19 = vmax.f32 %v3025_v62, %v3026_v32  ;;  %v1519_v40 = vrot.slane %v7290_v39, 4  ;;  %v8019_v34 = vsel %vm596_vm2, %v7796_v12, 0.0 }
 0x1eb   :  { %5844 = vrot.lane.b32.xlu2 %v5843_v49, %s6005_s19  ;;  %5839 = vrot.lane.b32.xlu1 %v5838_v26, %s6006_s20  ;;  %v890_v49 = vsel %vm797_vm7, %v888_v51, %v9989_v10  ;;  %v1675_v41 = vsel %vm596_vm2, %v1672_v44, %v1674_v55  ;;  %v8013_v51 = vpop.permute.xlu2 %5724  ;;  %v5706_v44 = vunpack.i.l.bf16 %v7963_v38  ;;  %10079 = vst [vmem:[#allocation11_spill] sm:$0xff] %v8019_v34  ;;  %v5711_v21 = vunpack.i.l.bf16 %v7960_v8  ;;  %v510_v55 = vpop.f32.mrf.mxu0 }
 0x1ec   :  { %v5833_v20 = vpack.i.bf16 %v1675_v41, %v890_v49  ;;  %v5727_v15 = vunpack.i.h.bf16 %v8013_v51  ;;  %v3021_v23 = vrot.slane %v3020_v54, 2  ;;  %v3015_v33 = vmax.f32 %v3013_v45, %v3014_v13  ;;  %v5715_v60 = vpop.permute.xlu0 %5714  ;;  %v5720_v49 = vpop.permute.xlu1 %5719 }
 0x1ed   :  { %2626 = vmatmul.f32.gmra.mxu1 %v2368_v7  ;;  %v1520_v32 = vsel %vm1460_vm8, %v1517_v0, %v1519_v40  ;;  %v1313_v12 = vrot.slane %v7950_v4, 3  ;;  %v1333_v38 = vrot.slane %v8006_v36, 3  ;;  %v3008_v8 = vmax.f32 %v3006_v58, %v3007_v11 }
 0x1ee   :  { %5834 = vrot.lane.b32.xlu0 %v5833_v20, %s6007_s21  ;;  %v8035_v24 = vadd.f32 %v7898_v46, %v510_v55  ;;  %v2408_v45 = vsel %vm2263_vm9, %v1520_v32, %v5701_v2  ;;  %v3028_v13 = vrot.slane %v3027_v19, 2  ;;  %v10080_v0 = vrot.slane %v7943_v29, 3 }
 0x1ef   :  { %v2448_v61 = vsel %vm258_vm1, %v2408_v45, %v5706_v44  ;;  %v1092_v7 = vrot.slane %v7950_v4, 2  ;;  %v3022_v20 = vmax.f32 %v3020_v54, %v3021_v23  ;;  %v2571_v58 = vadd.f32 %v7715_v5, %v7887_v53 }
 0x1f0   :  { %v8023_v26 = vpop.f32.mrf.mxu1  ;;  %v1334_v41 = vsel %vm1239_vm3, %v10080_v0, %v1333_v38  ;;  %v2488_v11 = vsel %vm2344_vm10, %v2448_v61, %v5711_v21  ;;  %v10081_v40 = vrot.slane %v7560_v48, 3  ;;  %v3016_v55 = vrot.slane %v3015_v33, 1 }
 0x1f1   :  { %v8029_v39 = vpop.f32.mrf.mxu2  ;;  %v5717_v32 = vunpack.i.h.bf16 %v5715_v60  ;;  %2763 = vmatmul.f32.gmra.mxu2 %v2488_v11  ;;  %v1112_v45 = vrot.slane %v8006_v36, 2  ;;  %v3009_v62 = vrot.slane %v3008_v8, 1  ;;  %v5722_v38 = vunpack.i.h.bf16 %v5720_v49 }
 0x1f2   :  { %v1314_v2 = vsel %vm1239_vm3, %v10081_v40, %v1313_v12  ;;  %v871_v0 = vrot.slane %v7950_v4, 1  ;;  %v891_v54 = vrot.slane %v8006_v36, 1  ;;  %v3029_v23 = vmax.f32 %v3027_v19, %v3028_v13 }
 0x1f3   :  { %v5858_v44 = vpack.i.bf16 %v1334_v41, %v1314_v2  ;;  %v2708_v53 = vadd.f32 %v7891_v1, %v2571_v58  ;;  %v10082_v21 = vrot.slane %v7560_v48, 2  ;;  %v10083_v61 = vrot.slane %v7943_v29, 2 }
 0x1f4   :  { %v3023_v11 = vrot.slane %v3022_v20, 1  ;;  %v10084_v2 = vrot.slane %v7560_v48, 1  ;;  %v10085_v19 = vrot.slane %v7943_v29, 1  ;;  %v3017_v13 = vmax.f32 %v3015_v33, %v3016_v55 }
 0x1f5   :  { %5859 = vrot.lane.b32.xlu2 %v5858_v44, %s6005_s19  ;;  %v1093_v12 = vsel %vm1018_vm5, %v10082_v21, %v1092_v7  ;;  %v1113_v41 = vsel %vm1018_vm5, %v10083_v61, %v1112_v45  ;;  %v5716_v58 = vunpack.i.l.bf16 %v5715_v60  ;;  %v2288_v7 = vsel %vm2263_vm9, %v7343_v56, %v5717_v32  ;;  %v8068_v21 = vpop.permute.xlu2 %5739 }
 0x1f6   :  { %v5853_v40 = vpack.i.bf16 %v1113_v41, %v1093_v12  ;;  %v872_v10 = vsel %vm797_vm7, %v10084_v2, %v871_v0  ;;  %v892_v1 = vsel %vm797_vm7, %v10085_v19, %v891_v54  ;;  %v5721_v27 = vunpack.i.l.bf16 %v5720_v49  ;;  %v513_v19 = vpop.f32.mrf.mxu0 }
 0x1f7   :  { %v5848_v44 = vpack.i.bf16 %v892_v1, %v872_v10  ;;  %v2328_v12 = vsel %vm258_vm1, %v2288_v7, %v5722_v38  ;;  %v1521_v0 = vrot.slane %v7343_v56, 4  ;;  %v1522_v61 = vrot.slane %v7383_v37, 4  ;;  %v5730_v1 = vpop.permute.xlu0 %5729  ;;  %v5735_v7 = vpop.permute.xlu1 %5734 }
 0x1f8   :  { %5854 = vrot.lane.b32.xlu1 %v5853_v40, %s6006_s20  ;;  %v8071_v45 = vpop.f32.mrf.mxu1  ;;  %v3030_v54 = vrot.slane %v3029_v23, 1  ;;  %v2819_v33 = vmax.f32 %v2708_v53, 0.0  ;;  %v2574_v10 = vadd.f32 %v7715_v5, %v7915_v47  ;;  %v2369_v60 = vsel %vm2344_vm10, %v2328_v12, %v5727_v15 }
 0x1f9   :  { %5849 = vrot.lane.b32.xlu0 %v5848_v44, %s6007_s21  ;;  %v8080_v49 = vpop.f32.mrf.mxu2  ;;  %v3010_v55 = vmax.f32 %v3008_v8, %v3009_v62  ;;  %v3024_v32 = vmax.f32 %v3022_v20, %v3023_v11  ;;  %v554_v41 = vmax.f32 %v8035_v24, 0.0  ;;  %2629 = vmatmul.f32.gmra.mxu1 %v2369_v60  ;;  %v1523_v56 = vsel %vm1460_vm8, %v1521_v0, %v1522_v61 }
 0x1fa   :  { %v5742_v38 = vunpack.i.h.bf16 %v8068_v21  ;;  %v2711_v53 = vadd.f32 %v7922_v43, %v2574_v10  ;;  %v2409_v47 = vsel %vm2263_vm9, %v1523_v56, %v5716_v58  ;;  %v2126_v40 = vrot.slane %v7802_v28, 7 }
 0x1fb   :  { %v3622_v15 = vsel %vm3616_vm12, %v3017_v13, %v3010_v55  ;;  %v2449_v8 = vsel %vm258_vm1, %v2409_v47, %v5721_v27  ;;  %v2133_v62 = vrot.slane %v7938_v42, 7  ;;  %v2134_v24 = vrot.slane %v7943_v29, 7 }
 0x1fc   :  { %v3031_v20 = vmax.f32 %v3029_v23, %v3030_v54  ;;  %v2899_v11 = vrot.slane %v2819_v33, 4  ;;  %v3032_v2 = vsel %vm2975_vm11, %v2819_v33, -inf  ;;  %v10086_v43 = vunpack.i.l.bf16 %v8013_v51 }
 0x1fd   :  { %v3623_v44 = vsel %vm3618_vm13, %v3024_v32, %v3622_v15  ;;  %v10087_v27 = vrot.slane %v7727_v52, 7  ;;  %v2135_v23 = vsel %vm2042_vm4, %v2133_v62, %v2134_v24  ;;  %v1905_v12 = vrot.slane %v7802_v28, 6 }
 0x1fe   :  { %v2489_v58 = vsel %vm2344_vm10, %v2449_v8, %v10086_v43  ;;  %v8106_v0 = vrot.slane %v554_v41, 5  ;;  %v5741_v51 = vunpack.i.l.bf16 %v8068_v21  ;;  %v2820_v54 = vmax.f32 %v2711_v53, 0.0 }
 0x1ff   :  { %2766 = vmatmul.f32.gmra.mxu2 %v2489_v58  ;;  %v2127_v13 = vsel %vm2042_vm4, %v10087_v27, %v2126_v40  ;;  %v8110_v10 = vadd.f32 %v7898_v46, %v513_v19  ;;  %v5732_v60 = vunpack.i.h.bf16 %v5730_v1  ;;  %v1912_v55 = vrot.slane %v7938_v42, 6 }
 0x200   :  { %v5873_v33 = vpack.i.bf16 %v2135_v23, %v2127_v13  ;;  %v1913_v32 = vrot.slane %v7943_v29, 6  ;;  %v3624_v56 = vsel %vm3620_vm14, %v3031_v20, %v3623_v44  ;;  %v3033_v47 = vrot.slane %v3032_v2, 4  ;;  %v8123_v53 = vpop.f32.mrf.mxu1 }
 0x201   :  { %v3039_v40 = vsel %vm2975_vm11, %v2899_v11, -inf  ;;  %v5737_v15 = vunpack.i.h.bf16 %v5735_v7  ;;  %v10088_v21 = vrot.slane %v7727_v52, 6  ;;  %v1684_v8 = vrot.slane %v7802_v28, 5  ;;  %v8128_v58 = vpop.f32.mrf.mxu2 }
 0x202   :  { %5874 = vrot.lane.b32.xlu2 %v5873_v33, %s6005_s19  ;;  %v1914_v46 = vsel %vm1821_vm6, %v1912_v55, %v1913_v32  ;;  %v1691_v62 = vrot.slane %v7938_v42, 5  ;;  %v2900_v20 = vrot.slane %v2820_v54, 4  ;;  %v3046_v11 = vsel %vm2975_vm11, %v2820_v54, -inf  ;;  %v8138_v54 = vpop.permute.xlu2 %5754 }
 0x203   :  { %v1906_v41 = vsel %vm1821_vm6, %v10088_v21, %v1905_v12  ;;  %v5731_v19 = vunpack.i.l.bf16 %v5730_v1  ;;  %v5736_v44 = vunpack.i.l.bf16 %v5735_v7  ;;  %v1692_v27 = vrot.slane %v7943_v29, 5 }
 0x204   :  { %v5868_v43 = vpack.i.bf16 %v1914_v46, %v1906_v41  ;;  %v2289_v13 = vsel %vm2263_vm9, %v7383_v37, %v5732_v60  ;;  %v1524_v23 = vrot.slane %v7428_v18, 4  ;;  %v3034_v12 = vmax.f32 %v3032_v2, %v3033_v47  ;;  %v8151_v47 = vpop.permute.xlu0 %5744 }
 0x205   :  { %v3040_v33 = vrot.slane %v3039_v40, 4  ;;  %v2577_v55 = vadd.f32 %v7715_v5, %v7968_v59  ;;  %v2329_v1 = vsel %vm258_vm1, %v2289_v13, %v5737_v15  ;;  %v10089_v7 = vrot.slane %v7727_v52, 5 }
 0x206   :  { %5869 = vrot.lane.b32.xlu1 %v5868_v43, %s6006_s20  ;;  %v1693_v60 = vsel %vm596_vm2, %v1691_v62, %v1692_v27  ;;  %v2370_v18 = vsel %vm2344_vm10, %v2329_v1, %v5742_v38  ;;  %v1525_v5 = vsel %vm1460_vm8, %v1522_v61, %v1524_v23  ;;  %v3700_v59 = vsel %vm596_vm2, 0.0, %v3624_v56  ;;  %v8159_v38 = vpop.permute.xlu1 %5749 }
 0x207   :  { %v1685_v21 = vsel %vm596_vm2, %v10089_v7, %v1684_v8  ;;  %v3047_v2 = vrot.slane %v3046_v11, 4  ;;  %2632 = vmatmul.f32.gmra.mxu1 %v2370_v18  ;;  %v2410_v41 = vsel %vm2263_vm9, %v1525_v5, %v5731_v19  ;;  %v5757_v46 = vunpack.i.h.bf16 %v8138_v54 }
 0x208   :  { %v5863_v15 = vpack.i.bf16 %v1693_v60, %v1685_v21  ;;  %v3053_v8 = vsel %vm2975_vm11, %v2900_v20, -inf  ;;  %v8157_v62 = vadd.f32 %v7976_v57, %v2577_v55  ;;  %v2450_v37 = vsel %vm258_vm1, %v2410_v41, %v5736_v44  ;;  %v8181_v60 = vpop.f32.mrf.mxu1 }
 0x209   :  { %v3035_v61 = vrot.slane %v3034_v12, 2  ;;  %v3041_v56 = vmax.f32 %v3039_v40, %v3040_v33  ;;  %v2490_v43 = vsel %vm2344_vm10, %v2450_v37, %v5741_v51  ;;  %v1325_v13 = vrot.slane %v7806_v14, 3 }
 0x20a   :  { %5864 = vrot.lane.b32.xlu0 %v5863_v15, %s6007_s21  ;;  %v8166_v19 = vsel %vm797_vm7, %v3700_v59, 0.0  ;;  %2769 = vmatmul.f32.gmra.mxu2 %v2490_v43  ;;  %v9995_v20 = vrot.slane %v7812_v16, 3  ;;  %v2136_v57 = vrot.slane %v8006_v36, 7  ;;  %v1104_v23 = vrot.slane %v7806_v14, 2 }
 0x20b   :  { %10090 = vst [vmem:[#allocation16_spill] sm:$0xff] %v8166_v19  ;;  %v3048_v55 = vmax.f32 %v3046_v11, %v3047_v2  ;;  %v3054_v44 = vrot.slane %v3053_v8, 4  ;;  %v9992_v40 = vrot.slane %v7812_v16, 2  ;;  %v1915_v33 = vrot.slane %v8006_v36, 6  ;;  %v8186_v2 = vpop.f32.mrf.mxu2 }
 0x20c   :  { %v2821_v51 = vmax.f32 %v8157_v62, 0.0  ;;  %v5747_v1 = vunpack.i.h.bf16 %v8151_v47  ;;  %v1327_v7 = vsel %vm1239_vm3, %v1325_v13, %v9995_v20  ;;  %v2137_v21 = vsel %vm2042_vm4, %v2134_v24, %v2136_v57  ;;  %v8198_v13 = vpop.permute.xlu2 %5769 }
 0x20d   :  { %v8183_v11 = vmax.f32 %v3034_v12, %v3035_v61  ;;  %v3042_v18 = vrot.slane %v3041_v56, 2  ;;  %v5752_v5 = vunpack.i.h.bf16 %v8159_v38  ;;  %v5888_v59 = vpack.i.bf16 %v1327_v7, %v2137_v21  ;;  %v8211_v7 = vpop.permute.xlu0 %5759 }
 0x20e   :  { %v1106_v15 = vsel %vm1018_vm5, %v1104_v23, %v9992_v40  ;;  %v1916_v41 = vsel %vm1821_vm6, %v1913_v32, %v1915_v33  ;;  %v883_v24 = vrot.slane %v7806_v14, 1  ;;  %v9993_v62 = vrot.slane %v7812_v16, 1  ;;  %v8203_v23 = vld [vmem:[%s9953_s4] ss:$0 sm:$0xff] }
 0x20f   :  { %v3049_v12 = vrot.slane %v3048_v55, 2  ;;  %v3055_v37 = vmax.f32 %v3053_v8, %v3054_v44  ;;  %5889 = vrot.lane.b32.xlu2 %v5888_v59, %s6005_s19  ;;  %v5883_v61 = vpack.i.bf16 %v1106_v15, %v1916_v41  ;;  %v1694_v43 = vrot.slane %v8006_v36, 5 }
 0x210   :  { %v2901_v57 = vrot.slane %v2821_v51, 4  ;;  %v2580_v32 = vadd.f32 %v8203_v23, %v8023_v26  ;;  %v5751_v33 = vunpack.i.l.bf16 %v8159_v38  ;;  %v2290_v8 = vsel %vm2263_vm9, %v7468_v22, %v5747_v1  ;;  %v8221_v38 = vpop.permute.xlu1 %5764 }
 0x211   :  { %v5746_v44 = vunpack.i.l.bf16 %v8151_v47  ;;  %5884 = vrot.lane.b32.xlu1 %v5883_v61, %s6006_s20  ;;  %v885_v21 = vsel %vm797_vm7, %v883_v24, %v9993_v62  ;;  %v1695_v59 = vsel %vm596_vm2, %v1692_v27, %v1694_v43  ;;  %v2330_v26 = vsel %vm258_vm1, %v2290_v8, %v5752_v5 }
 0x212   :  { %v5878_v15 = vpack.i.bf16 %v885_v21, %v1695_v59  ;;  %v2371_v1 = vsel %vm2344_vm10, %v2330_v26, %v5757_v46  ;;  %v1526_v47 = vrot.slane %v7468_v22, 4  ;;  %v1527_v41 = vrot.slane %v7471_v63, 4 }
 0x213   :  { %v3043_v61 = vmax.f32 %v3041_v56, %v3042_v18  ;;  %v555_v40 = vmax.f32 %v8110_v10, 0.0  ;;  %v5756_v24 = vunpack.i.l.bf16 %v8138_v54  ;;  %v2717_v62 = vadd.f32 %v8029_v39, %v2580_v32  ;;  %2635 = vmatmul.f32.gmra.mxu1 %v2371_v1 }
 0x214   :  { %v3050_v27 = vmax.f32 %v3048_v55, %v3049_v12  ;;  %v3056_v43 = vrot.slane %v3055_v37, 2  ;;  %v5762_v5 = vunpack.i.h.bf16 %v8211_v7  ;;  %5879 = vrot.lane.b32.xlu0 %v5878_v15, %s6007_s21  ;;  %v1528_v46 = vsel %vm1460_vm8, %v1526_v47, %v1527_v41  ;;  %v8240_v12 = vpop.f32.mrf.mxu1  ;;  %v8247_v1 = vpop.permute.xlu2 %5784 }
 0x215   :  { %v3037_v22 = vrot.slane %v8183_v11, 1  ;;  %v5767_v8 = vunpack.i.h.bf16 %v8221_v38  ;;  %v2411_v56 = vsel %vm2263_vm9, %v1528_v46, %v5746_v44  ;;  %v3760_v10 = vrot.slane %v8166_v19, 1  ;;  %v8245_v44 = vpop.f32.mrf.mxu2 }
 0x216   :  { %v3060_v54 = vsel %vm2975_vm11, %v2821_v51, -inf  ;;  %v3067_v39 = vsel %vm2975_vm11, %v2901_v57, -inf  ;;  %v2451_v55 = vsel %vm258_vm1, %v2411_v56, %v5751_v33  ;;  %v4043_v18 = vrot.slane %v8166_v19, 5 }
 0x217   :  { %v3044_v32 = vrot.slane %v3043_v61, 1  ;;  %v5772_v21 = vunpack.i.h.bf16 %v8198_v13  ;;  %v2822_v59 = vmax.f32 %v2717_v62, 0.0  ;;  %v2491_v26 = vsel %vm2344_vm10, %v2451_v55, %v5756_v24  ;;  %3781 = vrot.lane.b32.xlu2 %v3760_v10, %s6007_s21 }
 0x218   :  { %v3051_v15 = vrot.slane %v3050_v27, 1  ;;  %v3057_v51 = vmax.f32 %v3055_v37, %v3056_v43  ;;  %2772 = vmatmul.f32.gmra.mxu2 %v2491_v26  ;;  %v4044_v57 = vsel %vm596_vm2, %v4043_v18, %v7884_v50  ;;  %v2291_v33 = vsel %vm2263_vm9, %v7471_v63, %v5762_v5  ;;  %v5775_v26 = vpop.permute.xlu0 %5774 }
 0x219   :  { %v3061_v47 = vrot.slane %v3060_v54, 4  ;;  %v3068_v46 = vrot.slane %v3067_v39, 4  ;;  %v5761_v62 = vunpack.i.l.bf16 %v8211_v7  ;;  %4083 = vrot.lane.b32.xlu1 %v4044_v57, %s6007_s21  ;;  %v2331_v24 = vsel %vm258_vm1, %v2291_v33, %v5767_v8 }
 0x21a   :  { %v5766_v56 = vunpack.i.l.bf16 %v8221_v38  ;;  %v3840_v37 = vrot.slane %v8166_v19, 2  ;;  %v2372_v43 = vsel %vm2344_vm10, %v2331_v24, %v5772_v21  ;;  %v1529_v10 = vrot.slane %v7514_v3, 4  ;;  %v5780_v24 = vpop.permute.xlu1 %5779 }
 0x21b   :  { %v3038_v55 = vmax.f32 %v8183_v11, %v3037_v22  ;;  %v3045_v18 = vmax.f32 %v3043_v61, %v3044_v32  ;;  %v5771_v63 = vunpack.i.l.bf16 %v8198_v13  ;;  %v2902_v5 = vrot.slane %v2822_v59, 4  ;;  %2638 = vmatmul.f32.gmra.mxu1 %v2372_v43 }
 0x21c   :  { %v3052_v7 = vmax.f32 %v3050_v27, %v3051_v15  ;;  %v3058_v57 = vrot.slane %v3057_v51, 1  ;;  %3861 = vrot.lane.b32.xlu0 %v3840_v37, %s6006_s20  ;;  %v1530_v38 = vsel %vm1460_vm8, %v1527_v41, %v1529_v10  ;;  %v4245_v8 = vrot.slane %v8166_v19, 7 }
 0x21d   :  { %v3062_v33 = vmax.f32 %v3060_v54, %v3061_v47  ;;  %v3069_v21 = vmax.f32 %v3067_v39, %v3068_v46  ;;  %v2412_v3 = vsel %vm2263_vm9, %v1530_v38, %v5761_v62  ;;  %v3920_v11 = vrot.slane %v8166_v19, 3  ;;  %v8279_v47 = vpop.permute.xlu2 %5799  ;;  %v8283_v62 = vpop.f32.mrf.mxu1 }
 0x21e   :  { %v8269_v13 = vsel %vm596_vm2, 0.0, %v8106_v0  ;;  %v8271_v61 = vrot.slane %v555_v40, 5  ;;  %v5777_v27 = vunpack.i.h.bf16 %v5775_v26  ;;  %v2452_v22 = vsel %vm258_vm1, %v2412_v3, %v5766_v56 }
 0x21f   :  { %10091 = vst [vmem:[#allocation17_spill] sm:$0xff] %v8269_v13  ;;  %v3625_v41 = vsel %vm3616_vm12, %v3045_v18, %v3038_v55  ;;  %v3074_v32 = vsel %vm2975_vm11, %v2822_v59, -inf  ;;  %v3081_v54 = vsel %vm2975_vm11, %v2902_v5, -inf  ;;  %v2492_v39 = vsel %vm2344_vm10, %v2452_v22, %v5771_v63  ;;  %3941 = vrot.lane.b32.xlu2 %v3920_v11, %s6005_s19 }
 0x220   :  { %v3059_v15 = vmax.f32 %v3057_v51, %v3058_v57  ;;  %v5782_v46 = vunpack.i.h.bf16 %v5780_v24  ;;  %2775 = vmatmul.f32.gmra.mxu2 %v2492_v39  ;;  %v4246_v40 = vsel %vm2042_vm4, %v4245_v8, %v7918_v25  ;;  %v4144_v56 = vrot.slane %v8166_v19, 6  ;;  %v8290_v51 = vpop.f32.mrf.mxu2 }
 0x221   :  { %v3626_v59 = vsel %vm3618_vm13, %v3052_v7, %v3625_v41  ;;  %v3063_v37 = vrot.slane %v3062_v33, 2  ;;  %v3070_v43 = vrot.slane %v3069_v21, 2  ;;  %v2583_v10 = vadd.f32 %v8203_v23, %v8071_v45  ;;  %4285 = vrot.lane.b32.xlu1 %v4246_v40, %s6005_s19 }
 0x222   :  { %v3075_v55 = vrot.slane %v3074_v32, 4  ;;  %v3082_v18 = vrot.slane %v3081_v54, 4  ;;  %v2292_v63 = vsel %vm2263_vm9, %v7521_v30, %v5777_v27  ;;  %v1531_v5 = vrot.slane %v7521_v30, 4 }
 0x223   :  { %v5787_v57 = vunpack.i.h.bf16 %v8247_v1  ;;  %v2720_v7 = vadd.f32 %v8080_v49, %v2583_v10  ;;  %v5776_v38 = vunpack.i.l.bf16 %v5775_v26  ;;  %v4145_v8 = vsel %vm1821_vm6, %v4144_v56, %v7912_v17 }
 0x224   :  { %v8302_v45 = vsel %vm596_vm2, %v8106_v0, %v8271_v61  ;;  %v5781_v3 = vunpack.i.l.bf16 %v5780_v24  ;;  %4184 = vrot.lane.b32.xlu0 %v4145_v8, %s6006_s20  ;;  %v2332_v11 = vsel %vm258_vm1, %v2292_v63, %v5782_v46  ;;  %v9994_v30 = vrot.slane %v7560_v48, 4 }
 0x225   :  { %10092 = vst [vmem:[#allocation18_spill] sm:$0xff] %v8302_v45  ;;  %v3627_v27 = vsel %vm3620_vm14, %v3059_v15, %v3626_v59  ;;  %v3064_v22 = vmax.f32 %v3062_v33, %v3063_v37  ;;  %v3071_v49 = vmax.f32 %v3069_v21, %v3070_v43  ;;  %v2373_v26 = vsel %vm2344_vm10, %v2332_v11, %v5787_v57  ;;  %v8332_v63 = vpop.f32.mrf.mxu1 }
 0x226   :  { %v3076_v41 = vmax.f32 %v3074_v32, %v3075_v55  ;;  %v3083_v39 = vmax.f32 %v3081_v54, %v3082_v18  ;;  %v5786_v40 = vunpack.i.l.bf16 %v8247_v1  ;;  %2641 = vmatmul.f32.gmra.mxu1 %v2373_v26  ;;  %v1533_v0 = vsel %vm1460_vm8, %v1531_v5, %v9994_v30  ;;  %v8319_v32 = vpop.permute.xlu2 %5814 }
 0x227   :  { %v2823_v24 = vmax.f32 %v2720_v7, 0.0  ;;  %v2586_v46 = vadd.f32 %v8203_v23, %v8123_v53  ;;  %v2589_v15 = vadd.f32 %v8203_v23, %v8181_v60  ;;  %v2413_v33 = vsel %vm2263_vm9, %v1533_v0, %v5776_v38 }
 0x228   :  { %v3701_v21 = vsel %vm596_vm2, 0.0, %v3627_v27  ;;  %v2453_v1 = vsel %vm258_vm1, %v2413_v33, %v5781_v3  ;;  %v1335_v54 = vrot.slane %v8269_v13, 3  ;;  %v1336_v56 = vrot.slane %v8302_v45, 3  ;;  %v8337_v38 = vpop.f32.mrf.mxu2 }
 0x229   :  { %v2723_v59 = vadd.f32 %v8128_v58, %v2586_v46  ;;  %v8326_v37 = vadd.f32 %v8186_v2, %v2589_v15  ;;  %v2493_v53 = vsel %vm2344_vm10, %v2453_v1, %v5786_v40  ;;  %v2121_v60 = vrot.slane %v8011_v6, 7 }
 0x22a   :  { %v3065_v43 = vrot.slane %v3064_v22, 1  ;;  %v3072_v10 = vrot.slane %v3071_v49, 1  ;;  %2778 = vmatmul.f32.gmra.mxu2 %v2493_v53  ;;  %v1337_v55 = vsel %vm1239_vm3, %v1335_v54, %v1336_v56  ;;  %v1114_v18 = vrot.slane %v8269_v13, 2 }
 0x22b   :  { %v3077_v5 = vrot.slane %v3076_v41, 2  ;;  %v3084_v57 = vrot.slane %v3083_v39, 2  ;;  %v2903_v7 = vrot.slane %v2823_v24, 4  ;;  %v10093_v58 = vrot.slane %v7651_v35, 7 }
 0x22c   :  { %v3088_v8 = vsel %vm2975_vm11, %v2823_v24, -inf  ;;  %v1115_v11 = vrot.slane %v8302_v45, 2  ;;  %v1900_v27 = vrot.slane %v8011_v6, 6  ;;  %v8344_v26 = vsel %vm596_vm2, %v8271_v61, 0.0 }
 0x22d   :  { %v2122_v2 = vsel %vm2042_vm4, %v10093_v58, %v2121_v60  ;;  %10094 = vst [vmem:[#allocation19_spill] sm:$0xff] %v8344_v26  ;;  %v8347_v40 = vsel %vm797_vm7, %v3701_v21, 0.0  ;;  %v2824_v0 = vmax.f32 %v2723_v59, 0.0  ;;  %v2825_v46 = vmax.f32 %v8326_v37, 0.0 }
 0x22e   :  { %v5903_v3 = vpack.i.bf16 %v2122_v2, %v1337_v55  ;;  %v3066_v15 = vmax.f32 %v3064_v22, %v3065_v43  ;;  %v1116_v24 = vsel %vm1018_vm5, %v1114_v18, %v1115_v11  ;;  %v10095_v33 = vrot.slane %v7651_v35, 6  ;;  %v8359_v43 = vpop.permute.xlu2 %5829 }
 0x22f   :  { %v893_v54 = vrot.slane %v8269_v13, 1  ;;  %v3073_v53 = vmax.f32 %v3071_v49, %v3072_v10  ;;  %v3078_v61 = vmax.f32 %v3076_v41, %v3077_v5  ;;  %v3089_v60 = vrot.slane %v3088_v8, 4 }
 0x230   :  { %5904 = vrot.lane.b32.xlu2 %v5903_v3, %s6005_s19  ;;  %v1901_v1 = vsel %vm1821_vm6, %v10095_v33, %v1900_v27  ;;  %v3085_v21 = vmax.f32 %v3083_v39, %v3084_v57  ;;  %v3095_v59 = vsel %vm2975_vm11, %v2903_v7, -inf  ;;  %v894_v37 = vrot.slane %v8302_v45, 1 }
 0x231   :  { %v5898_v55 = vpack.i.bf16 %v1901_v1, %v1116_v24  ;;  %v1679_v22 = vrot.slane %v8011_v6, 5  ;;  %v2904_v18 = vrot.slane %v2824_v0, 4  ;;  %v3102_v58 = vsel %vm2975_vm11, %v2824_v0, -inf }
 0x232   :  { %v2905_v2 = vrot.slane %v2825_v46, 4  ;;  %v1318_v49 = vrot.slane %v8011_v6, 3  ;;  %v895_v41 = vsel %vm797_vm7, %v893_v54, %v894_v37  ;;  %v10096_v39 = vrot.slane %v7651_v35, 5 }
 0x233   :  { %5899 = vrot.lane.b32.xlu1 %v5898_v55, %s6006_s20  ;;  %v1338_v5 = vrot.slane %v8344_v26, 3  ;;  %v1097_v57 = vrot.slane %v8011_v6, 2  ;;  %v3079_v7 = vrot.slane %v3078_v61, 1  ;;  %v3090_v3 = vmax.f32 %v3088_v8, %v3089_v60  ;;  %v8374_v55 = vpop.f32.mrf.mxu1  ;;  %v8382_v60 = vpop.f32.mrf.mxu2 }
 0x234   :  { %v1680_v10 = vsel %vm596_vm2, %v10096_v39, %v1679_v22  ;;  %v2592_v27 = vadd.f32 %v8203_v23, %v8240_v12  ;;  %v3096_v24 = vrot.slane %v3095_v59, 4  ;;  %v3103_v33 = vrot.slane %v3102_v58, 4 }
 0x235   :  { %v5893_v0 = vpack.i.bf16 %v1680_v10, %v895_v41  ;;  %v1339_v1 = vsel %vm1239_vm3, %v1336_v56, %v1338_v5  ;;  %v1117_v54 = vrot.slane %v8344_v26, 2  ;;  %v3086_v30 = vrot.slane %v3085_v21, 1 }
 0x236   :  { %v3109_v22 = vsel %vm2975_vm11, %v2904_v18, -inf  ;;  %v2729_v39 = vadd.f32 %v8245_v44, %v2592_v27  ;;  %v10097_v8 = vrot.slane %v7651_v35, 3  ;;  %v3123_v41 = vsel %vm2975_vm11, %v2905_v2, -inf }
 0x237   :  { %5894 = vrot.lane.b32.xlu0 %v5893_v0, %s6007_s21  ;;  %v10098_v10 = vrot.slane %v7651_v35, 2  ;;  %v1118_v20 = vsel %vm1018_vm5, %v1115_v11, %v1117_v54  ;;  %v8390_v18 = vsel %vm3616_vm12, %v3073_v53, %v3066_v15  ;;  %v3091_v44 = vrot.slane %v3090_v3, 2 }
 0x238   :  { %v1319_v12 = vsel %vm1239_vm3, %v10097_v8, %v1318_v49  ;;  %v876_v0 = vrot.slane %v8011_v6, 1  ;;  %v8393_v36 = vmax.f32 %v3078_v61, %v3079_v7  ;;  %v3097_v49 = vmax.f32 %v3095_v59, %v3096_v24 }
 0x239   :  { %v5918_v56 = vpack.i.bf16 %v1339_v1, %v1319_v12  ;;  %v1098_v5 = vsel %vm1018_vm5, %v10098_v10, %v1097_v57  ;;  %v3104_v8 = vmax.f32 %v3102_v58, %v3103_v33  ;;  %v896_v2 = vrot.slane %v8344_v26, 1  ;;  %v8397_v1 = vpop.permute.xlu2 %3859  ;;  %v8412_v33 = vpop.permute.xlu1 %5794 }
 0x23a   :  { %v5913_v27 = vpack.i.bf16 %v1118_v20, %v1098_v5  ;;  %v3110_v57 = vrot.slane %v3109_v22, 4  ;;  %v3124_v12 = vrot.slane %v3123_v41, 4  ;;  %v2826_v11 = vmax.f32 %v2729_v39, 0.0 }
 0x23b   :  { %5919 = vrot.lane.b32.xlu2 %v5918_v56, %s6005_s19  ;;  %v2595_v15 = vadd.f32 %v8203_v23, %v8283_v62  ;;  %v8402_v20 = vmax.f32 %v3085_v21, %v3086_v30  ;;  %v3116_v53 = vsel %vm2975_vm11, %v2825_v46, -inf  ;;  %v10099_v61 = vrot.slane %v7651_v35, 1  ;;  %v8415_v21 = vpop.permute.xlu0 %5789 }
 0x23c   :  { %5914 = vrot.lane.b32.xlu1 %v5913_v27, %s6006_s20  ;;  %v897_v58 = vsel %vm797_vm7, %v894_v37, %v896_v2  ;;  %v8409_v7 = vmax.f32 %v3090_v3, %v3091_v44  ;;  %v2131_v62 = vrot.slane %v8019_v34, 7  ;;  %v3098_v39 = vrot.slane %v3097_v49, 2 }
 0x23d   :  { %v877_v59 = vsel %vm797_vm7, %v10099_v61, %v876_v0  ;;  %v2732_v24 = vadd.f32 %v8290_v51, %v2595_v15  ;;  %v3105_v30 = vrot.slane %v3104_v8, 2  ;;  %v2138_v46 = vrot.slane %v8269_v13, 7  ;;  %v8427_v15 = vpop.f32.mrf.mxu1 }
 0x23e   :  { %v5908_v54 = vpack.i.bf16 %v897_v58, %v877_v59  ;;  %v2139_v56 = vrot.slane %v8302_v45, 7  ;;  %v3111_v10 = vmax.f32 %v3109_v22, %v3110_v57  ;;  %v3117_v5 = vrot.slane %v3116_v53, 4 }
 0x23f   :  { %v3125_v37 = vmax.f32 %v3123_v41, %v3124_v12  ;;  %v2906_v3 = vrot.slane %v2826_v11, 4  ;;  %v3130_v51 = vsel %vm2975_vm11, %v2826_v11, -inf  ;;  %v2598_v44 = vadd.f32 %v8203_v23, %v8332_v63  ;;  %v8431_v12 = vpop.f32.mrf.mxu2 }
 0x240   :  { %5909 = vrot.lane.b32.xlu0 %v5908_v54, %s6007_s21  ;;  %v10100_v27 = vrot.slane %v7812_v16, 7  ;;  %v2140_v2 = vsel %vm2042_vm4, %v2138_v46, %v2139_v56  ;;  %v2827_v61 = vmax.f32 %v2732_v24, 0.0  ;;  %v1910_v41 = vrot.slane %v8019_v34, 6 }
 0x241   :  { %v1917_v57 = vrot.slane %v8269_v13, 6  ;;  %v8434_v59 = vmax.f32 %v3097_v49, %v3098_v39  ;;  %v8436_v63 = vmax.f32 %v3104_v8, %v3105_v30  ;;  %v2735_v58 = vadd.f32 %v8337_v38, %v2598_v44  ;;  %v8444_v49 = vpop.permute.xlu2 %4182  ;;  %v8446_v39 = vpop.permute.xlu1 %5809 }
 0x242   :  { %v2132_v0 = vsel %vm2042_vm4, %v10100_v27, %v2131_v62  ;;  %v3112_v54 = vrot.slane %v3111_v10, 2  ;;  %v1918_v24 = vrot.slane %v8302_v45, 6  ;;  %v1689_v62 = vrot.slane %v8019_v34, 5 }
 0x243   :  { %v5933_v22 = vpack.i.bf16 %v2140_v2, %v2132_v0  ;;  %v1696_v46 = vrot.slane %v8269_v13, 5  ;;  %v3118_v27 = vmax.f32 %v3116_v53, %v3117_v5  ;;  %v3126_v0 = vrot.slane %v3125_v37, 2  ;;  %v8455_v28 = vpop.permute.xlu0 %5804 }
 0x244   :  { %v3131_v2 = vrot.slane %v3130_v51, 4  ;;  %v3137_v11 = vsel %vm2975_vm11, %v2906_v3, -inf  ;;  %v2907_v8 = vrot.slane %v2827_v61, 4  ;;  %v10101_v38 = vrot.slane %v7812_v16, 6 }
 0x245   :  { %5934 = vrot.lane.b32.xlu2 %v5933_v22, %s6005_s19  ;;  %v1919_v44 = vsel %vm1821_vm6, %v1917_v57, %v1918_v24  ;;  %v1697_v22 = vrot.slane %v8302_v45, 5  ;;  %v3100_v14 = vrot.slane %v8434_v59, 1  ;;  %v3107_v53 = vrot.slane %v8436_v63, 1 }
 0x246   :  { %v1911_v30 = vsel %vm1821_vm6, %v10101_v38, %v1910_v41  ;;  %v2828_v5 = vmax.f32 %v2735_v58, 0.0  ;;  %v8457_v52 = vmax.f32 %v3111_v10, %v3112_v54  ;;  %v10102_v13 = vrot.slane %v7812_v16, 5 }
 0x247   :  { %v5928_v3 = vpack.i.bf16 %v1919_v44, %v1911_v30  ;;  %v1698_v41 = vsel %vm596_vm2, %v1696_v46, %v1697_v22  ;;  %v1328_v57 = vrot.slane %v8019_v34, 3  ;;  %v3119_v38 = vrot.slane %v3118_v27, 2 }
 0x248   :  { %v1690_v6 = vsel %vm596_vm2, %v10102_v13, %v1689_v62  ;;  %v3132_v45 = vmax.f32 %v3130_v51, %v3131_v2  ;;  %v3138_v19 = vrot.slane %v3137_v11, 4  ;;  %v8465_v58 = vmax.f32 %v3125_v37, %v3126_v0  ;;  %v8475_v2 = vpop.f32.mrf.mxu1 }
 0x249   :  { %5929 = vrot.lane.b32.xlu1 %v5928_v3, %s6006_s20  ;;  %v5923_v35 = vpack.i.bf16 %v1698_v41, %v1690_v6  ;;  %v3151_v30 = vsel %vm2975_vm11, %v2907_v8, -inf  ;;  %v2601_v10 = vadd.f32 %v8203_v23, %v8374_v55  ;;  %v2141_v54 = vrot.slane %v8344_v26, 7  ;;  %v8485_v8 = vpop.f32.mrf.mxu2 }
 0x24a   :  { %v3144_v13 = vsel %vm2975_vm11, %v2827_v61, -inf  ;;  %v2908_v62 = vrot.slane %v2828_v5, 4  ;;  %v3158_v46 = vsel %vm2975_vm11, %v2828_v5, -inf  ;;  %v1107_v51 = vrot.slane %v8019_v34, 2 }
 0x24b   :  { %5924 = vrot.lane.b32.xlu0 %v5923_v35, %s6007_s21  ;;  %v8478_v6 = vadd.f32 %v8382_v60, %v2601_v10  ;;  %v10103_v37 = vrot.slane %v7812_v16, 3  ;;  %v2142_v0 = vsel %vm2042_vm4, %v2139_v56, %v2141_v54  ;;  %v1920_v61 = vrot.slane %v8344_v26, 6 }
 0x24c   :  { %v3133_v44 = vrot.slane %v3132_v45, 2  ;;  %v3139_v5 = vmax.f32 %v3137_v11, %v3138_v19  ;;  %v3152_v35 = vrot.slane %v3151_v30, 4  ;;  %v10104_v41 = vrot.slane %v7812_v16, 2  ;;  %v8497_v11 = vpop.permute.xlu0 %5819 }
 0x24d   :  { %v1329_v55 = vsel %vm1239_vm3, %v10103_v37, %v1328_v57  ;;  %v1921_v60 = vsel %vm1821_vm6, %v1918_v24, %v1920_v61  ;;  %v886_v10 = vrot.slane %v8019_v34, 1  ;;  %v1699_v57 = vrot.slane %v8344_v26, 5  ;;  %v8493_v37 = vpop.permute.xlu1 %5824 }
 0x24e   :  { %v5948_v3 = vpack.i.bf16 %v2142_v0, %v1329_v55  ;;  %v1108_v31 = vsel %vm1018_vm5, %v10104_v41, %v1107_v51  ;;  %v3145_v56 = vrot.slane %v3144_v13, 4  ;;  %v3159_v54 = vrot.slane %v3158_v46, 4  ;;  %v8499_v55 = vpop.permute.xlu2 %5844 }
 0x24f   :  { %v3165_v29 = vsel %vm2975_vm11, %v2908_v62, -inf  ;;  %v5943_v19 = vpack.i.bf16 %v1921_v60, %v1108_v31  ;;  %v2829_v51 = vmax.f32 %v8478_v6, 0.0  ;;  %v2604_v24 = vadd.f32 %v8203_v23, %v8427_v15 }
 0x250   :  { %5949 = vrot.lane.b32.xlu2 %v5948_v3, %s6005_s19  ;;  %v10105_v0 = vrot.slane %v7812_v16, 1  ;;  %v1700_v41 = vsel %vm596_vm2, %v1697_v22, %v1699_v57  ;;  %v3120_v26 = vmax.f32 %v3118_v27, %v3119_v38  ;;  %v3134_v62 = vmax.f32 %v3132_v45, %v3133_v44 }
 0x251   :  { %v3140_v34 = vrot.slane %v3139_v5, 2  ;;  %5944 = vrot.lane.b32.xlu1 %v5943_v19, %s6006_s20  ;;  %v3629_v3 = vsel %vm3618_vm13, %v8393_v36, %v8390_v18  ;;  %v10106_v6 = vrot.slane %v8409_v7, 1  ;;  %v3153_v60 = vmax.f32 %v3151_v30, %v3152_v35  ;;  %v8527_v35 = vpop.f32.mrf.mxu2 }
 0x252   :  { %v887_v61 = vsel %vm797_vm7, %v10105_v0, %v886_v10  ;;  %v2741_v16 = vadd.f32 %v8431_v12, %v2604_v24  ;;  %v3101_v10 = vmax.f32 %v8434_v59, %v3100_v14  ;;  %v3108_v27 = vmax.f32 %v8436_v63, %v3107_v53  ;;  %v8522_v12 = vpop.f32.mrf.mxu1 }
 0x253   :  { %v5938_v31 = vpack.i.bf16 %v1700_v41, %v887_v61  ;;  %v3094_v15 = vmax.f32 %v8409_v7, %v10106_v6  ;;  %v3114_v45 = vrot.slane %v8457_v52, 1  ;;  %v3166_v22 = vrot.slane %v3165_v29, 4 }
 0x254   :  { %v3128_v38 = vrot.slane %v8465_v58, 1  ;;  %v3146_v44 = vmax.f32 %v3144_v13, %v3145_v56  ;;  %v3160_v36 = vmax.f32 %v3158_v46, %v3159_v54  ;;  %v2909_v18 = vrot.slane %v2829_v51, 4  ;;  %v8535_v54 = vpop.permute.xlu0 %4081 }
 0x255   :  { %5939 = vrot.lane.b32.xlu0 %v5938_v31, %s6007_s21  ;;  %v3121_v57 = vrot.slane %v3120_v26, 1  ;;  %v3135_v19 = vrot.slane %v3134_v62, 1  ;;  %v3141_v7 = vmax.f32 %v3139_v5, %v3140_v34  ;;  %v3841_v30 = vrot.slane %v8347_v40, 2  ;;  %v8533_v5 = vpop.permute.xlu1 %3779 }
 0x256   :  { %v3630_v14 = vsel %vm3620_vm14, %v8402_v20, %v3629_v3  ;;  %v3154_v59 = vrot.slane %v3153_v60, 2  ;;  %v2830_v63 = vmax.f32 %v2741_v16, 0.0  ;;  %v4045_v53 = vrot.slane %v8347_v40, 5 }
 0x257   :  { %v3631_v13 = vsel %vm3616_vm12, %v3101_v10, %v3094_v15  ;;  %v3115_v46 = vmax.f32 %v8457_v52, %v3114_v45  ;;  %v3167_v56 = vmax.f32 %v3165_v29, %v3166_v22  ;;  %v3761_v34 = vrot.slane %v8347_v40, 1  ;;  %v8541_v29 = vpop.permute.xlu2 %5859 }
 0x258   :  { %3863 = vrot.lane.b32.xlu2 %v3841_v30, %s6006_s20  ;;  %v3129_v20 = vmax.f32 %v8465_v58, %v3128_v38  ;;  %v3147_v16 = vrot.slane %v3146_v44, 2  ;;  %v3161_v24 = vrot.slane %v3160_v36, 2  ;;  %v3179_v0 = vsel %vm2975_vm11, %v2909_v18, -inf }
 0x259   :  { %v3632_v61 = vsel %vm3618_vm13, %v3108_v27, %v3631_v13  ;;  %v3122_v41 = vmax.f32 %v3120_v26, %v3121_v57  ;;  %v3136_v31 = vmax.f32 %v3134_v62, %v3135_v19  ;;  %v3142_v52 = vrot.slane %v3141_v7, 1  ;;  %3783 = vrot.lane.b32.xlu1 %v3761_v34, %s6007_s21 }
 0x25a   :  { %v3155_v3 = vmax.f32 %v3153_v60, %v3154_v59  ;;  %v2910_v6 = vrot.slane %v2830_v63, 4  ;;  %v4046_v15 = vsel %vm596_vm2, %v4045_v53, %v7884_v50  ;;  %v4146_v58 = vrot.slane %v8347_v40, 6 }
 0x25b   :  { %v3702_v10 = vsel %vm596_vm2, 0.0, %v3630_v14  ;;  %v3168_v45 = vrot.slane %v3167_v56, 2  ;;  %v3180_v22 = vrot.slane %v3179_v0, 4  ;;  %v3634_v26 = vsel %vm3616_vm12, %v3129_v20, %v3122_v41  ;;  %v8561_v20 = vpop.f32.mrf.mxu2 }
 0x25c   :  { %v3148_v62 = vmax.f32 %v3146_v44, %v3147_v16  ;;  %v3162_v27 = vmax.f32 %v3160_v36, %v3161_v24  ;;  %v3172_v38 = vsel %vm2975_vm11, %v2829_v51, -inf  ;;  %v3633_v60 = vsel %vm3620_vm14, %v3115_v46, %v3632_v61  ;;  %v4284_v41 = vpop.permute.xlu0 %4283 }
 0x25d   :  { %4085 = vrot.lane.b32.xlu0 %v4046_v15, %s6007_s21  ;;  %v3143_v18 = vmax.f32 %v3141_v7, %v3142_v52  ;;  %v3635_v57 = vsel %vm3618_vm13, %v3136_v31, %v3634_v26  ;;  %v3186_v19 = vsel %vm2975_vm11, %v2830_v63, -inf  ;;  %v3156_v30 = vrot.slane %v3155_v3, 1  ;;  %v8559_v7 = vpop.f32.mrf.mxu1 }
 0x25e   :  { %v3193_v14 = vsel %vm2975_vm11, %v2910_v6, -inf  ;;  %v4147_v59 = vsel %vm1821_vm6, %v4146_v58, %v7912_v17  ;;  %v4247_v53 = vrot.slane %v8347_v40, 7  ;;  %v3169_v13 = vmax.f32 %v3167_v56, %v3168_v45 }
 0x25f   :  { %v3173_v44 = vrot.slane %v3172_v38, 4  ;;  %v3181_v36 = vmax.f32 %v3179_v0, %v3180_v22  ;;  %v3921_v51 = vrot.slane %v8347_v40, 3  ;;  %v3149_v46 = vrot.slane %v3148_v62, 1  ;;  %v8569_v0 = vpop.permute.xlu1 %3939  ;;  %v8578_v26 = vpop.permute.xlu2 %5874 }
 0x260   :  { %4186 = vrot.lane.b32.xlu2 %v4147_v59, %s6006_s20  ;;  %v3163_v34 = vrot.slane %v3162_v27, 1  ;;  %v3187_v63 = vrot.slane %v3186_v19, 4  ;;  %v8564_v16 = vsel %vm797_vm7, %v3702_v10, 0.0  ;;  %v5801_v56 = vunpack.i.l.bf16 %v8279_v47 }
 0x261   :  { %v3194_v61 = vrot.slane %v3193_v14, 4  ;;  %3943 = vrot.lane.b32.xlu1 %v3921_v51, %s6005_s19  ;;  %v3703_v31 = vsel %vm596_vm2, 0.0, %v3633_v60  ;;  %v3636_v52 = vsel %vm3620_vm14, %v3143_v18, %v3635_v57  ;;  %v3157_v6 = vmax.f32 %v3155_v3, %v3156_v30 }
 0x262   :  { %v4248_v15 = vsel %vm2042_vm4, %v4247_v53, %v7918_v25  ;;  %v3170_v58 = vrot.slane %v3169_v13, 1  ;;  %v3174_v10 = vmax.f32 %v3172_v38, %v3173_v44  ;;  %v3182_v45 = vrot.slane %v3181_v36, 2 }
 0x263   :  { %v2607_v22 = vadd.f32 %v8203_v23, %v8475_v2  ;;  %v3150_v59 = vmax.f32 %v3148_v62, %v3149_v46  ;;  %v3164_v51 = vmax.f32 %v3162_v27, %v3163_v34  ;;  %v3188_v24 = vmax.f32 %v3186_v19, %v3187_v63 }
 0x264   :  { %v4047_v60 = vrot.slane %v8564_v16, 5  ;;  %v8582_v3 = vsel %vm797_vm7, %v3703_v31, 0.0  ;;  %v3195_v18 = vmax.f32 %v3193_v14, %v3194_v61  ;;  %v3762_v38 = vrot.slane %v8564_v16, 1 }
 0x265   :  { %4287 = vrot.lane.b32.xlu0 %v4248_v15, %s6005_s19  ;;  %10107 = vst [vmem:[#allocation20_spill] sm:$0xff] %v8582_v3  ;;  %v2744_v57 = vadd.f32 %v8485_v8, %v2607_v22  ;;  %v3704_v30 = vsel %vm596_vm2, 0.0, %v3636_v52  ;;  %v3637_v62 = vsel %vm3616_vm12, %v3157_v6, %v3150_v59  ;;  %v3171_v27 = vmax.f32 %v3169_v13, %v3170_v58  ;;  %v8597_v52 = vpop.f32.mrf.mxu1  ;;  %v8608_v22 = vpop.f32.mrf.mxu2 }
 0x266   :  { %v3175_v19 = vrot.slane %v3174_v10, 2  ;;  %v3183_v44 = vmax.f32 %v3181_v36, %v3182_v45  ;;  %v3999_v46 = vrot.slane %v7876_v9, 4  ;;  %v5792_v14 = vunpack.i.h.bf16 %v8415_v21 }
 0x267   :  { %v3638_v8 = vsel %vm3618_vm13, %v3164_v51, %v3637_v62  ;;  %v3189_v34 = vrot.slane %v3188_v24, 2  ;;  %v4048_v63 = vsel %vm596_vm2, %v4047_v60, %v7884_v50  ;;  %v3196_v61 = vrot.slane %v3195_v18, 2 }
 0x268   :  { %3785 = vrot.lane.b32.xlu2 %v3762_v38, %s6007_s21  ;;  %v2831_v31 = vmax.f32 %v2744_v57, 0.0  ;;  %v3842_v13 = vrot.slane %v8564_v16, 2  ;;  %v4403_v36 = vsel %vm2263_vm9, %v3999_v46, %v8535_v54  ;;  %v8603_v6 = vsel %vm797_vm7, %v3704_v30, 0.0  ;;  %v8615_v57 = vpop.permute.xlu1 %5839  ;;  %v8617_v38 = vpop.permute.xlu0 %5834 }
 0x269   :  { %4087 = vrot.lane.b32.xlu1 %v4048_v63, %s6007_s21  ;;  %10108 = vst [vmem:[#allocation21_spill] sm:$0xff] %v8603_v6  ;;  %v5791_v15 = vunpack.i.l.bf16 %v8415_v21  ;;  %v5797_v58 = vunpack.i.h.bf16 %v8412_v33  ;;  %v5796_v45 = vunpack.i.l.bf16 %v8412_v33  ;;  %v3639_v59 = vsel %vm3620_vm14, %v3171_v27, %v3638_v8 }
 0x26a   :  { %v3176_v51 = vmax.f32 %v3174_v10, %v3175_v19  ;;  %v3184_v60 = vrot.slane %v3183_v44, 1  ;;  %v4343_v54 = vsel %vm2263_vm9, %v7876_v9, %v8533_v5  ;;  %v3190_v30 = vmax.f32 %v3188_v24, %v3189_v34  ;;  %v8626_v9 = vpop.permute.xlu2 %5889 }
 0x26b   :  { %v2610_v62 = vadd.f32 %v8203_v23, %v8522_v12  ;;  %v4249_v46 = vrot.slane %v8564_v16, 7  ;;  %v4423_v10 = vsel %vm258_vm1, %v4403_v36, %v8444_v49  ;;  %v3197_v27 = vmax.f32 %v3195_v18, %v3196_v61 }
 0x26c   :  { %v2911_v19 = vrot.slane %v2831_v31, 4  ;;  %v3922_v8 = vrot.slane %v8564_v16, 3  ;;  %v4443_v63 = vsel %vm2344_vm10, %v4423_v10, %v4284_v41  ;;  %v4148_v24 = vrot.slane %v8564_v16, 6 }
 0x26d   :  { %3865 = vrot.lane.b32.xlu0 %v3842_v13, %s6006_s20  ;;  %v2747_v5 = vadd.f32 %v8527_v35, %v2610_v62  ;;  %v4363_v12 = vsel %vm258_vm1, %v4343_v54, %v8397_v1  ;;  %v4503_v34 = vrot.slane %v4443_v63, 4  ;;  %v3177_v2 = vrot.slane %v3176_v51, 1 }
 0x26e   :  { %v3200_v49 = vsel %vm2975_vm11, %v2831_v31, -inf  ;;  %v4383_v41 = vsel %vm2344_vm10, %v4363_v12, %v8569_v0  ;;  %v3191_v61 = vrot.slane %v3190_v30, 1  ;;  %v4250_v35 = vsel %vm2042_vm4, %v4249_v46, %v7918_v25 }
 0x26f   :  { %v4523_v36 = vsel %vm1460_vm8, %v4383_v41, %v4503_v34  ;;  %v3705_v1 = vsel %vm596_vm2, 0.0, %v3639_v59  ;;  %v3185_v62 = vmax.f32 %v3183_v44, %v3184_v60  ;;  %v3207_v31 = vsel %vm2975_vm11, %v2911_v19, -inf  ;;  %v2618_v41 = vpop.f32.mrf.mxu1 }
 0x270   :  { %3945 = vrot.lane.b32.xlu2 %v3922_v8, %s6005_s19  ;;  %4579 = vst [vmem:[#allocation1] ss:$2 sm:$0xff] %v4523_v36  ;;  %v3198_v10 = vrot.slane %v3197_v27, 1  ;;  %v3201_v0 = vrot.slane %v3200_v49, 4  ;;  %v2832_v8 = vmax.f32 %v2747_v5, 0.0  ;;  %v4149_v63 = vsel %vm1821_vm6, %v4148_v24, %v7912_v17  ;;  %v8660_v13 = vpop.permute.xlu1 %5854 }
 0x271   :  { %4289 = vrot.lane.b32.xlu1 %v4250_v35, %s6005_s19  ;;  %v3178_v12 = vmax.f32 %v3176_v51, %v3177_v2  ;;  %v8652_v44 = vsel %vm797_vm7, %v3705_v1, 0.0  ;;  %v3192_v60 = vmax.f32 %v3190_v30, %v3191_v61  ;;  %v3208_v19 = vrot.slane %v3207_v31, 4  ;;  %v2755_v35 = vpop.f32.mrf.mxu2 }
 0x272   :  { %v5836_v5 = vunpack.i.l.bf16 %v8617_v38  ;;  %v2613_v2 = vadd.f32 %v8203_v23, %v8559_v7  ;;  %v3843_v51 = vrot.slane %v8582_v3, 2  ;;  %v8664_v1 = vmax.f32 %v3197_v27, %v3198_v10  ;;  %v8676_v34 = vpop.permute.xlu2 %3781 }
 0x273   :  { %v3640_v24 = vsel %vm3616_vm12, %v3185_v62, %v3178_v12  ;;  %v8666_v30 = vmax.f32 %v3200_v49, %v3201_v0  ;;  %v3214_v61 = vsel %vm2975_vm11, %v2832_v8, -inf  ;;  %v4049_v18 = vrot.slane %v8582_v3, 5 }
 0x274   :  { %v2750_v62 = vadd.f32 %v8561_v20, %v2613_v2  ;;  %v3763_v7 = vrot.slane %v8582_v3, 1  ;;  %v5841_v12 = vunpack.i.l.bf16 %v8615_v57  ;;  %v2300_v36 = vsel %vm2263_vm9, %v7938_v42, %v5836_v5 }
 0x275   :  { %4188 = vrot.lane.b32.xlu0 %v4149_v63, %s6006_s20  ;;  %v8662_v63 = vpop.permute.xlu0 %5849  ;;  %v8679_v27 = vsel %vm3618_vm13, %v3192_v60, %v3640_v24  ;;  %v8681_v49 = vmax.f32 %v3207_v31, %v3208_v19  ;;  %v2912_v10 = vrot.slane %v2832_v8, 4  ;;  %v5846_v0 = vunpack.i.l.bf16 %v8499_v55 }
 0x276   :  { %v3215_v20 = vrot.slane %v3214_v61, 4  ;;  %v2616_v2 = vadd.f32 %v8203_v23, %v8597_v52  ;;  %v2340_v5 = vsel %vm258_vm1, %v2300_v36, %v5841_v12  ;;  %v4050_v53 = vsel %vm596_vm2, %v4049_v18, %v7884_v50 }
 0x277   :  { %v5837_v60 = vunpack.i.h.bf16 %v8617_v38  ;;  %v4150_v31 = vrot.slane %v8582_v3, 6  ;;  %v2381_v8 = vsel %vm2344_vm10, %v2340_v5, %v5846_v0  ;;  %v3203_v19 = vrot.slane %v8666_v30, 2  ;;  %v2621_v12 = vpop.f32.mrf.mxu1 }
 0x278   :  { %3867 = vrot.lane.b32.xlu2 %v3843_v51, %s6006_s20  ;;  %v2619_v51 = vadd.f32 %v8203_v23, %v2618_v41  ;;  %v5847_v24 = vunpack.i.h.bf16 %v8499_v55  ;;  %v2833_v52 = vmax.f32 %v2750_v62, 0.0  ;;  %2665 = vmatmul.f32.vlgmr.msra.gmra.mxu3 %v2381_v8  ;;  %v1534_v23 = vrot.slane %v7950_v4, 4 }
 0x279   :  { %3787 = vrot.lane.b32.xlu1 %v3763_v7, %s6007_s21  ;;  %v3210_v41 = vrot.slane %v8681_v49, 2  ;;  %v3221_v18 = vsel %vm2975_vm11, %v2912_v10, -inf  ;;  %v2753_v38 = vadd.f32 %v8608_v22, %v2616_v2  ;;  %v8703_v7 = vmax.f32 %v3214_v61, %v3215_v20  ;;  %v2758_v4 = vpop.f32.mrf.mxu2 }
 0x27a   :  { %v8701_v36 = vadd.f32 %v2755_v35, %v2619_v51  ;;  %v5842_v0 = vunpack.i.h.bf16 %v8615_v57  ;;  %v4251_v55 = vrot.slane %v8582_v3, 7  ;;  %v4151_v5 = vsel %vm1821_vm6, %v4150_v31, %v7912_v17  ;;  %v8718_v51 = vpop.permute.xlu1 %5869 }
 0x27b   :  { %v5852_v22 = vunpack.i.h.bf16 %v8662_v63  ;;  %v5851_v35 = vunpack.i.l.bf16 %v8662_v63  ;;  %v3222_v61 = vrot.slane %v3221_v18, 4  ;;  %v2913_v20 = vrot.slane %v2833_v52, 4 }
 0x27c   :  { %v3923_v57 = vrot.slane %v8582_v3, 3  ;;  %v2835_v31 = vmax.f32 %v8701_v36, 0.0  ;;  %v4252_v54 = vsel %vm2042_vm4, %v4251_v55, %v7918_v25  ;;  %v4152_v21 = vrot.slane %v8603_v6, 6 }
 0x27d   :  { %4089 = vrot.lane.b32.xlu0 %v4050_v53, %s6007_s21  ;;  %v10109_v53 = vrot.slane %v7560_v48, 4  ;;  %v8720_v8 = vpop.permute.xlu0 %5864  ;;  %v10113_v36 = vunpack.i.h.bf16 %v8279_v47  ;;  %vm5021_vm3 = vcmask 818176  }
 0x27e   :  { %v2915_v55 = vrot.slane %v2835_v31, 4 }
 0x27f   :  { %v1535_v62 = vsel %vm1460_vm8, %v10109_v53, %v1534_v23  ;;  %v2834_v23 = vmax.f32 %v2753_v38, 0.0  ;;  %v5857_v38 = vunpack.i.h.bf16 %v8660_v13 }
 0x280   :  { %v2414_v10 = vsel %vm2263_vm9, %v1535_v62, %v5837_v60  ;;  %4190 = vrot.lane.b32.xlu2 %v4151_v5, %s6006_s20  ;;  %v8726_v60 = vld [vmem:[%s9953_s4] ss:$0 sm:$0xff]  ;;  %v3228_v62 = vsel %vm2975_vm11, %v2833_v52, -inf  ;;  %v5856_v5 = vunpack.i.l.bf16 %v8660_v13 }
 0x281   :  { %v2454_v2 = vsel %vm258_vm1, %v2414_v10, %v5842_v0  ;;  %v2622_v63 = vadd.f32 %v8726_v60, %v2621_v12  ;;  %v5861_v0 = vunpack.i.l.bf16 %v8541_v29  ;;  %3947 = vrot.lane.b32.xlu1 %v3923_v57, %s6005_s19  ;;  %v8735_v10 = vpop.permute.xlu2 %3941  ;;  %v10110_v12 = vld [vmem:[#allocation15_spill] sm:$0xff]  ;;  %v5862_v57 = vunpack.i.h.bf16 %v8541_v29  ;;  %v10111_v29 = vld [vmem:[#allocation5_spill] sm:$0xff] }
 0x282   :  { %v2494_v53 = vsel %vm2344_vm10, %v2454_v2, %v5847_v24  ;;  %v2293_v24 = vsel %vm2263_vm9, %v7560_v48, %v5851_v35  ;;  %v2301_v52 = vsel %vm2263_vm9, %v10110_v12, %v5852_v22  ;;  %v3235_v2 = vsel %vm2975_vm11, %v2913_v20, -inf }
 0x283   :  { %2781 = vmatmul.f32.gmra.mxu2 %v2494_v53  ;;  %v2759_v59 = vadd.f32 %v2758_v4, %v2622_v63  ;;  %v2333_v13 = vsel %vm258_vm1, %v2293_v24, %v5856_v5  ;;  %v2341_v53 = vsel %vm258_vm1, %v2301_v52, %v5857_v38  ;;  %v2914_v4 = vrot.slane %v2834_v23, 4 }
 0x284   :  { %v4051_v63 = vrot.slane %v8603_v6, 5  ;;  %v2374_v48 = vsel %vm2344_vm10, %v2333_v13, %v5861_v0  ;;  %v3764_v22 = vrot.slane %v8603_v6, 1  ;;  %v2382_v35 = vsel %vm2344_vm10, %v2341_v53, %v5862_v57 }
 0x285   :  { %4291 = vrot.lane.b32.xlu0 %v4252_v54, %s6005_s19  ;;  %2644 = vmatmul.f32.gmra.mxu1 %v2374_v48  ;;  %v1536_v20 = vrot.slane %v10111_v29, 4  ;;  %v10112_v54 = vld [vmem:[#allocation12_spill] sm:$0xff]  ;;  %v3642_v38 = vsel %vm3620_vm14, %v8664_v1, %v8679_v27  ;;  %v8760_v5 = vmax.f32 %v8666_v30, %v3203_v19  ;;  %v3236_v24 = vrot.slane %v3235_v2, 4 }
 0x286   :  { %v10019_v46 = vrot.slane %v10112_v54, 4  ;;  %v2836_v52 = vmax.f32 %v2759_v59, 0.0  ;;  %2668 = vmatmul.f32.gmra.mxu3 %v2382_v35  ;;  %v3217_v0 = vrot.slane %v8703_v7, 2  ;;  %v3223_v13 = vmax.f32 %v3221_v18, %v3222_v61 }
 0x287   :  { %v3229_v48 = vrot.slane %v3228_v62, 4  ;;  %v3242_v53 = vsel %vm2975_vm11, %v2834_v23, -inf  ;;  %v3249_v1 = vsel %vm2975_vm11, %v2914_v4, -inf  ;;  %v4052_v30 = vsel %vm596_vm2, %v4051_v63, %v7884_v50  ;;  %v8783_v23 = vpop.permute.xlu1 %5884  ;;  %v8785_v4 = vpop.permute.xlu0 %5879 }
 0x288   :  { %3789 = vrot.lane.b32.xlu2 %v3764_v22, %s6007_s21  ;;  %v1538_v57 = vsel %vm1460_vm8, %v1536_v20, %v10019_v46  ;;  %v3211_v27 = vmax.f32 %v8681_v49, %v3210_v41  ;;  %v3263_v19 = vsel %vm2975_vm11, %v2915_v55, -inf  ;;  %v3844_v18 = vrot.slane %v8603_v6, 2 }
 0x289   :  { %v2415_v59 = vsel %vm2263_vm9, %v1538_v57, %v5791_v15  ;;  %4091 = vrot.lane.b32.xlu1 %v4052_v30, %s6007_s21  ;;  %v3237_v63 = vmax.f32 %v3235_v2, %v3236_v24  ;;  %v2916_v15 = vrot.slane %v2836_v52, 4  ;;  %v3270_v22 = vsel %vm2975_vm11, %v2836_v52, -inf }
 0x28a   :  { %v2455_v61 = vsel %vm258_vm1, %v2415_v59, %v5796_v45  ;;  %v3218_v41 = vmax.f32 %v8703_v7, %v3217_v0  ;;  %v3224_v55 = vrot.slane %v3223_v13, 2  ;;  %v3243_v35 = vrot.slane %v3242_v53, 4  ;;  %v8793_v45 = vpop.permute.xlu2 %5904 }
 0x28b   :  { %v2495_v49 = vsel %vm2344_vm10, %v2455_v61, %v5801_v56  ;;  %v3250_v20 = vrot.slane %v3249_v1, 4  ;;  %v3230_v57 = vmax.f32 %v3228_v62, %v3229_v48  ;;  %v3264_v30 = vrot.slane %v3263_v19, 4 }
 0x28c   :  { %2784 = vmatmul.f32.gmra.mxu2 %v2495_v49  ;;  %v4253_v2 = vrot.slane %v8603_v6, 7  ;;  %v2294_v24 = vsel %vm2263_vm9, %v10111_v29, %v5792_v14  ;;  %v3256_v56 = vsel %vm2975_vm11, %v2835_v31, -inf  ;;  %v3271_v7 = vrot.slane %v3270_v22, 4 }
 0x28d   :  { %3869 = vrot.lane.b32.xlu0 %v3844_v18, %s6006_s20  ;;  %v3924_v52 = vrot.slane %v8603_v6, 3  ;;  %v2334_v0 = vsel %vm258_vm1, %v2294_v24, %v5797_v58  ;;  %v3212_v62 = vrot.slane %v3211_v27, 1  ;;  %v3238_v48 = vrot.slane %v3237_v63, 2  ;;  %v2624_v18 = vpop.f32.mrf.mxu1  ;;  %v2761_v58 = vpop.f32.mrf.mxu2 }
 0x28e   :  { %v3277_v59 = vsel %vm2975_vm11, %v2916_v15, -inf  ;;  %v3219_v61 = vrot.slane %v3218_v41, 1  ;;  %v3244_v14 = vmax.f32 %v3242_v53, %v3243_v35  ;;  %v3251_v29 = vmax.f32 %v3249_v1, %v3250_v20 }
 0x28f   :  { %v2375_v31 = vsel %vm2344_vm10, %v2334_v0, %v10113_v36  ;;  %v3225_v49 = vmax.f32 %v3223_v13, %v3224_v55  ;;  %v3257_v33 = vrot.slane %v3256_v56, 4  ;;  %v3265_v46 = vmax.f32 %v3263_v19, %v3264_v30  ;;  %v3862_v1 = vpop.permute.xlu0 %3861 }
 0x290   :  { %3949 = vrot.lane.b32.xlu2 %v3924_v52, %s6005_s19  ;;  %v4254_v24 = vsel %vm2042_vm4, %v4253_v2, %v7918_v25  ;;  %2647 = vmatmul.f32.gmra.mxu1 %v2375_v31  ;;  %v3231_v15 = vrot.slane %v3230_v57, 2  ;;  %v3272_v3 = vmax.f32 %v3270_v22, %v3271_v7  ;;  %v3278_v6 = vrot.slane %v3277_v59, 4  ;;  %v4084_v22 = vpop.permute.xlu1 %4083 }
 0x291   :  { %v2625_v53 = vadd.f32 %v8726_v60, %v2624_v18  ;;  %4293 = vrot.lane.b32.xlu1 %v4254_v24, %s6005_s19  ;;  %v3706_v47 = vsel %vm596_vm2, 0.0, %v3642_v38  ;;  %v3205_v35 = vrot.slane %v8760_v5, 1  ;;  %v3239_v13 = vmax.f32 %v3237_v63, %v3238_v48 }
 0x292   :  { %v4153_v19 = vsel %vm1821_vm6, %v4152_v21, %v7912_v17  ;;  %v3213_v55 = vmax.f32 %v3211_v27, %v3212_v62  ;;  %v3245_v20 = vrot.slane %v3244_v14, 2  ;;  %v3252_v30 = vrot.slane %v3251_v29, 2 }
 0x293   :  { %v2762_v2 = vadd.f32 %v2761_v58, %v2625_v53  ;;  %v3220_v7 = vmax.f32 %v3218_v41, %v3219_v61  ;;  %v3226_v52 = vrot.slane %v3225_v49, 1  ;;  %v3258_v0 = vmax.f32 %v3256_v56, %v3257_v33 }
 0x294   :  { %v3266_v18 = vrot.slane %v3265_v46, 2  ;;  %v3232_v36 = vmax.f32 %v3230_v57, %v3231_v15  ;;  %v3273_v31 = vrot.slane %v3272_v3, 2  ;;  %v3279_v38 = vmax.f32 %v3277_v59, %v3278_v6 }
 0x295   :  { %4192 = vrot.lane.b32.xlu0 %v4153_v19, %s6006_s20  ;;  %v3845_v24 = vrot.slane %v8652_v44, 2  ;;  %v8823_v63 = vpop.permute.xlu2 %5919  ;;  %v8826_v48 = vsel %vm797_vm7, %v3706_v47, 0.0  ;;  %v3206_v27 = vmax.f32 %v8760_v5, %v3205_v35  ;;  %v3240_v62 = vrot.slane %v3239_v13, 1  ;;  %v10114_v19 = vld [vmem:[#allocation16_spill] sm:$0xff] }
 0x296   :  { %v4053_v21 = vrot.slane %v8652_v44, 5  ;;  %v3246_v58 = vmax.f32 %v3244_v14, %v3245_v20  ;;  %v3253_v41 = vmax.f32 %v3251_v29, %v3252_v30  ;;  %v2837_v61 = vmax.f32 %v2762_v2, 0.0  ;;  %v2627_v14 = vpop.f32.mrf.mxu1 }
 0x297   :  { %v3765_v57 = vrot.slane %v8652_v44, 1  ;;  %v3643_v6 = vsel %vm3616_vm12, %v3213_v55, %v3206_v27  ;;  %v3227_v56 = vmax.f32 %v3225_v49, %v3226_v52  ;;  %v3259_v59 = vrot.slane %v3258_v0, 2  ;;  %v4185_v55 = vpop.permute.xlu0 %4184 }
 0x298   :  { %3871 = vrot.lane.b32.xlu2 %v3845_v24, %s6006_s20  ;;  %v3267_v33 = vmax.f32 %v3265_v46, %v3266_v18  ;;  %v3644_v15 = vsel %vm3618_vm13, %v3220_v7, %v3643_v6  ;;  %v3233_v53 = vrot.slane %v3232_v36, 1  ;;  %v3274_v47 = vmax.f32 %v3272_v3, %v3273_v31  ;;  %v2764_v18 = vpop.f32.mrf.mxu2 }
 0x299   :  { %v3280_v5 = vrot.slane %v3279_v38, 2  ;;  %3791 = vrot.lane.b32.xlu1 %v3765_v57, %s6007_s21  ;;  %v3241_v35 = vmax.f32 %v3239_v13, %v3240_v62  ;;  %v4054_v29 = vsel %vm596_vm2, %v4053_v21, %v7884_v50  ;;  %v4000_v20 = vrot.slane %v10114_v19, 4  ;;  %v4286_v21 = vpop.permute.xlu1 %4285 }
 0x29a   :  { %v4154_v30 = vrot.slane %v8652_v44, 6  ;;  %v3247_v49 = vrot.slane %v3246_v58, 1  ;;  %v3254_v2 = vrot.slane %v3253_v41, 1  ;;  %v2917_v46 = vrot.slane %v2837_v61, 4 }
 0x29b   :  { %v3284_v7 = vsel %vm2975_vm11, %v2837_v61, -inf  ;;  %v3260_v3 = vmax.f32 %v3258_v0, %v3259_v59  ;;  %v3268_v52 = vrot.slane %v3267_v33, 1  ;;  %v4344_v13 = vsel %vm2263_vm9, %v10114_v19, %v8676_v34 }
 0x29c   :  { %v4404_v31 = vsel %vm2263_vm9, %v4000_v20, %v4084_v22  ;;  %v3275_v24 = vrot.slane %v3274_v47, 1  ;;  %v3281_v27 = vmax.f32 %v3279_v38, %v3280_v5  ;;  %v2628_v62 = vadd.f32 %v8726_v60, %v2627_v14 }
 0x29d   :  { %4093 = vrot.lane.b32.xlu0 %v4054_v29, %s6007_s21  ;;  %v4424_v57 = vsel %vm258_vm1, %v4404_v31, %v4185_v55  ;;  %v3285_v6 = vrot.slane %v3284_v7, 4  ;;  %v4364_v61 = vsel %vm258_vm1, %v4344_v13, %v3862_v1  ;;  %v4155_v0 = vsel %vm1821_vm6, %v4154_v30, %v7912_v17 }
 0x29e   :  { %v4255_v59 = vrot.slane %v8652_v44, 7  ;;  %v3291_v34 = vsel %vm2975_vm11, %v2917_v46, -inf  ;;  %v2765_v29 = vadd.f32 %v2764_v18, %v2628_v62  ;;  %v3925_v22 = vrot.slane %v8652_v44, 3 }
 0x29f   :  { %v8854_v38 = vpop.permute.xlu2 %5934  ;;  %v4444_v5 = vsel %vm2344_vm10, %v4424_v57, %v4286_v21  ;;  %v3645_v14 = vsel %vm3620_vm14, %v3227_v56, %v3644_v15  ;;  %v3248_v19 = vmax.f32 %v3246_v58, %v3247_v49  ;;  %v3261_v1 = vrot.slane %v3260_v3, 1 }
 0x2a0   :  { %4194 = vrot.lane.b32.xlu2 %v4155_v0, %s6006_s20  ;;  %v4504_v20 = vrot.slane %v4444_v5, 4  ;;  %v3234_v55 = vmax.f32 %v3232_v36, %v3233_v53  ;;  %v3269_v30 = vmax.f32 %v3267_v33, %v3268_v52  ;;  %v3282_v13 = vrot.slane %v3281_v27, 1 }
 0x2a1   :  { %v4384_v46 = vsel %vm2344_vm10, %v4364_v61, %v8735_v10  ;;  %3951 = vrot.lane.b32.xlu1 %v3925_v22, %s6005_s19  ;;  %v3286_v18 = vmax.f32 %v3284_v7, %v3285_v6  ;;  %v3292_v31 = vrot.slane %v3291_v34, 4  ;;  %v4256_v62 = vsel %vm2042_vm4, %v4255_v59, %v7918_v25 }
 0x2a2   :  { %v4524_v21 = vsel %vm1460_vm8, %v4384_v46, %v4504_v20  ;;  %v3646_v56 = vsel %vm3616_vm12, %v3241_v35, %v3234_v55  ;;  %v3255_v58 = vmax.f32 %v3253_v41, %v3254_v2  ;;  %v3276_v15 = vmax.f32 %v3274_v47, %v3275_v24  ;;  %v4556_v46 = vld [vmem:[%s9954_s5 + $0x68] sm:$0xff] }
 0x2a3   :  { %v2838_v49 = vmax.f32 %v2765_v29, 0.0  ;;  %4581 = vst [vmem:[#allocation1 + $0x1] ss:$2 sm:$0xff] %v4524_v21  ;;  %v3647_v10 = vsel %vm3618_vm13, %v3248_v19, %v3646_v56  ;;  %v3262_v33 = vmax.f32 %v3260_v3, %v3261_v1  ;;  %v4055_v53 = vrot.slane %v8826_v48, 5  ;;  %v4558_v29 = vld [vmem:[%s9954_s5 + $0x78] sm:$0xff] }
 0x2a4   :  { %v3707_v57 = vsel %vm596_vm2, 0.0, %v3645_v14  ;;  %v3766_v41 = vrot.slane %v8826_v48, 1  ;;  %v3283_v35 = vmax.f32 %v3281_v27, %v3282_v13  ;;  %v3287_v2 = vrot.slane %v3286_v18, 2  ;;  %v4557_v27 = vld [vmem:[%s9954_s5 + $0x70] sm:$0xff]  ;;  %4646 = vmatpush.msra.mxu3 %v4558_v29 }
 0x2a5   :  { %4295 = vrot.lane.b32.xlu0 %v4256_v62, %s6005_s19  ;;  %v3649_v47 = vsel %vm3616_vm12, %v3269_v30, %v3262_v33  ;;  %v3293_v24 = vmax.f32 %v3291_v34, %v3292_v31  ;;  %v3648_v6 = vsel %vm3620_vm14, %v3255_v58, %v3647_v10  ;;  %v2918_v0 = vrot.slane %v2838_v49, 4  ;;  %v5900_v59 = vpop.permute.xlu1 %5899  ;;  %v10115_v14 = vld [vmem:[#allocation10_spill] sm:$0xff]  ;;  %v2630_v58 = vpop.f32.mrf.mxu1  ;;  %v10117_v29 = vld [vmem:[#allocation17_spill] sm:$0xff] }
 0x2a6   :  { %v3650_v3 = vsel %vm3618_vm13, %v3276_v15, %v3649_v47  ;;  %v8885_v34 = vsel %vm797_vm7, %v3707_v57, 0.0  ;;  %v3298_v22 = vsel %vm2975_vm11, %v2838_v49, -inf  ;;  %v4056_v5 = vsel %vm596_vm2, %v4055_v53, %v7884_v50  ;;  %4647 = vmatpush.msra.mxu3 %v4557_v27  ;;  %v4555_v57 = vld [vmem:[%s9954_s5 + $0x60] sm:$0xff]  ;;  %v2767_v47 = vpop.f32.mrf.mxu2 }
 0x2a7   :  { %v1539_v19 = vrot.slane %v10115_v14, 4  ;;  %v3846_v30 = vrot.slane %v8826_v48, 2  ;;  %v3708_v31 = vsel %vm596_vm2, 0.0, %v3648_v6  ;;  %v3651_v62 = vsel %vm3620_vm14, %v3283_v35, %v3650_v3 }
 0x2a8   :  { %3793 = vrot.lane.b32.xlu2 %v3766_v41, %s6007_s21  ;;  %v8903_v21 = vmax.f32 %v3286_v18, %v3287_v2  ;;  %v3294_v56 = vrot.slane %v3293_v24, 2  ;;  %v3299_v49 = vrot.slane %v3298_v22, 4  ;;  %v3305_v10 = vsel %vm2975_vm11, %v2918_v0, -inf  ;;  %4648 = vmatpush.msra.mxu3 %v4556_v46 }
 0x2a9   :  { %4095 = vrot.lane.b32.xlu1 %v4056_v5, %s6007_s21  ;;  %v5895_v15 = vpop.permute.xlu0 %5894  ;;  %v5906_v41 = vunpack.i.l.bf16 %v8793_v45  ;;  %v5901_v18 = vunpack.i.l.bf16 %v5900_v59  ;;  %v4257_v35 = vrot.slane %v8826_v48, 7  ;;  %v10116_v2 = vrot.slane %v10112_v54, 4 }
 0x2aa   :  { %v8896_v13 = vpop.permute.xlu2 %5949  ;;  %v5897_v33 = vunpack.i.h.bf16 %v5895_v15  ;;  %v5896_v53 = vunpack.i.l.bf16 %v5895_v15  ;;  %v5902_v3 = vunpack.i.h.bf16 %v5900_v59  ;;  %v3926_v0 = vrot.slane %v8826_v48, 3  ;;  %4649 = vmatpush.msra.mxu3 %v4555_v57 }
 0x2ab   :  { %v1540_v6 = vsel %vm1460_vm8, %v10116_v2, %v1539_v19  ;;  %v2631_v14 = vadd.f32 %v8726_v60, %v2630_v58  ;;  %v4156_v15 = vrot.slane %v8826_v48, 6  ;;  %v8923_v55 = vmax.f32 %v3293_v24, %v3294_v56  ;;  %v4554_v58 = vld [vmem:[%s9954_s5 + $0x58] sm:$0xff] }
 0x2ac   :  { %v2302_v27 = vsel %vm2263_vm9, %v10117_v29, %v5896_v53  ;;  %v2416_v5 = vsel %vm2263_vm9, %v1540_v6, %v5897_v33  ;;  %v3300_v19 = vmax.f32 %v3298_v22, %v3299_v49  ;;  %v3306_v33 = vrot.slane %v3305_v10, 4  ;;  %4650 = vmatpush.msra.mxu3 %v4554_v58 }
 0x2ad   :  { %3873 = vrot.lane.b32.xlu0 %v3846_v30, %s6006_s20  ;;  %v5907_v30 = vunpack.i.h.bf16 %v8793_v45  ;;  %v2342_v20 = vsel %vm258_vm1, %v2302_v27, %v5901_v18  ;;  %v2456_v46 = vsel %vm258_vm1, %v2416_v5, %v5902_v3  ;;  %v8931_v45 = vadd.f32 %v2767_v47, %v2631_v14  ;;  %v4553_v47 = vld [vmem:[%s9954_s5 + $0x50] sm:$0xff] }
 0x2ae   :  { %v2383_v59 = vsel %vm2344_vm10, %v2342_v20, %v5906_v41  ;;  %v4258_v53 = vsel %vm2042_vm4, %v4257_v35, %v7918_v25  ;;  %v8937_v22 = vsel %vm797_vm7, %v3708_v31, 0.0  ;;  %v5872_v20 = vunpack.i.h.bf16 %v8718_v51  ;;  %v5915_v41 = vpop.permute.xlu1 %5914  ;;  %4651 = vmatpush.msra.mxu3 %v4553_v47 }
 0x2af   :  { %2671 = vmatmul.f32.gmra.mxu3 %v2383_v59  ;;  %v2496_v24 = vsel %vm2344_vm10, %v2456_v46, %v5907_v30  ;;  %v5871_v56 = vunpack.i.l.bf16 %v8718_v51  ;;  %v5867_v49 = vunpack.i.h.bf16 %v8720_v8  ;;  %v3709_v18 = vsel %vm596_vm2, 0.0, %v3651_v62  ;;  %v4552_v62 = vld [vmem:[%s9954_s5 + $0x48] sm:$0xff]  ;;  %v2633_v59 = vpop.f32.mrf.mxu1 }
 0x2b0   :  { %3953 = vrot.lane.b32.xlu2 %v3926_v0, %s6005_s19  ;;  %2787 = vmatmul.f32.gmra.mxu2 %v2496_v24  ;;  %v3289_v31 = vrot.slane %v8903_v21, 1  ;;  %v5866_v35 = vunpack.i.l.bf16 %v8720_v8  ;;  %v4157_v2 = vsel %vm1821_vm6, %v4156_v15, %v7912_v17  ;;  %v3296_v3 = vrot.slane %v8923_v55, 1 }
 0x2b1   :  { %4297 = vrot.lane.b32.xlu1 %v4258_v53, %s6005_s19  ;;  %v3301_v0 = vrot.slane %v3300_v19, 2  ;;  %v3307_v14 = vmax.f32 %v3305_v10, %v3306_v33  ;;  %v2839_v30 = vmax.f32 %v8931_v45, 0.0  ;;  %v5917_v46 = vunpack.i.h.bf16 %v5915_v41  ;;  %v4551_v10 = vld [vmem:[%s9954_s5 + $0x40] sm:$0xff]  ;;  %v2770_v45 = vpop.f32.mrf.mxu2  ;;  %4652 = vmatpush.msra.mxu3 %v4552_v62  ;;  %v10120_v62 = vld [vmem:[#allocation13_spill] sm:$0xff] }
 0x2b2   :  { %v8943_v57 = vpop.permute.xlu2 %3863  ;;  %v5910_v6 = vpop.permute.xlu0 %5909  ;;  %v5916_v53 = vunpack.i.l.bf16 %v5915_v41  ;;  %v5921_v15 = vunpack.i.l.bf16 %v8823_v63  ;;  %v3847_v58 = vrot.slane %v8885_v34, 2  ;;  %v5922_v33 = vunpack.i.h.bf16 %v8823_v63  ;;  %v4550_v63 = vld [vmem:[%s9954_s5 + $0x38] sm:$0xff] }
 0x2b3   :  { %v5912_v27 = vunpack.i.h.bf16 %v5910_v6  ;;  %v5911_v5 = vunpack.i.l.bf16 %v5910_v6  ;;  %v4057_v41 = vrot.slane %v8885_v34, 5  ;;  %v2634_v36 = vadd.f32 %v8726_v60, %v2633_v59  ;;  %4653 = vmatpush.msra.mxu3 %v4551_v10 }
 0x2b4   :  { %v3302_v52 = vmax.f32 %v3300_v19, %v3301_v0  ;;  %v2919_v61 = vrot.slane %v2839_v30, 4  ;;  %v8983_v59 = vsel %vm797_vm7, %v3709_v18, 0.0  ;;  %v3297_v19 = vmax.f32 %v8923_v55, %v3296_v3 }
 0x2b5   :  { %4196 = vrot.lane.b32.xlu0 %v4157_v2, %s6006_s20  ;;  %v2295_v24 = vsel %vm2263_vm9, %v10112_v54, %v5911_v5  ;;  %v10118_v2 = vld [vmem:[#allocation18_spill] sm:$0xff]  ;;  %v3767_v54 = vrot.slane %v8885_v34, 1  ;;  %v3312_v0 = vsel %vm2975_vm11, %v2839_v30, -inf  ;;  %v4158_v10 = vrot.slane %v8885_v34, 6  ;;  %4654 = vmatpush.msra.mxu3 %v4550_v63  ;;  %v4548_v30 = vld [vmem:[%s9954_s5 + $0x28] sm:$0xff] }
 0x2b6   :  { %v2303_v6 = vsel %vm2263_vm9, %v10118_v2, %v5912_v27  ;;  %v2335_v47 = vsel %vm258_vm1, %v2295_v24, %v5916_v53  ;;  %v10119_v5 = vld [vmem:[#allocation6_spill] sm:$0xff]  ;;  %v1542_v53 = vrot.slane %v10120_v62, 4  ;;  %v2771_v24 = vadd.f32 %v2770_v45, %v2634_v36 }
 0x2b7   :  { %v2343_v7 = vsel %vm258_vm1, %v2303_v6, %v5917_v46  ;;  %v2376_v27 = vsel %vm2344_vm10, %v2335_v47, %v5921_v15  ;;  %v1541_v1 = vrot.slane %v10119_v5, 4  ;;  %v3308_v15 = vrot.slane %v3307_v14, 2 }
 0x2b8   :  { %3875 = vrot.lane.b32.xlu2 %v3847_v58, %s6006_s20  ;;  %2650 = vmatmul.f32.gmra.mxu1 %v2376_v27  ;;  %v2384_v46 = vsel %vm2344_vm10, %v2343_v7, %v5922_v33  ;;  %v3290_v58 = vmax.f32 %v8903_v21, %v3289_v31  ;;  %v4058_v7 = vsel %vm596_vm2, %v4057_v41, %v7884_v50  ;;  %v4549_v21 = vld [vmem:[%s9954_s5 + $0x30] sm:$0xff]  ;;  %v3303_v33 = vrot.slane %v3302_v52, 1 }
 0x2b9   :  { %3795 = vrot.lane.b32.xlu1 %v3767_v54, %s6007_s21  ;;  %2674 = vmatmul.f32.gmra.mxu3 %v2384_v46  ;;  %v1543_v55 = vsel %vm1460_vm8, %v1541_v1, %v1542_v53  ;;  %v3319_v45 = vsel %vm2975_vm11, %v2919_v61, -inf  ;;  %v10121_v41 = vunpack.i.l.bf16 %v8455_v28  ;;  %v10122_v54 = vunpack.i.h.bf16 %v8455_v28  ;;  %v4547_v61 = vld [vmem:[%s9954_s5 + $0x20] sm:$0xff] }
 0x2ba   :  { %v8987_v6 = vpop.permute.xlu2 %4186  ;;  %4655 = vmatpush.msra.mxu3 %v4549_v21  ;;  %v3309_v1 = vmax.f32 %v3307_v14, %v3308_v15  ;;  %v3313_v63 = vrot.slane %v3312_v0, 4  ;;  %v2840_v46 = vmax.f32 %v2771_v24, 0.0  ;;  %v10124_v28 = vunpack.i.l.bf16 %v8319_v32 }
 0x2bb   :  { %v9002_v3 = vpop.permute.xlu1 %5929  ;;  %v2417_v47 = vsel %vm2263_vm9, %v1543_v55, %v10121_v41  ;;  %v2296_v27 = vsel %vm2263_vm9, %v10119_v5, %v10122_v54  ;;  %v5881_v55 = vunpack.i.l.bf16 %v8785_v4  ;;  %v4159_v14 = vsel %vm1821_vm6, %v4158_v10, %v7912_v17  ;;  %v2636_v41 = vpop.f32.mrf.mxu1  ;;  %v4546_v10 = vld [vmem:[%s9954_s5 + $0x18] sm:$0xff] }
 0x2bc   :  { %v4259_v15 = vrot.slane %v8885_v34, 7  ;;  %4656 = vmatpush.msra.mxu3 %v4548_v30  ;;  %v3652_v24 = vsel %vm3616_vm12, %v3297_v19, %v3290_v58  ;;  %v3320_v21 = vrot.slane %v3319_v45, 4  ;;  %v10125_v54 = vunpack.i.h.bf16 %v8446_v39  ;;  %v10127_v58 = vld [vmem:[#allocation7_spill] sm:$0xff] }
 0x2bd   :  { %4097 = vrot.lane.b32.xlu0 %v4058_v7, %s6007_s21  ;;  %v10123_v7 = vunpack.i.l.bf16 %v8446_v39  ;;  %v9018_v18 = vpop.permute.xlu0 %5924  ;;  %v1544_v19 = vrot.slane %v10127_v58, 4  ;;  %v3310_v31 = vrot.slane %v3309_v1, 1  ;;  %v9045_v39 = vmax.f32 %v3312_v0, %v3313_v63 }
 0x2be   :  { %4657 = vmatpush.msra.mxu3 %v4547_v61  ;;  %v2920_v63 = vrot.slane %v2840_v46, 4  ;;  %v10128_v8 = vunpack.i.h.bf16 %v8578_v26 }
 0x2bf   :  { %v2457_v36 = vsel %vm258_vm1, %v2417_v47, %v10123_v7  ;;  %v3927_v47 = vrot.slane %v8885_v34, 3  ;;  %v2336_v7 = vsel %vm258_vm1, %v2296_v27, %v10125_v54  ;;  %v3326_v27 = vsel %vm2975_vm11, %v2840_v46, -inf }
 0x2c0   :  { %v2497_v5 = vsel %vm2344_vm10, %v2457_v36, %v10124_v28  ;;  %4198 = vrot.lane.b32.xlu2 %v4159_v14, %s6006_s20  ;;  %v10126_v36 = vunpack.i.h.bf16 %v8319_v32  ;;  %v1551_v28 = vrot.slane %v7938_v42, 4  ;;  %v3304_v14 = vmax.f32 %v3302_v52, %v3303_v33  ;;  %v4545_v32 = vld [vmem:[%s9954_s5 + $0x10] sm:$0xff]  ;;  %4658 = vmatpush.msra.mxu3 %v4546_v10 }
 0x2c1   :  { %2790 = vmatmul.f32.gmra.mxu2 %v2497_v5  ;;  %v1552_v5 = vrot.slane %v10110_v12, 4  ;;  %3955 = vrot.lane.b32.xlu1 %v3927_v47, %s6005_s19  ;;  %v2637_v42 = vadd.f32 %v8726_v60, %v2636_v41  ;;  %v4260_v12 = vsel %vm2042_vm4, %v4259_v15, %v7918_v25  ;;  %v1545_v52 = vsel %vm1460_vm8, %v1542_v53, %v1544_v19  ;;  %v10132_v19 = vld [vmem:[#allocation14_spill] sm:$0xff] }
 0x2c2   :  { %v2377_v30 = vsel %vm2344_vm10, %v2336_v7, %v10126_v36  ;;  %v9049_v54 = vpop.permute.xlu2 %3785  ;;  %v9059_v33 = vmax.f32 %v3319_v45, %v3320_v21  ;;  %v2418_v61 = vsel %vm2263_vm9, %v1545_v52, %v5866_v35  ;;  %v3327_v15 = vrot.slane %v3326_v27, 4  ;;  %4659 = vmatpush.msra.mxu3 %v4545_v32  ;;  %v10134_v32 = vld [vmem:[#allocation8_spill] sm:$0xff] }
 0x2c3   :  { %2653 = vmatmul.f32.gmra.mxu1 %v2377_v30  ;;  %v1553_v0 = vsel %vm1460_vm8, %v1551_v28, %v1552_v5  ;;  %v9068_v47 = vpop.permute.xlu1 %5944  ;;  %v2458_v53 = vsel %vm258_vm1, %v2418_v61, %v5871_v56  ;;  %v4059_v46 = vrot.slane %v8937_v22, 5  ;;  %v9077_v21 = vmax.f32 %v3309_v1, %v3310_v31  ;;  %v2773_v31 = vpop.f32.mrf.mxu2 }
 0x2c4   :  { %v2421_v41 = vsel %vm2263_vm9, %v1553_v0, %v5867_v49  ;;  %v3768_v7 = vrot.slane %v8937_v22, 1  ;;  %v10129_v10 = vunpack.i.l.bf16 %v8497_v11  ;;  %v9093_v56 = vsel %vm3618_vm13, %v3304_v14, %v3652_v24  ;;  %v4543_v0 = vld [vmem:[%s9954_s5] sm:$0xff] }
 0x2c5   :  { %4299 = vrot.lane.b32.xlu0 %v4260_v12, %s6005_s19  ;;  %v2461_v45 = vsel %vm258_vm1, %v2421_v41, %v5872_v20  ;;  %v4544_v20 = vld [vmem:[%s9954_s5 + $0x8] sm:$0xff]  ;;  %v10130_v1 = vunpack.i.l.bf16 %v8578_v26  ;;  %v10131_v30 = vunpack.i.l.bf16 %v8493_v37  ;;  %v1546_v28 = vrot.slane %v10132_v19, 4 }
 0x2c6   :  { %v2501_v49 = vsel %vm2344_vm10, %v2461_v45, %v10128_v8  ;;  %v2297_v51 = vsel %vm2263_vm9, %v10120_v62, %v10129_v10  ;;  %v3315_v62 = vrot.slane %v9045_v39, 2  ;;  %v10133_v24 = vunpack.i.l.bf16 %v8359_v43  ;;  %v10135_v12 = vld [vmem:[#allocation9_spill] sm:$0xff]  ;;  %4660 = vmatpush.msra.mxu3 %v4544_v20 }
 0x2c7   :  { %v9082_v35 = vpop.permute.xlu0 %5939  ;;  %v2498_v36 = vsel %vm2344_vm10, %v2458_v53, %v10130_v1  ;;  %2802 = vmatmul.f32.vlgmr.msrb.gmra.mxu3 %v2501_v49  ;;  %v2337_v58 = vsel %vm258_vm1, %v2297_v51, %v10131_v30  ;;  %v1547_v26 = vrot.slane %v10134_v32, 4  ;;  %v1554_v52 = vrot.slane %v10135_v12, 4 }
 0x2c8   :  { %3797 = vrot.lane.b32.xlu2 %v3768_v7, %s6007_s21  ;;  %v2378_v14 = vsel %vm2344_vm10, %v2337_v58, %v10133_v24  ;;  %v3322_v61 = vrot.slane %v9059_v33, 2  ;;  %v9113_v41 = vmax.f32 %v3326_v27, %v3327_v15  ;;  %v3333_v53 = vsel %vm2975_vm11, %v2920_v63, -inf  ;;  %4661 = vmatpush.msra.mxu3 %v4543_v0 }
 0x2c9   :  { %2793 = vmatmul.f32.gmra.mxu2 %v2498_v36  ;;  %v4060_v45 = vsel %vm596_vm2, %v4059_v46, %v7884_v50  ;;  %v9118_v8 = vadd.f32 %v2773_v31, %v2637_v42  ;;  %v3848_v49 = vrot.slane %v8937_v22, 2  ;;  %v1548_v7 = vsel %vm1460_vm8, %v1546_v28, %v1547_v26 }
 0x2ca   :  { %4099 = vrot.lane.b32.xlu1 %v4060_v45, %s6007_s21  ;;  %v1555_v10 = vsel %vm1460_vm8, %v1552_v5, %v1554_v52  ;;  %v9124_v51 = vpop.permute.xlu2 %3945  ;;  %v5927_v27 = vunpack.i.h.bf16 %v9018_v18  ;;  %v10136_v63 = vunpack.i.h.bf16 %v8497_v11  ;;  %v10137_v46 = vunpack.i.h.bf16 %v8785_v4 }
 0x2cb   :  { %2656 = vmatmul.f32.gmra.mxu1 %v2378_v14  ;;  %v2422_v42 = vsel %vm2263_vm9, %v1555_v10, %v5881_v55  ;;  %v5926_v5 = vunpack.i.l.bf16 %v9018_v18  ;;  %v10138_v31 = vunpack.i.h.bf16 %v8493_v37  ;;  %v10139_v1 = vunpack.i.l.bf16 %v8783_v23  ;;  %v3784_v30 = vpop.permute.xlu1 %3783  ;;  %v10140_v55 = vld [vmem:[#allocation11_spill] sm:$0xff] }
 0x2cc   :  { %v2419_v15 = vsel %vm2263_vm9, %v1548_v7, %v10136_v63  ;;  %v2298_v20 = vsel %vm2263_vm9, %v10132_v19, %v10137_v46  ;;  %v1549_v58 = vrot.slane %v10140_v55, 4  ;;  %v10141_v4 = vunpack.i.h.bf16 %v8359_v43  ;;  %v2639_v63 = vpop.f32.mrf.mxu1 }
 0x2cd   :  { %3877 = vrot.lane.b32.xlu0 %v3848_v49, %s6006_s20  ;;  %v2459_v11 = vsel %vm258_vm1, %v2419_v15, %v10138_v31  ;;  %v2462_v36 = vsel %vm258_vm1, %v2422_v42, %v10139_v1  ;;  %v3928_v28 = vrot.slane %v8937_v22, 3  ;;  %v4261_v18 = vrot.slane %v8937_v22, 7 }
 0x2ce   :  { %v2499_v19 = vsel %vm2344_vm10, %v2459_v11, %v10141_v4  ;;  %v4160_v24 = vrot.slane %v8937_v22, 6  ;;  %v10142_v37 = vunpack.i.l.bf16 %v8626_v9  ;;  %v10143_v52 = vunpack.i.h.bf16 %v8783_v23  ;;  %v2776_v4 = vpop.f32.mrf.mxu2 }
 0x2cf   :  { %v4086_v12 = vpop.permute.xlu0 %4085  ;;  %v1556_v45 = vrot.slane %v10117_v29, 4  ;;  %v1557_v43 = vrot.slane %v10118_v2, 4  ;;  %v3334_v49 = vrot.slane %v3333_v53, 4  ;;  %v5937_v7 = vunpack.i.h.bf16 %v8854_v38 }
 0x2d0   :  { %v2502_v14 = vsel %vm2344_vm10, %v2462_v36, %v10142_v37  ;;  %v2338_v0 = vsel %vm258_vm1, %v2298_v20, %v10143_v52  ;;  %v2841_v10 = vmax.f32 %v9118_v8, 0.0  ;;  %v5941_v15 = vunpack.i.l.bf16 %v9082_v35  ;;  %3957 = vrot.lane.b32.xlu2 %v3928_v28, %s6005_s19 }
 0x2d1   :  { %2805 = vmatmul.f32.gmra.mxu3 %v2502_v14  ;;  %v5932_v42 = vunpack.i.h.bf16 %v9002_v3  ;;  %2796 = vmatmul.f32.gmra.mxu2 %v2499_v19  ;;  %v4001_v23 = vrot.slane %v8347_v40, 4  ;;  %v1550_v29 = vsel %vm1460_vm8, %v1547_v26, %v1549_v58  ;;  %v1558_v2 = vsel %vm1460_vm8, %v1556_v45, %v1557_v43 }
 0x2d2   :  { %v4262_v46 = vsel %vm2042_vm4, %v4261_v18, %v7918_v25  ;;  %v10144_v20 = vunpack.i.h.bf16 %v8626_v9  ;;  %v2420_v11 = vsel %vm2263_vm9, %v1550_v29, %v5926_v5  ;;  %v2423_v1 = vsel %vm2263_vm9, %v1558_v2, %v5927_v27  ;;  %v9181_v9 = vpop.permute.xlu2 %3867  ;;  %v10145_v27 = vld [vmem:[#allocation19_spill] sm:$0xff] }
 0x2d3   :  { %v5936_v36 = vunpack.i.l.bf16 %v8854_v38  ;;  %v2640_v55 = vadd.f32 %v8726_v60, %v2639_v63  ;;  %v5931_v26 = vunpack.i.l.bf16 %v9002_v3  ;;  %4301 = vrot.lane.b32.xlu1 %v4262_v46, %s6005_s19  ;;  %v4161_v58 = vsel %vm1821_vm6, %v4160_v24, %v7912_v17  ;;  %v3944_v37 = vpop.permute.xlu1 %3943 }
 0x2d4   :  { %v2379_v31 = vsel %vm2344_vm10, %v2338_v0, %v10144_v20  ;;  %v4405_v19 = vsel %vm2263_vm9, %v4001_v23, %v4086_v12  ;;  %v2463_v5 = vsel %vm258_vm1, %v2423_v1, %v5932_v42  ;;  %v2299_v38 = vsel %vm2263_vm9, %v10134_v32, %v5941_v15 }
 0x2d5   :  { %2659 = vmatmul.f32.gmra.mxu1 %v2379_v31  ;;  %v1559_v60 = vrot.slane %v10145_v27, 4  ;;  %v3335_v28 = vmax.f32 %v3333_v53, %v3334_v49  ;;  %v5946_v3 = vunpack.i.l.bf16 %v9068_v47  ;;  %v5942_v18 = vunpack.i.h.bf16 %v9082_v35  ;;  %4200 = vrot.lane.b32.xlu0 %v4161_v58, %s6006_s20 }
 0x2d6   :  { %v2460_v24 = vsel %vm258_vm1, %v2420_v11, %v5931_v26  ;;  %v2921_v14 = vrot.slane %v2841_v10, 4  ;;  %v5951_v12 = vunpack.i.l.bf16 %v8896_v13  ;;  %v2777_v52 = vadd.f32 %v2776_v4, %v2640_v55 }
 0x2d7   :  { %v4345_v32 = vsel %vm2263_vm9, %v8347_v40, %v3784_v30  ;;  %v2503_v53 = vsel %vm2344_vm10, %v2463_v5, %v5937_v7  ;;  %v4288_v0 = vpop.permute.xlu0 %4287  ;;  %v4425_v35 = vsel %vm258_vm1, %v4405_v19, %v8987_v6  ;;  %v3849_v45 = vrot.slane %v8983_v59, 2 }
 0x2d8   :  { %v2339_v49 = vsel %vm258_vm1, %v2299_v38, %v5946_v3  ;;  %v2500_v63 = vsel %vm2344_vm10, %v2460_v24, %v5936_v36  ;;  %v4445_v15 = vsel %vm2344_vm10, %v4425_v35, %v4288_v0  ;;  %v4061_v42 = vrot.slane %v8983_v59, 5 }
 0x2d9   :  { %2808 = vmatmul.f32.gmra.mxu3 %v2503_v53  ;;  %v1560_v23 = vsel %vm1460_vm8, %v1557_v43, %v1559_v60  ;;  %2799 = vmatmul.f32.gmra.mxu2 %v2500_v63  ;;  %v4365_v40 = vsel %vm258_vm1, %v4345_v32, %v8943_v57  ;;  %v4505_v30 = vrot.slane %v4445_v15, 4  ;;  %v3769_v6 = vrot.slane %v8983_v59, 1 }
 0x2da   :  { %3879 = vrot.lane.b32.xlu2 %v3849_v45, %s6006_s20  ;;  %v2424_v7 = vsel %vm2263_vm9, %v1560_v23, %v5942_v18  ;;  %v2842_v29 = vmax.f32 %v2777_v52, 0.0  ;;  %v5947_v2 = vunpack.i.h.bf16 %v9068_v47  ;;  %v4385_v46 = vsel %vm2344_vm10, %v4365_v40, %v3944_v37  ;;  %v9217_v57 = vpop.permute.xlu2 %4190 }
 0x2db   :  { %v2380_v20 = vsel %vm2344_vm10, %v2339_v49, %v5951_v12  ;;  %v3329_v43 = vrot.slane %v9113_v41, 2  ;;  %v4525_v31 = vsel %vm1460_vm8, %v4385_v46, %v4505_v30  ;;  %3799 = vrot.lane.b32.xlu1 %v3769_v6, %s6007_s21  ;;  %v3654_v11 = vsel %vm3620_vm14, %v9077_v21, %v9093_v56  ;;  %v4088_v21 = vpop.permute.xlu1 %4087  ;;  %v4594_v30 = vld.sshfl [vmem:[#allocation1] sm:$0xff pattern:$0x75316420] }
 0x2dc   :  { %4583 = vst [vmem:[#allocation1 + $0x10] ss:$2 sm:$0xff] %v4525_v31  ;;  %v4062_v47 = vsel %vm596_vm2, %v4061_v42, %v7884_v50  ;;  %v2464_v1 = vsel %vm258_vm1, %v2424_v7, %v5947_v2  ;;  %v4162_v36 = vrot.slane %v8983_v59, 6  ;;  %v3323_v55 = vmax.f32 %v9059_v33, %v3322_v61 }
 0x2dd   :  { %2662 = vmatmul.f32.gmra.mxu1 %v2380_v20  ;;  %v3336_v4 = vrot.slane %v3335_v28, 2  ;;  %v3347_v26 = vsel %vm2975_vm11, %v2921_v14, -inf  ;;  %v5952_v58 = vunpack.i.h.bf16 %v8896_v13  ;;  %4101 = vrot.lane.b32.xlu0 %v4062_v47, %s6007_s21  ;;  %v3316_v56 = vmax.f32 %v9045_v39, %v3315_v62 }
 0x2de   :  { %v2922_v19 = vrot.slane %v2842_v29, 4  ;;  %v3330_v5 = vmax.f32 %v9113_v41, %v3329_v43  ;;  %v3340_v38 = vsel %vm2975_vm11, %v2841_v10, -inf  ;;  %v3354_v33 = vsel %vm2975_vm11, %v2842_v29, -inf }
 0x2df   :  { %v2504_v61 = vsel %vm2344_vm10, %v2464_v1, %v5952_v58  ;;  %v3866_v27 = vpop.permute.xlu0 %3865  ;;  %v3710_v13 = vsel %vm596_vm2, 0.0, %v3654_v11  ;;  %v3348_v60 = vrot.slane %v3347_v26, 4  ;;  %v4163_v3 = vsel %vm1821_vm6, %v4162_v36, %v7912_v17  ;;  %v2642_v36 = vpop.f32.mrf.mxu1 }
 0x2e0   :  { %v4263_v39 = vrot.slane %v8983_v59, 7  ;;  %v3324_v62 = vrot.slane %v3323_v55, 1  ;;  %v3337_v41 = vmax.f32 %v3335_v28, %v3336_v4  ;;  %v3929_v8 = vrot.slane %v8983_v59, 3 }
 0x2e1   :  { %2811 = vmatmul.f32.gmra.mxu3 %v2504_v61  ;;  %v3317_v10 = vrot.slane %v3316_v56, 1  ;;  %v3341_v18 = vrot.slane %v3340_v38, 4  ;;  %v3355_v24 = vrot.slane %v3354_v33, 4  ;;  %v3361_v37 = vsel %vm2975_vm11, %v2922_v19, -inf  ;;  %v9282_v61 = vld [vmem:[%s9953_s4] ss:$0 sm:$0xff] }
 0x2e2   :  { %4202 = vrot.lane.b32.xlu2 %v4163_v3, %s6006_s20  ;;  %v9249_v14 = vsel %vm797_vm7, %v3710_v13, 0.0  ;;  %v3331_v12 = vrot.slane %v3330_v5, 1  ;;  %v9252_v52 = vpop.permute.xlu2 %3789  ;;  %v3349_v32 = vmax.f32 %v3347_v26, %v3348_v60  ;;  %v4264_v28 = vsel %vm2042_vm4, %v4263_v39, %v7918_v25 }
 0x2e3   :  { %3959 = vrot.lane.b32.xlu1 %v3929_v8, %s6005_s19  ;;  %v3325_v53 = vmax.f32 %v3323_v55, %v3324_v62  ;;  %v3338_v0 = vrot.slane %v3337_v41, 1  ;;  %v3362_v35 = vrot.slane %v3361_v37, 4  ;;  %v4002_v45 = vrot.slane %v8564_v16, 4  ;;  %v4290_v49 = vpop.permute.xlu1 %4289 }
 0x2e4   :  { %v3318_v63 = vmax.f32 %v3316_v56, %v3317_v10  ;;  %v3342_v15 = vmax.f32 %v3340_v38, %v3341_v18  ;;  %v3356_v42 = vmax.f32 %v3354_v33, %v3355_v24  ;;  %v4063_v23 = vrot.slane %v9249_v14, 5 }
 0x2e5   :  { %4303 = vrot.lane.b32.xlu0 %v4264_v28, %s6005_s19  ;;  %v3332_v40 = vmax.f32 %v3330_v5, %v3331_v12  ;;  %v4346_v6 = vsel %vm2263_vm9, %v8564_v16, %v9049_v54  ;;  %v4406_v7 = vsel %vm2263_vm9, %v4002_v45, %v4088_v21  ;;  %v3770_v2 = vrot.slane %v9249_v14, 1  ;;  %v2779_v5 = vpop.f32.mrf.mxu2  ;;  %v10146_v28 = vld [vmem:[#allocation20_spill] sm:$0xff] }
 0x2e6   :  { %v3350_v46 = vrot.slane %v3349_v32, 2  ;;  %v4366_v20 = vsel %vm258_vm1, %v4346_v6, %v3866_v27  ;;  %v3655_v31 = vsel %vm3616_vm12, %v3325_v53, %v3318_v63  ;;  %v3339_v11 = vmax.f32 %v3337_v41, %v3338_v0 }
 0x2e7   :  { %v4189_v29 = vpop.permute.xlu0 %4188  ;;  %v3363_v47 = vmax.f32 %v3361_v37, %v3362_v35  ;;  %v3343_v16 = vrot.slane %v3342_v15, 2  ;;  %v3357_v54 = vrot.slane %v3356_v42, 2  ;;  %v4064_v4 = vsel %vm596_vm2, %v4063_v23, %v7884_v50 }
 0x2e8   :  { %v4426_v43 = vsel %vm258_vm1, %v4406_v7, %v4189_v29  ;;  %v3656_v26 = vsel %vm3618_vm13, %v3332_v40, %v3655_v31  ;;  %v4386_v58 = vsel %vm2344_vm10, %v4366_v20, %v9124_v51  ;;  %v3850_v21 = vrot.slane %v9249_v14, 2 }
 0x2e9   :  { %4662 = vmatmul.f32.vlgmr.msra.gmra.mxu3 %v4594_v30  ;;  %v4446_v1 = vsel %vm2344_vm10, %v4426_v43, %v4290_v49  ;;  %v3351_v19 = vmax.f32 %v3349_v32, %v3350_v46  ;;  %v3364_v33 = vrot.slane %v3363_v47, 2  ;;  %v2643_v27 = vadd.f32 %v9282_v61, %v2642_v36 }
 0x2ea   :  { %3801 = vrot.lane.b32.xlu2 %v3770_v2, %s6007_s21  ;;  %v4506_v55 = vrot.slane %v4446_v1, 4  ;;  %v9276_v56 = vpop.permute.xlu2 %3949  ;;  %v3657_v13 = vsel %vm3620_vm14, %v3339_v11, %v3656_v26  ;;  %v3344_v60 = vmax.f32 %v3342_v15, %v3343_v16  ;;  %v3358_v3 = vmax.f32 %v3356_v42, %v3357_v54 }
 0x2eb   :  { %4103 = vrot.lane.b32.xlu1 %v4064_v4, %s6007_s21  ;;  %v3788_v51 = vpop.permute.xlu1 %3787  ;;  %v4265_v39 = vrot.slane %v9249_v14, 7  ;;  %v2780_v62 = vadd.f32 %v2779_v5, %v2643_v27  ;;  %v3930_v8 = vrot.slane %v9249_v14, 3  ;;  %v3352_v10 = vrot.slane %v3351_v19, 1 }
 0x2ec   :  { %v4526_v38 = vsel %vm1460_vm8, %v4386_v58, %v4506_v55  ;;  %v4164_v18 = vrot.slane %v9249_v14, 6  ;;  %v3711_v24 = vsel %vm596_vm2, 0.0, %v3657_v13  ;;  %v3365_v37 = vmax.f32 %v3363_v47, %v3364_v33 }
 0x2ed   :  { %4585 = vst [vmem:[#allocation1 + $0x11] ss:$2 sm:$0xff] %v4526_v38  ;;  %3881 = vrot.lane.b32.xlu0 %v3850_v21, %s6006_s20  ;;  %v3345_v12 = vrot.slane %v3344_v60, 1  ;;  %v3359_v32 = vrot.slane %v3358_v3, 1  ;;  %v4003_v53 = vrot.slane %v10146_v28, 4  ;;  %v4266_v0 = vsel %vm2042_vm4, %v4265_v39, %v7918_v25 }
 0x2ee   :  { %v2843_v35 = vmax.f32 %v2780_v62, 0.0  ;;  %v9299_v49 = vsel %vm797_vm7, %v3711_v24, 0.0  ;;  %v3353_v63 = vmax.f32 %v3351_v19, %v3352_v10  ;;  %v4165_v23 = vsel %vm1821_vm6, %v4164_v18, %v7912_v17  ;;  %v10147_v24 = vld [vmem:[#allocation21_spill] sm:$0xff] }
 0x2ef   :  { %v4090_v41 = vpop.permute.xlu0 %4089  ;;  %v3366_v40 = vrot.slane %v3365_v37, 1  ;;  %v3346_v6 = vmax.f32 %v3344_v60, %v3345_v12  ;;  %v3360_v7 = vmax.f32 %v3358_v3, %v3359_v32  ;;  %v4347_v29 = vsel %vm2263_vm9, %v10146_v28, %v3788_v51 }
 0x2f0   :  { %v4407_v42 = vsel %vm2263_vm9, %v4003_v53, %v4090_v41  ;;  %v2923_v2 = vrot.slane %v2843_v35, 4  ;;  %v3851_v43 = vrot.slane %v9299_v49, 2  ;;  %v4065_v47 = vrot.slane %v9299_v49, 5 }
 0x2f1   :  { %v4427_v20 = vsel %vm258_vm1, %v4407_v42, %v9217_v57  ;;  %v3658_v31 = vsel %vm3616_vm12, %v3353_v63, %v3346_v6  ;;  %v3367_v1 = vmax.f32 %v3365_v37, %v3366_v40  ;;  %v4367_v16 = vsel %vm258_vm1, %v4347_v29, %v9181_v9 }
 0x2f2   :  { %3961 = vrot.lane.b32.xlu2 %v3930_v8, %s6005_s19  ;;  %v9296_v45 = vpop.permute.xlu2 %3871  ;;  %v3771_v36 = vrot.slane %v9299_v49, 1  ;;  %v3659_v55 = vsel %vm3618_vm13, %v3360_v7, %v3658_v31  ;;  %v3375_v4 = vsel %vm2975_vm11, %v2923_v2, -inf  ;;  %v4066_v58 = vsel %vm596_vm2, %v4065_v47, %v7884_v50 }
 0x2f3   :  { %4305 = vrot.lane.b32.xlu1 %v4266_v0, %s6005_s19  ;;  %v3948_v30 = vpop.permute.xlu1 %3947  ;;  %v4166_v21 = vrot.slane %v9299_v49, 6  ;;  %v3660_v19 = vsel %vm3620_vm14, %v3367_v1, %v3659_v55  ;;  %v3368_v38 = vsel %vm2975_vm11, %v2843_v35, -inf  ;;  %v3376_v33 = vrot.slane %v3375_v4, 4 }
 0x2f4   :  { %v4596_v15 = vld.sshfl [vmem:[#allocation1 + $0x10] sm:$0xff pattern:$0x75316420]  ;;  %v4387_v57 = vsel %vm2344_vm10, %v4367_v16, %v3948_v30  ;;  %v3712_v51 = vsel %vm596_vm2, 0.0, %v3660_v19  ;;  %v4267_v60 = vrot.slane %v9299_v49, 7  ;;  %v3369_v3 = vrot.slane %v3368_v38, 4 }
 0x2f5   :  { %4204 = vrot.lane.b32.xlu0 %v4165_v23, %s6006_s20  ;;  %4665 = vmatmul.f32.gmra.mxu3 %v4596_v15  ;;  %v4167_v13 = vsel %vm1821_vm6, %v4166_v21, %v7912_v17  ;;  %v3931_v39 = vrot.slane %v9299_v49, 3  ;;  %v3377_v62 = vmax.f32 %v3375_v4, %v3376_v33  ;;  %v9337_v41 = vsel %vm797_vm7, %v3712_v51, 0.0 }
 0x2f6   :  { %v4268_v8 = vsel %vm2042_vm4, %v4267_v60, %v7918_v25  ;;  %v3370_v18 = vmax.f32 %v3368_v38, %v3369_v3  ;;  %v4004_v37 = vrot.slane %v10147_v24, 4  ;;  %v4067_v35 = vrot.slane %v9337_v41, 5 }
 0x2f7   :  { %v4292_v46 = vpop.permute.xlu0 %4291  ;;  %v3378_v28 = vrot.slane %v3377_v62, 2  ;;  %v4348_v63 = vsel %vm2263_vm9, %v10147_v24, %v9252_v52  ;;  %v3772_v40 = vrot.slane %v9337_v41, 1  ;;  %v3852_v47 = vrot.slane %v9337_v41, 2 }
 0x2f8   :  { %v4447_v11 = vsel %vm2344_vm10, %v4427_v20, %v4292_v46  ;;  %v3371_v7 = vrot.slane %v3370_v18, 2  ;;  %v4068_v52 = vsel %vm596_vm2, %v4067_v35, %v7884_v50  ;;  %v3932_v21 = vrot.slane %v9337_v41, 3 }
 0x2f9   :  { %v4507_v54 = vrot.slane %v4447_v11, 4  ;;  %v3379_v46 = vmax.f32 %v3377_v62, %v3378_v28  ;;  %v4168_v33 = vrot.slane %v9337_v41, 6  ;;  %v4005_v60 = vrot.slane %v8652_v44, 4 }
 0x2fa   :  { %3883 = vrot.lane.b32.xlu2 %v3851_v43, %s6006_s20  ;;  %v9324_v9 = vpop.permute.xlu2 %4194 }
 0x2fb   :  { %v4527_v26 = vsel %vm1460_vm8, %v4387_v57, %v4507_v54  ;;  %3803 = vrot.lane.b32.xlu1 %v3771_v36, %s6007_s21  ;;  %v4092_v5 = vpop.permute.xlu1 %4091  ;;  %v3372_v54 = vmax.f32 %v3370_v18, %v3371_v7  ;;  %v4169_v18 = vsel %vm1821_vm6, %v4168_v33, %v7912_v17 }
 0x2fc   :  { %4587 = vst [vmem:[#allocation1 + $0x20] ss:$2 sm:$0xff] %v4527_v26  ;;  %v4408_v15 = vsel %vm2263_vm9, %v4004_v37, %v4092_v5  ;;  %v3380_v26 = vrot.slane %v3379_v46, 1 }
 0x2fd   :  { %4105 = vrot.lane.b32.xlu0 %v4066_v58, %s6007_s21 }
 0x2ff   :  { %v3870_v27 = vpop.permute.xlu0 %3869 }
 0x300   :  { %v4368_v30 = vsel %vm258_vm1, %v4348_v63, %v3870_v27  ;;  %v3373_v27 = vrot.slane %v3372_v54, 1 }
 0x301   :  { %v4388_v43 = vsel %vm2344_vm10, %v4368_v30, %v9276_v56  ;;  %v4269_v56 = vrot.slane %v9337_v41, 7 }
 0x302   :  { %4206 = vrot.lane.b32.xlu2 %v4167_v13, %s6006_s20  ;;  %v2645_v10 = vpop.f32.mrf.mxu1  ;;  %v9345_v53 = vpop.permute.xlu2 %3793  ;;  %v3374_v37 = vmax.f32 %v3372_v54, %v3373_v27 }
 0x303   :  { %3963 = vrot.lane.b32.xlu1 %v3931_v39, %s6005_s19  ;;  %v4294_v12 = vpop.permute.xlu1 %4293  ;;  %v2646_v32 = vadd.f32 %v9282_v61, %v2645_v10  ;;  %v4270_v3 = vsel %vm2042_vm4, %v4269_v56, %v7918_v25  ;;  %v3381_v39 = vmax.f32 %v3379_v46, %v3380_v26  ;;  %v4006_v56 = vrot.slane %v8826_v48, 4 }
 0x305   :  { %4307 = vrot.lane.b32.xlu0 %v4268_v8, %s6005_s19  ;;  %v3661_v35 = vsel %vm3616_vm12, %v3381_v39, %v3374_v37 }
 0x306   :  { %v2782_v0 = vpop.f32.mrf.mxu2 }
 0x307   :  { %v4193_v42 = vpop.permute.xlu0 %4192  ;;  %v2783_v23 = vadd.f32 %v2782_v0, %v2646_v32 }
 0x308   :  { %v4428_v6 = vsel %vm258_vm1, %v4408_v15, %v4193_v42 }
 0x309   :  { %v4448_v29 = vsel %vm2344_vm10, %v4428_v6, %v4294_v12  ;;  %v2844_v2 = vmax.f32 %v2783_v23, 0.0 }
 0x30a   :  { %3805 = vrot.lane.b32.xlu2 %v3772_v40, %s6007_s21  ;;  %v4508_v20 = vrot.slane %v4448_v29, 4  ;;  %v9369_v38 = vpop.permute.xlu2 %3953 }
 0x30b   :  { %v2924_v31 = vrot.slane %v2844_v2, 4  ;;  %v3382_v11 = vsel %vm2975_vm11, %v2844_v2, -inf  ;;  %4107 = vrot.lane.b32.xlu1 %v4068_v52, %s6007_s21  ;;  %v3792_v55 = vpop.permute.xlu1 %3791 }
 0x30c   :  { %v4528_v1 = vsel %vm1460_vm8, %v4388_v43, %v4508_v20  ;;  %v3383_v16 = vrot.slane %v3382_v11, 4  ;;  %v4349_v0 = vsel %vm2263_vm9, %v8652_v44, %v3792_v55  ;;  %v9409_v55 = vpop.f32.mrf.mxu3 }
 0x30d   :  { %4589 = vst [vmem:[#allocation1 + $0x21] ss:$2 sm:$0xff] %v4528_v1  ;;  %v3389_v36 = vsel %vm2975_vm11, %v2924_v31, -inf  ;;  %3885 = vrot.lane.b32.xlu0 %v3852_v47, %s6006_s20  ;;  %v4369_v30 = vsel %vm258_vm1, %v4349_v0, %v9296_v45  ;;  %v2648_v20 = vpop.f32.mrf.mxu1 }
 0x30e   :  { %v3384_v57 = vmax.f32 %v3382_v11, %v3383_v16  ;;  %v3390_v4 = vrot.slane %v3389_v36, 4  ;;  %v2649_v11 = vadd.f32 %v9282_v61, %v2648_v20 }
 0x30f   :  { %v4094_v58 = vpop.permute.xlu0 %4093  ;;  %v2785_v16 = vpop.f32.mrf.mxu2 }
 0x310   :  { %v3385_v19 = vrot.slane %v3384_v57, 2  ;;  %v3391_v5 = vmax.f32 %v3389_v36, %v3390_v4  ;;  %v4409_v10 = vsel %vm2263_vm9, %v4005_v60, %v4094_v58  ;;  %v2786_v36 = vadd.f32 %v2785_v16, %v2649_v11  ;;  %v9449_v11 = vld.sshfl [vmem:[#allocation1 + $0x8] sm:$0xff pattern:$0x75316420] }
 0x311   :  { %v4429_v15 = vsel %vm258_vm1, %v4409_v10, %v9324_v9 }
 0x312   :  { %3965 = vrot.lane.b32.xlu2 %v3932_v21, %s6005_s19  ;;  %v3386_v51 = vmax.f32 %v3384_v57, %v3385_v19  ;;  %v3392_v13 = vrot.slane %v3391_v5, 2  ;;  %v9391_v29 = vpop.permute.xlu2 %3875  ;;  %v4350_v19 = vsel %vm2263_vm9, %v8826_v48, %v9345_v53 }
 0x313   :  { %4309 = vrot.lane.b32.xlu1 %v4270_v3, %s6005_s19  ;;  %v3952_v12 = vpop.permute.xlu1 %3951 }
 0x314   :  { %v3387_v62 = vrot.slane %v3386_v51, 1  ;;  %v3393_v8 = vmax.f32 %v3391_v5, %v3392_v13  ;;  %v4598_v24 = vld.sshfl [vmem:[#allocation1 + $0x20] sm:$0xff pattern:$0x75316420]  ;;  %v4389_v44 = vsel %vm2344_vm10, %v4369_v30, %v3952_v12  ;;  %v2845_v5 = vmax.f32 %v2786_v36, 0.0  ;;  %v9431_v10 = vpop.f32.mrf.mxu3 }
 0x315   :  { %4208 = vrot.lane.b32.xlu0 %v4169_v18, %s6006_s20  ;;  %4668 = vmatmul.f32.gmra.mxu3 %v4598_v24 }
 0x316   :  { %v3388_v32 = vmax.f32 %v3386_v51, %v3387_v62  ;;  %v3394_v28 = vrot.slane %v3393_v8, 1  ;;  %v2925_v53 = vrot.slane %v2845_v5, 4  ;;  %v3396_v12 = vsel %vm2975_vm11, %v2845_v5, -inf }
 0x317   :  { %v4296_v63 = vpop.permute.xlu0 %4295  ;;  %v3397_v0 = vrot.slane %v3396_v12, 4 }
 0x318   :  { %v3395_v42 = vmax.f32 %v3393_v8, %v3394_v28  ;;  %v3662_v23 = vsel %vm3618_vm13, %v3388_v32, %v3661_v35  ;;  %v4449_v40 = vsel %vm2344_vm10, %v4429_v15, %v4296_v63  ;;  %v3403_v24 = vsel %vm2975_vm11, %v2925_v53, -inf }
 0x319   :  { %v4509_v6 = vrot.slane %v4449_v40, 4  ;;  %v3404_v32 = vrot.slane %v3403_v24, 4  ;;  %v4007_v28 = vrot.slane %v8885_v34, 4 }
 0x31a   :  { %v3663_v7 = vsel %vm3620_vm14, %v3395_v42, %v3662_v23  ;;  %v4199_v57 = vpop.permute.xlu2 %4198 }
 0x31b   :  { %v3713_v2 = vsel %vm596_vm2, 0.0, %v3663_v7  ;;  %v4529_v46 = vsel %vm1460_vm8, %v4389_v44, %v4509_v6  ;;  %v4096_v52 = vpop.permute.xlu1 %4095  ;;  %v3405_v15 = vmax.f32 %v3403_v24, %v3404_v32  ;;  %v3398_v7 = vmax.f32 %v3396_v12, %v3397_v0 }
 0x31c   :  { %v9397_v9 = vsel %vm797_vm7, %v3713_v2, 0.0  ;;  %4591 = vst [vmem:[#allocation1 + $0x30] ss:$2 sm:$0xff] %v4529_v46  ;;  %v4410_v33 = vsel %vm2263_vm9, %v4006_v56, %v4096_v52 }
 0x31d   :  { %v3853_v43 = vrot.slane %v9397_v9, 2  ;;  %v3773_v45 = vrot.slane %v9397_v9, 1  ;;  %v4069_v31 = vrot.slane %v9397_v9, 5  ;;  %v4170_v54 = vrot.slane %v9397_v9, 6 }
 0x31e   :  { %v4271_v4 = vrot.slane %v9397_v9, 7  ;;  %v3933_v58 = vrot.slane %v9397_v9, 3 }
 0x31f   :  { %v3874_v47 = vpop.permute.xlu0 %3873  ;;  %3887 = vrot.lane.b32.xlu2 %v3853_v43, %s6006_s20  ;;  %3807 = vrot.lane.b32.xlu1 %v3773_v45, %s6007_s21  ;;  %v4070_v1 = vsel %vm596_vm2, %v4069_v31, %v7884_v50  ;;  %v4171_v21 = vsel %vm1821_vm6, %v4170_v54, %v7912_v17  ;;  %v3406_v45 = vrot.slane %v3405_v15, 2 }
 0x320   :  { %4109 = vrot.lane.b32.xlu0 %v4070_v1, %s6007_s21  ;;  %v4370_v51 = vsel %vm258_vm1, %v4350_v19, %v3874_v47  ;;  %v4272_v60 = vsel %vm2042_vm4, %v4271_v4, %v7918_v25  ;;  %v3399_v1 = vrot.slane %v3398_v7, 2 }
 0x321   :  { %v4390_v39 = vsel %vm2344_vm10, %v4370_v51, %v9369_v38  ;;  %v3407_v36 = vmax.f32 %v3405_v15, %v3406_v45  ;;  %v2667_v15 = vadd.f32 %v9282_v61, %v9409_v55 }
 0x322   :  { %v3798_v18 = vpop.permute.xlu2 %3797 }
 0x323   :  { %v4298_v26 = vpop.permute.xlu1 %4297  ;;  %v3408_v51 = vrot.slane %v3407_v36, 1  ;;  %v4352_v32 = vsel %vm2263_vm9, %v8937_v22, %v3798_v18 }
 0x325   :  { %v3409_v12 = vmax.f32 %v3407_v36, %v3408_v51 }
 0x327   :  { %v4197_v27 = vpop.permute.xlu0 %4196  ;;  %4210 = vrot.lane.b32.xlu2 %v4171_v21, %s6006_s20  ;;  %3967 = vrot.lane.b32.xlu1 %v3933_v58, %s6005_s19 }
 0x328   :  { %v4430_v13 = vsel %vm258_vm1, %v4410_v33, %v4197_v27  ;;  %4311 = vrot.lane.b32.xlu0 %v4272_v60, %s6005_s19 }
 0x329   :  { %v4450_v3 = vsel %vm2344_vm10, %v4430_v13, %v4298_v26  ;;  %v3400_v26 = vmax.f32 %v3398_v7, %v3399_v1 }
 0x32a   :  { %v4510_v48 = vrot.slane %v4450_v3, 4  ;;  %v9442_v44 = vpop.permute.xlu2 %3957 }
 0x32b   :  { %v3796_v8 = vpop.permute.xlu1 %3795 }
 0x32c   :  { %v4530_v62 = vsel %vm1460_vm8, %v4390_v39, %v4510_v48  ;;  %v4351_v42 = vsel %vm2263_vm9, %v8885_v34, %v3796_v8  ;;  %v3401_v48 = vrot.slane %v3400_v26, 1  ;;  %v4008_v8 = vrot.slane %v8937_v22, 4 }
 0x32d   :  { %4593 = vst [vmem:[#allocation1 + $0x31] ss:$2 sm:$0xff] %v4530_v62  ;;  %v4371_v20 = vsel %vm258_vm1, %v4351_v42, %v9391_v29 }
 0x32e   :  { %v3402_v42 = vmax.f32 %v3400_v26, %v3401_v48 }
 0x32f   :  { %v4098_v37 = vpop.permute.xlu0 %4097 }
 0x330   :  { %v4411_v35 = vsel %vm2263_vm9, %v4007_v28, %v4098_v37  ;;  %v3664_v18 = vsel %vm3616_vm12, %v3409_v12, %v3402_v42 }
 0x331   :  { %v4431_v30 = vsel %vm258_vm1, %v4411_v35, %v4199_v57 }
 0x332   :  { %v9439_v23 = vpop.f32.mrf.mxu3 }
 0x333   :  { %v3956_v38 = vpop.permute.xlu1 %3955  ;;  %v2788_v43 = vpop.f32.mrf.mxu2 }
 0x334   :  { %v4600_v63 = vld.sshfl [vmem:[#allocation1 + $0x30] sm:$0xff pattern:$0x75316420]  ;;  %v4391_v34 = vsel %vm2344_vm10, %v4371_v20, %v3956_v38  ;;  %v9457_v13 = vpop.permute.xlu2 %3879 }
 0x335   :  { %4671 = vmatmul.f32.gmra.mxu3 %v4600_v63  ;;  %v2651_v6 = vpop.f32.mrf.mxu1 }
 0x336   :  { %v2652_v46 = vadd.f32 %v9282_v61, %v2651_v6 }
 0x337   :  { %v4300_v40 = vpop.permute.xlu0 %4299 }
 0x338   :  { %v4451_v2 = vsel %vm2344_vm10, %v4431_v30, %v4300_v40  ;;  %v2789_v31 = vadd.f32 %v2788_v43, %v2652_v46 }
 0x339   :  { %v4511_v52 = vrot.slane %v4451_v2, 4 }
 0x33a   :  { %v2846_v16 = vmax.f32 %v2789_v31, 0.0 }
 0x33b   :  { %v4531_v47 = vsel %vm1460_vm8, %v4391_v34, %v4511_v52 }
 0x33c   :  { %4602 = vst [vmem:[#allocation1] ss:$2 sm:$0xff] %v4531_v47  ;;  %v4100_v54 = vpop.permute.xlu1 %4099  ;;  %v2926_v57 = vrot.slane %v2846_v16, 4  ;;  %v3410_v4 = vsel %vm2975_vm11, %v2846_v16, -inf  ;;  %v9454_v33 = vpop.f32.mrf.mxu3 }
 0x33d   :  { %v3411_v56 = vrot.slane %v3410_v4, 4  ;;  %v4412_v35 = vsel %vm2263_vm9, %v4008_v8, %v4100_v54  ;;  %v9473_v1 = vpop.permute.xlu2 %4202 }
 0x33e   :  { %v3417_v58 = vsel %vm2975_vm11, %v2926_v57, -inf }
 0x33f   :  { %v3878_v29 = vpop.permute.xlu0 %3877  ;;  %v3412_v19 = vmax.f32 %v3410_v4, %v3411_v56  ;;  %v3418_v5 = vrot.slane %v3417_v58, 4 }
 0x340   :  { %v2654_v21 = vpop.f32.mrf.mxu1  ;;  %v4372_v40 = vsel %vm258_vm1, %v4352_v32, %v3878_v29 }
 0x341   :  { %v2655_v27 = vadd.f32 %v9282_v61, %v2654_v21  ;;  %v3413_v60 = vrot.slane %v3412_v19, 2  ;;  %v3419_v3 = vmax.f32 %v3417_v58, %v3418_v5  ;;  %v4392_v16 = vsel %vm2344_vm10, %v4372_v40, %v9442_v44 }
 0x343   :  { %v3414_v39 = vmax.f32 %v3412_v19, %v3413_v60  ;;  %v3420_v62 = vrot.slane %v3419_v3, 2 }
 0x344   :  { %v2791_v53 = vpop.f32.mrf.mxu2 }
 0x345   :  { %v2792_v24 = vadd.f32 %v2791_v53, %v2655_v27  ;;  %v4302_v37 = vpop.permute.xlu1 %4301  ;;  %v3415_v28 = vrot.slane %v3414_v39, 1  ;;  %v3421_v0 = vmax.f32 %v3419_v3, %v3420_v62 }
 0x347   :  { %v2847_v63 = vmax.f32 %v2792_v24, 0.0  ;;  %v4201_v38 = vpop.permute.xlu0 %4200  ;;  %v3416_v7 = vmax.f32 %v3414_v39, %v3415_v28  ;;  %v3422_v2 = vrot.slane %v3421_v0, 1  ;;  %v2670_v39 = vadd.f32 %v9282_v61, %v9431_v10 }
 0x348   :  { %v4432_v30 = vsel %vm258_vm1, %v4412_v35, %v4201_v38  ;;  %v2657_v6 = vpop.f32.mrf.mxu1 }
 0x349   :  { %v2927_v46 = vrot.slane %v2847_v63, 4  ;;  %v3424_v22 = vsel %vm2975_vm11, %v2847_v63, -inf  ;;  %v4452_v52 = vsel %vm2344_vm10, %v4432_v30, %v4302_v37  ;;  %v2658_v43 = vadd.f32 %v9282_v61, %v2657_v6  ;;  %v9493_v30 = vpop.permute.xlu2 %3801 }
 0x34a   :  { %v3425_v20 = vrot.slane %v3424_v22, 4  ;;  %v3423_v45 = vmax.f32 %v3421_v0, %v3422_v2  ;;  %v3665_v55 = vsel %vm3618_vm13, %v3416_v7, %v3664_v18  ;;  %v4512_v31 = vrot.slane %v4452_v52, 4  ;;  %v2803_v47 = vpop.f32.mrf.mxu3 }
 0x34b   :  { %v3431_v34 = vsel %vm2975_vm11, %v2927_v46, -inf  ;;  %v2804_v57 = vadd.f32 %v2803_v47, %v2667_v15 }
 0x34c   :  { %v3432_v54 = vrot.slane %v3431_v34, 4  ;;  %v2794_v36 = vpop.f32.mrf.mxu2  ;;  %v3666_v4 = vsel %vm3620_vm14, %v3423_v45, %v3665_v55  ;;  %v4532_v56 = vsel %vm1460_vm8, %v4392_v16, %v4512_v31  ;;  %v3426_v19 = vmax.f32 %v3424_v22, %v3425_v20 }
 0x34d   :  { %v2795_v29 = vadd.f32 %v2794_v36, %v2658_v43  ;;  %v9479_v26 = vpop.permute.xlu1 %3799  ;;  %4603 = vst [vmem:[#allocation1 + $0x1] ss:$2 sm:$0xff] %v4532_v56  ;;  %v2851_v21 = vmax.f32 %v2804_v57, 0.0  ;;  %v3714_v51 = vsel %vm596_vm2, 0.0, %v3666_v4 }
 0x34e   :  { %v3433_v58 = vmax.f32 %v3431_v34, %v3432_v54  ;;  %v9486_v8 = vsel %vm797_vm7, %v3714_v51, 0.0  ;;  %v3427_v24 = vrot.slane %v3426_v19, 2 }
 0x34f   :  { %v2848_v5 = vmax.f32 %v2795_v29, 0.0  ;;  %v4102_v27 = vpop.permute.xlu0 %4101  ;;  %v2931_v60 = vrot.slane %v2851_v21, 4  ;;  %v3480_v6 = vsel %vm2975_vm11, %v2851_v21, -inf  ;;  %v3854_v46 = vrot.slane %v9486_v8, 2 }
 0x350   :  { %v3434_v3 = vrot.slane %v3433_v58, 2  ;;  %v3428_v22 = vmax.f32 %v3426_v19, %v3427_v24  ;;  %v3774_v55 = vrot.slane %v9486_v8, 1  ;;  %v3481_v31 = vrot.slane %v3480_v6, 4 }
 0x351   :  { %v2928_v48 = vrot.slane %v2848_v5, 4  ;;  %v3438_v53 = vsel %vm2975_vm11, %v2848_v5, -inf  ;;  %v3487_v28 = vsel %vm2975_vm11, %v2931_v60, -inf  ;;  %3889 = vrot.lane.b32.xlu0 %v3854_v46, %s6006_s20  ;;  %v4009_v29 = vrot.slane %v8983_v59, 4 }
 0x352   :  { %v2660_v44 = vpop.f32.mrf.mxu1  ;;  %v3439_v62 = vrot.slane %v3438_v53, 4  ;;  %v3435_v38 = vmax.f32 %v3433_v58, %v3434_v3  ;;  %v3488_v18 = vrot.slane %v3487_v28, 4  ;;  %3809 = vrot.lane.b32.xlu2 %v3774_v55, %s6007_s21  ;;  %v3429_v36 = vrot.slane %v3428_v22, 1 }
 0x353   :  { %v3445_v37 = vsel %vm2975_vm11, %v2928_v48, -inf  ;;  %v2661_v32 = vadd.f32 %v9282_v61, %v2660_v44  ;;  %v3482_v21 = vmax.f32 %v3480_v6, %v3481_v31  ;;  %v4413_v44 = vsel %vm2263_vm9, %v4009_v29, %v4102_v27 }
 0x354   :  { %v2806_v12 = vpop.f32.mrf.mxu3  ;;  %v3440_v0 = vmax.f32 %v3438_v53, %v3439_v62  ;;  %v3446_v35 = vrot.slane %v3445_v37, 4  ;;  %v2797_v63 = vpop.f32.mrf.mxu2  ;;  %v4610_v40 = vld.sshfl [vmem:[#allocation1] sm:$0xff pattern:$0x75316420]  ;;  %v3436_v34 = vrot.slane %v3435_v38, 1  ;;  %v3489_v57 = vmax.f32 %v3487_v28, %v3488_v18 }
 0x355   :  { %v2807_v15 = vadd.f32 %v2806_v12, %v2670_v39  ;;  %v2798_v42 = vadd.f32 %v2797_v63, %v2661_v32  ;;  %v9491_v10 = vpop.permute.xlu1 %3959  ;;  %4674 = vmatmul.f32.gmra.mxu3 %v4610_v40  ;;  %v3430_v48 = vmax.f32 %v3428_v22, %v3429_v36  ;;  %v9510_v12 = vpop.permute.xlu2 %3961  ;;  %v4353_v32 = vsel %vm2263_vm9, %v8983_v59, %v9479_v26 }
 0x356   :  { %v3441_v7 = vrot.slane %v3440_v0, 2  ;;  %v3447_v2 = vmax.f32 %v3445_v37, %v3446_v35  ;;  %v3437_v58 = vmax.f32 %v3435_v38, %v3436_v34  ;;  %v3490_v53 = vrot.slane %v3489_v57, 2 }
 0x357   :  { %v2849_v20 = vmax.f32 %v2798_v42, 0.0  ;;  %v4304_v52 = vpop.permute.xlu0 %4303  ;;  %v2852_v47 = vmax.f32 %v2807_v15, 0.0  ;;  %v2673_v37 = vadd.f32 %v9282_v61, %v9439_v23  ;;  %v4071_v27 = vrot.slane %v9486_v8, 5 }
 0x358   :  { %v3442_v43 = vmax.f32 %v3440_v0, %v3441_v7  ;;  %v3448_v45 = vrot.slane %v3447_v2, 2  ;;  %v3667_v0 = vsel %vm3616_vm12, %v3437_v58, %v3430_v48  ;;  %v3483_v35 = vrot.slane %v3482_v21, 2 }
 0x359   :  { %v2929_v54 = vrot.slane %v2849_v20, 4  ;;  %v3452_v56 = vsel %vm2975_vm11, %v2849_v20, -inf  ;;  %v2932_v19 = vrot.slane %v2852_v47, 4  ;;  %v3494_v28 = vsel %vm2975_vm11, %v2852_v47, -inf }
 0x35a   :  { %v3449_v16 = vmax.f32 %v3447_v2, %v3448_v45  ;;  %v3443_v4 = vrot.slane %v3442_v43, 1  ;;  %v3453_v3 = vrot.slane %v3452_v56, 4  ;;  %v2663_v15 = vpop.f32.mrf.mxu1  ;;  %v4072_v23 = vsel %vm596_vm2, %v4071_v27, %v7884_v50 }
 0x35b   :  { %v3459_v5 = vsel %vm2975_vm11, %v2929_v54, -inf  ;;  %v3501_v63 = vsel %vm2975_vm11, %v2932_v19, -inf  ;;  %v4433_v6 = vsel %vm258_vm1, %v4413_v44, %v9473_v1  ;;  %v3491_v26 = vmax.f32 %v3489_v57, %v3490_v53  ;;  %4111 = vrot.lane.b32.xlu1 %v4072_v23, %s6007_s21 }
 0x35c   :  { %v3450_v60 = vrot.slane %v3449_v16, 1  ;;  %v3444_v39 = vmax.f32 %v3442_v43, %v3443_v4  ;;  %v3460_v62 = vrot.slane %v3459_v5, 4  ;;  %v3454_v40 = vmax.f32 %v3452_v56, %v3453_v3  ;;  %v2809_v59 = vpop.f32.mrf.mxu3  ;;  %v2800_v55 = vpop.f32.mrf.mxu2 }
 0x35d   :  { %v9503_v51 = vpop.permute.xlu1 %4103  ;;  %v3495_v2 = vrot.slane %v3494_v28, 4  ;;  %v4453_v46 = vsel %vm2344_vm10, %v4433_v6, %v4304_v52  ;;  %v4373_v18 = vsel %vm258_vm1, %v4353_v32, %v9457_v13  ;;  %v2664_v43 = vadd.f32 %v9282_v61, %v2663_v15 }
 0x35e   :  { %v3461_v38 = vmax.f32 %v3459_v5, %v3460_v62  ;;  %v3451_v42 = vmax.f32 %v3449_v16, %v3450_v60  ;;  %v3668_v7 = vsel %vm3618_vm13, %v3444_v39, %v3667_v0  ;;  %v4513_v20 = vrot.slane %v4453_v46, 4  ;;  %v9534_v16 = vld.sshfl [vmem:[#allocation1 + $0x18] sm:$0xff pattern:$0x75316420] }
 0x35f   :  { %v9506_v24 = vpop.permute.xlu0 %3881  ;;  %v3502_v45 = vrot.slane %v3501_v63, 4  ;;  %v4393_v1 = vsel %vm2344_vm10, %v4373_v18, %v9491_v10  ;;  %v2810_v34 = vadd.f32 %v2809_v59, %v2673_v37  ;;  %v4172_v31 = vrot.slane %v9486_v8, 6 }
 0x360   :  { %v3462_v22 = vrot.slane %v3461_v38, 2  ;;  %v3669_v52 = vsel %vm3620_vm14, %v3451_v42, %v3668_v7  ;;  %v3455_v54 = vrot.slane %v3454_v40, 2  ;;  %v4533_v13 = vsel %vm1460_vm8, %v4393_v1, %v4513_v20 }
 0x361   :  { %v2801_v36 = vadd.f32 %v2800_v55, %v2664_v43  ;;  %v9538_v57 = vmax.f32 %v3482_v21, %v3483_v35  ;;  %v3492_v4 = vrot.slane %v3491_v26, 1  ;;  %4604 = vst [vmem:[#allocation1 + $0x10] ss:$2 sm:$0xff] %v4533_v13  ;;  %v2676_v10 = vadd.f32 %v9282_v61, %v9454_v33  ;;  %v9550_v61 = vpop.permute.xlu2 %3883 }
 0x362   :  { %v3463_v29 = vmax.f32 %v3461_v38, %v3462_v22  ;;  %v4173_v19 = vsel %vm1821_vm6, %v4172_v31, %v7912_v17  ;;  %v3715_v5 = vsel %vm596_vm2, 0.0, %v3669_v52  ;;  %v3496_v60 = vmax.f32 %v3494_v28, %v3495_v2 }
 0x363   :  { %v2850_v58 = vmax.f32 %v2801_v36, 0.0  ;;  %v2853_v44 = vmax.f32 %v2810_v34, 0.0  ;;  %4212 = vrot.lane.b32.xlu0 %v4173_v19, %s6006_s20  ;;  %v3934_v21 = vrot.slane %v9486_v8, 3  ;;  %v4354_v3 = vsel %vm2263_vm9, %v9249_v14, %v9493_v30 }
 0x364   :  { %v3503_v48 = vmax.f32 %v3501_v63, %v3502_v45  ;;  %v3456_v53 = vmax.f32 %v3454_v40, %v3455_v54  ;;  %v3485_v39 = vrot.slane %v9538_v57, 1  ;;  %v9553_v62 = vmax.f32 %v3491_v26, %v3492_v4  ;;  %v2812_v35 = vpop.f32.mrf.mxu3 }
 0x365   :  { %v9532_v47 = vpop.permute.xlu1 %4305  ;;  %v2930_v33 = vrot.slane %v2850_v58, 4  ;;  %v3466_v37 = vsel %vm2975_vm11, %v2850_v58, -inf  ;;  %3969 = vrot.lane.b32.xlu2 %v3934_v21, %s6005_s19  ;;  %v4273_v32 = vrot.slane %v9486_v8, 7  ;;  %v9559_v28 = vsel %vm797_vm7, %v3715_v5, 0.0 }
 0x366   :  { %v3464_v27 = vrot.slane %v3463_v29, 1  ;;  %v3467_v30 = vrot.slane %v3466_v37, 4  ;;  %v3497_v63 = vrot.slane %v3496_v60, 2  ;;  %v2933_v38 = vrot.slane %v2853_v44, 4 }
 0x367   :  { %v4205_v56 = vpop.permute.xlu0 %4204  ;;  %v3473_v0 = vsel %vm2975_vm11, %v2930_v33, -inf  ;;  %v4274_v42 = vsel %vm2042_vm4, %v4273_v32, %v7918_v25  ;;  %v3504_v23 = vrot.slane %v3503_v48, 2  ;;  %v3457_v6 = vrot.slane %v3456_v53, 1 }
 0x368   :  { %v3474_v15 = vrot.slane %v3473_v0, 4  ;;  %v3468_v59 = vmax.f32 %v3466_v37, %v3467_v30  ;;  %v4010_v26 = vrot.slane %v9249_v14, 4  ;;  %4313 = vrot.lane.b32.xlu1 %v4274_v42, %s6005_s19  ;;  %v3508_v7 = vsel %vm2975_vm11, %v2853_v44, -inf }
 0x369   :  { %v2813_v46 = vadd.f32 %v2812_v35, %v2676_v10  ;;  %v3855_v22 = vrot.slane %v9559_v28, 2  ;;  %v3465_v20 = vmax.f32 %v3463_v29, %v3464_v27  ;;  %v4073_v1 = vrot.slane %v9559_v28, 5 }
 0x36a   :  { %v3475_v2 = vmax.f32 %v3473_v0, %v3474_v15  ;;  %v3469_v43 = vrot.slane %v3468_v59, 2  ;;  %v4414_v45 = vsel %vm2263_vm9, %v4010_v26, %v9503_v51  ;;  %v3515_v55 = vsel %vm2975_vm11, %v2933_v38, -inf }
 0x36b   :  { %v2854_v14 = vmax.f32 %v2813_v46, 0.0  ;;  %v4434_v31 = vsel %vm258_vm1, %v4414_v45, %v4205_v56  ;;  %v4374_v54 = vsel %vm258_vm1, %v4354_v3, %v9506_v24  ;;  %v4074_v13 = vsel %vm596_vm2, %v4073_v1, %v7884_v50  ;;  %v4207_v24 = vpop.permute.xlu2 %4206 }
 0x36c   :  { %v3476_v34 = vrot.slane %v3475_v2, 2  ;;  %v3470_v52 = vmax.f32 %v3468_v59, %v3469_v43  ;;  %v3775_v36 = vrot.slane %v9559_v28, 1  ;;  %4113 = vrot.lane.b32.xlu0 %v4074_v13, %s6007_s21  ;;  %v4454_v56 = vsel %vm2344_vm10, %v4434_v31, %v9532_v47 }
 0x36d   :  { %v9564_v40 = vpop.permute.xlu1 %3803  ;;  %v2934_v10 = vrot.slane %v2854_v14, 4  ;;  %v3522_v51 = vsel %vm2975_vm11, %v2854_v14, -inf  ;;  %3891 = vrot.lane.b32.xlu2 %v3855_v22, %s6006_s20  ;;  %v3498_v29 = vmax.f32 %v3496_v60, %v3497_v63  ;;  %v3516_v58 = vrot.slane %v3515_v55, 4 }
 0x36e   :  { %v3477_v4 = vmax.f32 %v3475_v2, %v3476_v34  ;;  %v3471_v19 = vrot.slane %v3470_v52, 1  ;;  %v4514_v5 = vrot.slane %v4454_v56, 4  ;;  %v3458_v44 = vmax.f32 %v3456_v53, %v3457_v6 }
 0x36f   :  { %v4106_v18 = vpop.permute.xlu0 %4105  ;;  %v3523_v3 = vrot.slane %v3522_v51, 4  ;;  %v3529_v33 = vsel %vm2975_vm11, %v2934_v10, -inf  ;;  %v3509_v32 = vrot.slane %v3508_v7, 4  ;;  %v4394_v30 = vsel %vm2344_vm10, %v4374_v54, %v9510_v12 }
 0x370   :  { %v3478_v21 = vrot.slane %v3477_v4, 1  ;;  %v3472_v27 = vmax.f32 %v3470_v52, %v3471_v19  ;;  %3811 = vrot.lane.b32.xlu1 %v3775_v36, %s6007_s21  ;;  %v4174_v47 = vrot.slane %v9559_v28, 6  ;;  %v3505_v60 = vmax.f32 %v3503_v48, %v3504_v23 }
 0x371   :  { %v3670_v0 = vsel %vm3616_vm12, %v3465_v20, %v3458_v44  ;;  %v4534_v53 = vsel %vm1460_vm8, %v4394_v30, %v4514_v5  ;;  %v3517_v38 = vmax.f32 %v3515_v55, %v3516_v58  ;;  %v3530_v42 = vrot.slane %v3529_v33, 4 }
 0x372   :  { %v3479_v35 = vmax.f32 %v3477_v4, %v3478_v21  ;;  %v3671_v15 = vsel %vm3618_vm13, %v3472_v27, %v3670_v0  ;;  %4605 = vst [vmem:[#allocation1 + $0x11] ss:$2 sm:$0xff] %v4534_v53  ;;  %v4275_v6 = vrot.slane %v9559_v28, 7  ;;  %v3499_v59 = vrot.slane %v3498_v29, 1 }
 0x373   :  { %v3524_v26 = vmax.f32 %v3522_v51, %v3523_v3  ;;  %v4011_v2 = vrot.slane %v9299_v49, 4  ;;  %v3510_v48 = vmax.f32 %v3508_v7, %v3509_v32  ;;  %v4175_v46 = vsel %vm1821_vm6, %v4174_v47, %v7912_v17 }
 0x374   :  { %v3672_v12 = vsel %vm3620_vm14, %v3479_v35, %v3671_v15  ;;  %v4276_v22 = vsel %vm2042_vm4, %v4275_v6, %v7918_v25  ;;  %v3486_v20 = vmax.f32 %v9538_v57, %v3485_v39  ;;  %v3506_v43 = vrot.slane %v3505_v60, 1 }
 0x375   :  { %v3964_v37 = vpop.permute.xlu1 %3963  ;;  %v3716_v23 = vsel %vm596_vm2, 0.0, %v3672_v12  ;;  %4214 = vrot.lane.b32.xlu2 %v4175_v46, %s6006_s20  ;;  %4315 = vrot.lane.b32.xlu0 %v4276_v22, %s6005_s19  ;;  %v4415_v45 = vsel %vm2263_vm9, %v4011_v2, %v4106_v18  ;;  %v3518_v7 = vrot.slane %v3517_v38, 2  ;;  %v3531_v55 = vmax.f32 %v3529_v33, %v3530_v42  ;;  %v3806_v18 = vpop.permute.xlu2 %3805  ;;  %v9627_v33 = vld.sshfl [vmem:[#allocation1 + $0x28] sm:$0xff pattern:$0x75316420] }
 0x376   :  { %v9608_v1 = vsel %vm797_vm7, %v3716_v23, 0.0  ;;  %v3935_v34 = vrot.slane %v9559_v28, 3  ;;  %v3500_v14 = vmax.f32 %v3498_v29, %v3499_v59  ;;  %v3525_v31 = vrot.slane %v3524_v26, 2 }
 0x377   :  { %v4308_v63 = vpop.permute.xlu0 %4307  ;;  %v4355_v57 = vsel %vm2263_vm9, %v9299_v49, %v9564_v40  ;;  %v4435_v39 = vsel %vm258_vm1, %v4415_v45, %v4207_v24  ;;  %v3673_v52 = vsel %vm3616_vm12, %v9553_v62, %v3486_v20  ;;  %v3511_v54 = vrot.slane %v3510_v48, 2 }
 0x378   :  { %3971 = vrot.lane.b32.xlu1 %v3935_v34, %s6005_s19  ;;  %v4455_v13 = vsel %vm2344_vm10, %v4435_v39, %v4308_v63  ;;  %v3507_v4 = vmax.f32 %v3505_v60, %v3506_v43  ;;  %v3776_v10 = vrot.slane %v9608_v1, 1  ;;  %v3856_v56 = vrot.slane %v9608_v1, 2 }
 0x379   :  { %v4612_v51 = vld.sshfl [vmem:[#allocation1 + $0x10] sm:$0xff pattern:$0x75316420]  ;;  %v4075_v49 = vrot.slane %v9608_v1, 5  ;;  %v3519_v29 = vmax.f32 %v3517_v38, %v3518_v7  ;;  %v3532_v58 = vrot.slane %v3531_v55, 2  ;;  %v4375_v62 = vsel %vm258_vm1, %v4355_v57, %v9550_v61 }
 0x37a   :  { %4677 = vmatmul.f32.gmra.mxu3 %v4612_v51  ;;  %v4515_v19 = vrot.slane %v4455_v13, 4  ;;  %v3674_v24 = vsel %vm3618_vm13, %v3500_v14, %v3673_v52  ;;  %v3526_v5 = vmax.f32 %v3524_v26, %v3525_v31  ;;  %v4395_v44 = vsel %vm2344_vm10, %v4375_v62, %v3964_v37 }
 0x37b   :  { %v3512_v21 = vmax.f32 %v3510_v48, %v3511_v54  ;;  %v4076_v32 = vsel %vm596_vm2, %v4075_v49, %v7884_v50  ;;  %v3675_v61 = vsel %vm3620_vm14, %v3507_v4, %v3674_v24  ;;  %v3520_v27 = vrot.slane %v3519_v29, 1 }
 0x37c   :  { %v4535_v3 = vsel %vm1460_vm8, %v4395_v44, %v4515_v19  ;;  %v3533_v30 = vmax.f32 %v3531_v55, %v3532_v58  ;;  %v3527_v47 = vrot.slane %v3526_v5, 1  ;;  %v4012_v37 = vrot.slane %v9337_v41, 4 }
 0x37d   :  { %v4108_v36 = vpop.permute.xlu1 %4107  ;;  %3813 = vrot.lane.b32.xlu2 %v3776_v10, %s6007_s21  ;;  %3893 = vrot.lane.b32.xlu0 %v3856_v56, %s6006_s20  ;;  %4606 = vst [vmem:[#allocation1 + $0x20] ss:$2 sm:$0xff] %v4535_v3  ;;  %v3513_v60 = vrot.slane %v3512_v21, 1  ;;  %v4176_v0 = vrot.slane %v9608_v1, 6  ;;  %v3717_v35 = vsel %vm596_vm2, 0.0, %v3675_v61  ;;  %v4356_v53 = vsel %vm2263_vm9, %v9337_v41, %v3806_v18  ;;  %v3966_v6 = vpop.permute.xlu2 %3965 }
 0x37e   :  { %v4416_v63 = vsel %vm2263_vm9, %v4012_v37, %v4108_v36  ;;  %v3521_v15 = vmax.f32 %v3519_v29, %v3520_v27  ;;  %v3534_v42 = vrot.slane %v3533_v30, 1  ;;  %v3528_v2 = vmax.f32 %v3526_v5, %v3527_v47 }
 0x37f   :  { %v3886_v40 = vpop.permute.xlu0 %3885  ;;  %v3936_v48 = vrot.slane %v9608_v1, 3  ;;  %v4277_v23 = vrot.slane %v9608_v1, 7  ;;  %v3514_v22 = vmax.f32 %v3512_v21, %v3513_v60  ;;  %v4177_v41 = vsel %vm1821_vm6, %v4176_v0, %v7912_v17  ;;  %v9694_v60 = vld.sshfl [vmem:[#allocation1 + $0x38] sm:$0xff pattern:$0x75316420] }
 0x380   :  { %4115 = vrot.lane.b32.xlu1 %v4076_v32, %s6007_s21  ;;  %v4376_v59 = vsel %vm258_vm1, %v4356_v53, %v3886_v40  ;;  %v9649_v43 = vsel %vm797_vm7, %v3717_v35, 0.0  ;;  %v3535_v55 = vmax.f32 %v3533_v30, %v3534_v42  ;;  %v4013_v29 = vrot.slane %v9397_v9, 4 }
 0x381   :  { %v4396_v45 = vsel %vm2344_vm10, %v4376_v59, %v3966_v6  ;;  %v3676_v7 = vsel %vm3616_vm12, %v3521_v15, %v3514_v22  ;;  %v4278_v31 = vsel %vm2042_vm4, %v4277_v23, %v7918_v25  ;;  %v4077_v57 = vrot.slane %v9649_v43, 5  ;;  %v4574_v6 = vld [vmem:[%s9954_s5 + $0xf8] sm:$0xff]  ;;  %v4572_v59 = vld [vmem:[%s9954_s5 + $0xe8] sm:$0xff]  ;;  %v4569_v22 = vld [vmem:[%s9954_s5 + $0xd0] sm:$0xff] }
 0x382   :  { %v3677_v14 = vsel %vm3618_vm13, %v3528_v2, %v3676_v7  ;;  %v3857_v54 = vrot.slane %v9649_v43, 2  ;;  %v3777_v10 = vrot.slane %v9649_v43, 1  ;;  %v4178_v49 = vrot.slane %v9649_v43, 6  ;;  %4693 = vmatpush.msrb.mxu3 %v4574_v6  ;;  %v4571_v2 = vld [vmem:[%s9954_s5 + $0xe0] sm:$0xff] }
 0x383   :  { %v3678_v39 = vsel %vm3620_vm14, %v3535_v55, %v3677_v14  ;;  %v4078_v13 = vsel %vm596_vm2, %v4077_v57, %v7884_v50  ;;  %v4279_v40 = vrot.slane %v9649_v43, 7  ;;  %v3937_v42 = vrot.slane %v9649_v43, 3 }
 0x384   :  { %v3718_v36 = vsel %vm596_vm2, 0.0, %v3678_v39  ;;  %v4179_v24 = vsel %vm1821_vm6, %v4178_v49, %v7912_v17 }
 0x385   :  { %v4310_v12 = vpop.permute.xlu1 %4309  ;;  %3973 = vrot.lane.b32.xlu2 %v3936_v48, %s6005_s19  ;;  %4216 = vrot.lane.b32.xlu0 %v4177_v41, %s6006_s20  ;;  %v3888_v52 = vpop.permute.xlu2 %3887  ;;  %v9670_v56 = vsel %vm797_vm7, %v3718_v36, 0.0  ;;  %v4280_v5 = vsel %vm2042_vm4, %v4279_v40, %v7918_v25  ;;  %v4014_v41 = vrot.slane %v9486_v8, 4  ;;  %v4015_v36 = vrot.slane %v9559_v28, 4 }
 0x386   :  { %v4079_v62 = vrot.slane %v9670_v56, 5  ;;  %v3778_v35 = vrot.slane %v9670_v56, 1  ;;  %v4281_v53 = vrot.slane %v9670_v56, 7  ;;  %v3858_v15 = vrot.slane %v9670_v56, 2 }
 0x387   :  { %v4209_v38 = vpop.permute.xlu0 %4208 }
 0x388   :  { %v4436_v26 = vsel %vm258_vm1, %v4416_v63, %v4209_v38  ;;  %4317 = vrot.lane.b32.xlu1 %v4278_v31, %s6005_s19  ;;  %v4080_v27 = vsel %vm596_vm2, %v4079_v62, %v7884_v50  ;;  %v4282_v63 = vsel %vm2042_vm4, %v4281_v53, %v7918_v25  ;;  %v3938_v38 = vrot.slane %v9670_v56, 3  ;;  %v4573_v25 = vld [vmem:[%s9954_s5 + $0xf0] sm:$0xff] }
 0x389   :  { %v4456_v46 = vsel %vm2344_vm10, %v4436_v26, %v4310_v12  ;;  %4694 = vmatpush.msrb.mxu3 %v4573_v25  ;;  %vm4957_vm2 = vcmask 1047559  }
 0x38a   :  { %v4516_v20 = vrot.slane %v4456_v46, 4  ;;  %v4570_v46 = vld [vmem:[%s9954_s5 + $0xd8] sm:$0xff] }
 0x38b   :  { %4695 = vmatpush.msrb.mxu3 %v4572_v59  ;;  %v4561_v59 = vld [vmem:[%s9954_s5 + $0x90] sm:$0xff] }
 0x38c   :  { %v4536_v34 = vsel %vm1460_vm8, %v4396_v45, %v4516_v20 }
 0x38d   :  { %4607 = vst [vmem:[#allocation1 + $0x21] ss:$2 sm:$0xff] %v4536_v34  ;;  %3895 = vrot.lane.b32.xlu2 %v3857_v54, %s6006_s20  ;;  %4117 = vrot.lane.b32.xlu0 %v4078_v13, %s6007_s21  ;;  %v4211_v19 = vpop.permute.xlu2 %4210  ;;  %v4568_v13 = vld [vmem:[%s9954_s5 + $0xc8] sm:$0xff] }
 0x38e   :  { %4696 = vmatpush.msrb.mxu3 %v4571_v2 }
 0x390   :  { %3815 = vrot.lane.b32.xlu1 %v3777_v10, %s6007_s21  ;;  %4697 = vmatpush.msrb.mxu3 %v4570_v46  ;;  %v4566_v10 = vld [vmem:[%s9954_s5 + $0xb8] sm:$0xff] }
 0x391   :  { %v3808_v18 = vpop.permute.xlu1 %3807 }
 0x392   :  { %v4110_v4 = vpop.permute.xlu0 %4109  ;;  %v4357_v44 = vsel %vm2263_vm9, %v9397_v9, %v3808_v18  ;;  %v4180_v9 = vrot.slane %v9670_v56, 6  ;;  %4698 = vmatpush.msrb.mxu3 %v4569_v22 }
 0x393   :  { %v4417_v58 = vsel %vm2263_vm9, %v4013_v29, %v4110_v4  ;;  %v4377_v30 = vsel %vm258_vm1, %v4357_v44, %v3888_v52 }
 0x394   :  { %v4614_v51 = vld.sshfl [vmem:[#allocation1 + $0x20] sm:$0xff pattern:$0x75316420]  ;;  %v4437_v32 = vsel %vm258_vm1, %v4417_v58, %v4211_v19  ;;  %v4181_v50 = vsel %vm1821_vm6, %v4180_v9, %v7912_v17  ;;  %4699 = vmatpush.msrb.mxu3 %v4568_v13 }
 0x395   :  { %4680 = vmatmul.f32.gmra.mxu3 %v4614_v51  ;;  %4218 = vrot.lane.b32.xlu2 %v4179_v24, %s6006_s20  ;;  %v4563_v9 = vld [vmem:[%s9954_s5 + $0xa0] sm:$0xff] }
 0x396   :  { %4319 = vrot.lane.b32.xlu0 %v4280_v5, %s6005_s19 }
 0x398   :  { %4119 = vrot.lane.b32.xlu1 %v4080_v27, %s6007_s21 }
 0x399   :  { %v3968_v21 = vpop.permute.xlu1 %3967 }
 0x39a   :  { %v4312_v3 = vpop.permute.xlu0 %4311  ;;  %v4397_v37 = vsel %vm2344_vm10, %v4377_v30, %v3968_v21 }
 0x39b   :  { %v4457_v61 = vsel %vm2344_vm10, %v4437_v32, %v4312_v3  ;;  %v4565_v3 = vld [vmem:[%s9954_s5 + $0xb0] sm:$0xff]  ;;  %v9762_v32 = vld.sshfl [vmem:[#allocation1 + $0x8] sm:$0xff pattern:$0x75316420] }
 0x39c   :  { %v4517_v47 = vrot.slane %v4457_v61, 4 }
 0x39d   :  { %3817 = vrot.lane.b32.xlu2 %v3778_v35, %s6007_s21 }
 0x39e   :  { %v4537_v0 = vsel %vm1460_vm8, %v4397_v37, %v4517_v47  ;;  %4220 = vrot.lane.b32.xlu0 %v4181_v50, %s6006_s20  ;;  %v4562_v37 = vld [vmem:[%s9954_s5 + $0x98] sm:$0xff] }
 0x39f   :  { %4608 = vst [vmem:[#allocation1 + $0x30] ss:$2 sm:$0xff] %v4537_v0  ;;  %v4016_v0 = vrot.slane %v9608_v1, 4 }
 0x3a0   :  { %4321 = vrot.lane.b32.xlu1 %v4282_v63, %s6005_s19 }
 0x3a5   :  { %3977 = vrot.lane.b32.xlu2 %v3938_v38, %s6005_s19 }
 0x3a6   :  { %3897 = vrot.lane.b32.xlu0 %v3858_v15, %s6006_s20 }
 0x3a8   :  { %3975 = vrot.lane.b32.xlu1 %v3937_v42, %s6005_s19 }
 0x3ac   :  { %v3810_v17 = vpop.permute.xlu2 %3809 }
 0x3ad   :  { %v4358_v55 = vsel %vm2263_vm9, %v9486_v8, %v3810_v17  ;;  %v4567_v8 = vld [vmem:[%s9954_s5 + $0xc0] sm:$0xff] }
 0x3ae   :  { %4700 = vmatpush.msrb.mxu3 %v4567_v8 }
 0x3b0   :  { %4701 = vmatpush.msrb.mxu3 %v4566_v10 }
 0x3b2   :  { %4702 = vmatpush.msrb.mxu3 %v4565_v3 }
 0x3bf   :  { %v3970_v12 = vpop.permute.xlu2 %3969 }
 0x3c3   :  { %v3890_v26 = vpop.permute.xlu0 %3889 }
 0x3c4   :  { %v4378_v34 = vsel %vm258_vm1, %v4358_v55, %v3890_v26  ;;  %v4017_v55 = vrot.slane %v9649_v43, 4 }
 0x3c5   :  { %v4398_v52 = vsel %vm2344_vm10, %v4378_v34, %v3970_v12  ;;  %v4560_v12 = vld [vmem:[%s9954_s5 + $0x88] sm:$0xff] }
 0x3c7   :  { %v3892_v23 = vpop.permute.xlu2 %3891 }
 0x3cd   :  { %v4112_v48 = vpop.permute.xlu1 %4111 }
 0x3ce   :  { %v4418_v45 = vsel %vm2263_vm9, %v4014_v41, %v4112_v48 }
 0x3cf   :  { %v4215_v57 = vpop.permute.xlu2 %4214 }
 0x3d5   :  { %v4213_v20 = vpop.permute.xlu0 %4212 }
 0x3d6   :  { %v4438_v7 = vsel %vm258_vm1, %v4418_v45, %v4213_v20  ;;  %v4018_v45 = vrot.slane %v9670_v56, 4 }
 0x3d7   :  { %v3814_v49 = vpop.permute.xlu2 %3813 }
 0x3d8   :  { %v4360_v63 = vsel %vm2263_vm9, %v9608_v1, %v3814_v49  ;;  %v4613_v49 = vld.sshfl [vmem:[#allocation1 + $0x18] sm:$0xff pattern:$0x75316420] }
 0x3da   :  { %v4314_v14 = vpop.permute.xlu1 %4313 }
 0x3db   :  { %v4458_v31 = vsel %vm2344_vm10, %v4438_v7, %v4314_v14 }
 0x3dc   :  { %v4518_v39 = vrot.slane %v4458_v31, 4 }
 0x3de   :  { %v4538_v54 = vsel %vm1460_vm8, %v4398_v52, %v4518_v39  ;;  %v4114_v18 = vpop.permute.xlu0 %4113 }
 0x3df   :  { %4609 = vst [vmem:[#allocation1 + $0x31] ss:$2 sm:$0xff] %v4538_v54  ;;  %v4419_v51 = vsel %vm2263_vm9, %v4015_v36, %v4114_v18  ;;  %v3974_v30 = vpop.permute.xlu2 %3973 }
 0x3e0   :  { %v4439_v62 = vsel %vm258_vm1, %v4419_v51, %v4215_v57 }
 0x3e2   :  { %v3812_v4 = vpop.permute.xlu1 %3811 }
 0x3e3   :  { %v4359_v29 = vsel %vm2263_vm9, %v9559_v28, %v3812_v4  ;;  %v4564_v28 = vld [vmem:[%s9954_s5 + $0xa8] sm:$0xff] }
 0x3e4   :  { %v4379_v5 = vsel %vm258_vm1, %v4359_v29, %v3892_v23  ;;  %4703 = vmatpush.msrb.mxu3 %v4564_v28  ;;  %v4559_v23 = vld [vmem:[%s9954_s5 + $0x80] sm:$0xff] }
 0x3e6   :  { %v4616_v40 = vld.sshfl [vmem:[#allocation1 + $0x30] sm:$0xff pattern:$0x75316420]  ;;  %4704 = vmatpush.msrb.mxu3 %v4563_v9  ;;  %v9830_v9 = vld [vmem:[%s9955_s6] ss:$0 sm:$0xff] }
 0x3e7   :  { %4683 = vmatmul.f32.gmra.mxu3 %v4616_v40  ;;  %v4316_v58 = vpop.permute.xlu0 %4315  ;;  %v3896_v38 = vpop.permute.xlu2 %3895 }
 0x3e8   :  { %v4459_v19 = vsel %vm2344_vm10, %v4439_v62, %v4316_v58  ;;  %4705 = vmatpush.msrb.mxu3 %v4562_v37 }
 0x3e9   :  { %v4519_v24 = vrot.slane %v4459_v19, 4 }
 0x3ea   :  { %v3972_v44 = vpop.permute.xlu1 %3971  ;;  %4706 = vmatpush.msrb.mxu3 %v4561_v59 }
 0x3eb   :  { %v4399_v21 = vsel %vm2344_vm10, %v4379_v5, %v3972_v44  ;;  %v4663_v5 = vpop.f32.mrf.mxu3  ;;  %v4617_v44 = vld.sshfl [vmem:[#allocation1 + $0x38] sm:$0xff pattern:$0x75316420] }
 0x3ec   :  { %v4539_v61 = vsel %vm1460_vm8, %v4399_v21, %v4519_v24  ;;  %4707 = vmatpush.msrb.mxu3 %v4560_v12  ;;  %v4615_v24 = vld.sshfl [vmem:[#allocation1 + $0x28] sm:$0xff pattern:$0x75316420]  ;;  %v4664_v37 = vadd.f32 %v9830_v9, %v4663_v5  ;;  %v4920_v5 = vld [vmem:[%s9956_s7] sm:$0xff] }
 0x3ed   :  { %4618 = vst [vmem:[#allocation1] ss:$2 sm:$0xff] %v4539_v61 }
 0x3ee   :  { %4708 = vmatpush.msrb.mxu3 %v4559_v23 }
 0x3ef   :  { %v3894_v27 = vpop.permute.xlu0 %3893  ;;  %v4219_v48 = vpop.permute.xlu2 %4218 }
 0x3f0   :  { %v4380_v15 = vsel %vm258_vm1, %v4360_v63, %v3894_v27 }
 0x3f1   :  { %v4400_v25 = vsel %vm2344_vm10, %v4380_v15, %v3974_v30 }
 0x3f2   :  { %v4116_v47 = vpop.permute.xlu1 %4115 }
 0x3f3   :  { %v4420_v35 = vsel %vm2263_vm9, %v4016_v0, %v4116_v47  ;;  %v4666_v21 = vpop.f32.mrf.mxu3 }
 0x3f7   :  { %v4217_v53 = vpop.permute.xlu0 %4216  ;;  %v3818_v20 = vpop.permute.xlu2 %3817 }
 0x3f8   :  { %v4440_v50 = vsel %vm258_vm1, %v4420_v35, %v4217_v53  ;;  %v4362_v54 = vsel %vm2263_vm9, %v9670_v56, %v3818_v20  ;;  %v4922_v53 = vld [vmem:[%s9956_s7 + $0x10] sm:$0xff] }
 0x3fa   :  { %v4318_v42 = vpop.permute.xlu1 %4317 }
 0x3fb   :  { %v4460_v17 = vsel %vm2344_vm10, %v4440_v50, %v4318_v42  ;;  %v4669_v28 = vpop.f32.mrf.mxu3 }
 0x3fc   :  { %v4520_v6 = vrot.slane %v4460_v17, 4  ;;  %v4670_v23 = vadd.f32 %v9830_v9, %v4669_v28 }
 0x3fe   :  { %v4540_v26 = vsel %vm1460_vm8, %v4400_v25, %v4520_v6 }
 0x3ff   :  { %4619 = vst [vmem:[#allocation1 + $0x1] ss:$2 sm:$0xff] %v4540_v26  ;;  %v4118_v1 = vpop.permute.xlu0 %4117  ;;  %v3978_v36 = vpop.permute.xlu2 %3977 }
 0x400   :  { %v4421_v57 = vsel %vm2263_vm9, %v4017_v55, %v4118_v1 }
 0x401   :  { %v4441_v52 = vsel %vm258_vm1, %v4421_v57, %v4219_v48 }
 0x402   :  { %v3816_v2 = vpop.permute.xlu1 %3815 }
 0x403   :  { %v4361_v18 = vsel %vm2263_vm9, %v9649_v43, %v3816_v2 }
 0x404   :  { %v4381_v58 = vsel %vm258_vm1, %v4361_v18, %v3896_v38  ;;  %v4667_v38 = vadd.f32 %v9830_v9, %v4666_v21 }
 0x406   :  { %v4622_v46 = vld.sshfl [vmem:[#allocation1] sm:$0xff pattern:$0x75316420]  ;;  %v4623_v3 = vld.sshfl [vmem:[#allocation1 + $0x8] sm:$0xff pattern:$0x75316420] }
 0x407   :  { %4686 = vmatmul.f32.gmra.mxu3 %v4622_v46 }
 0x408   :  { %v4320_v22 = vpop.permute.xlu0 %4319 }
 0x409   :  { %v4461_v13 = vsel %vm2344_vm10, %v4441_v52, %v4320_v22 }
 0x40a   :  { %v4120_v41 = vpop.permute.xlu1 %4119  ;;  %v4521_v40 = vrot.slane %v4461_v13, 4 }
 0x40b   :  { %v4422_v34 = vsel %vm2263_vm9, %v4018_v45, %v4120_v41 }
 0x410   :  { %v4221_v7 = vpop.permute.xlu0 %4220 }
 0x411   :  { %v4442_v14 = vsel %vm258_vm1, %v4422_v34, %v4221_v7 }
 0x412   :  { %v4322_v31 = vpop.permute.xlu1 %4321 }
 0x413   :  { %v4462_v39 = vsel %vm2344_vm10, %v4442_v14, %v4322_v31 }
 0x414   :  { %v4522_v4 = vrot.slane %v4462_v39, 4  ;;  %v4921_v39 = vld [vmem:[%s9956_s7 + $0x8] sm:$0xff] }
 0x418   :  { %v3898_v8 = vpop.permute.xlu0 %3897 }
 0x419   :  { %v4382_v10 = vsel %vm258_vm1, %v4362_v54, %v3898_v8  ;;  %vm4952_vm1 = vcmask 1043459  }
 0x41a   :  { %v4402_v51 = vsel %vm2344_vm10, %v4382_v10, %v3978_v36  ;;  %v3976_v62 = vpop.permute.xlu1 %3975 }
 0x41b   :  { %v4542_v29 = vsel %vm1460_vm8, %v4402_v51, %v4522_v4  ;;  %v4401_v56 = vsel %vm2344_vm10, %v4381_v58, %v3976_v62 }
 0x41c   :  { %4621 = vst [vmem:[#allocation1 + $0x11] ss:$2 sm:$0xff] %v4542_v29  ;;  %v4541_v43 = vsel %vm1460_vm8, %v4401_v56, %v4521_v40 }
 0x41d   :  { %4620 = vst [vmem:[#allocation1 + $0x10] ss:$2 sm:$0xff] %v4541_v43 }
 0x424   :  { %v4624_v19 = vld.sshfl [vmem:[#allocation1 + $0x10] sm:$0xff pattern:$0x75316420]  ;;  %v4625_v61 = vld.sshfl [vmem:[#allocation1 + $0x18] sm:$0xff pattern:$0x75316420] }
 0x425   :  { %4689 = vmatmul.f32.gmra.mxu3 %v4624_v19 }
 0x42d   :  { %4709 = vmatmul.f32.vlgmr.msrb.gmra.mxu3 %v9449_v11  ;;  %v4672_v11 = vpop.f32.mrf.mxu3 }
 0x42e   :  { %v4673_v4 = vadd.f32 %v9830_v9, %v4672_v11 }
 0x435   :  { %4712 = vmatmul.f32.gmra.mxu3 %v9534_v16  ;;  %v9812_v16 = vpop.f32.mrf.mxu3 }
 0x43d   :  { %4715 = vmatmul.f32.gmra.mxu3 %v9627_v33  ;;  %v9814_v33 = vpop.f32.mrf.mxu3 }
 0x445   :  { %4718 = vmatmul.f32.gmra.mxu3 %v9694_v60  ;;  %v4923_v60 = vld [vmem:[%s9956_s7 + $0x18] sm:$0xff] }
 0x446   :  { %4987 = vmatpush.msra.mxu3 %v4923_v60 }
 0x448   :  { %4988 = vmatpush.msra.mxu3 %v4922_v53 }
 0x44a   :  { %4989 = vmatpush.msra.mxu3 %v4921_v39 }
 0x44c   :  { %4990 = vmatpush.msra.mxu3 %v4920_v5 }
 0x44d   :  { %4721 = vmatmul.f32.gmra.mxu3 %v9762_v32  ;;  %v9819_v32 = vpop.f32.mrf.mxu3 }
 0x455   :  { %4724 = vmatmul.f32.gmra.mxu3 %v4613_v49 }
 0x45d   :  { %4727 = vmatmul.f32.gmra.mxu3 %v4615_v24 }
 0x465   :  { %4730 = vmatmul.f32.gmra.mxu3 %v4617_v44 }
 0x46a   :  { %v9821_v27 = vpop.f32.mrf.mxu3 }
 0x46d   :  { %4733 = vmatmul.f32.gmra.mxu3 %v4623_v3 }
 0x475   :  { %4736 = vmatmul.f32.gmra.mxu3 %v4625_v61 }
 0x48a   :  { %v9823_v30 = vpop.f32.mrf.mxu3 }
 0x4a8   :  { %v9825_v47 = vpop.f32.mrf.mxu3 }
 0x4b0   :  { %v4710_v0 = vpop.f32.mrf.mxu3 }
 0x4b1   :  { %v4711_v35 = vadd.f32 %v4710_v0, %v4664_v37 }
 0x4b3   :  { %v4740_v50 = vmax.f32 %v4711_v35, 0.0 }
 0x4b5   :  { %v4760_v63 = vrot.slane %v4740_v50, 4  ;;  %v4780_v42 = vsel %vm2975_vm11, %v4740_v50, -inf }
 0x4b6   :  { %v4781_v59 = vrot.slane %v4780_v42, 4 }
 0x4b7   :  { %v4787_v15 = vsel %vm2975_vm11, %v4760_v63, -inf  ;;  %v4676_v63 = vadd.f32 %v9830_v9, %v9812_v16 }
 0x4b8   :  { %v4713_v17 = vpop.f32.mrf.mxu3  ;;  %v4788_v6 = vrot.slane %v4787_v15, 4  ;;  %v4782_v46 = vmax.f32 %v4780_v42, %v4781_v59 }
 0x4b9   :  { %v4714_v25 = vadd.f32 %v4713_v17, %v4667_v38 }
 0x4ba   :  { %v4789_v26 = vmax.f32 %v4787_v15, %v4788_v6  ;;  %v4783_v31 = vrot.slane %v4782_v46, 2 }
 0x4bb   :  { %v4741_v12 = vmax.f32 %v4714_v25, 0.0 }
 0x4bc   :  { %v4790_v7 = vrot.slane %v4789_v26, 2  ;;  %v4784_v10 = vmax.f32 %v4782_v46, %v4783_v31 }
 0x4bd   :  { %v4761_v1 = vrot.slane %v4741_v12, 4  ;;  %v4794_v2 = vsel %vm2975_vm11, %v4741_v12, -inf }
 0x4be   :  { %v4795_v48 = vrot.slane %v4794_v2, 4  ;;  %v4791_v52 = vmax.f32 %v4789_v26, %v4790_v7  ;;  %v4785_v44 = vrot.slane %v4784_v10, 1 }
 0x4bf   :  { %v4801_v22 = vsel %vm2975_vm11, %v4761_v1, -inf }
 0x4c0   :  { %v4796_v41 = vmax.f32 %v4794_v2, %v4795_v48  ;;  %v4802_v20 = vrot.slane %v4801_v22, 4  ;;  %v4716_v45 = vpop.f32.mrf.mxu3  ;;  %v4792_v58 = vrot.slane %v4791_v52, 1  ;;  %v4786_v38 = vmax.f32 %v4784_v10, %v4785_v44 }
 0x4c1   :  { %v4717_v55 = vadd.f32 %v4716_v45, %v4670_v23 }
 0x4c2   :  { %v4797_v34 = vrot.slane %v4796_v41, 2  ;;  %v4803_v14 = vmax.f32 %v4801_v22, %v4802_v20  ;;  %v4793_v61 = vmax.f32 %v4791_v52, %v4792_v58 }
 0x4c3   :  { %v4742_v57 = vmax.f32 %v4717_v55, 0.0 }
 0x4c4   :  { %v4804_v54 = vrot.slane %v4803_v14, 2  ;;  %v4798_v8 = vmax.f32 %v4796_v41, %v4797_v34  ;;  %v4949_v25 = vsel %vm4948_vm15, %v4793_v61, %v4786_v38 }
 0x4c5   :  { %v4762_v18 = vrot.slane %v4742_v57, 4  ;;  %v4808_v13 = vsel %vm2975_vm11, %v4742_v57, -inf  ;;  %v4679_v57 = vadd.f32 %v9830_v9, %v9814_v33 }
 0x4c6   :  { %v4809_v36 = vrot.slane %v4808_v13, 4  ;;  %v4805_v62 = vmax.f32 %v4803_v14, %v4804_v54  ;;  %v4799_v43 = vrot.slane %v4798_v8, 1 }
 0x4c7   :  { %v4815_v51 = vsel %vm2975_vm11, %v4762_v18, -inf }
 0x4c8   :  { %v4810_v49 = vmax.f32 %v4808_v13, %v4809_v36  ;;  %v4816_v40 = vrot.slane %v4815_v51, 4  ;;  %v4719_v29 = vpop.f32.mrf.mxu3  ;;  %v4806_v11 = vrot.slane %v4805_v62, 1  ;;  %v4800_v0 = vmax.f32 %v4798_v8, %v4799_v43 }
 0x4c9   :  { %v4720_v56 = vadd.f32 %v4719_v29, %v4673_v4 }
 0x4ca   :  { %v4811_v19 = vrot.slane %v4810_v49, 2  ;;  %v4817_v24 = vmax.f32 %v4815_v51, %v4816_v40  ;;  %v4807_v59 = vmax.f32 %v4805_v62, %v4806_v11  ;;  %v4951_v1 = vsel %vm4950_vm0, %v4800_v0, %v4949_v25 }
 0x4cb   :  { %v4743_v21 = vmax.f32 %v4720_v56, 0.0 }
 0x4cc   :  { %v4812_v3 = vmax.f32 %v4810_v49, %v4811_v19  ;;  %v4818_v28 = vrot.slane %v4817_v24, 2  ;;  %v4953_v41 = vsel %vm4952_vm1, %v4807_v59, %v4951_v1 }
 0x4cd   :  { %v4763_v60 = vrot.slane %v4743_v21, 4  ;;  %v4822_v37 = vsel %vm2975_vm11, %v4743_v21, -inf }
 0x4ce   :  { %v4813_v35 = vrot.slane %v4812_v3, 1  ;;  %v4819_v53 = vmax.f32 %v4817_v24, %v4818_v28  ;;  %v4823_v50 = vrot.slane %v4822_v37, 4  ;;  %v4682_v24 = vadd.f32 %v9830_v9, %v9819_v32 }
 0x4cf   :  { %v4829_v15 = vsel %vm2975_vm11, %v4763_v60, -inf }
 0x4d0   :  { %v4824_v42 = vmax.f32 %v4822_v37, %v4823_v50  ;;  %v4830_v17 = vrot.slane %v4829_v15, 4  ;;  %v4722_v6 = vpop.f32.mrf.mxu3  ;;  %v4820_v12 = vrot.slane %v4819_v53, 1  ;;  %v4814_v2 = vmax.f32 %v4812_v3, %v4813_v35 }
 0x4d1   :  { %v4723_v26 = vadd.f32 %v4722_v6, %v4676_v63  ;;  %v4685_v6 = vadd.f32 %v9830_v9, %v9821_v27 }
 0x4d2   :  { %v4825_v48 = vrot.slane %v4824_v42, 2  ;;  %v4831_v23 = vmax.f32 %v4829_v15, %v4830_v17  ;;  %v4821_v20 = vmax.f32 %v4819_v53, %v4820_v12  ;;  %v4954_v55 = vsel %vm3616_vm12, %v4814_v2, %v4953_v41 }
 0x4d3   :  { %v4744_v46 = vmax.f32 %v4723_v26, 0.0 }
 0x4d4   :  { %v4826_v16 = vmax.f32 %v4824_v42, %v4825_v48  ;;  %v4832_v22 = vrot.slane %v4831_v23, 2  ;;  %v4955_v4 = vsel %vm3618_vm13, %v4821_v20, %v4954_v55 }
 0x4d5   :  { %v4764_v45 = vrot.slane %v4744_v46, 4  ;;  %v4836_v7 = vsel %vm2975_vm11, %v4744_v46, -inf }
 0x4d6   :  { %v4827_v34 = vrot.slane %v4826_v16, 1  ;;  %v4833_v14 = vmax.f32 %v4831_v23, %v4832_v22  ;;  %v4837_v31 = vrot.slane %v4836_v7, 4 }
 0x4d7   :  { %v4843_v39 = vsel %vm2975_vm11, %v4764_v45, -inf }
 0x4d8   :  { %v4828_v52 = vmax.f32 %v4826_v16, %v4827_v34  ;;  %v4834_v54 = vrot.slane %v4833_v14, 1  ;;  %v4838_v18 = vmax.f32 %v4836_v7, %v4837_v31  ;;  %v4844_v13 = vrot.slane %v4843_v39, 4  ;;  %v4725_v8 = vpop.f32.mrf.mxu3  ;;  %v5016_v31 = vld [vmem:[%s9958_s9 + $0x60] sm:$0xf] }
 0x4d9   :  { %v4726_v36 = vadd.f32 %v4725_v8, %v4679_v57  ;;  %v5015_v57 = vld [vmem:[%s9958_s9 + $0x58] sm:$0xff]  ;;  %5311 = vmatpush.msk.msrb.mxu3 %vm1460_vm8, %v5016_v31  ;;  %v5014_v8 = vld [vmem:[%s9958_s9 + $0x50] sm:$0xff] }
 0x4da   :  { %v4835_v10 = vmax.f32 %v4833_v14, %v4834_v54  ;;  %v4845_v51 = vmax.f32 %v4843_v39, %v4844_v13  ;;  %v4956_v49 = vsel %vm3620_vm14, %v4828_v52, %v4955_v4  ;;  %v4839_v40 = vrot.slane %v4838_v18, 2 }
 0x4db   :  { %v4745_v29 = vmax.f32 %v4726_v36, 0.0  ;;  %5038 = vmatpush.msrb.mxu3 %v5015_v57 }
 0x4dc   :  { %v4846_v58 = vrot.slane %v4845_v51, 2  ;;  %v4958_v33 = vsel %vm4957_vm2, %v4835_v10, %v4956_v49  ;;  %v4840_v5 = vmax.f32 %v4838_v18, %v4839_v40  ;;  %v4688_v18 = vadd.f32 %v9830_v9, %v9823_v30  ;;  %v5013_v40 = vld [vmem:[%s9958_s9 + $0x48] sm:$0xff] }
 0x4dd   :  { %v4765_v62 = vrot.slane %v4745_v29, 4  ;;  %v4850_v56 = vsel %vm2975_vm11, %v4745_v29, -inf  ;;  %5308 = vmatmul.msk.f32.vlgmr.msra.gmra.mxu3 %vm2263_vm9, %v4958_v33 }
 0x4de   :  { %v4847_v43 = vmax.f32 %v4845_v51, %v4846_v58  ;;  %v4851_v19 = vrot.slane %v4850_v56, 4  ;;  %v4841_v0 = vrot.slane %v4840_v5, 1  ;;  %5039 = vmatpush.msrb.mxu3 %v5014_v8 }
 0x4df   :  { %v4857_v44 = vsel %vm2975_vm11, %v4765_v62, -inf  ;;  %v5012_v62 = vld [vmem:[%s9958_s9 + $0x40] sm:$0xff] }
 0x4e0   :  { %v4852_v21 = vmax.f32 %v4850_v56, %v4851_v19  ;;  %v4858_v3 = vrot.slane %v4857_v44, 4  ;;  %v4728_v28 = vpop.f32.mrf.mxu3  ;;  %v4848_v61 = vrot.slane %v4847_v43, 1  ;;  %v4842_v25 = vmax.f32 %v4840_v5, %v4841_v0  ;;  %5040 = vmatpush.msrb.mxu3 %v5013_v40 }
 0x4e1   :  { %v4729_v11 = vadd.f32 %v4728_v28, %v4682_v24 }
 0x4e2   :  { %v4853_v60 = vrot.slane %v4852_v21, 2  ;;  %v4859_v37 = vmax.f32 %v4857_v44, %v4858_v3  ;;  %v4849_v63 = vmax.f32 %v4847_v43, %v4848_v61  ;;  %v5011_v44 = vld [vmem:[%s9958_s9 + $0x38] sm:$0xff]  ;;  %5041 = vmatpush.msrb.mxu3 %v5012_v62 }
 0x4e3   :  { %v4746_v35 = vmax.f32 %v4729_v11, 0.0  ;;  %v4691_v11 = vadd.f32 %v9830_v9, %v9825_v47 }
 0x4e4   :  { %v4854_v53 = vmax.f32 %v4852_v21, %v4853_v60  ;;  %v4860_v50 = vrot.slane %v4859_v37, 2  ;;  %v4959_v23 = vsel %vm4948_vm15, %v4849_v63, %v4842_v25  ;;  %5042 = vmatpush.msrb.mxu3 %v5011_v44  ;;  %v5008_v25 = vld [vmem:[%s9958_s9 + $0x20] sm:$0xff] }
 0x4e5   :  { %v4766_v38 = vrot.slane %v4746_v35, 4  ;;  %v4864_v15 = vsel %vm2975_vm11, %v4746_v35, -inf }
 0x4e6   :  { %v4855_v42 = vrot.slane %v4854_v53, 1  ;;  %v4861_v32 = vmax.f32 %v4859_v37, %v4860_v50  ;;  %v4865_v17 = vrot.slane %v4864_v15, 4  ;;  %v5010_v37 = vld [vmem:[%s9958_s9 + $0x30] sm:$0xff] }
 0x4e7   :  { %v4871_v59 = vsel %vm2975_vm11, %v4766_v38, -inf  ;;  %5043 = vmatpush.msrb.mxu3 %v5010_v37 }
 0x4e8   :  { %v4856_v12 = vmax.f32 %v4854_v53, %v4855_v42  ;;  %v4862_v26 = vrot.slane %v4861_v32, 1  ;;  %v4866_v1 = vmax.f32 %v4864_v15, %v4865_v17  ;;  %v4872_v2 = vrot.slane %v4871_v59, 4  ;;  %v4731_v48 = vpop.f32.mrf.mxu3  ;;  %v5009_v42 = vld [vmem:[%s9958_s9 + $0x28] sm:$0xff] }
 0x4e9   :  { %v4732_v46 = vadd.f32 %v4731_v48, %v4685_v6  ;;  %5044 = vmatpush.msrb.mxu3 %v5009_v42 }
 0x4ea   :  { %v4863_v16 = vmax.f32 %v4861_v32, %v4862_v26  ;;  %v4960_v22 = vsel %vm4950_vm0, %v4856_v12, %v4959_v23  ;;  %v4867_v41 = vrot.slane %v4866_v1, 2  ;;  %v4873_v20 = vmax.f32 %v4871_v59, %v4872_v2  ;;  %v5007_v2 = vld [vmem:[%s9958_s9 + $0x18] sm:$0xff] }
 0x4eb   :  { %v4747_v45 = vmax.f32 %v4732_v46, 0.0  ;;  %5045 = vmatpush.msrb.mxu3 %v5008_v25 }
 0x4ec   :  { %v4868_v7 = vmax.f32 %v4866_v1, %v4867_v41  ;;  %v4874_v55 = vrot.slane %v4873_v20, 2  ;;  %v4961_v27 = vsel %vm4952_vm1, %v4863_v16, %v4960_v22 }
 0x4ed   :  { %v4767_v34 = vrot.slane %v4747_v45, 4  ;;  %v4878_v14 = vsel %vm2975_vm11, %v4747_v45, -inf  ;;  %5046 = vmatpush.msrb.mxu3 %v5007_v2 }
 0x4ee   :  { %v4869_v39 = vrot.slane %v4868_v7, 1  ;;  %v4875_v52 = vmax.f32 %v4873_v20, %v4874_v55  ;;  %v4879_v54 = vrot.slane %v4878_v14, 4 }
 0x4ef   :  { %v4885_v13 = vsel %vm2975_vm11, %v4767_v34, -inf }
 0x4f0   :  { %v4880_v36 = vmax.f32 %v4878_v14, %v4879_v54  ;;  %v4886_v4 = vrot.slane %v4885_v13, 4  ;;  %v4734_v10 = vpop.f32.mrf.mxu3  ;;  %v4876_v51 = vrot.slane %v4875_v52, 1  ;;  %v4870_v29 = vmax.f32 %v4868_v7, %v4869_v39 }
 0x4f1   :  { %v4735_v49 = vadd.f32 %v4734_v10, %v4688_v18  ;;  %v5005_v10 = vld [vmem:[%s9958_s9 + $0x8] sm:$0xff] }
 0x4f2   :  { %v4881_v58 = vrot.slane %v4880_v36, 2  ;;  %v4887_v33 = vmax.f32 %v4885_v13, %v4886_v4  ;;  %v4877_v19 = vmax.f32 %v4875_v52, %v4876_v51  ;;  %v4962_v61 = vsel %vm3616_vm12, %v4870_v29, %v4961_v27  ;;  %v5006_v4 = vld [vmem:[%s9958_s9 + $0x10] sm:$0xff]  ;;  %v5004_v51 = vld [vmem:[%s9958_s9] sm:$0xff] }
 0x4f3   :  { %v4748_v30 = vmax.f32 %v4735_v49, 0.0  ;;  %5047 = vmatpush.msrb.mxu3 %v5006_v4  ;;  %v5956_v49 = vld [vmem:[%s9957_s8] ss:$0 sm:$0xff]  ;;  %s6009_s8 = smov [#allocation2]  }
 0x4f4   :  { %v4882_v56 = vmax.f32 %v4880_v36, %v4881_v58  ;;  %v4888_v43 = vrot.slane %v4887_v33, 2  ;;  %v4963_v15 = vsel %vm3618_vm13, %v4877_v19, %v4962_v61 }
 0x4f5   :  { %v4768_v24 = vrot.slane %v4748_v30, 4  ;;  %v4892_v5 = vsel %vm2975_vm11, %v4748_v30, -inf  ;;  %5048 = vmatpush.msrb.mxu3 %v5005_v10 }
 0x4f6   :  { %v4883_v21 = vrot.slane %v4882_v56, 1  ;;  %v4889_v3 = vmax.f32 %v4887_v33, %v4888_v43  ;;  %v4893_v28 = vrot.slane %v4892_v5, 4 }
 0x4f7   :  { %v4899_v60 = vsel %vm2975_vm11, %v4768_v24, -inf  ;;  %5049 = vmatpush.msrb.mxu3 %v5004_v51  ;;  %v5957_v24 = vld [vmem:[%s9959_s10] ss:$0 sm:$0xff]  ;;  %s5177_s10 = sshll.u32 %s6009_s8, 4  ;;  %s5178_s10 = int_to_ptr.vmem [resolvable:$true] %s5177_s10 }
 0x4f8   :  { %v4884_v0 = vmax.f32 %v4882_v56, %v4883_v21  ;;  %v4894_v35 = vmax.f32 %v4892_v5, %v4893_v28  ;;  %v4900_v53 = vrot.slane %v4899_v60, 4  ;;  %v4737_v50 = vpop.f32.mrf.mxu3  ;;  %v4890_v63 = vrot.slane %v4889_v3, 1 }
 0x4f9   :  { %v4738_v38 = vadd.f32 %v4737_v50, %v4691_v11 }
 0x4fa   :  { %v4901_v47 = vmax.f32 %v4899_v60, %v4900_v53  ;;  %v4891_v9 = vmax.f32 %v4889_v3, %v4890_v63  ;;  %v4964_v32 = vsel %vm3620_vm14, %v4884_v0, %v4963_v15  ;;  %v4895_v17 = vrot.slane %v4894_v35, 2 }
 0x4fb   :  { %v4749_v6 = vmax.f32 %v4738_v38, 0.0 }
 0x4fc   :  { %v4902_v59 = vrot.slane %v4901_v47, 2  ;;  %v4965_v12 = vsel %vm4957_vm2, %v4891_v9, %v4964_v32  ;;  %v4896_v46 = vmax.f32 %v4894_v35, %v4895_v17 }
 0x4fd   :  { %v4769_v26 = vrot.slane %v4749_v6, 4  ;;  %v4906_v1 = vsel %vm2975_vm11, %v4749_v6, -inf  ;;  %5309 = vmatmul.msk.f32.gmra.mxu3 %vm2263_vm9, %v4965_v12 }
 0x4fe   :  { %v4903_v48 = vmax.f32 %v4901_v47, %v4902_v59  ;;  %v4907_v23 = vrot.slane %v4906_v1, 4  ;;  %v4897_v55 = vrot.slane %v4896_v46, 1 }
 0x4ff   :  { %v4913_v16 = vsel %vm2975_vm11, %v4769_v26, -inf }
 0x500   :  { %v4908_v22 = vmax.f32 %v4906_v1, %v4907_v23  ;;  %v4914_v41 = vrot.slane %v4913_v16, 4  ;;  %v4904_v20 = vrot.slane %v4903_v48, 1  ;;  %v4898_v39 = vmax.f32 %v4896_v46, %v4897_v55 }
 0x502   :  { %v4909_v45 = vrot.slane %v4908_v22, 2  ;;  %v4915_v7 = vmax.f32 %v4913_v16, %v4914_v41  ;;  %v4905_v14 = vmax.f32 %v4903_v48, %v4904_v20 }
 0x504   :  { %v4910_v27 = vmax.f32 %v4908_v22, %v4909_v45  ;;  %v4916_v34 = vrot.slane %v4915_v7, 2  ;;  %v4966_v18 = vsel %vm4948_vm15, %v4905_v14, %v4898_v39 }
 0x506   :  { %v4911_v31 = vrot.slane %v4910_v27, 1  ;;  %v4917_v57 = vmax.f32 %v4915_v7, %v4916_v34 }
 0x508   :  { %v4912_v52 = vmax.f32 %v4910_v27, %v4911_v31  ;;  %v4918_v54 = vrot.slane %v4917_v57, 1 }
 0x50a   :  { %v4919_v13 = vmax.f32 %v4917_v57, %v4918_v54  ;;  %v4967_v8 = vsel %vm4950_vm0, %v4912_v52, %v4966_v18 }
 0x50c   :  { %v4968_v36 = vsel %vm4952_vm1, %v4919_v13, %v4967_v8 }
 0x50d   :  { %5310 = vmatmul.msk.f32.gmra.mxu3 %vm2263_vm9, %v4968_v36 }
 0x560   :  { %v4992_v40 = vpop.f32.mrf.mxu3 }
 0x561   :  { %v4993_v29 = vadd.f32 %v5956_v49, %v4992_v40 }
 0x563   :  { %v5001_v58 = vmax.f32 %v4993_v29, 0.0 }
 0x565   :  { %5312 = vmatmul.msk.f32.vlgmr.msrb.gmra.mxu3 %vm5021_vm3, %v5001_v58 }
 0x580   :  { %v4995_v33 = vpop.f32.mrf.mxu3 }
 0x581   :  { %v4996_v30 = vadd.f32 %v5956_v49, %v4995_v33 }
 0x583   :  { %v5002_v62 = vmax.f32 %v4996_v30, 0.0 }
 0x585   :  { %5313 = vmatmul.msk.f32.gmra.mxu3 %vm5021_vm3, %v5002_v62 }
 0x590   :  { %v4998_v56 = vpop.f32.mrf.mxu3 }
 0x591   :  { %v4999_v43 = vadd.f32 %v5956_v49, %v4998_v56 }
 0x593   :  { %v5003_v19 = vmax.f32 %v4999_v43, 0.0 }
 0x595   :  { %5314 = vmatmul.msk.f32.gmra.mxu3 %vm5021_vm3, %v5003_v19 }
 0x5e8   :  { %v5051_v5 = vpop.f32.mrf.mxu3 }
 0x5e9   :  { %v5052_v44 = vadd.f32 %v5957_v24, %v5051_v5 }
 0x5eb   :  { %v5060_v21 = vsub.f32 0.0, %v5052_v44 }
 0x5ed   :  { %v5063_v3 = vmul.f32 1.442695, %v5060_v21 }
 0x5ef   :  { %5960 = vpow2.f32 %v5063_v3 }
 0x5f5   :  { %v5961_v28 = vpop.eup %5960 }
 0x5f6   :  { %v5069_v61 = vadd.f32 1.0, %v5961_v28 }
 0x5f8   :  { %5962 = vrcp.f32 %v5069_v61  ;;  %v5083_v0 = vand.u32 2147483648, %v5069_v61  ;;  %v5081_v53 = vand.u32 2147483647, %v5069_v61  ;;  %vm5077_vm5 = vweird.f32 %v5069_v61 }
 0x5fa   :  { %v5084_v63 = vor.u32 1.1754944e-38, %v5083_v0  ;;  %vm5082_vm8 = vcmp.eq.f32.partialorder %v5081_v53, 8.507059e+37 }
 0x5fe   :  { %v5963_v11 = vpop.eup %5962 }
 0x5ff   :  { %v5073_v60 = vmul.f32 %v5963_v11, %v5069_v61  ;;  %vm5078_vm4 = vweird.f32 %v5963_v11 }
 0x600   :  { %vm5079_vm7 = vmor %vm5077_vm5, %vm5078_vm4 }
 0x601   :  { %v5074_v37 = vsub.f32 1.0, %v5073_v60 }
 0x603   :  { %v5075_v35 = vmul.f32 %v5963_v11, %v5074_v37 }
 0x605   :  { %v5076_v50 = vadd.f32 %v5963_v11, %v5075_v35 }
 0x607   :  { %v5080_v38 = vsel %vm5079_vm7, %v5963_v11, %v5076_v50 }
 0x608   :  { %v5085_v15 = vsel %vm5082_vm8, %v5084_v63, %v5080_v38  ;;  %v5054_v42 = vpop.f32.mrf.mxu3 }
 0x609   :  { %v5120_v47 = vrot.slane %v5085_v15, 2  ;;  %v5121_v9 = vrot.slane %v5085_v15, 4  ;;  %v5122_v32 = vrot.slane %v5085_v15, 6  ;;  %5127 = vst [vmem:[#allocation1] ss:$4 sm:$0xff] %v5085_v15  ;;  %v5055_v17 = vadd.f32 %v5957_v24, %v5054_v42 }
 0x60b   :  { %5129 = vst [vmem:[#allocation1 + $0x1] ss:$4 sm:$0xff] %v5120_v47  ;;  %v5061_v6 = vsub.f32 0.0, %v5055_v17 }
 0x60c   :  { %5131 = vst [vmem:[#allocation1 + $0x2] ss:$4 sm:$0xff] %v5121_v9 }
 0x60d   :  { %5133 = vst [vmem:[#allocation1 + $0x3] ss:$4 sm:$0xff] %v5122_v32  ;;  %v5065_v25 = vmul.f32 1.442695, %v5061_v6 }
 0x60f   :  { %5964 = vpow2.f32 %v5065_v25 }
 0x614   :  { %v5136_v52 = vld.sshfl [vmem:[#allocation1] sm:$0xff pattern:$0x73625140] }
 0x615   :  { %v5965_v59 = vpop.eup %5964 }
 0x616   :  { %v5070_v12 = vadd.f32 1.0, %v5965_v59 }
 0x618   :  { %5966 = vrcp.f32 %v5070_v12  ;;  %v5057_v26 = vpop.f32.mrf.mxu3  ;;  %v5098_v22 = vand.u32 2147483648, %v5070_v12  ;;  %v5096_v20 = vand.u32 2147483647, %v5070_v12  ;;  %vm5092_vm10 = vweird.f32 %v5070_v12 }
 0x619   :  { %v5058_v1 = vadd.f32 %v5957_v24, %v5057_v26 }
 0x61a   :  { %v5099_v55 = vor.u32 1.1754944e-38, %v5098_v22  ;;  %vm5097_vm12 = vcmp.eq.f32.partialorder %v5096_v20, 8.507059e+37 }
 0x61b   :  { %v5062_v2 = vsub.f32 0.0, %v5058_v1 }
 0x61d   :  { %v5067_v48 = vmul.f32 1.442695, %v5062_v2 }
 0x61e   :  { %v5967_v23 = vpop.eup %5966 }
 0x61f   :  { %v5088_v46 = vmul.f32 %v5967_v23, %v5070_v12  ;;  %5968 = vpow2.f32 %v5067_v48  ;;  %vm5093_vm9 = vweird.f32 %v5967_v23 }
 0x620   :  { %vm5094_vm11 = vmor %vm5092_vm10, %vm5093_vm9 }
 0x621   :  { %v5089_v16 = vsub.f32 1.0, %v5088_v46 }
 0x623   :  { %v5090_v41 = vmul.f32 %v5967_v23, %v5089_v16 }
 0x625   :  { %v5969_v45 = vpop.eup %5968  ;;  %v5091_v7 = vadd.f32 %v5967_v23, %v5090_v41 }
 0x626   :  { %v5071_v27 = vadd.f32 1.0, %v5969_v45 }
 0x627   :  { %v5095_v34 = vsel %vm5094_vm11, %v5967_v23, %v5091_v7 }
 0x628   :  { %v5100_v14 = vsel %vm5097_vm12, %v5099_v55, %v5095_v34  ;;  %5970 = vrcp.f32 %v5071_v27  ;;  %v5113_v36 = vand.u32 2147483648, %v5071_v27  ;;  %v5111_v10 = vand.u32 2147483647, %v5071_v27 }
 0x629   :  { %v5123_v31 = vrot.slane %v5100_v14, 2  ;;  %v5124_v57 = vrot.slane %v5100_v14, 4  ;;  %v5125_v39 = vrot.slane %v5100_v14, 6  ;;  %5135 = vst [vmem:[#allocation1 + $0x20] ss:$4 sm:$0xff] %v5100_v14  ;;  %vm5107_vm14 = vweird.f32 %v5071_v27 }
 0x62a   :  { %v5114_v40 = vor.u32 1.1754944e-38, %v5113_v36  ;;  %vm5112_vm1 = vcmp.eq.f32.partialorder %v5111_v10, 8.507059e+37 }
 0x62b   :  { %5138 = vst [vmem:[#allocation1] ss:$4 sm:$0xff] %v5123_v31 }
 0x62c   :  { %5139 = vst [vmem:[#allocation1 + $0x1] ss:$4 sm:$0xff] %v5124_v57 }
 0x62d   :  { %5140 = vst [vmem:[#allocation1 + $0x2] ss:$4 sm:$0xff] %v5125_v39 }
 0x62e   :  { %v5971_v54 = vpop.eup %5970 }
 0x62f   :  { %v5103_v18 = vmul.f32 %v5971_v54, %v5071_v27  ;;  %vm5108_vm13 = vweird.f32 %v5971_v54 }
 0x630   :  { %v5137_v13 = vld.sshfl [vmem:[#allocation1 + $0x20] sm:$0xff pattern:$0x73625140]  ;;  %vm5109_vm0 = vmor %vm5107_vm14, %vm5108_vm13 }
 0x631   :  { %v5104_v8 = vsub.f32 1.0, %v5103_v18  ;;  %v5149_v51 = vsel %vm1821_vm6, %v5137_v13, 0.0 }
 0x632   :  { %v5150_v29 = vadd.f32 %v5149_v51, %v5136_v52 }
 0x633   :  { %v5105_v4 = vmul.f32 %v5971_v54, %v5104_v8 }
 0x634   :  { %v5151_v62 = vrot.slane %v5150_v29, 4 }
 0x635   :  { %v5106_v49 = vadd.f32 %v5971_v54, %v5105_v4 }
 0x636   :  { %v5152_v56 = vadd.f32 %v5151_v62, %v5150_v29 }
 0x637   :  { %v5110_v58 = vsel %vm5109_vm0, %v5971_v54, %v5106_v49 }
 0x638   :  { %v5115_v33 = vsel %vm5112_vm1, %v5114_v40, %v5110_v58  ;;  %v5153_v19 = vrot.slane %v5152_v56, 2 }
 0x639   :  { %v5126_v30 = vrot.slane %v5115_v33, 2  ;;  %5141 = vst [vmem:[#allocation1 + $0x3] ss:$4 sm:$0xff] %v5115_v33 }
 0x63a   :  { %v5154_v21 = vadd.f32 %v5153_v19, %v5152_v56 }
 0x63b   :  { %5142 = vst [vmem:[#allocation1 + $0x20] ss:$4 sm:$0xff] %v5126_v30 }
 0x63c   :  { %v5155_v61 = vrot.slane %v5154_v21, 1 }
 0x63e   :  { %v5156_v37 = vadd.f32 %v5155_v61, %v5154_v21 }
 0x640   :  { %v5143_v24 = vld.sshfl [vmem:[#allocation1] sm:$0xff pattern:$0x73625140]  ;;  %v5165_v53 = vmul.f32 0.1, %v5156_v37 }
 0x642   :  { %v5144_v43 = vld.sshfl [vmem:[#allocation1 + $0x20] sm:$0xff pattern:$0x73625140] }
 0x643   :  { %v5157_v5 = vsel %vm1821_vm6, %v5144_v43, 0.0 }
 0x644   :  { %v5158_v44 = vadd.f32 %v5157_v5, %v5143_v24 }
 0x646   :  { %v5159_v3 = vrot.slane %v5158_v44, 4 }
 0x648   :  { %v5160_v28 = vadd.f32 %v5159_v3, %v5158_v44 }
 0x64a   :  { %v5161_v11 = vrot.slane %v5160_v28, 2 }
 0x64c   :  { %v5162_v60 = vadd.f32 %v5161_v11, %v5160_v28 }
 0x64e   :  { %v5163_v0 = vrot.slane %v5162_v60, 1 }
 0x650   :  { %v5164_v35 = vadd.f32 %v5163_v0, %v5162_v60 }
 0x652   :  { %v5166_v50 = vmul.f32 0.1, %v5164_v35 }
 0x654   :  { %v5169_v63 = vsel %vm4948_vm15, %v5166_v50, %v5165_v53 }
 0x655   :  { %5171 = vst [vmem:[#allocation2] sm:$0x3] %v5169_v63 }
 0x656   :  { %5182 = dma.vmem_to_hbm [thread:$0]  %s5178_s10, 32, %s5180_s1, [#allocation3]  }
 0x657   :  { %6002 = dma.done.wait [#allocation3], 32  }
 0x658   :  { %6003 = vsyncadd [#allocation3], 4294967264 }
 0x659   :  { %5187 = vsyncpa [#allocation3], 1 }

</bundles_post_ra>
